<compile_context>
chip_gen: v7x
topology: tpu7x:2x2x1
jax: 0.10.0
libtpu: 0.0.40
codegen_flags: <defaults>
</compile_context>

<pallas_src>
import math
import jax
import jax.numpy as jnp
from jax import lax
from jax.experimental import pallas as pl
from jax.experimental.pallas import tpu as pltpu

CIN, COUT, K = 43, 2, 18        # fixed by the PyTorch module: Conv2d(43, 2, 18)
CIN_PAD = 48                    # 43 padded to a multiple of 8 -> aligned row slices


def _make_conv_tanh_kernel(B_TILE, H, W):
    HO, WO = H - K + 1, W - K + 1

    def kernel(x_ref, w_ref, b_ref, o_ref):
        # x_ref: (B_TILE, H*CIN_PAD, W)  bf16 ; row index = h*CIN_PAD + ci
        # w_ref: (K*COUT, K*CIN_PAD)     bf16 ; row = kw*COUT + co, col = kh*CIN_PAD + ci
        # b_ref: (COUT, 1)               f32
        # o_ref: (B_TILE, HO, COUT, WO)  f32
        w_full = w_ref[...]                                   # stationary LHS (36, 864)
        bias = b_ref[...]                                     # (COUT, 1)

        for b in range(B_TILE):                               # static unroll
            for ho in range(HO):                              # static unroll over output rows
                # Static, 16-aligned window: x rows for h = ho .. ho+K-1, all channels.
                xwin = x_ref[b, ho * CIN_PAD:(ho + K) * CIN_PAD, :]      # (K*CIN_PAD, W)
                # One MXU call per output row: all kh, kw taps and both channels.
                part = jnp.dot(w_full, xwin,
                               preferred_element_type=jnp.float32)       # (K*COUT, W)
                # Realign the kw taps to output columns (done once per row),
                # pairwise-tree accumulation to shorten the dependency chain.
                terms = [part[kw * COUT:(kw + 1) * COUT, kw:kw + WO] for kw in range(K)]
                while len(terms) > 1:
                    nxt = [terms[i] + terms[i + 1] for i in range(0, len(terms) - 1, 2)]
                    if len(terms) % 2:
                        nxt.append(terms[-1])
                    terms = nxt
                o_ref[b, ho] = jnp.tanh(terms[0] + bias)      # (COUT, WO)

    return kernel


def conv2d_tanh(x_nchw, w_oihw, bias):
    """tanh(conv2d(x, w) + b), VALID padding, stride 1. NCHW in / NCHW out."""
    N, Cin, H, W = x_nchw.shape
    assert Cin == CIN and H >= K and W >= K
    HO, WO = H - K + 1, W - K + 1

    # Largest batch tile dividing N (amortizes per-grid-step pipeline overhead).
    B_TILE = 1
    for cand in (16, 8, 4, 2, 1):
        if N % cand == 0:
            B_TILE = cand
            break

    # ---- layout plumbing in the wrapper (cheap XLA transposes/reshapes) ----
    # Zero-pad channels 43 -> 48 on BOTH x and w (zero channels contribute nothing).
    x_pad = jnp.pad(x_nchw, ((0, 0), (0, CIN_PAD - CIN), (0, 0), (0, 0)))
    # (N, CIN_PAD, H, W) -> (N, H, CIN_PAD, W) -> (N, H*CIN_PAD, W), bf16
    x_k = jnp.transpose(x_pad, (0, 2, 1, 3)).reshape(N, H * CIN_PAD, W).astype(jnp.bfloat16)

    w_pad = jnp.pad(w_oihw, ((0, 0), (0, CIN_PAD - CIN), (0, 0), (0, 0)))   # (COUT, CIN_PAD, K, K)
    # row = kw*COUT + co ; col = kh*CIN_PAD + ci
    w_k = jnp.transpose(w_pad, (3, 0, 2, 1)).reshape(K * COUT, K * CIN_PAD).astype(jnp.bfloat16)

    b_k = bias.reshape(COUT, 1).astype(jnp.float32)

    out = pl.pallas_call(
        _make_conv_tanh_kernel(B_TILE, H, W),
        out_shape=jax.ShapeDtypeStruct((N, HO, COUT, WO), jnp.float32),
        grid=(N // B_TILE,),
        in_specs=[
            # B_TILE images, channels folded into the sublane axis (~0.3 MB/image bf16)
            pl.BlockSpec((B_TILE, H * CIN_PAD, W), lambda n: (n, 0, 0)),
            # full weight, compact (36, 864) layout
            pl.BlockSpec((K * COUT, K * CIN_PAD), lambda n: (0, 0)),
            # bias
            pl.BlockSpec((COUT, 1), lambda n: (0, 0)),
        ],
        out_specs=pl.BlockSpec((B_TILE, HO, COUT, WO), lambda n: (n, 0, 0, 0)),
        compiler_params=pltpu.CompilerParams(
            dimension_semantics=("parallel",)),   # batch tiles shard across v7x's 2 TCs
    )(x_k, w_k, b_k)

    return jnp.transpose(out, (0, 2, 1, 3))       # (N, COUT, HO, WO) == NCHW


if __name__ == "__main__":
    # Small shapes consistent with the module: Cin=43 is fixed and spatial must
    # be >= kernel=18; keep batch / spatial small.
    N, H, W = 2, 24, 32
    key = jax.random.PRNGKey(0)
    kx, kw_key, kb_key = jax.random.split(key, 3)

    x = jax.random.uniform(kx, (N, CIN, H, W), jnp.float32)            # like torch.rand

    # Deterministic Conv2d-style init: U(-1/sqrt(fan_in), 1/sqrt(fan_in))
    fan_in = CIN * K * K
    bound = 1.0 / math.sqrt(fan_in)
    w = jax.random.uniform(kw_key, (COUT, CIN, K, K), jnp.float32, -bound, bound)
    b = jax.random.uniform(kb_key, (COUT,), jnp.float32, -bound, bound)

    out = jax.block_until_ready(jax.jit(conv2d_tanh)(x, w, b))
    assert out.shape == (N, COUT, H - K + 1, W - K + 1)

    # Pure-JAX high-precision reference for correctness.
    ref = lax.conv_general_dilated(
        x, w, window_strides=(1, 1), padding="VALID",
        dimension_numbers=("NCHW", "OIHW", "NCHW"),
        precision=lax.Precision.HIGHEST)
    ref = jnp.tanh(ref + b.reshape(1, COUT, 1, 1))

    # bf16 MXU inputs, f32 accumulation over a ~14k-deep contraction -> ~1e-3 max abs error.
    err = float(jnp.max(jnp.abs(out - ref)))
    assert err < 5e-3, err

    print("KERNEL_OK")
</pallas_src>

<mosaic_0001>
module attributes {stable_mosaic.version = 11 : i64} {
  func.func @kernel(%arg0: i32, %arg1: memref<2x1152x32xbf16, #tpu.memory_space<vmem>>, %arg2: memref<36x864xbf16, #tpu.memory_space<vmem>>, %arg3: memref<2x1xf32, #tpu.memory_space<vmem>>, %arg4: memref<2x7x2x15xf32, #tpu.memory_space<vmem>>) attributes {dimension_semantics = [#tpu.dimension_semantics<parallel>], iteration_bounds = array<i64: 1>, scalar_prefetch = 0 : i64, scratch_operands = 0 : i64, tpu.core_type = #tpu.core_type<tc>, window_params = [{transform_indices = @transform_0, window_bounds = array<i64: 2, 1152, 32>}, {pipeline_mode = #tpu.pipeline_mode<synchronous>, transform_indices = @transform_1, window_bounds = array<i64: 36, 864>}, {pipeline_mode = #tpu.pipeline_mode<synchronous>, transform_indices = @transform_2, window_bounds = array<i64: 2, 1>}, {transform_indices = @transform_3, window_bounds = array<i64: 2, 7, 2, 15>}]} {
    %c0 = arith.constant 0 : index
    %c0_0 = arith.constant 0 : index
    %0 = vector.load %arg2[%c0, %c0_0] : memref<36x864xbf16, #tpu.memory_space<vmem>>, vector<36x864xbf16>
    %c0_1 = arith.constant 0 : index
    %c0_2 = arith.constant 0 : index
    %1 = vector.load %arg3[%c0_1, %c0_2] : memref<2x1xf32, #tpu.memory_space<vmem>>, vector<2x1xf32>
    %c0_3 = arith.constant 0 : index
    %c0_4 = arith.constant 0 : index
    %c0_5 = arith.constant 0 : index
    %2 = vector.load %arg1[%c0_3, %c0_4, %c0_5] : memref<2x1152x32xbf16, #tpu.memory_space<vmem>>, vector<1x864x32xbf16>
    %3 = vector.shape_cast %2 : vector<1x864x32xbf16> to vector<864x32xbf16>
    %cst = arith.constant dense<0.000000e+00> : vector<36x32xf32>
    %4 = tpu.matmul %0, %3, %cst {dimension_numbers = #tpu.dot_dimension_numbers<[1], [0], [0], [1], [0, 0, 1, 1], [], []>} : vector<36x864xbf16>, vector<864x32xbf16>, vector<36x32xf32> -> vector<36x32xf32>
    %5 = vector.extract_strided_slice %4 {offsets = [0, 0], sizes = [2, 15], strides = [1, 1]} : vector<36x32xf32> to vector<2x15xf32>
    %6 = vector.extract_strided_slice %4 {offsets = [2, 1], sizes = [2, 15], strides = [1, 1]} : vector<36x32xf32> to vector<2x15xf32>
    %7 = vector.extract_strided_slice %4 {offsets = [4, 2], sizes = [2, 15], strides = [1, 1]} : vector<36x32xf32> to vector<2x15xf32>
    %8 = vector.extract_strided_slice %4 {offsets = [6, 3], sizes = [2, 15], strides = [1, 1]} : vector<36x32xf32> to vector<2x15xf32>
    %9 = vector.extract_strided_slice %4 {offsets = [8, 4], sizes = [2, 15], strides = [1, 1]} : vector<36x32xf32> to vector<2x15xf32>
    %10 = vector.extract_strided_slice %4 {offsets = [10, 5], sizes = [2, 15], strides = [1, 1]} : vector<36x32xf32> to vector<2x15xf32>
    %11 = vector.extract_strided_slice %4 {offsets = [12, 6], sizes = [2, 15], strides = [1, 1]} : vector<36x32xf32> to vector<2x15xf32>
    %12 = vector.extract_strided_slice %4 {offsets = [14, 7], sizes = [2, 15], strides = [1, 1]} : vector<36x32xf32> to vector<2x15xf32>
    %13 = vector.extract_strided_slice %4 {offsets = [16, 8], sizes = [2, 15], strides = [1, 1]} : vector<36x32xf32> to vector<2x15xf32>
    %14 = vector.extract_strided_slice %4 {offsets = [18, 9], sizes = [2, 15], strides = [1, 1]} : vector<36x32xf32> to vector<2x15xf32>
    %15 = vector.extract_strided_slice %4 {offsets = [20, 10], sizes = [2, 15], strides = [1, 1]} : vector<36x32xf32> to vector<2x15xf32>
    %16 = vector.extract_strided_slice %4 {offsets = [22, 11], sizes = [2, 15], strides = [1, 1]} : vector<36x32xf32> to vector<2x15xf32>
    %17 = vector.extract_strided_slice %4 {offsets = [24, 12], sizes = [2, 15], strides = [1, 1]} : vector<36x32xf32> to vector<2x15xf32>
    %18 = vector.extract_strided_slice %4 {offsets = [26, 13], sizes = [2, 15], strides = [1, 1]} : vector<36x32xf32> to vector<2x15xf32>
    %19 = vector.extract_strided_slice %4 {offsets = [28, 14], sizes = [2, 15], strides = [1, 1]} : vector<36x32xf32> to vector<2x15xf32>
    %20 = vector.extract_strided_slice %4 {offsets = [30, 15], sizes = [2, 15], strides = [1, 1]} : vector<36x32xf32> to vector<2x15xf32>
    %21 = vector.extract_strided_slice %4 {offsets = [32, 16], sizes = [2, 15], strides = [1, 1]} : vector<36x32xf32> to vector<2x15xf32>
    %22 = vector.extract_strided_slice %4 {offsets = [34, 17], sizes = [2, 15], strides = [1, 1]} : vector<36x32xf32> to vector<2x15xf32>
    %23 = arith.addf %5, %6 : vector<2x15xf32>
    %24 = arith.addf %7, %8 : vector<2x15xf32>
    %25 = arith.addf %9, %10 : vector<2x15xf32>
    %26 = arith.addf %11, %12 : vector<2x15xf32>
    %27 = arith.addf %13, %14 : vector<2x15xf32>
    %28 = arith.addf %15, %16 : vector<2x15xf32>
    %29 = arith.addf %17, %18 : vector<2x15xf32>
    %30 = arith.addf %19, %20 : vector<2x15xf32>
    %31 = arith.addf %21, %22 : vector<2x15xf32>
    %32 = arith.addf %23, %24 : vector<2x15xf32>
    %33 = arith.addf %25, %26 : vector<2x15xf32>
    %34 = arith.addf %27, %28 : vector<2x15xf32>
    %35 = arith.addf %29, %30 : vector<2x15xf32>
    %36 = arith.addf %32, %33 : vector<2x15xf32>
    %37 = arith.addf %34, %35 : vector<2x15xf32>
    %38 = arith.addf %36, %37 : vector<2x15xf32>
    %39 = arith.addf %38, %31 : vector<2x15xf32>
    %40 = vector.broadcast %1 : vector<2x1xf32> to vector<2x15xf32>
    %41 = arith.addf %39, %40 : vector<2x15xf32>
    %42 = math.tanh %41 : vector<2x15xf32>
    %c0_6 = arith.constant 0 : index
    %c0_7 = arith.constant 0 : index
    %c0_8 = arith.constant 0 : index
    %c0_9 = arith.constant 0 : index
    %43 = vector.load %arg4[%c0_6, %c0_7, %c0_8, %c0_9] : memref<2x7x2x15xf32, #tpu.memory_space<vmem>>, vector<1x1x2x15xf32>
    %44 = vector.shape_cast %43 : vector<1x1x2x15xf32> to vector<2x15xf32>
    %45 = vector.shape_cast %42 : vector<2x15xf32> to vector<1x1x2x15xf32>
    tpu.vector_store %arg4[%c0_6, %c0_7, %c0_8, %c0_9], %45 {strides = array<i32>} : memref<2x7x2x15xf32, #tpu.memory_space<vmem>>, vector<1x1x2x15xf32>,
    %c0_10 = arith.constant 0 : index
    %c48 = arith.constant 48 : index
    %c0_11 = arith.constant 0 : index
    %46 = vector.load %arg1[%c0_10, %c48, %c0_11] : memref<2x1152x32xbf16, #tpu.memory_space<vmem>>, vector<1x864x32xbf16>
    %47 = vector.shape_cast %46 : vector<1x864x32xbf16> to vector<864x32xbf16>
    %cst_12 = arith.constant dense<0.000000e+00> : vector<36x32xf32>
    %48 = tpu.matmul %0, %47, %cst_12 {dimension_numbers = #tpu.dot_dimension_numbers<[1], [0], [0], [1], [0, 0, 1, 1], [], []>} : vector<36x864xbf16>, vector<864x32xbf16>, vector<36x32xf32> -> vector<36x32xf32>
    %49 = vector.extract_strided_slice %48 {offsets = [0, 0], sizes = [2, 15], strides = [1, 1]} : vector<36x32xf32> to vector<2x15xf32>
    %50 = vector.extract_strided_slice %48 {offsets = [2, 1], sizes = [2, 15], strides = [1, 1]} : vector<36x32xf32> to vector<2x15xf32>
    %51 = vector.extract_strided_slice %48 {offsets = [4, 2], sizes = [2, 15], strides = [1, 1]} : vector<36x32xf32> to vector<2x15xf32>
    %52 = vector.extract_strided_slice %48 {offsets = [6, 3], sizes = [2, 15], strides = [1, 1]} : vector<36x32xf32> to vector<2x15xf32>
    %53 = vector.extract_strided_slice %48 {offsets = [8, 4], sizes = [2, 15], strides = [1, 1]} : vector<36x32xf32> to vector<2x15xf32>
    %54 = vector.extract_strided_slice %48 {offsets = [10, 5], sizes = [2, 15], strides = [1, 1]} : vector<36x32xf32> to vector<2x15xf32>
    %55 = vector.extract_strided_slice %48 {offsets = [12, 6], sizes = [2, 15], strides = [1, 1]} : vector<36x32xf32> to vector<2x15xf32>
    %56 = vector.extract_strided_slice %48 {offsets = [14, 7], sizes = [2, 15], strides = [1, 1]} : vector<36x32xf32> to vector<2x15xf32>
    %57 = vector.extract_strided_slice %48 {offsets = [16, 8], sizes = [2, 15], strides = [1, 1]} : vector<36x32xf32> to vector<2x15xf32>
    %58 = vector.extract_strided_slice %48 {offsets = [18, 9], sizes = [2, 15], strides = [1, 1]} : vector<36x32xf32> to vector<2x15xf32>
    %59 = vector.extract_strided_slice %48 {offsets = [20, 10], sizes = [2, 15], strides = [1, 1]} : vector<36x32xf32> to vector<2x15xf32>
    %60 = vector.extract_strided_slice %48 {offsets = [22, 11], sizes = [2, 15], strides = [1, 1]} : vector<36x32xf32> to vector<2x15xf32>
    %61 = vector.extract_strided_slice %48 {offsets = [24, 12], sizes = [2, 15], strides = [1, 1]} : vector<36x32xf32> to vector<2x15xf32>
    %62 = vector.extract_strided_slice %48 {offsets = [26, 13], sizes = [2, 15], strides = [1, 1]} : vector<36x32xf32> to vector<2x15xf32>
    %63 = vector.extract_strided_slice %48 {offsets = [28, 14], sizes = [2, 15], strides = [1, 1]} : vector<36x32xf32> to vector<2x15xf32>
    %64 = vector.extract_strided_slice %48 {offsets = [30, 15], sizes = [2, 15], strides = [1, 1]} : vector<36x32xf32> to vector<2x15xf32>
    %65 = vector.extract_strided_slice %48 {offsets = [32, 16], sizes = [2, 15], strides = [1, 1]} : vector<36x32xf32> to vector<2x15xf32>
    %66 = vector.extract_strided_slice %48 {offsets = [34, 17], sizes = [2, 15], strides = [1, 1]} : vector<36x32xf32> to vector<2x15xf32>
    %67 = arith.addf %49, %50 : vector<2x15xf32>
    %68 = arith.addf %51, %52 : vector<2x15xf32>
    %69 = arith.addf %53, %54 : vector<2x15xf32>
    %70 = arith.addf %55, %56 : vector<2x15xf32>
    %71 = arith.addf %57, %58 : vector<2x15xf32>
    %72 = arith.addf %59, %60 : vector<2x15xf32>
    %73 = arith.addf %61, %62 : vector<2x15xf32>
    %74 = arith.addf %63, %64 : vector<2x15xf32>
    %75 = arith.addf %65, %66 : vector<2x15xf32>
    %76 = arith.addf %67, %68 : vector<2x15xf32>
    %77 = arith.addf %69, %70 : vector<2x15xf32>
    %78 = arith.addf %71, %72 : vector<2x15xf32>
    %79 = arith.addf %73, %74 : vector<2x15xf32>
    %80 = arith.addf %76, %77 : vector<2x15xf32>
    %81 = arith.addf %78, %79 : vector<2x15xf32>
    %82 = arith.addf %80, %81 : vector<2x15xf32>
    %83 = arith.addf %82, %75 : vector<2x15xf32>
    %84 = vector.broadcast %1 : vector<2x1xf32> to vector<2x15xf32>
    %85 = arith.addf %83, %84 : vector<2x15xf32>
    %86 = math.tanh %85 : vector<2x15xf32>
    %c0_13 = arith.constant 0 : index
    %c1 = arith.constant 1 : index
    %c0_14 = arith.constant 0 : index
    %c0_15 = arith.constant 0 : index
    %87 = vector.load %arg4[%c0_13, %c1, %c0_14, %c0_15] : memref<2x7x2x15xf32, #tpu.memory_space<vmem>>, vector<1x1x2x15xf32>
    %88 = vector.shape_cast %87 : vector<1x1x2x15xf32> to vector<2x15xf32>
    %89 = vector.shape_cast %86 : vector<2x15xf32> to vector<1x1x2x15xf32>
    tpu.vector_store %arg4[%c0_13, %c1, %c0_14, %c0_15], %89 {strides = array<i32>} : memref<2x7x2x15xf32, #tpu.memory_space<vmem>>, vector<1x1x2x15xf32>,
    %c0_16 = arith.constant 0 : index
    %c96 = arith.constant 96 : index
    %c0_17 = arith.constant 0 : index
    %90 = vector.load %arg1[%c0_16, %c96, %c0_17] : memref<2x1152x32xbf16, #tpu.memory_space<vmem>>, vector<1x864x32xbf16>
    %91 = vector.shape_cast %90 : vector<1x864x32xbf16> to vector<864x32xbf16>
    %cst_18 = arith.constant dense<0.000000e+00> : vector<36x32xf32>
    %92 = tpu.matmul %0, %91, %cst_18 {dimension_numbers = #tpu.dot_dimension_numbers<[1], [0], [0], [1], [0, 0, 1, 1], [], []>} : vector<36x864xbf16>, vector<864x32xbf16>, vector<36x32xf32> -> vector<36x32xf32>
    %93 = vector.extract_strided_slice %92 {offsets = [0, 0], sizes = [2, 15], strides = [1, 1]} : vector<36x32xf32> to vector<2x15xf32>
    %94 = vector.extract_strided_slice %92 {offsets = [2, 1], sizes = [2, 15], strides = [1, 1]} : vector<36x32xf32> to vector<2x15xf32>
    %95 = vector.extract_strided_slice %92 {offsets = [4, 2], sizes = [2, 15], strides = [1, 1]} : vector<36x32xf32> to vector<2x15xf32>
    %96 = vector.extract_strided_slice %92 {offsets = [6, 3], sizes = [2, 15], strides = [1, 1]} : vector<36x32xf32> to vector<2x15xf32>
    %97 = vector.extract_strided_slice %92 {offsets = [8, 4], sizes = [2, 15], strides = [1, 1]} : vector<36x32xf32> to vector<2x15xf32>
    %98 = vector.extract_strided_slice %92 {offsets = [10, 5], sizes = [2, 15], strides = [1, 1]} : vector<36x32xf32> to vector<2x15xf32>
    %99 = vector.extract_strided_slice %92 {offsets = [12, 6], sizes = [2, 15], strides = [1, 1]} : vector<36x32xf32> to vector<2x15xf32>
    %100 = vector.extract_strided_slice %92 {offsets = [14, 7], sizes = [2, 15], strides = [1, 1]} : vector<36x32xf32> to vector<2x15xf32>
    %101 = vector.extract_strided_slice %92 {offsets = [16, 8], sizes = [2, 15], strides = [1, 1]} : vector<36x32xf32> to vector<2x15xf32>
    %102 = vector.extract_strided_slice %92 {offsets = [18, 9], sizes = [2, 15], strides = [1, 1]} : vector<36x32xf32> to vector<2x15xf32>
    %103 = vector.extract_strided_slice %92 {offsets = [20, 10], sizes = [2, 15], strides = [1, 1]} : vector<36x32xf32> to vector<2x15xf32>
    %104 = vector.extract_strided_slice %92 {offsets = [22, 11], sizes = [2, 15], strides = [1, 1]} : vector<36x32xf32> to vector<2x15xf32>
    %105 = vector.extract_strided_slice %92 {offsets = [24, 12], sizes = [2, 15], strides = [1, 1]} : vector<36x32xf32> to vector<2x15xf32>
    %106 = vector.extract_strided_slice %92 {offsets = [26, 13], sizes = [2, 15], strides = [1, 1]} : vector<36x32xf32> to vector<2x15xf32>
    %107 = vector.extract_strided_slice %92 {offsets = [28, 14], sizes = [2, 15], strides = [1, 1]} : vector<36x32xf32> to vector<2x15xf32>
    %108 = vector.extract_strided_slice %92 {offsets = [30, 15], sizes = [2, 15], strides = [1, 1]} : vector<36x32xf32> to vector<2x15xf32>
    %109 = vector.extract_strided_slice %92 {offsets = [32, 16], sizes = [2, 15], strides = [1, 1]} : vector<36x32xf32> to vector<2x15xf32>
    %110 = vector.extract_strided_slice %92 {offsets = [34, 17], sizes = [2, 15], strides = [1, 1]} : vector<36x32xf32> to vector<2x15xf32>
    %111 = arith.addf %93, %94 : vector<2x15xf32>
    %112 = arith.addf %95, %96 : vector<2x15xf32>
    %113 = arith.addf %97, %98 : vector<2x15xf32>
    %114 = arith.addf %99, %100 : vector<2x15xf32>
    %115 = arith.addf %101, %102 : vector<2x15xf32>
    %116 = arith.addf %103, %104 : vector<2x15xf32>
    %117 = arith.addf %105, %106 : vector<2x15xf32>
    %118 = arith.addf %107, %108 : vector<2x15xf32>
    %119 = arith.addf %109, %110 : vector<2x15xf32>
    %120 = arith.addf %111, %112 : vector<2x15xf32>
    %121 = arith.addf %113, %114 : vector<2x15xf32>
    %122 = arith.addf %115, %116 : vector<2x15xf32>
    %123 = arith.addf %117, %118 : vector<2x15xf32>
    %124 = arith.addf %120, %121 : vector<2x15xf32>
    %125 = arith.addf %122, %123 : vector<2x15xf32>
    %126 = arith.addf %124, %125 : vector<2x15xf32>
    %127 = arith.addf %126, %119 : vector<2x15xf32>
    %128 = vector.broadcast %1 : vector<2x1xf32> to vector<2x15xf32>
    %129 = arith.addf %127, %128 : vector<2x15xf32>
    %130 = math.tanh %129 : vector<2x15xf32>
    %c0_19 = arith.constant 0 : index
    %c2 = arith.constant 2 : index
    %c0_20 = arith.constant 0 : index
    %c0_21 = arith.constant 0 : index
    %131 = vector.load %arg4[%c0_19, %c2, %c0_20, %c0_21] : memref<2x7x2x15xf32, #tpu.memory_space<vmem>>, vector<1x1x2x15xf32>
    %132 = vector.shape_cast %131 : vector<1x1x2x15xf32> to vector<2x15xf32>
    %133 = vector.shape_cast %130 : vector<2x15xf32> to vector<1x1x2x15xf32>
    tpu.vector_store %arg4[%c0_19, %c2, %c0_20, %c0_21], %133 {strides = array<i32>} : memref<2x7x2x15xf32, #tpu.memory_space<vmem>>, vector<1x1x2x15xf32>,
    %c0_22 = arith.constant 0 : index
    %c144 = arith.constant 144 : index
    %c0_23 = arith.constant 0 : index
    %134 = vector.load %arg1[%c0_22, %c144, %c0_23] : memref<2x1152x32xbf16, #tpu.memory_space<vmem>>, vector<1x864x32xbf16>
    %135 = vector.shape_cast %134 : vector<1x864x32xbf16> to vector<864x32xbf16>
    %cst_24 = arith.constant dense<0.000000e+00> : vector<36x32xf32>
    %136 = tpu.matmul %0, %135, %cst_24 {dimension_numbers = #tpu.dot_dimension_numbers<[1], [0], [0], [1], [0, 0, 1, 1], [], []>} : vector<36x864xbf16>, vector<864x32xbf16>, vector<36x32xf32> -> vector<36x32xf32>
    %137 = vector.extract_strided_slice %136 {offsets = [0, 0], sizes = [2, 15], strides = [1, 1]} : vector<36x32xf32> to vector<2x15xf32>
    %138 = vector.extract_strided_slice %136 {offsets = [2, 1], sizes = [2, 15], strides = [1, 1]} : vector<36x32xf32> to vector<2x15xf32>
    %139 = vector.extract_strided_slice %136 {offsets = [4, 2], sizes = [2, 15], strides = [1, 1]} : vector<36x32xf32> to vector<2x15xf32>
    %140 = vector.extract_strided_slice %136 {offsets = [6, 3], sizes = [2, 15], strides = [1, 1]} : vector<36x32xf32> to vector<2x15xf32>
    %141 = vector.extract_strided_slice %136 {offsets = [8, 4], sizes = [2, 15], strides = [1, 1]} : vector<36x32xf32> to vector<2x15xf32>
    %142 = vector.extract_strided_slice %136 {offsets = [10, 5], sizes = [2, 15], strides = [1, 1]} : vector<36x32xf32> to vector<2x15xf32>
    %143 = vector.extract_strided_slice %136 {offsets = [12, 6], sizes = [2, 15], strides = [1, 1]} : vector<36x32xf32> to vector<2x15xf32>
    %144 = vector.extract_strided_slice %136 {offsets = [14, 7], sizes = [2, 15], strides = [1, 1]} : vector<36x32xf32> to vector<2x15xf32>
    %145 = vector.extract_strided_slice %136 {offsets = [16, 8], sizes = [2, 15], strides = [1, 1]} : vector<36x32xf32> to vector<2x15xf32>
    %146 = vector.extract_strided_slice %136 {offsets = [18, 9], sizes = [2, 15], strides = [1, 1]} : vector<36x32xf32> to vector<2x15xf32>
    %147 = vector.extract_strided_slice %136 {offsets = [20, 10], sizes = [2, 15], strides = [1, 1]} : vector<36x32xf32> to vector<2x15xf32>
    %148 = vector.extract_strided_slice %136 {offsets = [22, 11], sizes = [2, 15], strides = [1, 1]} : vector<36x32xf32> to vector<2x15xf32>
    %149 = vector.extract_strided_slice %136 {offsets = [24, 12], sizes = [2, 15], strides = [1, 1]} : vector<36x32xf32> to vector<2x15xf32>
    %150 = vector.extract_strided_slice %136 {offsets = [26, 13], sizes = [2, 15], strides = [1, 1]} : vector<36x32xf32> to vector<2x15xf32>
    %151 = vector.extract_strided_slice %136 {offsets = [28, 14], sizes = [2, 15], strides = [1, 1]} : vector<36x32xf32> to vector<2x15xf32>
    %152 = vector.extract_strided_slice %136 {offsets = [30, 15], sizes = [2, 15], strides = [1, 1]} : vector<36x32xf32> to vector<2x15xf32>
    %153 = vector.extract_strided_slice %136 {offsets = [32, 16], sizes = [2, 15], strides = [1, 1]} : vector<36x32xf32> to vector<2x15xf32>
    %154 = vector.extract_strided_slice %136 {offsets = [34, 17], sizes = [2, 15], strides = [1, 1]} : vector<36x32xf32> to vector<2x15xf32>
    %155 = arith.addf %137, %138 : vector<2x15xf32>
    %156 = arith.addf %139, %140 : vector<2x15xf32>
    %157 = arith.addf %141, %142 : vector<2x15xf32>
    %158 = arith.addf %143, %144 : vector<2x15xf32>
    %159 = arith.addf %145, %146 : vector<2x15xf32>
    %160 = arith.addf %147, %148 : vector<2x15xf32>
    %161 = arith.addf %149, %150 : vector<2x15xf32>
    %162 = arith.addf %151, %152 : vector<2x15xf32>
    %163 = arith.addf %153, %154 : vector<2x15xf32>
    %164 = arith.addf %155, %156 : vector<2x15xf32>
    %165 = arith.addf %157, %158 : vector<2x15xf32>
    %166 = arith.addf %159, %160 : vector<2x15xf32>
    %167 = arith.addf %161, %162 : vector<2x15xf32>
    %168 = arith.addf %164, %165 : vector<2x15xf32>
    %169 = arith.addf %166, %167 : vector<2x15xf32>
    %170 = arith.addf %168, %169 : vector<2x15xf32>
    %171 = arith.addf %170, %163 : vector<2x15xf32>
    %172 = vector.broadcast %1 : vector<2x1xf32> to vector<2x15xf32>
    %173 = arith.addf %171, %172 : vector<2x15xf32>
    %174 = math.tanh %173 : vector<2x15xf32>
    %c0_25 = arith.constant 0 : index
    %c3 = arith.constant 3 : index
    %c0_26 = arith.constant 0 : index
    %c0_27 = arith.constant 0 : index
    %175 = vector.load %arg4[%c0_25, %c3, %c0_26, %c0_27] : memref<2x7x2x15xf32, #tpu.memory_space<vmem>>, vector<1x1x2x15xf32>
    %176 = vector.shape_cast %175 : vector<1x1x2x15xf32> to vector<2x15xf32>
    %177 = vector.shape_cast %174 : vector<2x15xf32> to vector<1x1x2x15xf32>
    tpu.vector_store %arg4[%c0_25, %c3, %c0_26, %c0_27], %177 {strides = array<i32>} : memref<2x7x2x15xf32, #tpu.memory_space<vmem>>, vector<1x1x2x15xf32>,
    %c0_28 = arith.constant 0 : index
    %c192 = arith.constant 192 : index
    %c0_29 = arith.constant 0 : index
    %178 = vector.load %arg1[%c0_28, %c192, %c0_29] : memref<2x1152x32xbf16, #tpu.memory_space<vmem>>, vector<1x864x32xbf16>
    %179 = vector.shape_cast %178 : vector<1x864x32xbf16> to vector<864x32xbf16>
    %cst_30 = arith.constant dense<0.000000e+00> : vector<36x32xf32>
    %180 = tpu.matmul %0, %179, %cst_30 {dimension_numbers = #tpu.dot_dimension_numbers<[1], [0], [0], [1], [0, 0, 1, 1], [], []>} : vector<36x864xbf16>, vector<864x32xbf16>, vector<36x32xf32> -> vector<36x32xf32>
    %181 = vector.extract_strided_slice %180 {offsets = [0, 0], sizes = [2, 15], strides = [1, 1]} : vector<36x32xf32> to vector<2x15xf32>
    %182 = vector.extract_strided_slice %180 {offsets = [2, 1], sizes = [2, 15], strides = [1, 1]} : vector<36x32xf32> to vector<2x15xf32>
    %183 = vector.extract_strided_slice %180 {offsets = [4, 2], sizes = [2, 15], strides = [1, 1]} : vector<36x32xf32> to vector<2x15xf32>
    %184 = vector.extract_strided_slice %180 {offsets = [6, 3], sizes = [2, 15], strides = [1, 1]} : vector<36x32xf32> to vector<2x15xf32>
    %185 = vector.extract_strided_slice %180 {offsets = [8, 4], sizes = [2, 15], strides = [1, 1]} : vector<36x32xf32> to vector<2x15xf32>
    %186 = vector.extract_strided_slice %180 {offsets = [10, 5], sizes = [2, 15], strides = [1, 1]} : vector<36x32xf32> to vector<2x15xf32>
    %187 = vector.extract_strided_slice %180 {offsets = [12, 6], sizes = [2, 15], strides = [1, 1]} : vector<36x32xf32> to vector<2x15xf32>
    %188 = vector.extract_strided_slice %180 {offsets = [14, 7], sizes = [2, 15], strides = [1, 1]} : vector<36x32xf32> to vector<2x15xf32>
    %189 = vector.extract_strided_slice %180 {offsets = [16, 8], sizes = [2, 15], strides = [1, 1]} : vector<36x32xf32> to vector<2x15xf32>
    %190 = vector.extract_strided_slice %180 {offsets = [18, 9], sizes = [2, 15], strides = [1, 1]} : vector<36x32xf32> to vector<2x15xf32>
    %191 = vector.extract_strided_slice %180 {offsets = [20, 10], sizes = [2, 15], strides = [1, 1]} : vector<36x32xf32> to vector<2x15xf32>
    %192 = vector.extract_strided_slice %180 {offsets = [22, 11], sizes = [2, 15], strides = [1, 1]} : vector<36x32xf32> to vector<2x15xf32>
    %193 = vector.extract_strided_slice %180 {offsets = [24, 12], sizes = [2, 15], strides = [1, 1]} : vector<36x32xf32> to vector<2x15xf32>
    %194 = vector.extract_strided_slice %180 {offsets = [26, 13], sizes = [2, 15], strides = [1, 1]} : vector<36x32xf32> to vector<2x15xf32>
    %195 = vector.extract_strided_slice %180 {offsets = [28, 14], sizes = [2, 15], strides = [1, 1]} : vector<36x32xf32> to vector<2x15xf32>
    %196 = vector.extract_strided_slice %180 {offsets = [30, 15], sizes = [2, 15], strides = [1, 1]} : vector<36x32xf32> to vector<2x15xf32>
    %197 = vector.extract_strided_slice %180 {offsets = [32, 16], sizes = [2, 15], strides = [1, 1]} : vector<36x32xf32> to vector<2x15xf32>
    %198 = vector.extract_strided_slice %180 {offsets = [34, 17], sizes = [2, 15], strides = [1, 1]} : vector<36x32xf32> to vector<2x15xf32>
    %199 = arith.addf %181, %182 : vector<2x15xf32>
    %200 = arith.addf %183, %184 : vector<2x15xf32>
    %201 = arith.addf %185, %186 : vector<2x15xf32>
    %202 = arith.addf %187, %188 : vector<2x15xf32>
    %203 = arith.addf %189, %190 : vector<2x15xf32>
    %204 = arith.addf %191, %192 : vector<2x15xf32>
    %205 = arith.addf %193, %194 : vector<2x15xf32>
    %206 = arith.addf %195, %196 : vector<2x15xf32>
    %207 = arith.addf %197, %198 : vector<2x15xf32>
    %208 = arith.addf %199, %200 : vector<2x15xf32>
    %209 = arith.addf %201, %202 : vector<2x15xf32>
    %210 = arith.addf %203, %204 : vector<2x15xf32>
    %211 = arith.addf %205, %206 : vector<2x15xf32>
    %212 = arith.addf %208, %209 : vector<2x15xf32>
    %213 = arith.addf %210, %211 : vector<2x15xf32>
    %214 = arith.addf %212, %213 : vector<2x15xf32>
    %215 = arith.addf %214, %207 : vector<2x15xf32>
    %216 = vector.broadcast %1 : vector<2x1xf32> to vector<2x15xf32>
    %217 = arith.addf %215, %216 : vector<2x15xf32>
    %218 = math.tanh %217 : vector<2x15xf32>
    %c0_31 = arith.constant 0 : index
    %c4 = arith.constant 4 : index
    %c0_32 = arith.constant 0 : index
    %c0_33 = arith.constant 0 : index
    %219 = vector.load %arg4[%c0_31, %c4, %c0_32, %c0_33] : memref<2x7x2x15xf32, #tpu.memory_space<vmem>>, vector<1x1x2x15xf32>
    %220 = vector.shape_cast %219 : vector<1x1x2x15xf32> to vector<2x15xf32>
    %221 = vector.shape_cast %218 : vector<2x15xf32> to vector<1x1x2x15xf32>
    tpu.vector_store %arg4[%c0_31, %c4, %c0_32, %c0_33], %221 {strides = array<i32>} : memref<2x7x2x15xf32, #tpu.memory_space<vmem>>, vector<1x1x2x15xf32>,
    %c0_34 = arith.constant 0 : index
    %c240 = arith.constant 240 : index
    %c0_35 = arith.constant 0 : index
    %222 = vector.load %arg1[%c0_34, %c240, %c0_35] : memref<2x1152x32xbf16, #tpu.memory_space<vmem>>, vector<1x864x32xbf16>
    %223 = vector.shape_cast %222 : vector<1x864x32xbf16> to vector<864x32xbf16>
    %cst_36 = arith.constant dense<0.000000e+00> : vector<36x32xf32>
    %224 = tpu.matmul %0, %223, %cst_36 {dimension_numbers = #tpu.dot_dimension_numbers<[1], [0], [0], [1], [0, 0, 1, 1], [], []>} : vector<36x864xbf16>, vector<864x32xbf16>, vector<36x32xf32> -> vector<36x32xf32>
    %225 = vector.extract_strided_slice %224 {offsets = [0, 0], sizes = [2, 15], strides = [1, 1]} : vector<36x32xf32> to vector<2x15xf32>
    %226 = vector.extract_strided_slice %224 {offsets = [2, 1], sizes = [2, 15], strides = [1, 1]} : vector<36x32xf32> to vector<2x15xf32>
    %227 = vector.extract_strided_slice %224 {offsets = [4, 2], sizes = [2, 15], strides = [1, 1]} : vector<36x32xf32> to vector<2x15xf32>
    %228 = vector.extract_strided_slice %224 {offsets = [6, 3], sizes = [2, 15], strides = [1, 1]} : vector<36x32xf32> to vector<2x15xf32>
    %229 = vector.extract_strided_slice %224 {offsets = [8, 4], sizes = [2, 15], strides = [1, 1]} : vector<36x32xf32> to vector<2x15xf32>
    %230 = vector.extract_strided_slice %224 {offsets = [10, 5], sizes = [2, 15], strides = [1, 1]} : vector<36x32xf32> to vector<2x15xf32>
    %231 = vector.extract_strided_slice %224 {offsets = [12, 6], sizes = [2, 15], strides = [1, 1]} : vector<36x32xf32> to vector<2x15xf32>
    %232 = vector.extract_strided_slice %224 {offsets = [14, 7], sizes = [2, 15], strides = [1, 1]} : vector<36x32xf32> to vector<2x15xf32>
    %233 = vector.extract_strided_slice %224 {offsets = [16, 8], sizes = [2, 15], strides = [1, 1]} : vector<36x32xf32> to vector<2x15xf32>
    %234 = vector.extract_strided_slice %224 {offsets = [18, 9], sizes = [2, 15], strides = [1, 1]} : vector<36x32xf32> to vector<2x15xf32>
    %235 = vector.extract_strided_slice %224 {offsets = [20, 10], sizes = [2, 15], strides = [1, 1]} : vector<36x32xf32> to vector<2x15xf32>
    %236 = vector.extract_strided_slice %224 {offsets = [22, 11], sizes = [2, 15], strides = [1, 1]} : vector<36x32xf32> to vector<2x15xf32>
    %237 = vector.extract_strided_slice %224 {offsets = [24, 12], sizes = [2, 15], strides = [1, 1]} : vector<36x32xf32> to vector<2x15xf32>
    %238 = vector.extract_strided_slice %224 {offsets = [26, 13], sizes = [2, 15], strides = [1, 1]} : vector<36x32xf32> to vector<2x15xf32>
    %239 = vector.extract_strided_slice %224 {offsets = [28, 14], sizes = [2, 15], strides = [1, 1]} : vector<36x32xf32> to vector<2x15xf32>
    %240 = vector.extract_strided_slice %224 {offsets = [30, 15], sizes = [2, 15], strides = [1, 1]} : vector<36x32xf32> to vector<2x15xf32>
    %241 = vector.extract_strided_slice %224 {offsets = [32, 16], sizes = [2, 15], strides = [1, 1]} : vector<36x32xf32> to vector<2x15xf32>
    %242 = vector.extract_strided_slice %224 {offsets = [34, 17], sizes = [2, 15], strides = [1, 1]} : vector<36x32xf32> to vector<2x15xf32>
    %243 = arith.addf %225, %226 : vector<2x15xf32>
    %244 = arith.addf %227, %228 : vector<2x15xf32>
    %245 = arith.addf %229, %230 : vector<2x15xf32>
    %246 = arith.addf %231, %232 : vector<2x15xf32>
    %247 = arith.addf %233, %234 : vector<2x15xf32>
    %248 = arith.addf %235, %236 : vector<2x15xf32>
    %249 = arith.addf %237, %238 : vector<2x15xf32>
    %250 = arith.addf %239, %240 : vector<2x15xf32>
    %251 = arith.addf %241, %242 : vector<2x15xf32>
    %252 = arith.addf %243, %244 : vector<2x15xf32>
    %253 = arith.addf %245, %246 : vector<2x15xf32>
    %254 = arith.addf %247, %248 : vector<2x15xf32>
    %255 = arith.addf %249, %250 : vector<2x15xf32>
    %256 = arith.addf %252, %253 : vector<2x15xf32>
    %257 = arith.addf %254, %255 : vector<2x15xf32>
    %258 = arith.addf %256, %257 : vector<2x15xf32>
    %259 = arith.addf %258, %251 : vector<2x15xf32>
    %260 = vector.broadcast %1 : vector<2x1xf32> to vector<2x15xf32>
    %261 = arith.addf %259, %260 : vector<2x15xf32>
    %262 = math.tanh %261 : vector<2x15xf32>
    %c0_37 = arith.constant 0 : index
    %c5 = arith.constant 5 : index
    %c0_38 = arith.constant 0 : index
    %c0_39 = arith.constant 0 : index
    %263 = vector.load %arg4[%c0_37, %c5, %c0_38, %c0_39] : memref<2x7x2x15xf32, #tpu.memory_space<vmem>>, vector<1x1x2x15xf32>
    %264 = vector.shape_cast %263 : vector<1x1x2x15xf32> to vector<2x15xf32>
    %265 = vector.shape_cast %262 : vector<2x15xf32> to vector<1x1x2x15xf32>
    tpu.vector_store %arg4[%c0_37, %c5, %c0_38, %c0_39], %265 {strides = array<i32>} : memref<2x7x2x15xf32, #tpu.memory_space<vmem>>, vector<1x1x2x15xf32>,
    %c0_40 = arith.constant 0 : index
    %c288 = arith.constant 288 : index
    %c0_41 = arith.constant 0 : index
    %266 = vector.load %arg1[%c0_40, %c288, %c0_41] : memref<2x1152x32xbf16, #tpu.memory_space<vmem>>, vector<1x864x32xbf16>
    %267 = vector.shape_cast %266 : vector<1x864x32xbf16> to vector<864x32xbf16>
    %cst_42 = arith.constant dense<0.000000e+00> : vector<36x32xf32>
    %268 = tpu.matmul %0, %267, %cst_42 {dimension_numbers = #tpu.dot_dimension_numbers<[1], [0], [0], [1], [0, 0, 1, 1], [], []>} : vector<36x864xbf16>, vector<864x32xbf16>, vector<36x32xf32> -> vector<36x32xf32>
    %269 = vector.extract_strided_slice %268 {offsets = [0, 0], sizes = [2, 15], strides = [1, 1]} : vector<36x32xf32> to vector<2x15xf32>
    %270 = vector.extract_strided_slice %268 {offsets = [2, 1], sizes = [2, 15], strides = [1, 1]} : vector<36x32xf32> to vector<2x15xf32>
    %271 = vector.extract_strided_slice %268 {offsets = [4, 2], sizes = [2, 15], strides = [1, 1]} : vector<36x32xf32> to vector<2x15xf32>
    %272 = vector.extract_strided_slice %268 {offsets = [6, 3], sizes = [2, 15], strides = [1, 1]} : vector<36x32xf32> to vector<2x15xf32>
    %273 = vector.extract_strided_slice %268 {offsets = [8, 4], sizes = [2, 15], strides = [1, 1]} : vector<36x32xf32> to vector<2x15xf32>
    %274 = vector.extract_strided_slice %268 {offsets = [10, 5], sizes = [2, 15], strides = [1, 1]} : vector<36x32xf32> to vector<2x15xf32>
    %275 = vector.extract_strided_slice %268 {offsets = [12, 6], sizes = [2, 15], strides = [1, 1]} : vector<36x32xf32> to vector<2x15xf32>
    %276 = vector.extract_strided_slice %268 {offsets = [14, 7], sizes = [2, 15], strides = [1, 1]} : vector<36x32xf32> to vector<2x15xf32>
    %277 = vector.extract_strided_slice %268 {offsets = [16, 8], sizes = [2, 15], strides = [1, 1]} : vector<36x32xf32> to vector<2x15xf32>
    %278 = vector.extract_strided_slice %268 {offsets = [18, 9], sizes = [2, 15], strides = [1, 1]} : vector<36x32xf32> to vector<2x15xf32>
    %279 = vector.extract_strided_slice %268 {offsets = [20, 10], sizes = [2, 15], strides = [1, 1]} : vector<36x32xf32> to vector<2x15xf32>
    %280 = vector.extract_strided_slice %268 {offsets = [22, 11], sizes = [2, 15], strides = [1, 1]} : vector<36x32xf32> to vector<2x15xf32>
    %281 = vector.extract_strided_slice %268 {offsets = [24, 12], sizes = [2, 15], strides = [1, 1]} : vector<36x32xf32> to vector<2x15xf32>
    %282 = vector.extract_strided_slice %268 {offsets = [26, 13], sizes = [2, 15], strides = [1, 1]} : vector<36x32xf32> to vector<2x15xf32>
    %283 = vector.extract_strided_slice %268 {offsets = [28, 14], sizes = [2, 15], strides = [1, 1]} : vector<36x32xf32> to vector<2x15xf32>
    %284 = vector.extract_strided_slice %268 {offsets = [30, 15], sizes = [2, 15], strides = [1, 1]} : vector<36x32xf32> to vector<2x15xf32>
    %285 = vector.extract_strided_slice %268 {offsets = [32, 16], sizes = [2, 15], strides = [1, 1]} : vector<36x32xf32> to vector<2x15xf32>
    %286 = vector.extract_strided_slice %268 {offsets = [34, 17], sizes = [2, 15], strides = [1, 1]} : vector<36x32xf32> to vector<2x15xf32>
    %287 = arith.addf %269, %270 : vector<2x15xf32>
    %288 = arith.addf %271, %272 : vector<2x15xf32>
    %289 = arith.addf %273, %274 : vector<2x15xf32>
    %290 = arith.addf %275, %276 : vector<2x15xf32>
    %291 = arith.addf %277, %278 : vector<2x15xf32>
    %292 = arith.addf %279, %280 : vector<2x15xf32>
    %293 = arith.addf %281, %282 : vector<2x15xf32>
    %294 = arith.addf %283, %284 : vector<2x15xf32>
    %295 = arith.addf %285, %286 : vector<2x15xf32>
    %296 = arith.addf %287, %288 : vector<2x15xf32>
    %297 = arith.addf %289, %290 : vector<2x15xf32>
    %298 = arith.addf %291, %292 : vector<2x15xf32>
    %299 = arith.addf %293, %294 : vector<2x15xf32>
    %300 = arith.addf %296, %297 : vector<2x15xf32>
    %301 = arith.addf %298, %299 : vector<2x15xf32>
    %302 = arith.addf %300, %301 : vector<2x15xf32>
    %303 = arith.addf %302, %295 : vector<2x15xf32>
    %304 = vector.broadcast %1 : vector<2x1xf32> to vector<2x15xf32>
    %305 = arith.addf %303, %304 : vector<2x15xf32>
    %306 = math.tanh %305 : vector<2x15xf32>
    %c0_43 = arith.constant 0 : index
    %c6 = arith.constant 6 : index
    %c0_44 = arith.constant 0 : index
    %c0_45 = arith.constant 0 : index
    %307 = vector.load %arg4[%c0_43, %c6, %c0_44, %c0_45] : memref<2x7x2x15xf32, #tpu.memory_space<vmem>>, vector<1x1x2x15xf32>
    %308 = vector.shape_cast %307 : vector<1x1x2x15xf32> to vector<2x15xf32>
    %309 = vector.shape_cast %306 : vector<2x15xf32> to vector<1x1x2x15xf32>
    tpu.vector_store %arg4[%c0_43, %c6, %c0_44, %c0_45], %309 {strides = array<i32>} : memref<2x7x2x15xf32, #tpu.memory_space<vmem>>, vector<1x1x2x15xf32>,
    %c1_46 = arith.constant 1 : index
    %c0_47 = arith.constant 0 : index
    %c0_48 = arith.constant 0 : index
    %310 = vector.load %arg1[%c1_46, %c0_47, %c0_48] : memref<2x1152x32xbf16, #tpu.memory_space<vmem>>, vector<1x864x32xbf16>
    %311 = vector.shape_cast %310 : vector<1x864x32xbf16> to vector<864x32xbf16>
    %cst_49 = arith.constant dense<0.000000e+00> : vector<36x32xf32>
    %312 = tpu.matmul %0, %311, %cst_49 {dimension_numbers = #tpu.dot_dimension_numbers<[1], [0], [0], [1], [0, 0, 1, 1], [], []>} : vector<36x864xbf16>, vector<864x32xbf16>, vector<36x32xf32> -> vector<36x32xf32>
    %313 = vector.extract_strided_slice %312 {offsets = [0, 0], sizes = [2, 15], strides = [1, 1]} : vector<36x32xf32> to vector<2x15xf32>
    %314 = vector.extract_strided_slice %312 {offsets = [2, 1], sizes = [2, 15], strides = [1, 1]} : vector<36x32xf32> to vector<2x15xf32>
    %315 = vector.extract_strided_slice %312 {offsets = [4, 2], sizes = [2, 15], strides = [1, 1]} : vector<36x32xf32> to vector<2x15xf32>
    %316 = vector.extract_strided_slice %312 {offsets = [6, 3], sizes = [2, 15], strides = [1, 1]} : vector<36x32xf32> to vector<2x15xf32>
    %317 = vector.extract_strided_slice %312 {offsets = [8, 4], sizes = [2, 15], strides = [1, 1]} : vector<36x32xf32> to vector<2x15xf32>
    %318 = vector.extract_strided_slice %312 {offsets = [10, 5], sizes = [2, 15], strides = [1, 1]} : vector<36x32xf32> to vector<2x15xf32>
    %319 = vector.extract_strided_slice %312 {offsets = [12, 6], sizes = [2, 15], strides = [1, 1]} : vector<36x32xf32> to vector<2x15xf32>
    %320 = vector.extract_strided_slice %312 {offsets = [14, 7], sizes = [2, 15], strides = [1, 1]} : vector<36x32xf32> to vector<2x15xf32>
    %321 = vector.extract_strided_slice %312 {offsets = [16, 8], sizes = [2, 15], strides = [1, 1]} : vector<36x32xf32> to vector<2x15xf32>
    %322 = vector.extract_strided_slice %312 {offsets = [18, 9], sizes = [2, 15], strides = [1, 1]} : vector<36x32xf32> to vector<2x15xf32>
    %323 = vector.extract_strided_slice %312 {offsets = [20, 10], sizes = [2, 15], strides = [1, 1]} : vector<36x32xf32> to vector<2x15xf32>
    %324 = vector.extract_strided_slice %312 {offsets = [22, 11], sizes = [2, 15], strides = [1, 1]} : vector<36x32xf32> to vector<2x15xf32>
    %325 = vector.extract_strided_slice %312 {offsets = [24, 12], sizes = [2, 15], strides = [1, 1]} : vector<36x32xf32> to vector<2x15xf32>
    %326 = vector.extract_strided_slice %312 {offsets = [26, 13], sizes = [2, 15], strides = [1, 1]} : vector<36x32xf32> to vector<2x15xf32>
    %327 = vector.extract_strided_slice %312 {offsets = [28, 14], sizes = [2, 15], strides = [1, 1]} : vector<36x32xf32> to vector<2x15xf32>
    %328 = vector.extract_strided_slice %312 {offsets = [30, 15], sizes = [2, 15], strides = [1, 1]} : vector<36x32xf32> to vector<2x15xf32>
    %329 = vector.extract_strided_slice %312 {offsets = [32, 16], sizes = [2, 15], strides = [1, 1]} : vector<36x32xf32> to vector<2x15xf32>
    %330 = vector.extract_strided_slice %312 {offsets = [34, 17], sizes = [2, 15], strides = [1, 1]} : vector<36x32xf32> to vector<2x15xf32>
    %331 = arith.addf %313, %314 : vector<2x15xf32>
    %332 = arith.addf %315, %316 : vector<2x15xf32>
    %333 = arith.addf %317, %318 : vector<2x15xf32>
    %334 = arith.addf %319, %320 : vector<2x15xf32>
    %335 = arith.addf %321, %322 : vector<2x15xf32>
    %336 = arith.addf %323, %324 : vector<2x15xf32>
    %337 = arith.addf %325, %326 : vector<2x15xf32>
    %338 = arith.addf %327, %328 : vector<2x15xf32>
    %339 = arith.addf %329, %330 : vector<2x15xf32>
    %340 = arith.addf %331, %332 : vector<2x15xf32>
    %341 = arith.addf %333, %334 : vector<2x15xf32>
    %342 = arith.addf %335, %336 : vector<2x15xf32>
    %343 = arith.addf %337, %338 : vector<2x15xf32>
    %344 = arith.addf %340, %341 : vector<2x15xf32>
    %345 = arith.addf %342, %343 : vector<2x15xf32>
    %346 = arith.addf %344, %345 : vector<2x15xf32>
    %347 = arith.addf %346, %339 : vector<2x15xf32>
    %348 = vector.broadcast %1 : vector<2x1xf32> to vector<2x15xf32>
    %349 = arith.addf %347, %348 : vector<2x15xf32>
    %350 = math.tanh %349 : vector<2x15xf32>
    %c1_50 = arith.constant 1 : index
    %c0_51 = arith.constant 0 : index
    %c0_52 = arith.constant 0 : index
    %c0_53 = arith.constant 0 : index
    %351 = vector.load %arg4[%c1_50, %c0_51, %c0_52, %c0_53] : memref<2x7x2x15xf32, #tpu.memory_space<vmem>>, vector<1x1x2x15xf32>
    %352 = vector.shape_cast %351 : vector<1x1x2x15xf32> to vector<2x15xf32>
    %353 = vector.shape_cast %350 : vector<2x15xf32> to vector<1x1x2x15xf32>
    tpu.vector_store %arg4[%c1_50, %c0_51, %c0_52, %c0_53], %353 {strides = array<i32>} : memref<2x7x2x15xf32, #tpu.memory_space<vmem>>, vector<1x1x2x15xf32>,
    %c1_54 = arith.constant 1 : index
    %c48_55 = arith.constant 48 : index
    %c0_56 = arith.constant 0 : index
    %354 = vector.load %arg1[%c1_54, %c48_55, %c0_56] : memref<2x1152x32xbf16, #tpu.memory_space<vmem>>, vector<1x864x32xbf16>
    %355 = vector.shape_cast %354 : vector<1x864x32xbf16> to vector<864x32xbf16>
    %cst_57 = arith.constant dense<0.000000e+00> : vector<36x32xf32>
    %356 = tpu.matmul %0, %355, %cst_57 {dimension_numbers = #tpu.dot_dimension_numbers<[1], [0], [0], [1], [0, 0, 1, 1], [], []>} : vector<36x864xbf16>, vector<864x32xbf16>, vector<36x32xf32> -> vector<36x32xf32>
    %357 = vector.extract_strided_slice %356 {offsets = [0, 0], sizes = [2, 15], strides = [1, 1]} : vector<36x32xf32> to vector<2x15xf32>
    %358 = vector.extract_strided_slice %356 {offsets = [2, 1], sizes = [2, 15], strides = [1, 1]} : vector<36x32xf32> to vector<2x15xf32>
    %359 = vector.extract_strided_slice %356 {offsets = [4, 2], sizes = [2, 15], strides = [1, 1]} : vector<36x32xf32> to vector<2x15xf32>
    %360 = vector.extract_strided_slice %356 {offsets = [6, 3], sizes = [2, 15], strides = [1, 1]} : vector<36x32xf32> to vector<2x15xf32>
    %361 = vector.extract_strided_slice %356 {offsets = [8, 4], sizes = [2, 15], strides = [1, 1]} : vector<36x32xf32> to vector<2x15xf32>
    %362 = vector.extract_strided_slice %356 {offsets = [10, 5], sizes = [2, 15], strides = [1, 1]} : vector<36x32xf32> to vector<2x15xf32>
    %363 = vector.extract_strided_slice %356 {offsets = [12, 6], sizes = [2, 15], strides = [1, 1]} : vector<36x32xf32> to vector<2x15xf32>
    %364 = vector.extract_strided_slice %356 {offsets = [14, 7], sizes = [2, 15], strides = [1, 1]} : vector<36x32xf32> to vector<2x15xf32>
    %365 = vector.extract_strided_slice %356 {offsets = [16, 8], sizes = [2, 15], strides = [1, 1]} : vector<36x32xf32> to vector<2x15xf32>
    %366 = vector.extract_strided_slice %356 {offsets = [18, 9], sizes = [2, 15], strides = [1, 1]} : vector<36x32xf32> to vector<2x15xf32>
    %367 = vector.extract_strided_slice %356 {offsets = [20, 10], sizes = [2, 15], strides = [1, 1]} : vector<36x32xf32> to vector<2x15xf32>
    %368 = vector.extract_strided_slice %356 {offsets = [22, 11], sizes = [2, 15], strides = [1, 1]} : vector<36x32xf32> to vector<2x15xf32>
    %369 = vector.extract_strided_slice %356 {offsets = [24, 12], sizes = [2, 15], strides = [1, 1]} : vector<36x32xf32> to vector<2x15xf32>
    %370 = vector.extract_strided_slice %356 {offsets = [26, 13], sizes = [2, 15], strides = [1, 1]} : vector<36x32xf32> to vector<2x15xf32>
    %371 = vector.extract_strided_slice %356 {offsets = [28, 14], sizes = [2, 15], strides = [1, 1]} : vector<36x32xf32> to vector<2x15xf32>
    %372 = vector.extract_strided_slice %356 {offsets = [30, 15], sizes = [2, 15], strides = [1, 1]} : vector<36x32xf32> to vector<2x15xf32>
    %373 = vector.extract_strided_slice %356 {offsets = [32, 16], sizes = [2, 15], strides = [1, 1]} : vector<36x32xf32> to vector<2x15xf32>
    %374 = vector.extract_strided_slice %356 {offsets = [34, 17], sizes = [2, 15], strides = [1, 1]} : vector<36x32xf32> to vector<2x15xf32>
    %375 = arith.addf %357, %358 : vector<2x15xf32>
    %376 = arith.addf %359, %360 : vector<2x15xf32>
    %377 = arith.addf %361, %362 : vector<2x15xf32>
    %378 = arith.addf %363, %364 : vector<2x15xf32>
    %379 = arith.addf %365, %366 : vector<2x15xf32>
    %380 = arith.addf %367, %368 : vector<2x15xf32>
    %381 = arith.addf %369, %370 : vector<2x15xf32>
    %382 = arith.addf %371, %372 : vector<2x15xf32>
    %383 = arith.addf %373, %374 : vector<2x15xf32>
    %384 = arith.addf %375, %376 : vector<2x15xf32>
    %385 = arith.addf %377, %378 : vector<2x15xf32>
    %386 = arith.addf %379, %380 : vector<2x15xf32>
    %387 = arith.addf %381, %382 : vector<2x15xf32>
    %388 = arith.addf %384, %385 : vector<2x15xf32>
    %389 = arith.addf %386, %387 : vector<2x15xf32>
    %390 = arith.addf %388, %389 : vector<2x15xf32>
    %391 = arith.addf %390, %383 : vector<2x15xf32>
    %392 = vector.broadcast %1 : vector<2x1xf32> to vector<2x15xf32>
    %393 = arith.addf %391, %392 : vector<2x15xf32>
    %394 = math.tanh %393 : vector<2x15xf32>
    %c1_58 = arith.constant 1 : index
    %c1_59 = arith.constant 1 : index
    %c0_60 = arith.constant 0 : index
    %c0_61 = arith.constant 0 : index
    %395 = vector.load %arg4[%c1_58, %c1_59, %c0_60, %c0_61] : memref<2x7x2x15xf32, #tpu.memory_space<vmem>>, vector<1x1x2x15xf32>
    %396 = vector.shape_cast %395 : vector<1x1x2x15xf32> to vector<2x15xf32>
    %397 = vector.shape_cast %394 : vector<2x15xf32> to vector<1x1x2x15xf32>
    tpu.vector_store %arg4[%c1_58, %c1_59, %c0_60, %c0_61], %397 {strides = array<i32>} : memref<2x7x2x15xf32, #tpu.memory_space<vmem>>, vector<1x1x2x15xf32>,
    %c1_62 = arith.constant 1 : index
    %c96_63 = arith.constant 96 : index
    %c0_64 = arith.constant 0 : index
    %398 = vector.load %arg1[%c1_62, %c96_63, %c0_64] : memref<2x1152x32xbf16, #tpu.memory_space<vmem>>, vector<1x864x32xbf16>
    %399 = vector.shape_cast %398 : vector<1x864x32xbf16> to vector<864x32xbf16>
    %cst_65 = arith.constant dense<0.000000e+00> : vector<36x32xf32>
    %400 = tpu.matmul %0, %399, %cst_65 {dimension_numbers = #tpu.dot_dimension_numbers<[1], [0], [0], [1], [0, 0, 1, 1], [], []>} : vector<36x864xbf16>, vector<864x32xbf16>, vector<36x32xf32> -> vector<36x32xf32>
    %401 = vector.extract_strided_slice %400 {offsets = [0, 0], sizes = [2, 15], strides = [1, 1]} : vector<36x32xf32> to vector<2x15xf32>
    %402 = vector.extract_strided_slice %400 {offsets = [2, 1], sizes = [2, 15], strides = [1, 1]} : vector<36x32xf32> to vector<2x15xf32>
    %403 = vector.extract_strided_slice %400 {offsets = [4, 2], sizes = [2, 15], strides = [1, 1]} : vector<36x32xf32> to vector<2x15xf32>
    %404 = vector.extract_strided_slice %400 {offsets = [6, 3], sizes = [2, 15], strides = [1, 1]} : vector<36x32xf32> to vector<2x15xf32>
    %405 = vector.extract_strided_slice %400 {offsets = [8, 4], sizes = [2, 15], strides = [1, 1]} : vector<36x32xf32> to vector<2x15xf32>
    %406 = vector.extract_strided_slice %400 {offsets = [10, 5], sizes = [2, 15], strides = [1, 1]} : vector<36x32xf32> to vector<2x15xf32>
    %407 = vector.extract_strided_slice %400 {offsets = [12, 6], sizes = [2, 15], strides = [1, 1]} : vector<36x32xf32> to vector<2x15xf32>
    %408 = vector.extract_strided_slice %400 {offsets = [14, 7], sizes = [2, 15], strides = [1, 1]} : vector<36x32xf32> to vector<2x15xf32>
    %409 = vector.extract_strided_slice %400 {offsets = [16, 8], sizes = [2, 15], strides = [1, 1]} : vector<36x32xf32> to vector<2x15xf32>
    %410 = vector.extract_strided_slice %400 {offsets = [18, 9], sizes = [2, 15], strides = [1, 1]} : vector<36x32xf32> to vector<2x15xf32>
    %411 = vector.extract_strided_slice %400 {offsets = [20, 10], sizes = [2, 15], strides = [1, 1]} : vector<36x32xf32> to vector<2x15xf32>
    %412 = vector.extract_strided_slice %400 {offsets = [22, 11], sizes = [2, 15], strides = [1, 1]} : vector<36x32xf32> to vector<2x15xf32>
    %413 = vector.extract_strided_slice %400 {offsets = [24, 12], sizes = [2, 15], strides = [1, 1]} : vector<36x32xf32> to vector<2x15xf32>
    %414 = vector.extract_strided_slice %400 {offsets = [26, 13], sizes = [2, 15], strides = [1, 1]} : vector<36x32xf32> to vector<2x15xf32>
    %415 = vector.extract_strided_slice %400 {offsets = [28, 14], sizes = [2, 15], strides = [1, 1]} : vector<36x32xf32> to vector<2x15xf32>
    %416 = vector.extract_strided_slice %400 {offsets = [30, 15], sizes = [2, 15], strides = [1, 1]} : vector<36x32xf32> to vector<2x15xf32>
    %417 = vector.extract_strided_slice %400 {offsets = [32, 16], sizes = [2, 15], strides = [1, 1]} : vector<36x32xf32> to vector<2x15xf32>
    %418 = vector.extract_strided_slice %400 {offsets = [34, 17], sizes = [2, 15], strides = [1, 1]} : vector<36x32xf32> to vector<2x15xf32>
    %419 = arith.addf %401, %402 : vector<2x15xf32>
    %420 = arith.addf %403, %404 : vector<2x15xf32>
    %421 = arith.addf %405, %406 : vector<2x15xf32>
    %422 = arith.addf %407, %408 : vector<2x15xf32>
    %423 = arith.addf %409, %410 : vector<2x15xf32>
    %424 = arith.addf %411, %412 : vector<2x15xf32>
    %425 = arith.addf %413, %414 : vector<2x15xf32>
    %426 = arith.addf %415, %416 : vector<2x15xf32>
    %427 = arith.addf %417, %418 : vector<2x15xf32>
    %428 = arith.addf %419, %420 : vector<2x15xf32>
    %429 = arith.addf %421, %422 : vector<2x15xf32>
    %430 = arith.addf %423, %424 : vector<2x15xf32>
    %431 = arith.addf %425, %426 : vector<2x15xf32>
    %432 = arith.addf %428, %429 : vector<2x15xf32>
    %433 = arith.addf %430, %431 : vector<2x15xf32>
    %434 = arith.addf %432, %433 : vector<2x15xf32>
    %435 = arith.addf %434, %427 : vector<2x15xf32>
    %436 = vector.broadcast %1 : vector<2x1xf32> to vector<2x15xf32>
    %437 = arith.addf %435, %436 : vector<2x15xf32>
    %438 = math.tanh %437 : vector<2x15xf32>
    %c1_66 = arith.constant 1 : index
    %c2_67 = arith.constant 2 : index
    %c0_68 = arith.constant 0 : index
    %c0_69 = arith.constant 0 : index
    %439 = vector.load %arg4[%c1_66, %c2_67, %c0_68, %c0_69] : memref<2x7x2x15xf32, #tpu.memory_space<vmem>>, vector<1x1x2x15xf32>
    %440 = vector.shape_cast %439 : vector<1x1x2x15xf32> to vector<2x15xf32>
    %441 = vector.shape_cast %438 : vector<2x15xf32> to vector<1x1x2x15xf32>
    tpu.vector_store %arg4[%c1_66, %c2_67, %c0_68, %c0_69], %441 {strides = array<i32>} : memref<2x7x2x15xf32, #tpu.memory_space<vmem>>, vector<1x1x2x15xf32>,
    %c1_70 = arith.constant 1 : index
    %c144_71 = arith.constant 144 : index
    %c0_72 = arith.constant 0 : index
    %442 = vector.load %arg1[%c1_70, %c144_71, %c0_72] : memref<2x1152x32xbf16, #tpu.memory_space<vmem>>, vector<1x864x32xbf16>
    %443 = vector.shape_cast %442 : vector<1x864x32xbf16> to vector<864x32xbf16>
    %cst_73 = arith.constant dense<0.000000e+00> : vector<36x32xf32>
    %444 = tpu.matmul %0, %443, %cst_73 {dimension_numbers = #tpu.dot_dimension_numbers<[1], [0], [0], [1], [0, 0, 1, 1], [], []>} : vector<36x864xbf16>, vector<864x32xbf16>, vector<36x32xf32> -> vector<36x32xf32>
    %445 = vector.extract_strided_slice %444 {offsets = [0, 0], sizes = [2, 15], strides = [1, 1]} : vector<36x32xf32> to vector<2x15xf32>
    %446 = vector.extract_strided_slice %444 {offsets = [2, 1], sizes = [2, 15], strides = [1, 1]} : vector<36x32xf32> to vector<2x15xf32>
    %447 = vector.extract_strided_slice %444 {offsets = [4, 2], sizes = [2, 15], strides = [1, 1]} : vector<36x32xf32> to vector<2x15xf32>
    %448 = vector.extract_strided_slice %444 {offsets = [6, 3], sizes = [2, 15], strides = [1, 1]} : vector<36x32xf32> to vector<2x15xf32>
    %449 = vector.extract_strided_slice %444 {offsets = [8, 4], sizes = [2, 15], strides = [1, 1]} : vector<36x32xf32> to vector<2x15xf32>
    %450 = vector.extract_strided_slice %444 {offsets = [10, 5], sizes = [2, 15], strides = [1, 1]} : vector<36x32xf32> to vector<2x15xf32>
    %451 = vector.extract_strided_slice %444 {offsets = [12, 6], sizes = [2, 15], strides = [1, 1]} : vector<36x32xf32> to vector<2x15xf32>
    %452 = vector.extract_strided_slice %444 {offsets = [14, 7], sizes = [2, 15], strides = [1, 1]} : vector<36x32xf32> to vector<2x15xf32>
    %453 = vector.extract_strided_slice %444 {offsets = [16, 8], sizes = [2, 15], strides = [1, 1]} : vector<36x32xf32> to vector<2x15xf32>
    %454 = vector.extract_strided_slice %444 {offsets = [18, 9], sizes = [2, 15], strides = [1, 1]} : vector<36x32xf32> to vector<2x15xf32>
    %455 = vector.extract_strided_slice %444 {offsets = [20, 10], sizes = [2, 15], strides = [1, 1]} : vector<36x32xf32> to vector<2x15xf32>
    %456 = vector.extract_strided_slice %444 {offsets = [22, 11], sizes = [2, 15], strides = [1, 1]} : vector<36x32xf32> to vector<2x15xf32>
    %457 = vector.extract_strided_slice %444 {offsets = [24, 12], sizes = [2, 15], strides = [1, 1]} : vector<36x32xf32> to vector<2x15xf32>
    %458 = vector.extract_strided_slice %444 {offsets = [26, 13], sizes = [2, 15], strides = [1, 1]} : vector<36x32xf32> to vector<2x15xf32>
    %459 = vector.extract_strided_slice %444 {offsets = [28, 14], sizes = [2, 15], strides = [1, 1]} : vector<36x32xf32> to vector<2x15xf32>
    %460 = vector.extract_strided_slice %444 {offsets = [30, 15], sizes = [2, 15], strides = [1, 1]} : vector<36x32xf32> to vector<2x15xf32>
    %461 = vector.extract_strided_slice %444 {offsets = [32, 16], sizes = [2, 15], strides = [1, 1]} : vector<36x32xf32> to vector<2x15xf32>
    %462 = vector.extract_strided_slice %444 {offsets = [34, 17], sizes = [2, 15], strides = [1, 1]} : vector<36x32xf32> to vector<2x15xf32>
    %463 = arith.addf %445, %446 : vector<2x15xf32>
    %464 = arith.addf %447, %448 : vector<2x15xf32>
    %465 = arith.addf %449, %450 : vector<2x15xf32>
    %466 = arith.addf %451, %452 : vector<2x15xf32>
    %467 = arith.addf %453, %454 : vector<2x15xf32>
    %468 = arith.addf %455, %456 : vector<2x15xf32>
    %469 = arith.addf %457, %458 : vector<2x15xf32>
    %470 = arith.addf %459, %460 : vector<2x15xf32>
    %471 = arith.addf %461, %462 : vector<2x15xf32>
    %472 = arith.addf %463, %464 : vector<2x15xf32>
    %473 = arith.addf %465, %466 : vector<2x15xf32>
    %474 = arith.addf %467, %468 : vector<2x15xf32>
    %475 = arith.addf %469, %470 : vector<2x15xf32>
    %476 = arith.addf %472, %473 : vector<2x15xf32>
    %477 = arith.addf %474, %475 : vector<2x15xf32>
    %478 = arith.addf %476, %477 : vector<2x15xf32>
    %479 = arith.addf %478, %471 : vector<2x15xf32>
    %480 = vector.broadcast %1 : vector<2x1xf32> to vector<2x15xf32>
    %481 = arith.addf %479, %480 : vector<2x15xf32>
    %482 = math.tanh %481 : vector<2x15xf32>
    %c1_74 = arith.constant 1 : index
    %c3_75 = arith.constant 3 : index
    %c0_76 = arith.constant 0 : index
    %c0_77 = arith.constant 0 : index
    %483 = vector.load %arg4[%c1_74, %c3_75, %c0_76, %c0_77] : memref<2x7x2x15xf32, #tpu.memory_space<vmem>>, vector<1x1x2x15xf32>
    %484 = vector.shape_cast %483 : vector<1x1x2x15xf32> to vector<2x15xf32>
    %485 = vector.shape_cast %482 : vector<2x15xf32> to vector<1x1x2x15xf32>
    tpu.vector_store %arg4[%c1_74, %c3_75, %c0_76, %c0_77], %485 {strides = array<i32>} : memref<2x7x2x15xf32, #tpu.memory_space<vmem>>, vector<1x1x2x15xf32>,
    %c1_78 = arith.constant 1 : index
    %c192_79 = arith.constant 192 : index
    %c0_80 = arith.constant 0 : index
    %486 = vector.load %arg1[%c1_78, %c192_79, %c0_80] : memref<2x1152x32xbf16, #tpu.memory_space<vmem>>, vector<1x864x32xbf16>
    %487 = vector.shape_cast %486 : vector<1x864x32xbf16> to vector<864x32xbf16>
    %cst_81 = arith.constant dense<0.000000e+00> : vector<36x32xf32>
    %488 = tpu.matmul %0, %487, %cst_81 {dimension_numbers = #tpu.dot_dimension_numbers<[1], [0], [0], [1], [0, 0, 1, 1], [], []>} : vector<36x864xbf16>, vector<864x32xbf16>, vector<36x32xf32> -> vector<36x32xf32>
    %489 = vector.extract_strided_slice %488 {offsets = [0, 0], sizes = [2, 15], strides = [1, 1]} : vector<36x32xf32> to vector<2x15xf32>
    %490 = vector.extract_strided_slice %488 {offsets = [2, 1], sizes = [2, 15], strides = [1, 1]} : vector<36x32xf32> to vector<2x15xf32>
    %491 = vector.extract_strided_slice %488 {offsets = [4, 2], sizes = [2, 15], strides = [1, 1]} : vector<36x32xf32> to vector<2x15xf32>
    %492 = vector.extract_strided_slice %488 {offsets = [6, 3], sizes = [2, 15], strides = [1, 1]} : vector<36x32xf32> to vector<2x15xf32>
    %493 = vector.extract_strided_slice %488 {offsets = [8, 4], sizes = [2, 15], strides = [1, 1]} : vector<36x32xf32> to vector<2x15xf32>
    %494 = vector.extract_strided_slice %488 {offsets = [10, 5], sizes = [2, 15], strides = [1, 1]} : vector<36x32xf32> to vector<2x15xf32>
    %495 = vector.extract_strided_slice %488 {offsets = [12, 6], sizes = [2, 15], strides = [1, 1]} : vector<36x32xf32> to vector<2x15xf32>
    %496 = vector.extract_strided_slice %488 {offsets = [14, 7], sizes = [2, 15], strides = [1, 1]} : vector<36x32xf32> to vector<2x15xf32>
    %497 = vector.extract_strided_slice %488 {offsets = [16, 8], sizes = [2, 15], strides = [1, 1]} : vector<36x32xf32> to vector<2x15xf32>
    %498 = vector.extract_strided_slice %488 {offsets = [18, 9], sizes = [2, 15], strides = [1, 1]} : vector<36x32xf32> to vector<2x15xf32>
    %499 = vector.extract_strided_slice %488 {offsets = [20, 10], sizes = [2, 15], strides = [1, 1]} : vector<36x32xf32> to vector<2x15xf32>
    %500 = vector.extract_strided_slice %488 {offsets = [22, 11], sizes = [2, 15], strides = [1, 1]} : vector<36x32xf32> to vector<2x15xf32>
    %501 = vector.extract_strided_slice %488 {offsets = [24, 12], sizes = [2, 15], strides = [1, 1]} : vector<36x32xf32> to vector<2x15xf32>
    %502 = vector.extract_strided_slice %488 {offsets = [26, 13], sizes = [2, 15], strides = [1, 1]} : vector<36x32xf32> to vector<2x15xf32>
    %503 = vector.extract_strided_slice %488 {offsets = [28, 14], sizes = [2, 15], strides = [1, 1]} : vector<36x32xf32> to vector<2x15xf32>
    %504 = vector.extract_strided_slice %488 {offsets = [30, 15], sizes = [2, 15], strides = [1, 1]} : vector<36x32xf32> to vector<2x15xf32>
    %505 = vector.extract_strided_slice %488 {offsets = [32, 16], sizes = [2, 15], strides = [1, 1]} : vector<36x32xf32> to vector<2x15xf32>
    %506 = vector.extract_strided_slice %488 {offsets = [34, 17], sizes = [2, 15], strides = [1, 1]} : vector<36x32xf32> to vector<2x15xf32>
    %507 = arith.addf %489, %490 : vector<2x15xf32>
    %508 = arith.addf %491, %492 : vector<2x15xf32>
    %509 = arith.addf %493, %494 : vector<2x15xf32>
    %510 = arith.addf %495, %496 : vector<2x15xf32>
    %511 = arith.addf %497, %498 : vector<2x15xf32>
    %512 = arith.addf %499, %500 : vector<2x15xf32>
    %513 = arith.addf %501, %502 : vector<2x15xf32>
    %514 = arith.addf %503, %504 : vector<2x15xf32>
    %515 = arith.addf %505, %506 : vector<2x15xf32>
    %516 = arith.addf %507, %508 : vector<2x15xf32>
    %517 = arith.addf %509, %510 : vector<2x15xf32>
    %518 = arith.addf %511, %512 : vector<2x15xf32>
    %519 = arith.addf %513, %514 : vector<2x15xf32>
    %520 = arith.addf %516, %517 : vector<2x15xf32>
    %521 = arith.addf %518, %519 : vector<2x15xf32>
    %522 = arith.addf %520, %521 : vector<2x15xf32>
    %523 = arith.addf %522, %515 : vector<2x15xf32>
    %524 = vector.broadcast %1 : vector<2x1xf32> to vector<2x15xf32>
    %525 = arith.addf %523, %524 : vector<2x15xf32>
    %526 = math.tanh %525 : vector<2x15xf32>
    %c1_82 = arith.constant 1 : index
    %c4_83 = arith.constant 4 : index
    %c0_84 = arith.constant 0 : index
    %c0_85 = arith.constant 0 : index
    %527 = vector.load %arg4[%c1_82, %c4_83, %c0_84, %c0_85] : memref<2x7x2x15xf32, #tpu.memory_space<vmem>>, vector<1x1x2x15xf32>
    %528 = vector.shape_cast %527 : vector<1x1x2x15xf32> to vector<2x15xf32>
    %529 = vector.shape_cast %526 : vector<2x15xf32> to vector<1x1x2x15xf32>
    tpu.vector_store %arg4[%c1_82, %c4_83, %c0_84, %c0_85], %529 {strides = array<i32>} : memref<2x7x2x15xf32, #tpu.memory_space<vmem>>, vector<1x1x2x15xf32>,
    %c1_86 = arith.constant 1 : index
    %c240_87 = arith.constant 240 : index
    %c0_88 = arith.constant 0 : index
    %530 = vector.load %arg1[%c1_86, %c240_87, %c0_88] : memref<2x1152x32xbf16, #tpu.memory_space<vmem>>, vector<1x864x32xbf16>
    %531 = vector.shape_cast %530 : vector<1x864x32xbf16> to vector<864x32xbf16>
    %cst_89 = arith.constant dense<0.000000e+00> : vector<36x32xf32>
    %532 = tpu.matmul %0, %531, %cst_89 {dimension_numbers = #tpu.dot_dimension_numbers<[1], [0], [0], [1], [0, 0, 1, 1], [], []>} : vector<36x864xbf16>, vector<864x32xbf16>, vector<36x32xf32> -> vector<36x32xf32>
    %533 = vector.extract_strided_slice %532 {offsets = [0, 0], sizes = [2, 15], strides = [1, 1]} : vector<36x32xf32> to vector<2x15xf32>
    %534 = vector.extract_strided_slice %532 {offsets = [2, 1], sizes = [2, 15], strides = [1, 1]} : vector<36x32xf32> to vector<2x15xf32>
    %535 = vector.extract_strided_slice %532 {offsets = [4, 2], sizes = [2, 15], strides = [1, 1]} : vector<36x32xf32> to vector<2x15xf32>
    %536 = vector.extract_strided_slice %532 {offsets = [6, 3], sizes = [2, 15], strides = [1, 1]} : vector<36x32xf32> to vector<2x15xf32>
    %537 = vector.extract_strided_slice %532 {offsets = [8, 4], sizes = [2, 15], strides = [1, 1]} : vector<36x32xf32> to vector<2x15xf32>
    %538 = vector.extract_strided_slice %532 {offsets = [10, 5], sizes = [2, 15], strides = [1, 1]} : vector<36x32xf32> to vector<2x15xf32>
    %539 = vector.extract_strided_slice %532 {offsets = [12, 6], sizes = [2, 15], strides = [1, 1]} : vector<36x32xf32> to vector<2x15xf32>
    %540 = vector.extract_strided_slice %532 {offsets = [14, 7], sizes = [2, 15], strides = [1, 1]} : vector<36x32xf32> to vector<2x15xf32>
    %541 = vector.extract_strided_slice %532 {offsets = [16, 8], sizes = [2, 15], strides = [1, 1]} : vector<36x32xf32> to vector<2x15xf32>
    %542 = vector.extract_strided_slice %532 {offsets = [18, 9], sizes = [2, 15], strides = [1, 1]} : vector<36x32xf32> to vector<2x15xf32>
    %543 = vector.extract_strided_slice %532 {offsets = [20, 10], sizes = [2, 15], strides = [1, 1]} : vector<36x32xf32> to vector<2x15xf32>
    %544 = vector.extract_strided_slice %532 {offsets = [22, 11], sizes = [2, 15], strides = [1, 1]} : vector<36x32xf32> to vector<2x15xf32>
    %545 = vector.extract_strided_slice %532 {offsets = [24, 12], sizes = [2, 15], strides = [1, 1]} : vector<36x32xf32> to vector<2x15xf32>
    %546 = vector.extract_strided_slice %532 {offsets = [26, 13], sizes = [2, 15], strides = [1, 1]} : vector<36x32xf32> to vector<2x15xf32>
    %547 = vector.extract_strided_slice %532 {offsets = [28, 14], sizes = [2, 15], strides = [1, 1]} : vector<36x32xf32> to vector<2x15xf32>
    %548 = vector.extract_strided_slice %532 {offsets = [30, 15], sizes = [2, 15], strides = [1, 1]} : vector<36x32xf32> to vector<2x15xf32>
    %549 = vector.extract_strided_slice %532 {offsets = [32, 16], sizes = [2, 15], strides = [1, 1]} : vector<36x32xf32> to vector<2x15xf32>
    %550 = vector.extract_strided_slice %532 {offsets = [34, 17], sizes = [2, 15], strides = [1, 1]} : vector<36x32xf32> to vector<2x15xf32>
    %551 = arith.addf %533, %534 : vector<2x15xf32>
    %552 = arith.addf %535, %536 : vector<2x15xf32>
    %553 = arith.addf %537, %538 : vector<2x15xf32>
    %554 = arith.addf %539, %540 : vector<2x15xf32>
    %555 = arith.addf %541, %542 : vector<2x15xf32>
    %556 = arith.addf %543, %544 : vector<2x15xf32>
    %557 = arith.addf %545, %546 : vector<2x15xf32>
    %558 = arith.addf %547, %548 : vector<2x15xf32>
    %559 = arith.addf %549, %550 : vector<2x15xf32>
    %560 = arith.addf %551, %552 : vector<2x15xf32>
    %561 = arith.addf %553, %554 : vector<2x15xf32>
    %562 = arith.addf %555, %556 : vector<2x15xf32>
    %563 = arith.addf %557, %558 : vector<2x15xf32>
    %564 = arith.addf %560, %561 : vector<2x15xf32>
    %565 = arith.addf %562, %563 : vector<2x15xf32>
    %566 = arith.addf %564, %565 : vector<2x15xf32>
    %567 = arith.addf %566, %559 : vector<2x15xf32>
    %568 = vector.broadcast %1 : vector<2x1xf32> to vector<2x15xf32>
    %569 = arith.addf %567, %568 : vector<2x15xf32>
    %570 = math.tanh %569 : vector<2x15xf32>
    %c1_90 = arith.constant 1 : index
    %c5_91 = arith.constant 5 : index
    %c0_92 = arith.constant 0 : index
    %c0_93 = arith.constant 0 : index
    %571 = vector.load %arg4[%c1_90, %c5_91, %c0_92, %c0_93] : memref<2x7x2x15xf32, #tpu.memory_space<vmem>>, vector<1x1x2x15xf32>
    %572 = vector.shape_cast %571 : vector<1x1x2x15xf32> to vector<2x15xf32>
    %573 = vector.shape_cast %570 : vector<2x15xf32> to vector<1x1x2x15xf32>
    tpu.vector_store %arg4[%c1_90, %c5_91, %c0_92, %c0_93], %573 {strides = array<i32>} : memref<2x7x2x15xf32, #tpu.memory_space<vmem>>, vector<1x1x2x15xf32>,
    %c1_94 = arith.constant 1 : index
    %c288_95 = arith.constant 288 : index
    %c0_96 = arith.constant 0 : index
    %574 = vector.load %arg1[%c1_94, %c288_95, %c0_96] : memref<2x1152x32xbf16, #tpu.memory_space<vmem>>, vector<1x864x32xbf16>
    %575 = vector.shape_cast %574 : vector<1x864x32xbf16> to vector<864x32xbf16>
    %cst_97 = arith.constant dense<0.000000e+00> : vector<36x32xf32>
    %576 = tpu.matmul %0, %575, %cst_97 {dimension_numbers = #tpu.dot_dimension_numbers<[1], [0], [0], [1], [0, 0, 1, 1], [], []>} : vector<36x864xbf16>, vector<864x32xbf16>, vector<36x32xf32> -> vector<36x32xf32>
    %577 = vector.extract_strided_slice %576 {offsets = [0, 0], sizes = [2, 15], strides = [1, 1]} : vector<36x32xf32> to vector<2x15xf32>
    %578 = vector.extract_strided_slice %576 {offsets = [2, 1], sizes = [2, 15], strides = [1, 1]} : vector<36x32xf32> to vector<2x15xf32>
    %579 = vector.extract_strided_slice %576 {offsets = [4, 2], sizes = [2, 15], strides = [1, 1]} : vector<36x32xf32> to vector<2x15xf32>
    %580 = vector.extract_strided_slice %576 {offsets = [6, 3], sizes = [2, 15], strides = [1, 1]} : vector<36x32xf32> to vector<2x15xf32>
    %581 = vector.extract_strided_slice %576 {offsets = [8, 4], sizes = [2, 15], strides = [1, 1]} : vector<36x32xf32> to vector<2x15xf32>
    %582 = vector.extract_strided_slice %576 {offsets = [10, 5], sizes = [2, 15], strides = [1, 1]} : vector<36x32xf32> to vector<2x15xf32>
    %583 = vector.extract_strided_slice %576 {offsets = [12, 6], sizes = [2, 15], strides = [1, 1]} : vector<36x32xf32> to vector<2x15xf32>
    %584 = vector.extract_strided_slice %576 {offsets = [14, 7], sizes = [2, 15], strides = [1, 1]} : vector<36x32xf32> to vector<2x15xf32>
    %585 = vector.extract_strided_slice %576 {offsets = [16, 8], sizes = [2, 15], strides = [1, 1]} : vector<36x32xf32> to vector<2x15xf32>
    %586 = vector.extract_strided_slice %576 {offsets = [18, 9], sizes = [2, 15], strides = [1, 1]} : vector<36x32xf32> to vector<2x15xf32>
    %587 = vector.extract_strided_slice %576 {offsets = [20, 10], sizes = [2, 15], strides = [1, 1]} : vector<36x32xf32> to vector<2x15xf32>
    %588 = vector.extract_strided_slice %576 {offsets = [22, 11], sizes = [2, 15], strides = [1, 1]} : vector<36x32xf32> to vector<2x15xf32>
    %589 = vector.extract_strided_slice %576 {offsets = [24, 12], sizes = [2, 15], strides = [1, 1]} : vector<36x32xf32> to vector<2x15xf32>
    %590 = vector.extract_strided_slice %576 {offsets = [26, 13], sizes = [2, 15], strides = [1, 1]} : vector<36x32xf32> to vector<2x15xf32>
    %591 = vector.extract_strided_slice %576 {offsets = [28, 14], sizes = [2, 15], strides = [1, 1]} : vector<36x32xf32> to vector<2x15xf32>
    %592 = vector.extract_strided_slice %576 {offsets = [30, 15], sizes = [2, 15], strides = [1, 1]} : vector<36x32xf32> to vector<2x15xf32>
    %593 = vector.extract_strided_slice %576 {offsets = [32, 16], sizes = [2, 15], strides = [1, 1]} : vector<36x32xf32> to vector<2x15xf32>
    %594 = vector.extract_strided_slice %576 {offsets = [34, 17], sizes = [2, 15], strides = [1, 1]} : vector<36x32xf32> to vector<2x15xf32>
    %595 = arith.addf %577, %578 : vector<2x15xf32>
    %596 = arith.addf %579, %580 : vector<2x15xf32>
    %597 = arith.addf %581, %582 : vector<2x15xf32>
    %598 = arith.addf %583, %584 : vector<2x15xf32>
    %599 = arith.addf %585, %586 : vector<2x15xf32>
    %600 = arith.addf %587, %588 : vector<2x15xf32>
    %601 = arith.addf %589, %590 : vector<2x15xf32>
    %602 = arith.addf %591, %592 : vector<2x15xf32>
    %603 = arith.addf %593, %594 : vector<2x15xf32>
    %604 = arith.addf %595, %596 : vector<2x15xf32>
    %605 = arith.addf %597, %598 : vector<2x15xf32>
    %606 = arith.addf %599, %600 : vector<2x15xf32>
    %607 = arith.addf %601, %602 : vector<2x15xf32>
    %608 = arith.addf %604, %605 : vector<2x15xf32>
    %609 = arith.addf %606, %607 : vector<2x15xf32>
    %610 = arith.addf %608, %609 : vector<2x15xf32>
    %611 = arith.addf %610, %603 : vector<2x15xf32>
    %612 = vector.broadcast %1 : vector<2x1xf32> to vector<2x15xf32>
    %613 = arith.addf %611, %612 : vector<2x15xf32>
    %614 = math.tanh %613 : vector<2x15xf32>
    %c1_98 = arith.constant 1 : index
    %c6_99 = arith.constant 6 : index
    %c0_100 = arith.constant 0 : index
    %c0_101 = arith.constant 0 : index
    %615 = vector.load %arg4[%c1_98, %c6_99, %c0_100, %c0_101] : memref<2x7x2x15xf32, #tpu.memory_space<vmem>>, vector<1x1x2x15xf32>
    %616 = vector.shape_cast %615 : vector<1x1x2x15xf32> to vector<2x15xf32>
    %617 = vector.shape_cast %614 : vector<2x15xf32> to vector<1x1x2x15xf32>
    tpu.vector_store %arg4[%c1_98, %c6_99, %c0_100, %c0_101], %617 {strides = array<i32>} : memref<2x7x2x15xf32, #tpu.memory_space<vmem>>, vector<1x1x2x15xf32>,
    return
  }
  func.func @transform_0(%arg0: i32) -> (i32, i32, i32) {
    %c0_i32 = arith.constant 0 : i32
    %c0_i32_0 = arith.constant 0 : i32
    %c0_i32_1 = arith.constant 0 : i32
    return %arg0, %c0_i32, %c0_i32_0 : i32, i32, i32
  }
  func.func @transform_1(%arg0: i32) -> (i32, i32) {
    %c0_i32 = arith.constant 0 : i32
    %c0_i32_0 = arith.constant 0 : i32
    %c0_i32_1 = arith.constant 0 : i32
    return %c0_i32, %c0_i32_0 : i32, i32
  }
  func.func @transform_2(%arg0: i32) -> (i32, i32) {
    %c0_i32 = arith.constant 0 : i32
    %c0_i32_0 = arith.constant 0 : i32
    %c0_i32_1 = arith.constant 0 : i32
    return %c0_i32, %c0_i32_0 : i32, i32
  }
  func.func @transform_3(%arg0: i32) -> (i32, i32, i32, i32) {
    %c0_i32 = arith.constant 0 : i32
    %c0_i32_0 = arith.constant 0 : i32
    %c0_i32_1 = arith.constant 0 : i32
    %c0_i32_2 = arith.constant 0 : i32
    return %arg0, %c0_i32, %c0_i32_0, %c0_i32_1 : i32, i32, i32, i32
  }
}

</mosaic_0001>

<bundles_post_ra>
// kernel: conv2d_tanh.1
= control target key start
LH: loop header
LB: loop body
LE: loop exit
PB: predicated region body
PF: predicated region fallthrough
CT: control target
= control target key end

     0   :  { %v19235_v36 = vmov 0.0   ;;  %vm14843_vm0 = vmmov 0   ;;  %vm563_vm1 = vcmask 785408   ;;  %s14845_s21 = smov 127   ;;  %s14846_s25 = smov 126   ;;  %vm878_vm2 = vcmask 115712   ;;  %s19231_s0 = inlined_call_operand.vmem [shape: bf16[2,1152,32], index: 0, kind: input, shape index: {}]   ;;  %s19232_s1 = inlined_call_operand.vmem [shape: bf16[36,864], index: 1, kind: input, shape index: {}]   ;;  %s19233_s2 = inlined_call_operand.vmem [shape: f32[2,1], index: 2, kind: input, shape index: {}]   ;;  %s19234_s3 = inlined_call_operand.hbm [shape: f32[2,7,2,15], index: 3, kind: output, shape index: {}]  }
   0x1   :  { %v13917_v0 = vld [vmem:[%s19231_s0 + $0x40] sm:$0xff]   ;;  %v13921_v4 = vld [vmem:[%s19231_s0 + $0x48] sm:$0xff]   ;;  %v13925_v8 = vld [vmem:[%s19231_s0 + $0x50] sm:$0xff]   ;;  %s14847_s13 = smov 112   ;;  %s14848_s19 = smov 124  }
   0x2   :  { %v13918_v1 = vld [vmem:[%s19231_s0 + $0xc0] sm:$0xff]   ;;  %12014 = vmatprep.subr.bf16.mxu0 %v13917_v0  ;;  %v13922_v5 = vld [vmem:[%s19231_s0 + $0xc8] sm:$0xff]   ;;  %v13926_v9 = vld [vmem:[%s19231_s0 + $0xd0] sm:$0xff]   ;;  %s14849_s28 = smov 120  }
   0x3   :  { %v13919_v2 = vld [vmem:[%s19231_s0] sm:$0xff]   ;;  %12048 = vmatprep.subr.bf16.mxu1 %v13918_v1  ;;  %v13923_v6 = vld [vmem:[%s19231_s0 + $0x8] sm:$0xff]   ;;  %v13927_v10 = vld [vmem:[%s19231_s0 + $0x10] sm:$0xff]  }
   0x4   :  { %v13920_v3 = vld [vmem:[%s19231_s0 + $0x80] sm:$0xff]   ;;  %12015 = vmatpush3.bf16.msra.mxu0 %v13919_v2  ;;  %v13924_v7 = vld [vmem:[%s19231_s0 + $0x88] sm:$0xff]   ;;  %v13928_v11 = vld [vmem:[%s19231_s0 + $0x90] sm:$0xff]  }
   0x5   :  { %12049 = vmatpush3.bf16.msra.mxu1 %v13920_v3  ;;  %12016 = vmatprep.subr.bf16.mxu0 %v13921_v4  ;;  %v13929_v12 = vld [vmem:[%s19231_s0 + $0x58] sm:$0xff]   ;;  %v13933_v16 = vld [vmem:[%s19231_s0 + $0x60] sm:$0xff]   ;;  %v13937_v20 = vld [vmem:[%s19231_s0 + $0x68] sm:$0xff]  }
   0x6   :  { %12050 = vmatprep.subr.bf16.mxu1 %v13922_v5  ;;  %v13930_v13 = vld [vmem:[%s19231_s0 + $0xd8] sm:$0xff]   ;;  %v13934_v17 = vld [vmem:[%s19231_s0 + $0xe0] sm:$0xff]   ;;  %v13938_v21 = vld [vmem:[%s19231_s0 + $0xe8] sm:$0xff]  }
   0x7   :  { %v13931_v14 = vld [vmem:[%s19231_s0 + $0x18] sm:$0xff]   ;;  %v13935_v18 = vld [vmem:[%s19231_s0 + $0x20] sm:$0xff]   ;;  %v13939_v22 = vld [vmem:[%s19231_s0 + $0x28] sm:$0xff]  }
   0x8   :  { %12017 = vmatpush3.bf16.msra.mxu0 %v13923_v6  ;;  %v13932_v15 = vld [vmem:[%s19231_s0 + $0x98] sm:$0xff]   ;;  %v13936_v19 = vld [vmem:[%s19231_s0 + $0xa0] sm:$0xff]   ;;  %v13940_v23 = vld [vmem:[%s19231_s0 + $0xa8] sm:$0xff]  }
   0x9   :  { %12051 = vmatpush3.bf16.msra.mxu1 %v13924_v7  ;;  %12018 = vmatprep.subr.bf16.mxu0 %v13925_v8  ;;  %v13941_v24 = vld [vmem:[%s19231_s0 + $0x70] sm:$0xff]   ;;  %v13945_v28 = vld [vmem:[%s19231_s0 + $0x78] sm:$0xff]   ;;  %v14972_v32 = vld [vmem:[%s19232_s1 + $0x4] ss:$28 sps:$4 sm:$0xff]  }
   0xa   :  { %12052 = vmatprep.subr.bf16.mxu1 %v13926_v9  ;;  %v13942_v25 = vld [vmem:[%s19231_s0 + $0xf0] sm:$0xff]   ;;  %v13946_v29 = vld [vmem:[%s19231_s0 + $0xf8] sm:$0xff]   ;;  %v14977_v33 = vld [vmem:[%s19232_s1 + $0xc] ss:$28 sps:$4 sm:$0xff]   ;;  %605 = vmatprep.mubr.bf16.mxu0 %v14972_v32 }
   0xb   :  { %v13943_v26 = vld [vmem:[%s19231_s0 + $0x30] sm:$0xff]   ;;  %v13947_v30 = vld [vmem:[%s19231_s0 + $0x38] sm:$0xff]   ;;  %v14988_v35 = vld [vmem:[%s19232_s1 + $0x8] ss:$28 sps:$4 sm:$0xff]   ;;  %661 = vmatprep.mubr.bf16.mxu1 %v14977_v33 }
   0xc   :  { %12019 = vmatpush3.bf16.msra.mxu0 %v13927_v10  ;;  %v13944_v27 = vld [vmem:[%s19231_s0 + $0xb0] sm:$0xff]   ;;  %v13948_v31 = vld [vmem:[%s19231_s0 + $0xb8] sm:$0xff]   ;;  %v13955_v37 = vld [vmem:[%s19231_s0 + $0x140] sm:$0xff]  }
   0xd   :  { %12053 = vmatpush3.bf16.msra.mxu1 %v13928_v11  ;;  %12020 = vmatprep.subr.bf16.mxu0 %v13929_v12  ;;  %v14983_v34 = vld [vmem:[%s19232_s1] ss:$28 sps:$4 sm:$0xff]   ;;  %v13958_v40 = vld [vmem:[%s19231_s0 + $0x148] sm:$0xff]   ;;  %v15026_v45 = vld [vmem:[%s19232_s1 + $0x38] ss:$28 sps:$4 sm:$0xff]  }
   0xe   :  { %12054 = vmatprep.subr.bf16.mxu1 %v13930_v13  ;;  %v13956_v38 = vld [vmem:[%s19231_s0 + $0x100] sm:$0xff]   ;;  %v13959_v41 = vld [vmem:[%s19231_s0 + $0x108] sm:$0xff]   ;;  %v15016_v43 = vld [vmem:[%s19232_s1 + $0x3c] ss:$28 sps:$4 sm:$0xff]  }
   0xf   :  { %v13957_v39 = vld [vmem:[%s19231_s0 + $0x180] sm:$0xff]   ;;  %v13960_v42 = vld [vmem:[%s19231_s0 + $0x188] sm:$0xff]   ;;  %v13967_v47 = vld [vmem:[%s19231_s0 + $0x150] sm:$0xff]  }
  0x10   :  { %12021 = vmatpush3.bf16.msra.mxu0 %v13931_v14  ;;  %v15021_v44 = vld [vmem:[%s19232_s1 + $0x44] ss:$28 sps:$4 sm:$0xff]   ;;  %v13968_v48 = vld [vmem:[%s19231_s0 + $0x110] sm:$0xff]   ;;  %v13970_v50 = vld [vmem:[%s19231_s0 + $0x158] sm:$0xff]  }
  0x11   :  { %12055 = vmatpush3.bf16.msra.mxu1 %v13932_v15  ;;  %12022 = vmatprep.subr.bf16.mxu0 %v13933_v16  ;;  %v15032_v46 = vld [vmem:[%s19232_s1 + $0x40] ss:$28 sps:$4 sm:$0xff]   ;;  %v13969_v49 = vld [vmem:[%s19231_s0 + $0x190] sm:$0xff]   ;;  %v13980_v62 = vld [vmem:[%s19231_s0 + $0x168] sm:$0xff]  }
  0x12   :  { %12056 = vmatprep.subr.bf16.mxu1 %v13934_v17  ;;  %v13971_v51 = vld [vmem:[%s19231_s0 + $0x118] sm:$0xff]   ;;  %v32_v53 = vld [vmem:[%s19232_s1 + $0x70] sm:$0x33]  ;;  %v13977_v59 = vld [vmem:[%s19231_s0 + $0x160] sm:$0xff]  }
  0x13   :  { %v13972_v52 = vld [vmem:[%s19231_s0 + $0x198] sm:$0xff]   ;;  %v15063_v55 = vcombine.high %v32_v53, %v32_v53  ;;  %v15067_v57 = vcombine.low %v32_v53, %v32_v53  ;;  %v13978_v60 = vld [vmem:[%s19231_s0 + $0x120] sm:$0xff]   ;;  %v13981_v63 = vld [vmem:[%s19231_s0 + $0x128] sm:$0xff]  }
  0x14   :  { %12023 = vmatpush3.bf16.msra.mxu0 %v13935_v18  ;;  %v33_v54 = vld [vmem:[%s19232_s1 + $0x78] sm:$0x33]  ;;  %v13979_v61 = vld [vmem:[%s19231_s0 + $0x1a0] sm:$0xff]   ;;  %v13982_v0 = vld [vmem:[%s19231_s0 + $0x1a8] sm:$0xff]  }
  0x15   :  { %12057 = vmatpush3.bf16.msra.mxu1 %v13936_v19  ;;  %12024 = vmatprep.subr.bf16.mxu0 %v13937_v20  ;;  %v15065_v56 = vcombine.high %v33_v54, %v33_v54  ;;  %v15069_v58 = vcombine.low %v33_v54, %v33_v54  ;;  %v13983_v1 = vld [vmem:[%s19231_s0 + $0x170] sm:$0xff]   ;;  %v13985_v3 = vld [vmem:[%s19231_s0 + $0x58] sm:$0xff]   ;;  %v13989_v7 = vld [vmem:[%s19231_s0 + $0x60] sm:$0xff]  }
  0x16   :  { %12058 = vmatprep.subr.bf16.mxu1 %v13938_v21  ;;  %v15103_v2 = vld [vmem:[%s19232_s1 + $0x18] ss:$28 sps:$4 sm:$0xff]   ;;  %v13991_v9 = vld [vmem:[%s19231_s0 + $0x20] sm:$0xff]   ;;  %v15138_v11 = vld [vmem:[%s19232_s1 + $0x10] ss:$28 sps:$4 sm:$0xff]  }
  0x17   :  { %v13986_v4 = vld [vmem:[%s19231_s0 + $0x130] sm:$0xff]   ;;  %v13987_v5 = vld [vmem:[%s19231_s0 + $0x18] sm:$0xff]   ;;  %v13995_v12 = vld [vmem:[%s19231_s0 + $0x68] sm:$0xff]  }
  0x18   :  { %12025 = vmatpush3.bf16.msra.mxu0 %v13939_v22  ;;  %v13988_v6 = vld [vmem:[%s19231_s0 + $0x178] sm:$0xff]   ;;  %v15131_v10 = vld [vmem:[%s19232_s1 + $0x14] ss:$28 sps:$4 sm:$0xff]   ;;  %v13997_v14 = vld [vmem:[%s19231_s0 + $0x28] sm:$0xff]  }
  0x19   :  { %12059 = vmatpush3.bf16.msra.mxu1 %v13940_v23  ;;  %12026 = vmatprep.subr.bf16.mxu0 %v13941_v24  ;;  %v13990_v8 = vld [vmem:[%s19231_s0 + $0x138] sm:$0xff]   ;;  %v13999_v16 = vld [vmem:[%s19231_s0 + $0x70] sm:$0xff]   ;;  %v14000_v17 = vld [vmem:[%s19231_s0 + $0xe0] sm:$0xff]  }
  0x1a   :  { %12060 = vmatprep.subr.bf16.mxu1 %v13942_v25  ;;  %v13996_v13 = vld [vmem:[%s19231_s0 + $0xd8] sm:$0xff]   ;;  %v14001_v18 = vld [vmem:[%s19231_s0 + $0x30] sm:$0xff]   ;;  %v14002_v19 = vld [vmem:[%s19231_s0 + $0xa0] sm:$0xff]  }
  0x1b   :  { %v13998_v15 = vld [vmem:[%s19231_s0 + $0x98] sm:$0xff]   ;;  %v15169_v20 = vld [vmem:[%s19232_s1 + $0x50] ss:$28 sps:$4 sm:$0xff]   ;;  %v15179_v22 = vld [vmem:[%s19232_s1 + $0x48] ss:$28 sps:$4 sm:$0xff]  }
  0x1c   :  { %12027 = vmatpush3.bf16.msra.mxu0 %v13943_v26  ;;  %v15174_v21 = vld [vmem:[%s19232_s1 + $0x4c] ss:$28 sps:$4 sm:$0xff]   ;;  %v14007_v23 = vld [vmem:[%s19231_s0 + $0x78] sm:$0xff]   ;;  %v14030_v54 = vld [vmem:[%s19231_s0 + $0x110] sm:$0xff]  }
  0x1d   :  { %12061 = vmatpush3.bf16.msra.mxu1 %v13944_v27  ;;  %12028 = vmatprep.subr.bf16.mxu0 %v13945_v28  ;;  %v14008_v24 = vld [vmem:[%s19231_s0 + $0xe8] sm:$0xff]   ;;  %v14009_v25 = vld [vmem:[%s19231_s0 + $0x38] sm:$0xff]   ;;  %v14011_v27 = vld [vmem:[%s19231_s0 + $0x80] sm:$0xff]  }
  0x1e   :  { %12062 = vmatprep.subr.bf16.mxu1 %v13946_v29  ;;  %v14010_v26 = vld [vmem:[%s19231_s0 + $0xa8] sm:$0xff]   ;;  %v14012_v28 = vld [vmem:[%s19231_s0 + $0xf0] sm:$0xff]   ;;  %v14013_v29 = vld [vmem:[%s19231_s0 + $0x40] sm:$0xff]  }
  0x1f   :  { %v14029_v53 = vld [vmem:[%s19231_s0 + $0x118] sm:$0xff]  }
  0x20   :  { %12029 = vmatpush3.bf16.msra.mxu0 %v13947_v30  ;;  %v14014_v30 = vld [vmem:[%s19231_s0 + $0xb0] sm:$0xff]  }
  0x21   :  { %12063 = vmatpush3.bf16.msra.mxu1 %v13948_v31  ;;  %12082 = vmatprep.subr.bf16.mxu0 %v13955_v37  ;;  %v15214_v31 = vld [vmem:[%s19232_s1 + $0x88] ss:$0 sps:$4 sm:$0x33]   ;;  %v34_v37 = vld [vmem:[%s19232_s1 + $0x80] sm:$0x33] }
  0x22   :  { %13568 = vmatprep.subr.bf16.mxu1 %v19235_v36 }
  0x23   :  { %606 = vmatmul.mubr.bf16.vlgmr.msra.gmra.mrb[0].mxu0 %v14983_v34 }
  0x24   :  { %662 = vmatmul.mubr.bf16.vlgmr.msra.gmra.mrb[0].mxu1 %v14988_v35  ;;  %12083 = vmatpush3.bf16.msra.mxu0 %v13956_v38  ;;  %v14018_v38 = vld [vmem:[%s19231_s0 + $0x88] sm:$0xff]  }
  0x25   :  { %13569 = vmatpush3.bf16.msra.mxu1 %v13957_v39  ;;  %12084 = vmatprep.subr.bf16.mxu0 %v13958_v40  ;;  %v15222_v39 = vcombine.high %v34_v37, %v34_v37  ;;  %v15224_v40 = vcombine.low %v34_v37, %v34_v37  ;;  %v14072_v37 = vld [vmem:[%s19231_s0 + $0x98] sm:$0xff]  }
  0x26   :  { %13570 = vmatprep.subr.bf16.mxu1 %v19235_v36  ;;  %613 = vmatprep.mubr.bf16.mxu0 %v15016_v43 }
  0x27   :  { %669 = vmatprep.mubr.bf16.mxu1 %v15021_v44 }
  0x28   :  { %12085 = vmatpush3.bf16.msra.mxu0 %v13959_v41  ;;  %v14019_v41 = vld [vmem:[%s19231_s0 + $0xf8] sm:$0xff]  }
  0x29   :  { %13571 = vmatpush3.bf16.msra.mxu1 %v13960_v42  ;;  %12086 = vmatprep.subr.bf16.mxu0 %v13967_v47  ;;  %v14020_v42 = vld [vmem:[%s19231_s0 + $0x48] sm:$0xff]   ;;  %v14021_v47 = vld [vmem:[%s19231_s0 + $0xb8] sm:$0xff]  }
  0x2a   :  { %13572 = vmatprep.subr.bf16.mxu1 %v19235_v36 }
  0x2b   :  { %614 = vmatmul.mubr.bf16.gmra.mrb[4].mxu0 %v15026_v45 }
  0x2c   :  { %670 = vmatmul.mubr.bf16.gmra.mrb[4].mxu1 %v15032_v46  ;;  %12087 = vmatpush3.bf16.msra.mxu0 %v13968_v48  ;;  %v14022_v48 = vld [vmem:[%s19231_s0 + $0x90] sm:$0xff]  }
  0x2d   :  { %13573 = vmatpush3.bf16.msra.mxu1 %v13969_v49  ;;  %12088 = vmatprep.subr.bf16.mxu0 %v13970_v50  ;;  %v14023_v49 = vld [vmem:[%s19231_s0 + $0x100] sm:$0xff]  }
  0x2e   :  { %13574 = vmatprep.subr.bf16.mxu1 %v19235_v36  ;;  %621 = vmatprep.mubr.bf16.mxu0 %v15063_v55  ;;  %v14025_v50 = vld [vmem:[%s19231_s0 + $0xc0] sm:$0xff]  }
  0x2f   :  { %677 = vmatprep.mubr.bf16.mxu1 %v15065_v56 }
  0x30   :  { %12089 = vmatpush3.bf16.msra.mxu0 %v13971_v51  ;;  %v14027_v51 = vld [vmem:[%s19231_s0 + $0x158] sm:$0xff]  }
  0x31   :  { %13575 = vmatpush3.bf16.msra.mxu1 %v13972_v52  ;;  %12090 = vmatprep.subr.bf16.mxu0 %v13977_v59  ;;  %v14028_v52 = vld [vmem:[%s19231_s0 + $0xc8] sm:$0xff]   ;;  %v14031_v59 = vld [vmem:[%s19231_s0 + $0x160] sm:$0xff]  }
  0x32   :  { %13576 = vmatprep.subr.bf16.mxu1 %v19235_v36 }
  0x33   :  { %622 = vmatmul.mubr.bf16.gmra.mrb[8].mxu0 %v15067_v57 }
  0x34   :  { %678 = vmatmul.mubr.bf16.gmra.mrb[8].mxu1 %v15069_v58  ;;  %12091 = vmatpush3.bf16.msra.mxu0 %v13978_v60  ;;  %v14033_v60 = vld [vmem:[%s19231_s0 + $0x120] sm:$0xff]  }
  0x35   :  { %13577 = vmatpush3.bf16.msra.mxu1 %v13979_v61  ;;  %12092 = vmatprep.subr.bf16.mxu0 %v13980_v62  ;;  %v14035_v61 = vld [vmem:[%s19231_s0 + $0x128] sm:$0xff]   ;;  %v14036_v62 = vld [vmem:[%s19231_s0 + $0x198] sm:$0xff]  }
  0x36   :  { %13578 = vmatprep.subr.bf16.mxu1 %v19235_v36  ;;  %13580 = vmatprep.mubr.msk.bf16.mxu1 %vm14843_vm0, %v19235_v36 }
  0x37   :  { %717 = vmatprep.mubr.bf16.mxu0 %v15131_v10 }
  0x38   :  { %12093 = vmatpush3.bf16.msra.mxu0 %v13981_v63  ;;  %v14037_v63 = vld [vmem:[%s19231_s0 + $0x170] sm:$0xff]  }
  0x39   :  { %13579 = vmatpush3.bf16.msra.mxu1 %v13982_v0  ;;  %12094 = vmatprep.subr.bf16.mxu0 %v13983_v1  ;;  %v14038_v0 = vld [vmem:[%s19231_s0 + $0x130] sm:$0xff]   ;;  %v14039_v1 = vld [vmem:[%s19231_s0 + $0x1a0] sm:$0xff]  }
  0x3a   :  { %12125 = vmatprep.subr.bf16.mxu1 %v13985_v3  ;;  %v14042_v3 = vld [vmem:[%s19231_s0 + $0x1a8] sm:$0xff]  }
  0x3c   :  { %13581 = vmatmul.mubr.msk.bf16.vlgmr.msra.gmra.mrb[12].mxu1 %vm563_vm1, %v15103_v2  ;;  %12095 = vmatpush3.bf16.msra.mxu0 %v13986_v4  ;;  %v14043_v4 = vld [vmem:[%s19231_s0 + $0x180] sm:$0xff]  }
  0x3d   :  { %12126 = vmatpush3.bf16.msra.mxu1 %v13987_v5  ;;  %12096 = vmatprep.subr.bf16.mxu0 %v13988_v6  ;;  %v14045_v5 = vld [vmem:[%s19231_s0 + $0x1b0] sm:$0xff]   ;;  %v14046_v6 = vld [vmem:[%s19231_s0 + $0x188] sm:$0xff]  }
  0x3e   :  { %12127 = vmatprep.subr.bf16.mxu1 %v13989_v7  ;;  %13584 = vmatprep.mubr.msk.bf16.mxu1 %vm14843_vm0, %v19235_v36  ;;  %v14048_v7 = vld [vmem:[%s19231_s0 + $0x1b8] sm:$0xff]  }
  0x40   :  { %12097 = vmatpush3.bf16.msra.mxu0 %v13990_v8  ;;  %v14049_v8 = vld [vmem:[%s19231_s0 + $0x190] sm:$0xff]  }
  0x41   :  { %12128 = vmatpush3.bf16.msra.mxu1 %v13991_v9  ;;  %12159 = vmatprep.subr.bf16.mxu0 %v13996_v13  ;;  %v14050_v9 = vld [vmem:[%s19231_s0 + $0x150] sm:$0xff]  }
  0x42   :  { %12129 = vmatprep.subr.bf16.mxu1 %v13995_v12  ;;  %v14051_v12 = vld [vmem:[%s19231_s0 + $0x1c0] sm:$0xff]   ;;  %v14052_v13 = vld [vmem:[%s19231_s0 + $0x70] sm:$0xff]  }
  0x43   :  { %718 = vmatmul.mubr.bf16.vlgmr.msra.gmra.mrb[12].mxu0 %v15138_v11 }
  0x44   :  { %12160 = vmatpush3.bf16.msra.mxu0 %v13998_v15  ;;  %13585 = vmatmul.mubr.msk.bf16.gmra.mrb[16].mxu1 %vm563_vm1, %v15169_v20  ;;  %v14054_v15 = vld [vmem:[%s19231_s0 + $0x30] sm:$0xff]  }
  0x45   :  { %12130 = vmatpush3.bf16.msra.mxu1 %v13997_v14  ;;  %12161 = vmatprep.subr.bf16.mxu0 %v14000_v17  ;;  %v14053_v14 = vld [vmem:[%s19231_s0 + $0xf0] sm:$0xff]   ;;  %v14056_v17 = vld [vmem:[%s19231_s0 + $0x78] sm:$0xff]  }
  0x46   :  { %12131 = vmatprep.subr.bf16.mxu1 %v13999_v16  ;;  %725 = vmatprep.mubr.bf16.mxu0 %v15174_v21  ;;  %v14055_v16 = vld [vmem:[%s19231_s0 + $0xb0] sm:$0xff]  }
  0x47   :  { %13588 = vmatprep.mubr.msk.bf16.mxu1 %vm14843_vm0, %v19235_v36 }
  0x48   :  { %12162 = vmatpush3.bf16.msra.mxu0 %v14002_v19  ;;  %v14058_v19 = vld [vmem:[%s19231_s0 + $0x38] sm:$0xff]  }
  0x49   :  { %12132 = vmatpush3.bf16.msra.mxu1 %v14001_v18  ;;  %12163 = vmatprep.subr.bf16.mxu0 %v14008_v24  ;;  %v14057_v18 = vld [vmem:[%s19231_s0 + $0xf8] sm:$0xff]   ;;  %v14060_v24 = vld [vmem:[%s19231_s0 + $0x80] sm:$0xff]  }
  0x4a   :  { %12133 = vmatprep.subr.bf16.mxu1 %v14007_v23  ;;  %v14059_v23 = vld [vmem:[%s19231_s0 + $0xb8] sm:$0xff]  }
  0x4b   :  { %726 = vmatmul.mubr.bf16.gmra.mrb[16].mxu0 %v15179_v22 }
  0x4c   :  { %12164 = vmatpush3.bf16.msra.mxu0 %v14010_v26  ;;  %13589 = vmatmul.mubr.msk.bf16.gmra.mrb[20].mxu1 %vm563_vm1, %v15214_v31  ;;  %v14064_v26 = vld [vmem:[%s19231_s0 + $0x88] sm:$0xff]  }
  0x4d   :  { %12134 = vmatpush3.bf16.msra.mxu1 %v14009_v25  ;;  %12165 = vmatprep.subr.bf16.mxu0 %v14012_v28  ;;  %v14061_v25 = vld [vmem:[%s19231_s0 + $0x100] sm:$0xff]   ;;  %v14067_v28 = vld [vmem:[%s19231_s0 + $0xc8] sm:$0xff]  }
  0x4e   :  { %12135 = vmatprep.subr.bf16.mxu1 %v14011_v27  ;;  %733 = vmatprep.mubr.bf16.mxu0 %v15222_v39  ;;  %v14066_v27 = vld [vmem:[%s19231_s0 + $0x48] sm:$0xff]  }
  0x4f   :  { %1344 = vmatprep.mubr.bf16.mxu1 %v14972_v32  ;;  %v14024_v32 = vld [vmem:[%s19231_s0 + $0x50] sm:$0xff]  }
  0x50   :  { %12166 = vmatpush3.bf16.msra.mxu0 %v14014_v30  ;;  %v14069_v30 = vld [vmem:[%s19231_s0 + $0x110] sm:$0xff]  }
  0x51   :  { %12136 = vmatpush3.bf16.msra.mxu1 %v14013_v29  ;;  %12167 = vmatprep.subr.bf16.mxu0 %v14019_v41  ;;  %v14068_v29 = vld [vmem:[%s19231_s0 + $0x90] sm:$0xff]   ;;  %v14074_v41 = vld [vmem:[%s19231_s0 + $0x58] sm:$0xff]  }
  0x52   :  { %12137 = vmatprep.subr.bf16.mxu1 %v14018_v38  ;;  %v14073_v38 = vld [vmem:[%s19231_s0 + $0x118] sm:$0xff]  }
  0x53   :  { %734 = vmatmul.mubr.bf16.gmra.mrb[20].mxu0 %v15224_v40 }
  0x54   :  { %1400 = vmatprep.mubr.bf16.mxu0 %v14977_v33  ;;  %12168 = vmatpush3.bf16.msra.mxu0 %v14021_v47  ;;  %v14026_v33 = vld [vmem:[%s19231_s0 + $0x108] sm:$0xff]   ;;  %v14076_v47 = vld [vmem:[%s19231_s0 + $0xa0] sm:$0xff]  }
  0x55   :  { %12138 = vmatpush3.bf16.msra.mxu1 %v14020_v42  ;;  %12169 = vmatprep.subr.bf16.mxu0 %v14023_v49  ;;  %v14075_v42 = vld [vmem:[%s19231_s0 + $0xd8] sm:$0xff]   ;;  %v14078_v49 = vld [vmem:[%s19231_s0 + $0x60] sm:$0xff]  }
  0x56   :  { %12139 = vmatprep.subr.bf16.mxu1 %v14022_v48  ;;  %v14077_v48 = vld [vmem:[%s19231_s0 + $0x120] sm:$0xff]  }
  0x58   :  { %12170 = vmatpush3.bf16.msra.mxu0 %v14025_v50  ;;  %v15455_v50 = vld [vmem:[%s19232_s1 + $0xc] ss:$28 sps:$4 sm:$0xff]  }
  0x59   :  { %12140 = vmatpush3.bf16.msra.mxu1 %v14024_v32  ;;  %12171 = vmatprep.subr.bf16.mxu0 %v14026_v33  ;;  %v15449_v32 = vld [vmem:[%s19232_s1 + $0x4] ss:$28 sps:$4 sm:$0xff]  }
  0x5a   :  { %12193 = vmatprep.subr.bf16.mxu1 %v14027_v51  ;;  %v14079_v33 = vld [vmem:[%s19231_s0 + $0xe0] sm:$0xff]   ;;  %v14080_v51 = vld [vmem:[%s19231_s0 + $0xa8] sm:$0xff]  }
  0x5c   :  { %1345 = vmatmul.mubr.bf16.vlgmr.msra.gmra.mrb[24].mxu1 %v14983_v34  ;;  %12172 = vmatpush3.bf16.msra.mxu0 %v14028_v52  ;;  %v14032_v34 = vld [vmem:[%s19231_s0 + $0xd0] sm:$0xff]   ;;  %v14081_v52 = vld [vmem:[%s19231_s0 + $0x128] sm:$0xff]  }
  0x5d   :  { %1352 = vmatprep.mubr.bf16.mxu1 %v15016_v43  ;;  %12194 = vmatpush3.bf16.msra.mxu1 %v14029_v53  ;;  %v14034_v43 = vld [vmem:[%s19231_s0 + $0x168] sm:$0xff]  }
  0x5e   :  { %12173 = vmatprep.subr.bf16.mxu0 %v14030_v54  ;;  %12195 = vmatprep.subr.bf16.mxu1 %v14031_v59  ;;  %v14082_v53 = vld [vmem:[%s19231_s0 + $0x68] sm:$0xff]   ;;  %v14084_v59 = vld [vmem:[%s19231_s0 + $0x170] sm:$0xff]  }
  0x5f   :  { %v14083_v54 = vld [vmem:[%s19231_s0 + $0xe8] sm:$0xff]  }
  0x60   :  { %12174 = vmatpush3.bf16.msra.mxu0 %v14032_v34  ;;  %v14844_v34 = vmov 0  }
  0x61   :  { %12196 = vmatpush3.bf16.msra.mxu1 %v14033_v60  ;;  %13592 = vmatprep.subr.bf16.mxu0 %v19235_v36  ;;  %v14085_v60 = vld [vmem:[%s19231_s0 + $0x130] sm:$0xff]  }
  0x62   :  { %12197 = vmatprep.subr.bf16.mxu1 %v14034_v43  ;;  %13915 = vset.pattern.permute.xlu1 %v14844_v34  ;;  %v14086_v43 = vld [vmem:[%s19231_s0 + $0x1b0] sm:$0xff]  }
  0x63   :  { %1401 = vmatmul.mubr.bf16.vlgmr.msra.gmra.mrb[24].mxu0 %v14988_v35  ;;  %v14041_v35 = vld [vmem:[%s19231_s0 + $0x138] sm:$0xff]   ;;  %13916 = vset.pattern.permute.xlu0 %v14844_v34  ;;  %v14127_v34 = vld [vmem:[%s19231_s0 + $0x128] sm:$0xff]  }
  0x64   :  { %1353 = vmatmul.mubr.bf16.gmra.mrb[28].mxu1 %v15026_v45  ;;  %13593 = vmatpush3.bf16.msra.mxu0 %v14036_v62  ;;  %v14040_v45 = vld [vmem:[%s19231_s0 + $0x178] sm:$0xff]  }
  0x65   :  { %1360 = vmatprep.mubr.bf16.mxu1 %v15063_v55  ;;  %12198 = vmatpush3.bf16.msra.mxu1 %v14035_v61  ;;  %v14087_v61 = vld [vmem:[%s19231_s0 + $0x178] sm:$0xff]  }
  0x66   :  { %12199 = vmatprep.subr.bf16.mxu1 %v14037_v63  ;;  %13594 = vmatprep.subr.bf16.mxu0 %v19235_v36  ;;  %v15489_v62 = vld [vmem:[%s19232_s1] ss:$28 sps:$4 sm:$0xff]   ;;  %v15495_v63 = vld [vmem:[%s19232_s1 + $0x8] ss:$28 sps:$4 sm:$0xff]  }
  0x67   :  { %1408 = vmatprep.mubr.bf16.mxu0 %v15021_v44  ;;  %v14044_v44 = vld [vmem:[%s19231_s0 + $0x140] sm:$0xff]  }
  0x68   :  { %13595 = vmatpush3.bf16.msra.mxu0 %v14039_v1  ;;  %v14089_v1 = vld [vmem:[%s19231_s0 + $0x1b8] sm:$0xff]  }
  0x69   :  { %12200 = vmatpush3.bf16.msra.mxu1 %v14038_v0  ;;  %13596 = vmatprep.subr.bf16.mxu0 %v19235_v36  ;;  %v14088_v0 = vld [vmem:[%s19231_s0 + $0x138] sm:$0xff]  }
  0x6a   :  { %12201 = vmatprep.subr.bf16.mxu1 %v14040_v45  ;;  %v14090_v45 = vld [vmem:[%s19231_s0 + $0x180] sm:$0xff]  }
  0x6b   :  { %1409 = vmatmul.mubr.bf16.gmra.mrb[28].mxu0 %v15032_v46  ;;  %v14047_v46 = vld [vmem:[%s19231_s0 + $0x148] sm:$0xff]  }
  0x6c   :  { %1361 = vmatmul.mubr.bf16.gmra.mrb[32].mxu1 %v15067_v57  ;;  %13597 = vmatpush3.bf16.msra.mxu0 %v14042_v3  ;;  %v15517_v3 = vld [vmem:[%s19232_s1 + $0x44] ss:$28 sps:$4 sm:$0xff]  }
  0x6d   :  { %1456 = vmatprep.mubr.bf16.mxu1 %v15131_v10  ;;  %12202 = vmatpush3.bf16.msra.mxu1 %v14041_v35  ;;  %v15511_v35 = vld [vmem:[%s19232_s1 + $0x3c] ss:$28 sps:$4 sm:$0xff]  }
  0x6e   :  { %12203 = vmatprep.subr.bf16.mxu1 %v14043_v4  ;;  %13598 = vmatprep.subr.bf16.mxu0 %v19235_v36  ;;  %v14091_v4 = vld [vmem:[%s19231_s0 + $0x140] sm:$0xff]  }
  0x6f   :  { %1416 = vmatprep.mubr.bf16.mxu0 %v15065_v56 }
  0x70   :  { %13599 = vmatpush3.bf16.msra.mxu0 %v14045_v5  ;;  %v14093_v5 = vld [vmem:[%s19231_s0 + $0x188] sm:$0xff]  }
  0x71   :  { %12204 = vmatpush3.bf16.msra.mxu1 %v14044_v44  ;;  %13600 = vmatprep.subr.bf16.mxu0 %v19235_v36  ;;  %v14092_v44 = vld [vmem:[%s19231_s0 + $0x1c0] sm:$0xff]  }
  0x72   :  { %12205 = vmatprep.subr.bf16.mxu1 %v14046_v6  ;;  %v15533_v6 = vld [vmem:[%s19232_s1 + $0x38] ss:$28 sps:$4 sm:$0xff]  }
  0x73   :  { %1417 = vmatmul.mubr.bf16.gmra.mrb[32].mxu0 %v15069_v58 }
  0x74   :  { %13601 = vmatpush3.bf16.msra.mxu0 %v14048_v7  ;;  %13604 = vmatprep.mubr.msk.bf16.mxu0 %vm14843_vm0, %v19235_v36  ;;  %v14094_v7 = vld [vmem:[%s19231_s0 + $0x148] sm:$0xff]  }
  0x75   :  { %12206 = vmatpush3.bf16.msra.mxu1 %v14047_v46  ;;  %13602 = vmatprep.subr.bf16.mxu0 %v19235_v36  ;;  %v15539_v46 = vld [vmem:[%s19232_s1 + $0x40] ss:$28 sps:$4 sm:$0xff]  }
  0x76   :  { %12207 = vmatprep.subr.bf16.mxu1 %v14049_v8  ;;  %v14095_v8 = vld [vmem:[%s19231_s0 + $0x1c8] sm:$0xff]  }
  0x78   :  { %13603 = vmatpush3.bf16.msra.mxu0 %v14051_v12  ;;  %v14097_v12 = vld [vmem:[%s19231_s0 + $0x150] sm:$0xff]  }
  0x79   :  { %12208 = vmatpush3.bf16.msra.mxu1 %v14050_v9  ;;  %12236 = vmatprep.subr.bf16.mxu0 %v14052_v13  ;;  %v14096_v9 = vld [vmem:[%s19231_s0 + $0x190] sm:$0xff]  }
  0x7a   :  { %12270 = vmatprep.subr.bf16.mxu1 %v14053_v14  ;;  %v14098_v13 = vld [vmem:[%s19231_s0 + $0x1d0] sm:$0xff]   ;;  %v14099_v14 = vld [vmem:[%s19231_s0 + $0x198] sm:$0xff]  }
  0x7b   :  { %13605 = vmatmul.mubr.msk.bf16.vlgmr.msra.gmra.mrb[36].mxu0 %vm563_vm1, %v15103_v2  ;;  %v14062_v2 = vld [vmem:[%s19231_s0 + $0x40] sm:$0xff]  }
  0x7c   :  { %1457 = vmatmul.mubr.bf16.vlgmr.msra.gmra.mrb[36].mxu1 %v15138_v11  ;;  %12237 = vmatpush3.bf16.msra.mxu0 %v14054_v15  ;;  %v14063_v11 = vld [vmem:[%s19231_s0 + $0xc0] sm:$0xff]   ;;  %v14100_v15 = vld [vmem:[%s19231_s0 + $0x158] sm:$0xff]  }
  0x7d   :  { %12271 = vmatpush3.bf16.msra.mxu1 %v14055_v16  ;;  %12238 = vmatprep.subr.bf16.mxu0 %v14056_v17  ;;  %v14101_v16 = vld [vmem:[%s19231_s0 + $0x1d8] sm:$0xff]   ;;  %v14102_v17 = vld [vmem:[%s19231_s0 + $0x1a0] sm:$0xff]  }
  0x7e   :  { %12272 = vmatprep.subr.bf16.mxu1 %v14057_v18  ;;  %1464 = vmatprep.mubr.bf16.mxu1 %v15174_v21  ;;  %v14065_v21 = vld [vmem:[%s19231_s0 + $0x108] sm:$0xff]  }
  0x7f   :  { %13608 = vmatprep.mubr.msk.bf16.mxu0 %vm14843_vm0, %v19235_v36  ;;  %v14103_v18 = vld [vmem:[%s19231_s0 + $0x88] sm:$0xff]  }
  0x80   :  { %12239 = vmatpush3.bf16.msra.mxu0 %v14058_v19  ;;  %v14104_v19 = vld [vmem:[%s19231_s0 + $0x160] sm:$0xff]  }
  0x81   :  { %12273 = vmatpush3.bf16.msra.mxu1 %v14059_v23  ;;  %12240 = vmatprep.subr.bf16.mxu0 %v14060_v24  ;;  %v14105_v23 = vld [vmem:[%s19231_s0 + $0x48] sm:$0xff]  }
  0x82   :  { %12274 = vmatprep.subr.bf16.mxu1 %v14061_v25  ;;  %v14106_v24 = vld [vmem:[%s19231_s0 + $0x1a8] sm:$0xff]   ;;  %v14107_v25 = vld [vmem:[%s19231_s0 + $0x90] sm:$0xff]  }
  0x83   :  { %13609 = vmatmul.mubr.msk.bf16.gmra.mrb[40].mxu0 %vm563_vm1, %v15169_v20  ;;  %v14070_v20 = vld [vmem:[%s19231_s0 + $0x50] sm:$0xff]  }
  0x84   :  { %1465 = vmatmul.mubr.bf16.gmra.mrb[40].mxu1 %v15179_v22  ;;  %12241 = vmatpush3.bf16.msra.mxu0 %v14062_v2  ;;  %v14071_v22 = vld [vmem:[%s19231_s0 + $0xd0] sm:$0xff]  }
  0x85   :  { %12275 = vmatpush3.bf16.msra.mxu1 %v14063_v11  ;;  %12242 = vmatprep.subr.bf16.mxu0 %v14064_v26  ;;  %v15600_v2 = vld [vmem:[%s19232_s1 + $0x18] ss:$28 sps:$4 sm:$0xff]  }
  0x86   :  { %12276 = vmatprep.subr.bf16.mxu1 %v14065_v21  ;;  %1472 = vmatprep.mubr.bf16.mxu1 %v15222_v39  ;;  %v14109_v11 = vld [vmem:[%s19231_s0 + $0x50] sm:$0xff]   ;;  %v14110_v26 = vld [vmem:[%s19231_s0 + $0x98] sm:$0xff]   ;;  %v14111_v21 = vld [vmem:[%s19231_s0 + $0x108] sm:$0xff]  }
  0x87   :  { %13612 = vmatprep.mubr.msk.bf16.mxu0 %vm14843_vm0, %v19235_v36 }
  0x88   :  { %12243 = vmatpush3.bf16.msra.mxu0 %v14066_v27  ;;  %v14112_v27 = vld [vmem:[%s19231_s0 + $0x58] sm:$0xff]  }
  0x89   :  { %12277 = vmatpush3.bf16.msra.mxu1 %v14067_v28  ;;  %12244 = vmatprep.subr.bf16.mxu0 %v14068_v29  ;;  %v14113_v28 = vld [vmem:[%s19231_s0 + $0xc8] sm:$0xff]   ;;  %v14114_v29 = vld [vmem:[%s19231_s0 + $0xa0] sm:$0xff]  }
  0x8a   :  { %12278 = vmatprep.subr.bf16.mxu1 %v14069_v30  ;;  %v14115_v30 = vld [vmem:[%s19231_s0 + $0x110] sm:$0xff]  }
  0x8b   :  { %13613 = vmatmul.mubr.msk.bf16.gmra.mrb[44].mxu0 %vm563_vm1, %v15214_v31 }
  0x8c   :  { %1473 = vmatmul.mubr.bf16.gmra.mrb[44].mxu1 %v15224_v40  ;;  %12245 = vmatpush3.bf16.msra.mxu0 %v14070_v20  ;;  %v14116_v20 = vld [vmem:[%s19231_s0 + $0x60] sm:$0xff]  }
  0x8d   :  { %12279 = vmatpush3.bf16.msra.mxu1 %v14071_v22  ;;  %12246 = vmatprep.subr.bf16.mxu0 %v14072_v37  ;;  %v15633_v22 = vld [vmem:[%s19232_s1 + $0x10] ss:$28 sps:$4 sm:$0xff]  }
  0x8e   :  { %12280 = vmatprep.subr.bf16.mxu1 %v14073_v38  ;;  %2078 = vmatprep.mubr.bf16.mxu0 %v15449_v32  ;;  %v14117_v37 = vld [vmem:[%s19231_s0 + $0xd0] sm:$0xff]  }
  0x8f   :  { %2134 = vmatprep.mubr.bf16.mxu1 %v15455_v50  ;;  %v15642_v38 = vld [vmem:[%s19232_s1 + $0x50] ss:$28 sps:$4 sm:$0xff]  }
  0x90   :  { %12247 = vmatpush3.bf16.msra.mxu0 %v14074_v41  ;;  %v14118_v41 = vld [vmem:[%s19231_s0 + $0xa8] sm:$0xff]  }
  0x91   :  { %12281 = vmatpush3.bf16.msra.mxu1 %v14075_v42  ;;  %12248 = vmatprep.subr.bf16.mxu0 %v14076_v47  ;;  %v14119_v42 = vld [vmem:[%s19231_s0 + $0x118] sm:$0xff]   ;;  %v15655_v47 = vld [vmem:[%s19232_s1 + $0x4c] ss:$28 sps:$4 sm:$0xff]  }
  0x92   :  { %12282 = vmatprep.subr.bf16.mxu1 %v14077_v48  ;;  %v14120_v48 = vld [vmem:[%s19231_s0 + $0x68] sm:$0xff]  }
  0x94   :  { %12249 = vmatpush3.bf16.msra.mxu0 %v14078_v49  ;;  %v14121_v49 = vld [vmem:[%s19231_s0 + $0xd8] sm:$0xff]  }
  0x95   :  { %12283 = vmatpush3.bf16.msra.mxu1 %v14079_v33  ;;  %12250 = vmatprep.subr.bf16.mxu0 %v14080_v51  ;;  %v14122_v33 = vld [vmem:[%s19231_s0 + $0xb0] sm:$0xff]   ;;  %v14123_v51 = vld [vmem:[%s19231_s0 + $0x120] sm:$0xff]  }
  0x96   :  { %12284 = vmatprep.subr.bf16.mxu1 %v14081_v52  ;;  %v14124_v52 = vld [vmem:[%s19231_s0 + $0x70] sm:$0xff]  }
  0x98   :  { %12251 = vmatpush3.bf16.msra.mxu0 %v14082_v53  ;;  %v15678_v53 = vld [vmem:[%s19232_s1 + $0x48] ss:$28 sps:$4 sm:$0xff]  }
  0x99   :  { %12285 = vmatpush3.bf16.msra.mxu1 %v14083_v54  ;;  %12304 = vmatprep.subr.bf16.mxu0 %v14084_v59  ;;  %v14125_v54 = vld [vmem:[%s19231_s0 + $0xe0] sm:$0xff]   ;;  %v14126_v59 = vld [vmem:[%s19231_s0 + $0xb8] sm:$0xff]  }
  0x9a   :  { %13616 = vmatprep.subr.bf16.mxu1 %v19235_v36 }
  0x9b   :  { %2079 = vmatmul.mubr.bf16.vlgmr.msra.gmra.mrb[48].mxu0 %v15489_v62 }
  0x9c   :  { %2135 = vmatmul.mubr.bf16.vlgmr.msra.gmra.mrb[48].mxu1 %v15495_v63  ;;  %12305 = vmatpush3.bf16.msra.mxu0 %v14085_v60  ;;  %v14128_v60 = vld [vmem:[%s19231_s0 + $0x78] sm:$0xff]  }
  0x9d   :  { %13617 = vmatpush3.bf16.msra.mxu1 %v14086_v43  ;;  %12306 = vmatprep.subr.bf16.mxu0 %v14087_v61  ;;  %v14130_v43 = vld [vmem:[%s19231_s0 + $0xc0] sm:$0xff]   ;;  %v14131_v61 = vld [vmem:[%s19231_s0 + $0x130] sm:$0xff]  }
  0x9e   :  { %13618 = vmatprep.subr.bf16.mxu1 %v19235_v36  ;;  %2086 = vmatprep.mubr.bf16.mxu0 %v15511_v35 }
  0x9f   :  { %2142 = vmatprep.mubr.bf16.mxu1 %v15517_v3 }
  0xa0   :  { %12307 = vmatpush3.bf16.msra.mxu0 %v14088_v0  ;;  %v14133_v0 = vld [vmem:[%s19231_s0 + $0xf0] sm:$0xff]  }
  0xa1   :  { %13619 = vmatpush3.bf16.msra.mxu1 %v14089_v1  ;;  %12308 = vmatprep.subr.bf16.mxu0 %v14090_v45  ;;  %v14134_v1 = vld [vmem:[%s19231_s0 + $0x138] sm:$0xff]   ;;  %v14135_v45 = vld [vmem:[%s19231_s0 + $0x188] sm:$0xff]  }
  0xa2   :  { %13620 = vmatprep.subr.bf16.mxu1 %v19235_v36 }
  0xa3   :  { %2087 = vmatmul.mubr.bf16.gmra.mrb[52].mxu0 %v15533_v6 }
  0xa4   :  { %2143 = vmatmul.mubr.bf16.gmra.mrb[52].mxu1 %v15539_v46  ;;  %12309 = vmatpush3.bf16.msra.mxu0 %v14091_v4  ;;  %v14136_v4 = vld [vmem:[%s19231_s0 + $0xf8] sm:$0xff]  }
  0xa5   :  { %13621 = vmatpush3.bf16.msra.mxu1 %v14092_v44  ;;  %12310 = vmatprep.subr.bf16.mxu0 %v14093_v5  ;;  %v14137_v44 = vld [vmem:[%s19231_s0 + $0x148] sm:$0xff]   ;;  %v14138_v5 = vld [vmem:[%s19231_s0 + $0x140] sm:$0xff]  }
  0xa6   :  { %13622 = vmatprep.subr.bf16.mxu1 %v19235_v36  ;;  %2094 = vmatprep.mubr.bf16.mxu0 %v15063_v55 }
  0xa7   :  { %2150 = vmatprep.mubr.bf16.mxu1 %v15065_v56 }
  0xa8   :  { %12311 = vmatpush3.bf16.msra.mxu0 %v14094_v7  ;;  %v14139_v7 = vld [vmem:[%s19231_s0 + $0x190] sm:$0xff]  }
  0xa9   :  { %13623 = vmatpush3.bf16.msra.mxu1 %v14095_v8  ;;  %12312 = vmatprep.subr.bf16.mxu0 %v14096_v9  ;;  %v14141_v8 = vld [vmem:[%s19231_s0 + $0x150] sm:$0xff]   ;;  %v14142_v9 = vld [vmem:[%s19231_s0 + $0x198] sm:$0xff]  }
  0xaa   :  { %13624 = vmatprep.subr.bf16.mxu1 %v19235_v36 }
  0xab   :  { %2095 = vmatmul.mubr.bf16.gmra.mrb[56].mxu0 %v15067_v57 }
  0xac   :  { %2151 = vmatmul.mubr.bf16.gmra.mrb[56].mxu1 %v15069_v58  ;;  %12313 = vmatpush3.bf16.msra.mxu0 %v14097_v12  ;;  %v14144_v12 = vld [vmem:[%s19231_s0 + $0x1c8] sm:$0xff]  }
  0xad   :  { %13625 = vmatpush3.bf16.msra.mxu1 %v14098_v13  ;;  %12314 = vmatprep.subr.bf16.mxu0 %v14099_v14  ;;  %v14145_v13 = vld [vmem:[%s19231_s0 + $0x1a0] sm:$0xff]   ;;  %v14147_v14 = vld [vmem:[%s19231_s0 + $0x1d0] sm:$0xff]  }
  0xae   :  { %13626 = vmatprep.subr.bf16.mxu1 %v19235_v36  ;;  %13628 = vmatprep.mubr.msk.bf16.mxu1 %vm14843_vm0, %v19235_v36 }
  0xaf   :  { %2190 = vmatprep.mubr.bf16.mxu0 %v15131_v10  ;;  %v14108_v10 = vld [vmem:[%s19231_s0 + $0x168] sm:$0xff]  }
  0xb0   :  { %12315 = vmatpush3.bf16.msra.mxu0 %v14100_v15  ;;  %v14148_v15 = vld [vmem:[%s19231_s0 + $0x1a8] sm:$0xff]  }
  0xb1   :  { %13627 = vmatpush3.bf16.msra.mxu1 %v14101_v16  ;;  %12316 = vmatprep.subr.bf16.mxu0 %v14102_v17  ;;  %v14151_v16 = vld [vmem:[%s19231_s0 + $0x1b0] sm:$0xff]   ;;  %v14153_v17 = vld [vmem:[%s19231_s0 + $0x1e0] sm:$0xff]  }
  0xb2   :  { %12347 = vmatprep.subr.bf16.mxu1 %v14103_v18  ;;  %v14154_v18 = vld [vmem:[%s19231_s0 + $0x1b8] sm:$0xff]  }
  0xb4   :  { %13629 = vmatmul.mubr.msk.bf16.vlgmr.msra.gmra.mrb[60].mxu1 %vm563_vm1, %v15600_v2  ;;  %12317 = vmatpush3.bf16.msra.mxu0 %v14104_v19  ;;  %v14155_v19 = vld [vmem:[%s19231_s0 + $0x178] sm:$0xff]  }
  0xb5   :  { %12348 = vmatpush3.bf16.msra.mxu1 %v14105_v23  ;;  %12318 = vmatprep.subr.bf16.mxu0 %v14106_v24  ;;  %v14156_v23 = vld [vmem:[%s19231_s0 + $0x1e8] sm:$0xff]   ;;  %v14157_v24 = vld [vmem:[%s19231_s0 + $0x1c0] sm:$0xff]  }
  0xb6   :  { %12349 = vmatprep.subr.bf16.mxu1 %v14107_v25  ;;  %13632 = vmatprep.mubr.msk.bf16.mxu1 %vm14843_vm0, %v19235_v36  ;;  %v14158_v25 = vld [vmem:[%s19231_s0 + $0x180] sm:$0xff]  }
  0xb8   :  { %12319 = vmatpush3.bf16.msra.mxu0 %v14108_v10  ;;  %v14159_v10 = vld [vmem:[%s19231_s0 + $0x1f0] sm:$0xff]  }
  0xb9   :  { %12350 = vmatpush3.bf16.msra.mxu1 %v14109_v11  ;;  %12381 = vmatprep.subr.bf16.mxu0 %v14111_v21  ;;  %v14160_v11 = vld [vmem:[%s19231_s0 + $0xa0] sm:$0xff]  }
  0xba   :  { %12351 = vmatprep.subr.bf16.mxu1 %v14110_v26  ;;  %v14161_v26 = vld [vmem:[%s19231_s0 + $0x120] sm:$0xff]  }
  0xbb   :  { %2191 = vmatmul.mubr.bf16.vlgmr.msra.gmra.mrb[60].mxu0 %v15633_v22  ;;  %v14162_v21 = vld [vmem:[%s19231_s0 + $0x60] sm:$0xff]  }
  0xbc   :  { %13633 = vmatmul.mubr.msk.bf16.gmra.mrb[64].mxu1 %vm563_vm1, %v15642_v38  ;;  %12382 = vmatpush3.bf16.msra.mxu0 %v14113_v28 }
  0xbd   :  { %12352 = vmatpush3.bf16.msra.mxu1 %v14112_v27  ;;  %12383 = vmatprep.subr.bf16.mxu0 %v14115_v30  ;;  %v14163_v27 = vld [vmem:[%s19231_s0 + $0xe0] sm:$0xff]   ;;  %v14164_v30 = vld [vmem:[%s19231_s0 + $0xa8] sm:$0xff]  }
  0xbe   :  { %12353 = vmatprep.subr.bf16.mxu1 %v14114_v29  ;;  %2198 = vmatprep.mubr.bf16.mxu0 %v15655_v47 }
  0xbf   :  { %13636 = vmatprep.mubr.msk.bf16.mxu1 %vm14843_vm0, %v19235_v36 }
  0xc0   :  { %12384 = vmatpush3.bf16.msra.mxu0 %v14117_v37 }
  0xc1   :  { %12354 = vmatpush3.bf16.msra.mxu1 %v14116_v20  ;;  %12385 = vmatprep.subr.bf16.mxu0 %v14119_v42  ;;  %v14165_v20 = vld [vmem:[%s19231_s0 + $0x128] sm:$0xff]  }
  0xc2   :  { %12355 = vmatprep.subr.bf16.mxu1 %v14118_v41 }
  0xc3   :  { %2199 = vmatmul.mubr.bf16.gmra.mrb[64].mxu0 %v15678_v53 }
  0xc4   :  { %13637 = vmatmul.mubr.msk.bf16.gmra.mrb[68].mxu1 %vm563_vm1, %v15214_v31  ;;  %12386 = vmatpush3.bf16.msra.mxu0 %v14121_v49  ;;  %v14129_v31 = vld [vmem:[%s19231_s0 + $0xe8] sm:$0xff]  }
  0xc5   :  { %12356 = vmatpush3.bf16.msra.mxu1 %v14120_v48  ;;  %12387 = vmatprep.subr.bf16.mxu0 %v14123_v51  ;;  %v14166_v51 = vld [vmem:[%s19231_s0 + $0x68] sm:$0xff]  }
  0xc6   :  { %12357 = vmatprep.subr.bf16.mxu1 %v14122_v33  ;;  %2206 = vmatprep.mubr.bf16.mxu0 %v15222_v39 }
  0xc7   :  { %2812 = vmatprep.mubr.bf16.mxu1 %v15449_v32  ;;  %v14132_v32 = vld [vmem:[%s19231_s0 + $0x80] sm:$0xff]  }
  0xc8   :  { %12388 = vmatpush3.bf16.msra.mxu0 %v14125_v54 }
  0xc9   :  { %12358 = vmatpush3.bf16.msra.mxu1 %v14124_v52  ;;  %12389 = vmatprep.subr.bf16.mxu0 %v14127_v34  ;;  %v14167_v52 = vld [vmem:[%s19231_s0 + $0xe8] sm:$0xff]   ;;  %v14168_v34 = vld [vmem:[%s19231_s0 + $0xb0] sm:$0xff]  }
  0xca   :  { %12359 = vmatprep.subr.bf16.mxu1 %v14126_v59 }
  0xcb   :  { %2207 = vmatmul.mubr.bf16.gmra.mrb[68].mxu0 %v15224_v40 }
  0xcc   :  { %12390 = vmatpush3.bf16.msra.mxu0 %v14129_v31  ;;  %2868 = vmatprep.mubr.bf16.mxu0 %v15455_v50  ;;  %v14140_v50 = vld [vmem:[%s19231_s0 + $0x100] sm:$0xff]  }
  0xcd   :  { %12360 = vmatpush3.bf16.msra.mxu1 %v14128_v60  ;;  %12391 = vmatprep.subr.bf16.mxu0 %v14131_v61  ;;  %v14170_v61 = vld [vmem:[%s19231_s0 + $0x70] sm:$0xff]  }
  0xce   :  { %12361 = vmatprep.subr.bf16.mxu1 %v14130_v43 }
  0xd0   :  { %12392 = vmatpush3.bf16.msra.mxu0 %v14133_v0 }
  0xd1   :  { %12362 = vmatpush3.bf16.msra.mxu1 %v14132_v32  ;;  %12393 = vmatprep.subr.bf16.mxu0 %v14134_v1  ;;  %v14171_v32 = vld [vmem:[%s19231_s0 + $0xf0] sm:$0xff]  }
  0xd2   :  { %12415 = vmatprep.subr.bf16.mxu1 %v14135_v45 }
  0xd4   :  { %2813 = vmatmul.mubr.bf16.vlgmr.msra.gmra.mrb[72].mxu1 %v15489_v62  ;;  %12394 = vmatpush3.bf16.msra.mxu0 %v14136_v4  ;;  %v14143_v62 = vld [vmem:[%s19231_s0 + $0x158] sm:$0xff]  }
  0xd5   :  { %12416 = vmatpush3.bf16.msra.mxu1 %v14137_v44  ;;  %12395 = vmatprep.subr.bf16.mxu0 %v14138_v5  ;;  %v14173_v4 = vld [vmem:[%s19231_s0 + $0x138] sm:$0xff]  }
  0xd6   :  { %12417 = vmatprep.subr.bf16.mxu1 %v14139_v7  ;;  %2820 = vmatprep.mubr.bf16.mxu1 %v15511_v35  ;;  %v14146_v35 = vld [vmem:[%s19231_s0 + $0x160] sm:$0xff]  }
  0xd8   :  { %12396 = vmatpush3.bf16.msra.mxu0 %v14140_v50  ;;  %v14174_v50 = vld [vmem:[%s19231_s0 + $0x78] sm:$0xff]  }
  0xd9   :  { %12418 = vmatpush3.bf16.msra.mxu1 %v14141_v8  ;;  %13640 = vmatprep.subr.bf16.mxu0 %v19235_v36 }
  0xda   :  { %12419 = vmatprep.subr.bf16.mxu1 %v14142_v9 }
  0xdb   :  { %2869 = vmatmul.mubr.bf16.vlgmr.msra.gmra.mrb[72].mxu0 %v15495_v63  ;;  %v14149_v63 = vld [vmem:[%s19231_s0 + $0x168] sm:$0xff]  }
  0xdc   :  { %2821 = vmatmul.mubr.bf16.gmra.mrb[76].mxu1 %v15533_v6  ;;  %13641 = vmatpush3.bf16.msra.mxu0 %v14144_v12  ;;  %v14150_v6 = vld [vmem:[%s19231_s0 + $0x1d8] sm:$0xff]  }
  0xdd   :  { %12420 = vmatpush3.bf16.msra.mxu1 %v14143_v62  ;;  %13642 = vmatprep.subr.bf16.mxu0 %v19235_v36  ;;  %v14175_v62 = vld [vmem:[%s19231_s0 + $0xf8] sm:$0xff]  }
  0xde   :  { %12421 = vmatprep.subr.bf16.mxu1 %v14145_v13  ;;  %2876 = vmatprep.mubr.bf16.mxu0 %v15517_v3  ;;  %v14152_v3 = vld [vmem:[%s19231_s0 + $0x170] sm:$0xff]   ;;  %v14176_v13 = vld [vmem:[%s19231_s0 + $0xc0] sm:$0xff]  }
  0xdf   :  { %2828 = vmatprep.mubr.bf16.mxu1 %v15063_v55 }
  0xe0   :  { %13643 = vmatpush3.bf16.msra.mxu0 %v14147_v14 }
  0xe1   :  { %12422 = vmatpush3.bf16.msra.mxu1 %v14146_v35  ;;  %13644 = vmatprep.subr.bf16.mxu0 %v19235_v36 }
  0xe2   :  { %12423 = vmatprep.subr.bf16.mxu1 %v14148_v15 }
  0xe3   :  { %2877 = vmatmul.mubr.bf16.gmra.mrb[76].mxu0 %v15539_v46  ;;  %v15793_v46 = vld [vmem:[%s19232_s1 + $0x14] ss:$28 sps:$4 sm:$0xff]  }
  0xe4   :  { %2829 = vmatmul.mubr.bf16.gmra.mrb[80].mxu1 %v15067_v57  ;;  %13645 = vmatpush3.bf16.msra.mxu0 %v14150_v6 }
  0xe5   :  { %12424 = vmatpush3.bf16.msra.mxu1 %v14149_v63  ;;  %13646 = vmatprep.subr.bf16.mxu0 %v19235_v36  ;;  %v14178_v63 = vld [vmem:[%s19231_s0 + $0x80] sm:$0xff]  }
  0xe6   :  { %12425 = vmatprep.subr.bf16.mxu1 %v14151_v16  ;;  %2884 = vmatprep.mubr.bf16.mxu0 %v15065_v56  ;;  %v14179_v16 = vld [vmem:[%s19231_s0 + $0x100] sm:$0xff]  }
  0xe7   :  { %2924 = vmatprep.mubr.bf16.mxu1 %v15793_v46 }
  0xe8   :  { %13647 = vmatpush3.bf16.msra.mxu0 %v14153_v17  ;;  %v36_v17 = vld [vmem:[%s19233_s2] sm:$0x3] }
  0xe9   :  { %12426 = vmatpush3.bf16.msra.mxu1 %v14152_v3  ;;  %13648 = vmatprep.subr.bf16.mxu0 %v19235_v36  ;;  %v14180_v3 = vld [vmem:[%s19231_s0 + $0xc8] sm:$0xff]  }
  0xea   :  { %12427 = vmatprep.subr.bf16.mxu1 %v14154_v18  ;;  %873 = vperm.xlu1 %13915, %v36_v17  }
  0xeb   :  { %2885 = vmatmul.mubr.bf16.gmra.mrb[80].mxu0 %v15069_v58 }
  0xec   :  { %13649 = vmatpush3.bf16.msra.mxu0 %v14156_v23  ;;  %13652 = vmatprep.mubr.msk.bf16.mxu0 %vm14843_vm0, %v19235_v36 }
  0xed   :  { %12428 = vmatpush3.bf16.msra.mxu1 %v14155_v19  ;;  %13650 = vmatprep.subr.bf16.mxu0 %v19235_v36  ;;  %v14181_v19 = vld [vmem:[%s19231_s0 + $0x148] sm:$0xff]  }
  0xee   :  { %12429 = vmatprep.subr.bf16.mxu1 %v14157_v24 }
  0xf0   :  { %13651 = vmatpush3.bf16.msra.mxu0 %v14159_v10 }
  0xf1   :  { %12430 = vmatpush3.bf16.msra.mxu1 %v14158_v25  ;;  %12458 = vmatprep.subr.bf16.mxu0 %v14160_v11  ;;  %v14182_v25 = vld [vmem:[%s19231_s0 + $0x88] sm:$0xff]  }
  0xf2   :  { %12492 = vmatprep.subr.bf16.mxu1 %v14161_v26  ;;  %v15912_v26 = vld [vmem:[%s19232_s1 + $0x88] ss:$0 sps:$4 sm:$0x33]  }
  0xf3   :  { %13653 = vmatmul.mubr.msk.bf16.vlgmr.msra.gmra.mrb[84].mxu0 %vm563_vm1, %v15600_v2  ;;  %v14169_v2 = vld [vmem:[%s19231_s0 + $0x130] sm:$0xff]  }
  0xf4   :  { %2925 = vmatmul.mubr.bf16.vlgmr.msra.gmra.mrb[84].mxu1 %v15633_v22  ;;  %12459 = vmatpush3.bf16.msra.mxu0 %v14162_v21  ;;  %v14183_v21 = vld [vmem:[%s19231_s0 + $0x108] sm:$0xff]  }
  0xf5   :  { %12493 = vmatpush3.bf16.msra.mxu1 %v14163_v27  ;;  %12460 = vmatprep.subr.bf16.mxu0 %v14164_v30  ;;  %v14184_v27 = vld [vmem:[%s19231_s0 + $0xd0] sm:$0xff]  }
  0xf6   :  { %v12030_v28 = vpop.f32.mrb[0].mxu0  ;;  %12494 = vmatprep.subr.bf16.mxu1 %v14165_v20  ;;  %2932 = vmatprep.mubr.bf16.mxu1 %v15655_v47  ;;  %v14172_v47 = vld [vmem:[%s19231_s0 + $0xb8] sm:$0xff]  }
  0xf7   :  { %v12064_v29 = vpop.f32.mrb[0].mxu1  ;;  %v12031_v37 = vpop.f32.mrb[1].mxu0  ;;  %13656 = vmatprep.mubr.msk.bf16.mxu0 %vm14843_vm0, %v19235_v36 }
  0xf8   :  { %v12065_v41 = vpop.f32.mrb[1].mxu1  ;;  %v12032_v42 = vadd.f32 %v12031_v37, %v12030_v28  ;;  %v12033_v49 = vpop.f32.mrb[2].mxu0  ;;  %12461 = vmatpush3.bf16.msra.mxu0 %v14166_v51  ;;  %v14187_v51 = vld [vmem:[%s19231_s0 + $0x110] sm:$0xff]  }
  0xf9   :  { %v12066_v48 = vadd.f32 %v12065_v41, %v12064_v29  ;;  %v12067_v33 = vpop.f32.mrb[2].mxu1  ;;  %v12034_v54 = vpop.f32.mrb[3].mxu0  ;;  %12495 = vmatpush3.bf16.msra.mxu1 %v14167_v52  ;;  %12462 = vmatprep.subr.bf16.mxu0 %v14168_v34  ;;  %v14185_v41 = vld [vmem:[%s19231_s0 + $0x150] sm:$0xff]   ;;  %v14188_v52 = vld [vmem:[%s19231_s0 + $0xd8] sm:$0xff]  }
  0xfa   :  { %v12068_v59 = vpop.f32.mrb[3].mxu1  ;;  %v12035_v31 = vadd.f32 %v12034_v54, %v12033_v49  ;;  %12496 = vmatprep.subr.bf16.mxu1 %v14169_v2  ;;  %v15933_v49 = vld [vmem:[%s19232_s1 + $0x4] ss:$28 sps:$4 sm:$0xff]   ;;  %v14189_v54 = vld [vmem:[%s19231_s0 + $0x158] sm:$0xff]  }
  0xfb   :  { %v15846_v60 = vadd.f32 %v12066_v48, %v12032_v42  ;;  %v12069_v43 = vadd.f32 %v12068_v59, %v12067_v33  ;;  %13657 = vmatmul.mubr.msk.bf16.gmra.mrb[88].mxu0 %vm563_vm1, %v15642_v38  ;;  %v14186_v48 = vld [vmem:[%s19231_s0 + $0x90] sm:$0xff]   ;;  %v15939_v33 = vld [vmem:[%s19232_s1 + $0xc] ss:$28 sps:$4 sm:$0xff]   ;;  %v14190_v34 = vld [vmem:[%s19231_s0 + $0x98] sm:$0xff]  }
  0xfc   :  { %2933 = vmatmul.mubr.bf16.gmra.mrb[88].mxu1 %v15678_v53  ;;  %12463 = vmatpush3.bf16.msra.mxu0 %v14170_v61  ;;  %v14177_v53 = vld [vmem:[%s19231_s0 + $0x140] sm:$0xff]  }
  0xfd   :  { %v15851_v22 = vadd.f32 %v12069_v43, %v12035_v31  ;;  %12497 = vmatpush3.bf16.msra.mxu1 %v14171_v32  ;;  %12464 = vmatprep.subr.bf16.mxu0 %v14172_v47  ;;  %v14191_v43 = vld [vmem:[%s19231_s0 + $0x118] sm:$0xff]   ;;  %v14192_v61 = vld [vmem:[%s19231_s0 + $0x1a0] sm:$0xff]  }
  0xfe   :  { %v12036_v0 = vpop.f32.mrb[4].mxu0  ;;  %12498 = vmatprep.subr.bf16.mxu1 %v14173_v4  ;;  %2940 = vmatprep.mubr.bf16.mxu1 %v15222_v39  ;;  %v15973_v4 = vld [vmem:[%s19232_s1] ss:$28 sps:$4 sm:$0xff]  }
  0xff   :  { %v12070_v1 = vpop.f32.mrb[4].mxu1  ;;  %v12037_v45 = vpop.f32.mrb[5].mxu0  ;;  %13660 = vmatprep.mubr.msk.bf16.mxu0 %vm14843_vm0, %v19235_v36 }
 0x100   :  { %v12038_v44 = vadd.f32 %v12037_v45, %v12036_v0  ;;  %v12071_v5 = vpop.f32.mrb[5].mxu1  ;;  %v12039_v7 = vpop.f32.mrb[6].mxu0  ;;  %12465 = vmatpush3.bf16.msra.mxu0 %v14174_v50  ;;  %v14193_v0 = vld [vmem:[%s19231_s0 + $0x160] sm:$0xff]   ;;  %v14195_v45 = vld [vmem:[%s19231_s0 + $0x1a8] sm:$0xff]  }
 0x101   :  { %v12072_v8 = vadd.f32 %v12071_v5, %v12070_v1  ;;  %v12073_v9 = vpop.f32.mrb[6].mxu1  ;;  %v12040_v12 = vpop.f32.mrb[7].mxu0  ;;  %12499 = vmatpush3.bf16.msra.mxu1 %v14175_v62  ;;  %12466 = vmatprep.subr.bf16.mxu0 %v14176_v13  ;;  %v14194_v1 = vld [vmem:[%s19231_s0 + $0x1e0] sm:$0xff]  }
 0x102   :  { %v12041_v35 = vadd.f32 %v12040_v12, %v12039_v7  ;;  %v12074_v14 = vpop.f32.mrb[7].mxu1  ;;  %12500 = vmatprep.subr.bf16.mxu1 %v14177_v53  ;;  %v14196_v7 = vld [vmem:[%s19231_s0 + $0x168] sm:$0xff]   ;;  %v14198_v12 = vld [vmem:[%s19231_s0 + $0x1b0] sm:$0xff]  }
 0x103   :  { %v15883_v15 = vadd.f32 %v12072_v8, %v12038_v44  ;;  %v12075_v38 = vadd.f32 %v12074_v14, %v12073_v9  ;;  %13661 = vmatmul.mubr.msk.bf16.gmra.mrb[92].mxu0 %vm563_vm1, %v15912_v26  ;;  %v15979_v44 = vld [vmem:[%s19232_s1 + $0x8] ss:$28 sps:$4 sm:$0xff]  }
 0x104   :  { %2941 = vmatmul.mubr.bf16.gmra.mrb[92].mxu1 %v15224_v40  ;;  %12467 = vmatpush3.bf16.msra.mxu0 %v14178_v63  ;;  %v14197_v9 = vld [vmem:[%s19231_s0 + $0x1e8] sm:$0xff]   ;;  %v16001_v14 = vld [vmem:[%s19232_s1 + $0x44] ss:$28 sps:$4 sm:$0xff]  }
 0x105   :  { %v15891_v6 = vadd.f32 %v12075_v38, %v12041_v35  ;;  %12501 = vmatpush3.bf16.msra.mxu1 %v14179_v16  ;;  %12468 = vmatprep.subr.bf16.mxu0 %v14180_v3  ;;  %v15995_v35 = vld [vmem:[%s19232_s1 + $0x3c] ss:$28 sps:$4 sm:$0xff]   ;;  %v14199_v38 = vld [vmem:[%s19231_s0 + $0x170] sm:$0xff]  }
 0x106   :  { %v12042_v18 = vpop.f32.mrb[8].mxu0  ;;  %12502 = vmatprep.subr.bf16.mxu1 %v14181_v19  ;;  %3546 = vmatprep.mubr.bf16.mxu0 %v15933_v49  ;;  %v14200_v16 = vld [vmem:[%s19231_s0 + $0x1f0] sm:$0xff]  }
 0x107   :  { %v12076_v23 = vpop.f32.mrb[8].mxu1  ;;  %v12043_v24 = vpop.f32.mrb[9].mxu0  ;;  %3602 = vmatprep.mubr.bf16.mxu1 %v15939_v33 }
 0x108   :  { %v12044_v10 = vadd.f32 %v12043_v24, %v12042_v18  ;;  %v12077_v11 = vpop.f32.mrb[9].mxu1  ;;  %v12045_v28 = vpop.f32.mrb[10].mxu0  ;;  %12469 = vmatpush3.bf16.msra.mxu0 %v14182_v25  ;;  %v16030_v24 = vld [vmem:[%s19232_s1 + $0x40] ss:$28 sps:$4 sm:$0xff]  }
 0x109   :  { %v12078_v29 = vadd.f32 %v12077_v11, %v12076_v23  ;;  %v12079_v30 = vpop.f32.mrb[10].mxu1  ;;  %v12046_v20 = vpop.f32.mrb[11].mxu0  ;;  %12503 = vmatpush3.bf16.msra.mxu1 %v14183_v21  ;;  %12470 = vmatprep.subr.bf16.mxu0 %v14184_v27  ;;  %v14202_v27 = vld [vmem:[%s19231_s0 + $0x178] sm:$0xff]  }
 0x10a   :  { %v12080_v37 = vpop.f32.mrb[11].mxu1  ;;  %12504 = vmatprep.subr.bf16.mxu1 %v14185_v41  ;;  %v14203_v28 = vld [vmem:[%s19231_s0 + $0x1f8] sm:$0xff]   ;;  %v14204_v20 = vld [vmem:[%s19231_s0 + $0x1c0] sm:$0xff]  }
 0x10b   :  { %v15925_v42 = vadd.f32 %v12078_v29, %v12044_v10  ;;  %v14205_v41 = vld [vmem:[%s19231_s0 + $0x180] sm:$0xff]  }
 0x10c   :  { %12471 = vmatpush3.bf16.msra.mxu0 %v14186_v48 }
 0x10d   :  { %12505 = vmatpush3.bf16.msra.mxu1 %v14187_v51  ;;  %12472 = vmatprep.subr.bf16.mxu0 %v14188_v52  ;;  %v14206_v52 = vld [vmem:[%s19231_s0 + $0x200] sm:$0xff]  }
 0x10e   :  { %12506 = vmatprep.subr.bf16.mxu1 %v14189_v54 }
 0x10f   :  { %v775_v59 = vpop.f32.mrb[12].mxu1 }
 0x110   :  { %v13582_v31 = vpop.f32.mrb[13].mxu1  ;;  %12473 = vmatpush3.bf16.msra.mxu0 %v14190_v34 }
 0x111   :  { %v778_v2 = vpop.f32.mrb[14].mxu1  ;;  %12507 = vmatpush3.bf16.msra.mxu1 %v14191_v43  ;;  %12526 = vmatprep.subr.bf16.mxu0 %v14192_v61 }
 0x112   :  { %v13583_v32 = vpop.f32.mrb[15].mxu1  ;;  %13664 = vmatprep.subr.bf16.mxu1 %v19235_v36 }
 0x113   :  { %3547 = vmatmul.mubr.bf16.vlgmr.msra.gmra.mrb[96].mxu0 %v15973_v4  ;;  %v14209_v32 = vld [vmem:[%s19231_s0 + $0x208] sm:$0xff]  }
 0x114   :  { %3603 = vmatmul.mubr.bf16.vlgmr.msra.gmra.mrb[96].mxu1 %v15979_v44  ;;  %12527 = vmatpush3.bf16.msra.mxu0 %v14193_v0 }
 0x115   :  { %13665 = vmatpush3.bf16.msra.mxu1 %v14194_v1  ;;  %12528 = vmatprep.subr.bf16.mxu0 %v14195_v45  ;;  %v14210_v45 = vld [vmem:[%s19231_s0 + $0x1d0] sm:$0xff]  }
 0x116   :  { %v12098_v47 = vpop.f32.mrb[12].mxu0  ;;  %13666 = vmatprep.subr.bf16.mxu1 %v19235_v36  ;;  %3554 = vmatprep.mubr.bf16.mxu0 %v15995_v35 }
 0x117   :  { %v12099_v5 = vpop.f32.mrb[13].mxu0  ;;  %3610 = vmatprep.mubr.bf16.mxu1 %v16001_v14  ;;  %v783_v17 = vpop.f32.mrb[16].mxu1 }
 0x118   :  { %v12100_v50 = vadd.f32 %v12099_v5, %v12098_v47  ;;  %v12101_v8 = vpop.f32.mrb[14].mxu0  ;;  %12529 = vmatpush3.bf16.msra.mxu0 %v14196_v7  ;;  %v13586_v18 = vpop.f32.mrb[17].mxu1  ;;  %v14211_v47 = vld [vmem:[%s19231_s0 + $0xb8] sm:$0xff]  }
 0x119   :  { %v12102_v62 = vpop.f32.mrb[15].mxu0  ;;  %13667 = vmatpush3.bf16.msra.mxu1 %v14197_v9  ;;  %12530 = vmatprep.subr.bf16.mxu0 %v14198_v12  ;;  %v786_v10 = vpop.f32.mrb[18].mxu1  ;;  %v14219_v18 = vld [vmem:[%s19231_s0 + $0x138] sm:$0xff]  }
 0x11a   :  { %v12103_v13 = vadd.f32 %v12102_v62, %v12101_v8  ;;  %v720_v53 = vadd.f32 %v12100_v50, %v15846_v60  ;;  %13668 = vmatprep.subr.bf16.mxu1 %v19235_v36  ;;  %v14201_v60 = vld [vmem:[%s19231_s0 + $0x1b8] sm:$0xff]   ;;  %v13587_v21 = vpop.f32.mrb[19].mxu1  ;;  %v14212_v50 = vld [vmem:[%s19231_s0 + $0x190] sm:$0xff]  }
 0x11b   :  { %v14213_v8 = vld [vmem:[%s19231_s0 + $0x78] sm:$0xff]  }
 0x11c   :  { %v723_v63 = vadd.f32 %v12103_v13, %v15851_v22  ;;  %v16012_v3 = vadd.f32 %v775_v59, %v720_v53  ;;  %v16024_v22 = vld [vmem:[%s19232_s1 + $0x38] ss:$28 sps:$4 sm:$0xff]   ;;  %3611 = vmatmul.mubr.bf16.gmra.mrb[100].mxu1 %v16030_v24  ;;  %12531 = vmatpush3.bf16.msra.mxu0 %v14199_v38 }
 0x11d   :  { %3555 = vmatmul.mubr.bf16.gmra.mrb[100].mxu0 %v16024_v22  ;;  %13669 = vmatpush3.bf16.msra.mxu1 %v14200_v16  ;;  %v14214_v62 = vld [vmem:[%s19231_s0 + $0x1d8] sm:$0xff]  }
 0x11e   :  { %v798_v19 = vrot.slane %v16012_v3, 2  ;;  %v16019_v23 = vadd.f32 %v778_v2, %v723_v63  ;;  %v12104_v25 = vpop.f32.mrb[16].mxu0  ;;  %12532 = vmatprep.subr.bf16.mxu0 %v14201_v60  ;;  %13670 = vmatprep.subr.bf16.mxu1 %v19235_v36  ;;  %v14215_v63 = vld [vmem:[%s19231_s0 + $0xc0] sm:$0xff]   ;;  %v14216_v16 = vld [vmem:[%s19231_s0 + $0x198] sm:$0xff]   ;;  %v14218_v60 = vld [vmem:[%s19231_s0 + $0xc8] sm:$0xff]  }
 0x11f   :  { %v12105_v11 = vpop.f32.mrb[17].mxu0  ;;  %3562 = vmatprep.mubr.bf16.mxu0 %v15063_v55  ;;  %3618 = vmatprep.mubr.bf16.mxu1 %v15065_v56  ;;  %v791_v31 = vpop.f32.mrb[20].mxu1 }
 0x120   :  { %v12106_v29 = vadd.f32 %v12105_v11, %v12104_v25  ;;  %v12107_v30 = vpop.f32.mrb[18].mxu0  ;;  %799 = vrot.lane.b32.xlu0 %v798_v19, %s14845_s21  ;;  %12533 = vmatpush3.bf16.msra.mxu0 %v14202_v27  ;;  %v804_v54 = vrot.slane %v16019_v23, 2  ;;  %v13590_v61 = vpop.f32.mrb[21].mxu1  ;;  %v14220_v11 = vld [vmem:[%s19231_s0 + $0x88] sm:$0xff]  }
 0x121   :  { %v12108_v37 = vpop.f32.mrb[19].mxu0  ;;  %13671 = vmatpush3.bf16.msra.mxu1 %v14203_v28  ;;  %12534 = vmatprep.subr.bf16.mxu0 %v14204_v20  ;;  %v794_v1 = vpop.f32.mrb[22].mxu1  ;;  %v14221_v28 = vld [vmem:[%s19231_s0 + $0xf8] sm:$0xff]  }
 0x122   :  { %v728_v48 = vadd.f32 %v12106_v29, %v15883_v15  ;;  %v12109_v51 = vadd.f32 %v12108_v37, %v12107_v30  ;;  %13672 = vmatprep.subr.bf16.mxu1 %v19235_v36  ;;  %v14207_v15 = vld [vmem:[%s19231_s0 + $0x1c8] sm:$0xff]   ;;  %v13591_v7 = vpop.f32.mrb[23].mxu1  ;;  %v14222_v30 = vld [vmem:[%s19231_s0 + $0xd0] sm:$0xff]   ;;  %v14223_v37 = vld [vmem:[%s19231_s0 + $0x140] sm:$0xff]  }
 0x124   :  { %v731_v59 = vadd.f32 %v12109_v51, %v15891_v6  ;;  %v16059_v34 = vadd.f32 %v783_v17, %v728_v48  ;;  %805 = vrot.lane.b32.xlu0 %v804_v54, %s14845_s21  ;;  %3619 = vmatmul.mubr.bf16.gmra.mrb[104].mxu1 %v15069_v58  ;;  %v14208_v6 = vld [vmem:[%s19231_s0 + $0x188] sm:$0xff]   ;;  %v14225_v51 = vld [vmem:[%s19231_s0 + $0x100] sm:$0xff]   ;;  %v14226_v54 = vld [vmem:[%s19231_s0 + $0xd8] sm:$0xff]  }
 0x125   :  { %3563 = vmatmul.mubr.bf16.gmra.mrb[104].mxu0 %v15067_v57  ;;  %13673 = vmatpush3.bf16.msra.mxu1 %v14206_v52  ;;  %v16142_v48 = vld [vmem:[%s19232_s1 + $0x10] ss:$28 sps:$4 sm:$0xff]  }
 0x126   :  { %v810_v43 = vrot.slane %v16059_v34, 2  ;;  %v16068_v2 = vadd.f32 %v786_v10, %v731_v59  ;;  %12535 = vmatpush3.bf16.msra.mxu0 %v14205_v41  ;;  %v12110_v0 = vpop.f32.mrb[20].mxu0  ;;  %13674 = vmatprep.subr.bf16.mxu1 %v19235_v36  ;;  %v14224_v41 = vld [vmem:[%s19231_s0 + $0x90] sm:$0xff]   ;;  %v14227_v59 = vld [vmem:[%s19231_s0 + $0x148] sm:$0xff]  }
 0x127   :  { %12536 = vmatprep.subr.bf16.mxu0 %v14207_v15  ;;  %v12111_v5 = vpop.f32.mrb[21].mxu0  ;;  %13676 = vmatprep.mubr.msk.bf16.mxu1 %vm14843_vm0, %v19235_v36  ;;  %v16151_v52 = vld [vmem:[%s19232_s1 + $0x50] ss:$28 sps:$4 sm:$0xff]  }
 0x128   :  { %811 = vrot.lane.b32.xlu1 %v810_v43, %s14845_s21  ;;  %v12112_v9 = vadd.f32 %v12111_v5, %v12110_v0  ;;  %v12113_v12 = vpop.f32.mrb[22].mxu0  ;;  %3658 = vmatprep.mubr.bf16.mxu0 %v15793_v46  ;;  %v816_v13 = vrot.slane %v16068_v2, 2  ;;  %v14217_v46 = vld [vmem:[%s19231_s0 + $0x80] sm:$0xff]   ;;  %v14228_v43 = vld [vmem:[%s19231_s0 + $0x98] sm:$0xff]   ;;  %v14229_v5 = vld [vmem:[%s19231_s0 + $0x108] sm:$0xff]  }
 0x129   :  { %13675 = vmatpush3.bf16.msra.mxu1 %v14209_v32  ;;  %v12114_v53 = vpop.f32.mrb[23].mxu0 }
 0x12a   :  { %12537 = vmatpush3.bf16.msra.mxu0 %v14208_v6  ;;  %v736_v38 = vadd.f32 %v12112_v9, %v15925_v42  ;;  %12569 = vmatprep.subr.bf16.mxu1 %v14211_v47  ;;  %v16108_v42 = vld [vmem:[%s19232_s1 + $0x18] ss:$28 sps:$4 sm:$0xff]   ;;  %v16164_v6 = vld [vmem:[%s19232_s1 + $0x4c] ss:$28 sps:$4 sm:$0xff]   ;;  %v14232_v53 = vld [vmem:[%s19231_s0 + $0xa0] sm:$0xff]  }
 0x12b   :  { %12538 = vmatprep.subr.bf16.mxu0 %v14210_v45 }
 0x12c   :  { %817 = vrot.lane.b32.xlu1 %v816_v13, %s14845_s21  ;;  %13677 = vmatmul.mubr.msk.bf16.vlgmr.msra.gmra.mrb[108].mxu1 %vm563_vm1, %v16108_v42  ;;  %v16112_v17 = vadd.f32 %v791_v31, %v736_v38  ;;  %v16189_v38 = vld [vmem:[%s19232_s1 + $0x48] ss:$28 sps:$4 sm:$0xff]  }
 0x12d   :  { %12570 = vmatpush3.bf16.msra.mxu1 %v14213_v8  ;;  %13680 = vmatprep.mubr.msk.bf16.mxu1 %vm14843_vm0, %v19235_v36 }
 0x12e   :  { %12539 = vmatpush3.bf16.msra.mxu0 %v14212_v50  ;;  %12571 = vmatprep.subr.bf16.mxu1 %v14215_v63  ;;  %v822_v25 = vrot.slane %v16112_v17, 2  ;;  %v14230_v50 = vld [vmem:[%s19231_s0 + $0xe0] sm:$0xff]   ;;  %v14233_v63 = vld [vmem:[%s19231_s0 + $0x110] sm:$0xff]  }
 0x12f   :  { %v12141_v19 = vpop.f32.mrb[24].mxu1  ;;  %12540 = vmatprep.subr.bf16.mxu0 %v14214_v62  ;;  %v14231_v62 = vld [vmem:[%s19231_s0 + $0x150] sm:$0xff]  }
 0x130   :  { %v12142_v10 = vpop.f32.mrb[25].mxu1  ;;  %823 = vrot.lane.b32.xlu0 %v822_v25, %s14845_s21  ;;  %v14237_v25 = vld [vmem:[%s19231_s0 + $0x118] sm:$0xff]  }
 0x131   :  { %v12143_v21 = vadd.f32 %v12142_v10, %v12141_v19  ;;  %v12144_v27 = vpop.f32.mrb[26].mxu1  ;;  %12572 = vmatpush3.bf16.msra.mxu1 %v14217_v46  ;;  %v14234_v46 = vld [vmem:[%s19231_s0 + $0xe8] sm:$0xff]  }
 0x132   :  { %12541 = vmatpush3.bf16.msra.mxu0 %v14216_v16  ;;  %v12145_v29 = vpop.f32.mrb[27].mxu1  ;;  %12573 = vmatprep.subr.bf16.mxu1 %v14218_v60  ;;  %v14235_v60 = vld [vmem:[%s19231_s0 + $0x158] sm:$0xff]  }
 0x133   :  { %v12146_v20 = vadd.f32 %v12145_v29, %v12144_v27  ;;  %12603 = vmatprep.subr.bf16.mxu0 %v14219_v18 }
 0x134   :  { %13681 = vmatmul.mubr.msk.bf16.gmra.mrb[112].mxu1 %vm563_vm1, %v16151_v52 }
 0x135   :  { %3659 = vmatmul.mubr.bf16.vlgmr.msra.gmra.mrb[108].mxu0 %v16142_v48  ;;  %12574 = vmatpush3.bf16.msra.mxu1 %v14220_v11 }
 0x136   :  { %12604 = vmatpush3.bf16.msra.mxu0 %v14221_v28  ;;  %12575 = vmatprep.subr.bf16.mxu1 %v14222_v30  ;;  %v12175_v31 = vpop.f32.mrb[24].mxu0  ;;  %v14238_v28 = vld [vmem:[%s19231_s0 + $0xf0] sm:$0xff]  }
 0x137   :  { %12605 = vmatprep.subr.bf16.mxu0 %v14223_v37  ;;  %v12147_v15 = vpop.f32.mrb[28].mxu1  ;;  %3666 = vmatprep.mubr.bf16.mxu0 %v16164_v6  ;;  %v12176_v32 = vpop.f32.mrb[25].mxu0 }
 0x138   :  { %v12148_v61 = vpop.f32.mrb[29].mxu1  ;;  %13684 = vmatprep.mubr.msk.bf16.mxu1 %vm14843_vm0, %v19235_v36  ;;  %v12177_v45 = vadd.f32 %v12176_v32, %v12175_v31  ;;  %v12178_v47 = vpop.f32.mrb[26].mxu0  ;;  %v14242_v31 = vld [vmem:[%s19231_s0 + $0x168] sm:$0xff]  }
 0x139   :  { %v12149_v0 = vadd.f32 %v12148_v61, %v12147_v15  ;;  %v12150_v1 = vpop.f32.mrb[30].mxu1  ;;  %12576 = vmatpush3.bf16.msra.mxu1 %v14224_v41  ;;  %v12179_v8 = vpop.f32.mrb[27].mxu0  ;;  %v14239_v41 = vld [vmem:[%s19231_s0 + $0x160] sm:$0xff]   ;;  %v14244_v32 = vld [vmem:[%s19231_s0 + $0x128] sm:$0xff]  }
 0x13a   :  { %12606 = vmatpush3.bf16.msra.mxu0 %v14225_v51  ;;  %v12151_v7 = vpop.f32.mrb[31].mxu1  ;;  %12577 = vmatprep.subr.bf16.mxu1 %v14226_v54  ;;  %v16181_v12 = vadd.f32 %v12177_v45, %v12143_v21  ;;  %v12180_v13 = vadd.f32 %v12179_v8, %v12178_v47  ;;  %v14240_v54 = vld [vmem:[%s19231_s0 + $0xb0] sm:$0xff]  }
 0x13b   :  { %12607 = vmatprep.subr.bf16.mxu0 %v14227_v59  ;;  %v12152_v9 = vadd.f32 %v12151_v7, %v12150_v1  ;;  %v14241_v59 = vld [vmem:[%s19231_s0 + $0x120] sm:$0xff]   ;;  %v14245_v1 = vld [vmem:[%s19231_s0 + $0x178] sm:$0xff]   ;;  %v14248_v8 = vld [vmem:[%s19231_s0 + $0x130] sm:$0xff]  }
 0x13c   :  { %13685 = vmatmul.mubr.msk.bf16.gmra.mrb[116].mxu1 %vm563_vm1, %v15912_v26  ;;  %v16197_v16 = vadd.f32 %v12180_v13, %v12146_v20  ;;  %v14236_v26 = vld [vmem:[%s19231_s0 + $0xa8] sm:$0xff]  }
 0x13d   :  { %3667 = vmatmul.mubr.bf16.gmra.mrb[112].mxu0 %v16189_v38  ;;  %12578 = vmatpush3.bf16.msra.mxu1 %v14228_v43  ;;  %v14243_v43 = vld [vmem:[%s19231_s0 + $0x1b8] sm:$0xff]  }
 0x13e   :  { %12608 = vmatpush3.bf16.msra.mxu0 %v14229_v5  ;;  %12579 = vmatprep.subr.bf16.mxu1 %v14230_v50  ;;  %v12181_v19 = vpop.f32.mrb[28].mxu0  ;;  %v14246_v5 = vld [vmem:[%s19231_s0 + $0x170] sm:$0xff]  }
 0x13f   :  { %12609 = vmatprep.subr.bf16.mxu0 %v14231_v62  ;;  %v12153_v18 = vpop.f32.mrb[32].mxu1  ;;  %3674 = vmatprep.mubr.bf16.mxu0 %v15222_v39  ;;  %v12182_v11 = vpop.f32.mrb[29].mxu0  ;;  %v14250_v62 = vld [vmem:[%s19231_s0 + $0x1c8] sm:$0xff]  }
 0x140   :  { %v12154_v10 = vpop.f32.mrb[33].mxu1  ;;  %4280 = vmatprep.mubr.bf16.mxu1 %v15933_v49  ;;  %v12183_v29 = vadd.f32 %v12182_v11, %v12181_v19  ;;  %v12184_v30 = vpop.f32.mrb[30].mxu0 }
 0x141   :  { %v12155_v21 = vadd.f32 %v12154_v10, %v12153_v18  ;;  %v12156_v27 = vpop.f32.mrb[34].mxu1  ;;  %12580 = vmatpush3.bf16.msra.mxu1 %v14232_v53  ;;  %v12185_v37 = vpop.f32.mrb[31].mxu0 }
 0x142   :  { %12610 = vmatpush3.bf16.msra.mxu0 %v14233_v63  ;;  %v12157_v20 = vpop.f32.mrb[35].mxu1  ;;  %12581 = vmatprep.subr.bf16.mxu1 %v14234_v46  ;;  %v16219_v49 = vadd.f32 %v12183_v29, %v12149_v0  ;;  %v12186_v51 = vadd.f32 %v12185_v37, %v12184_v30  ;;  %v14254_v27 = vld [vmem:[%s19231_s0 + $0x190] sm:$0xff]   ;;  %v14255_v30 = vld [vmem:[%s19231_s0 + $0x200] sm:$0xff]   ;;  %v14257_v37 = vld [vmem:[%s19231_s0 + $0x198] sm:$0xff]  }
 0x143   :  { %12611 = vmatprep.subr.bf16.mxu0 %v14235_v60 }
 0x144   :  { %v16228_v15 = vadd.f32 %v12186_v51, %v12152_v9  ;;  %v14249_v9 = vld [vmem:[%s19231_s0 + $0x180] sm:$0xff]  }
 0x145   :  { %3675 = vmatmul.mubr.bf16.gmra.mrb[116].mxu0 %v15224_v40  ;;  %12582 = vmatpush3.bf16.msra.mxu1 %v14236_v26  ;;  %v14252_v26 = vld [vmem:[%s19231_s0 + $0x1f8] sm:$0xff]  }
 0x146   :  { %12612 = vmatpush3.bf16.msra.mxu0 %v14237_v25  ;;  %12583 = vmatprep.subr.bf16.mxu1 %v14238_v28  ;;  %v12187_v61 = vpop.f32.mrb[32].mxu0  ;;  %v14253_v25 = vld [vmem:[%s19231_s0 + $0x1d0] sm:$0xff]  }
 0x147   :  { %12613 = vmatprep.subr.bf16.mxu0 %v14239_v41  ;;  %4336 = vmatprep.mubr.bf16.mxu0 %v15939_v33  ;;  %v12188_v0 = vpop.f32.mrb[33].mxu0  ;;  %v14247_v33 = vld [vmem:[%s19231_s0 + $0x1c0] sm:$0xff]   ;;  %v14258_v41 = vld [vmem:[%s19231_s0 + $0x208] sm:$0xff]  }
 0x148   :  { %v12189_v45 = vadd.f32 %v12188_v0, %v12187_v61  ;;  %v12190_v47 = vpop.f32.mrb[34].mxu0  ;;  %v14259_v61 = vld [vmem:[%s19231_s0 + $0x1e0] sm:$0xff]  }
 0x149   :  { %12584 = vmatpush3.bf16.msra.mxu1 %v14240_v54  ;;  %v12191_v7 = vpop.f32.mrb[35].mxu0  ;;  %v14260_v47 = vld [vmem:[%s19231_s0 + $0x1a0] sm:$0xff]  }
 0x14a   :  { %12614 = vmatpush3.bf16.msra.mxu0 %v14241_v59  ;;  %12637 = vmatprep.subr.bf16.mxu1 %v14243_v43  ;;  %v16249_v50 = vadd.f32 %v12189_v45, %v12155_v21 }
 0x14b   :  { %12615 = vmatprep.subr.bf16.mxu0 %v14242_v31 }
 0x14c   :  { %4281 = vmatmul.mubr.bf16.vlgmr.msra.gmra.mrb[120].mxu1 %v15973_v4  ;;  %v14251_v4 = vld [vmem:[%s19231_s0 + $0x188] sm:$0xff]  }
 0x14d   :  { %12638 = vmatpush3.bf16.msra.mxu1 %v14245_v1  ;;  %4288 = vmatprep.mubr.bf16.mxu1 %v15995_v35 }
 0x14e   :  { %12616 = vmatpush3.bf16.msra.mxu0 %v14244_v32  ;;  %12639 = vmatprep.subr.bf16.mxu1 %v14247_v33  ;;  %v1514_v53 = vpop.f32.mrb[36].mxu0 }
 0x14f   :  { %12617 = vmatprep.subr.bf16.mxu0 %v14246_v5  ;;  %v12209_v13 = vpop.f32.mrb[36].mxu1  ;;  %v13606_v46 = vpop.f32.mrb[37].mxu0 }
 0x150   :  { %v12210_v63 = vpop.f32.mrb[37].mxu1  ;;  %v1517_v19 = vpop.f32.mrb[38].mxu0 }
 0x151   :  { %v12211_v60 = vadd.f32 %v12210_v63, %v12209_v13  ;;  %v12212_v18 = vpop.f32.mrb[38].mxu1  ;;  %12640 = vmatpush3.bf16.msra.mxu1 %v14249_v9  ;;  %v13607_v11 = vpop.f32.mrb[39].mxu0 }
 0x152   :  { %12618 = vmatpush3.bf16.msra.mxu0 %v14248_v8  ;;  %v12213_v10 = vpop.f32.mrb[39].mxu1  ;;  %12641 = vmatprep.subr.bf16.mxu1 %v14250_v62 }
 0x153   :  { %13688 = vmatprep.subr.bf16.mxu0 %v19235_v36  ;;  %v1459_v35 = vadd.f32 %v12211_v60, %v16181_v12  ;;  %v12214_v21 = vadd.f32 %v12213_v10, %v12212_v18 }
 0x154   :  { %4289 = vmatmul.mubr.bf16.gmra.mrb[124].mxu1 %v16024_v22 }
 0x155   :  { %4337 = vmatmul.mubr.bf16.vlgmr.msra.gmra.mrb[120].mxu0 %v15979_v44  ;;  %v16278_v28 = vadd.f32 %v1514_v53, %v1459_v35  ;;  %v1462_v29 = vadd.f32 %v12214_v21, %v16197_v16  ;;  %12642 = vmatpush3.bf16.msra.mxu1 %v14251_v4  ;;  %v14256_v44 = vld [vmem:[%s19231_s0 + $0x1d8] sm:$0xff]   ;;  %v14263_v53 = vld [vmem:[%s19231_s0 + $0x1a8] sm:$0xff]   ;;  %v14266_v35 = vld [vmem:[%s19231_s0 + $0x1b0] sm:$0xff]  }
 0x156   :  { %13689 = vmatpush3.bf16.msra.mxu0 %v14252_v26  ;;  %12643 = vmatprep.subr.bf16.mxu1 %v14253_v25  ;;  %v1522_v16 = vpop.f32.mrb[40].mxu0  ;;  %v14264_v4 = vld [vmem:[%s19231_s0 + $0x218] sm:$0xff]   ;;  %v14267_v21 = vld [vmem:[%s19231_s0 + $0x220] sm:$0xff]  }
 0x157   :  { %13690 = vmatprep.subr.bf16.mxu0 %v19235_v36  ;;  %v16288_v12 = vadd.f32 %v1517_v19, %v1462_v29  ;;  %v12215_v22 = vpop.f32.mrb[40].mxu1  ;;  %v1537_v20 = vrot.slane %v16278_v28, 2  ;;  %4344 = vmatprep.mubr.bf16.mxu0 %v16001_v14  ;;  %v13610_v54 = vpop.f32.mrb[41].mxu0  ;;  %v14265_v19 = vld [vmem:[%s19231_s0 + $0x1f0] sm:$0xff]  }
 0x158   :  { %4296 = vmatprep.mubr.bf16.mxu1 %v15063_v55  ;;  %v12216_v51 = vpop.f32.mrb[41].mxu1  ;;  %v1525_v14 = vpop.f32.mrb[42].mxu0  ;;  %v14269_v29 = vld [vmem:[%s19231_s0 + $0x150] sm:$0xff]   ;;  %v14277_v54 = vld [vmem:[%s19231_s0 + $0x160] sm:$0xff]  }
 0x159   :  { %v12217_v59 = vadd.f32 %v12216_v51, %v12215_v22  ;;  %v12218_v31 = vpop.f32.mrb[42].mxu1  ;;  %12644 = vmatpush3.bf16.msra.mxu1 %v14254_v27  ;;  %v1543_v43 = vrot.slane %v16288_v12, 2  ;;  %1538 = vrot.lane.b32.xlu0 %v1537_v20, %s14845_s21  ;;  %v13611_v0 = vpop.f32.mrb[43].mxu0  ;;  %v14271_v22 = vld [vmem:[%s19231_s0 + $0x110] sm:$0xff]   ;;  %v14272_v20 = vld [vmem:[%s19231_s0 + $0xd8] sm:$0xff]   ;;  %v14276_v51 = vld [vmem:[%s19231_s0 + $0xe0] sm:$0xff]  }
 0x15a   :  { %13691 = vmatpush3.bf16.msra.mxu0 %v14255_v30  ;;  %v12219_v32 = vpop.f32.mrb[43].mxu1  ;;  %12645 = vmatprep.subr.bf16.mxu1 %v14256_v44  ;;  %v14270_v44 = vld [vmem:[%s19231_s0 + $0x90] sm:$0xff]  }
 0x15b   :  { %v12220_v1 = vadd.f32 %v12219_v32, %v12218_v31  ;;  %1544 = vrot.lane.b32.xlu1 %v1543_v43, %s14845_s21  ;;  %v1467_v45 = vadd.f32 %v12217_v59, %v16219_v49  ;;  %13692 = vmatprep.subr.bf16.mxu0 %v19235_v36  ;;  %v14261_v49 = vld [vmem:[%s19231_s0 + $0x210] sm:$0xff]   ;;  %v14279_v31 = vld [vmem:[%s19231_s0 + $0x120] sm:$0xff]  }
 0x15c   :  { %4297 = vmatmul.mubr.bf16.gmra.mrb[128].mxu1 %v15067_v57 }
 0x15d   :  { %4345 = vmatmul.mubr.bf16.gmra.mrb[124].mxu0 %v16030_v24  ;;  %v16312_v5 = vadd.f32 %v1522_v16, %v1467_v45  ;;  %12646 = vmatpush3.bf16.msra.mxu1 %v14257_v37  ;;  %v1470_v7 = vadd.f32 %v12220_v1, %v16228_v15  ;;  %v14262_v24 = vld [vmem:[%s19231_s0 + $0x1e8] sm:$0xff]   ;;  %v16329_v15 = vld [vmem:[%s19232_s1 + $0x14] ss:$28 sps:$4 sm:$0xff]   ;;  %v14273_v16 = vld [vmem:[%s19231_s0 + $0x158] sm:$0xff]  }
 0x15e   :  { %13693 = vmatpush3.bf16.msra.mxu0 %v14258_v41  ;;  %12647 = vmatprep.subr.bf16.mxu1 %v14259_v61  ;;  %v1530_v62 = vpop.f32.mrb[44].mxu0  ;;  %v14274_v37 = vld [vmem:[%s19231_s0 + $0x98] sm:$0xff]   ;;  %v14281_v45 = vld [vmem:[%s19231_s0 + $0x168] sm:$0xff]  }
 0x15f   :  { %13694 = vmatprep.subr.bf16.mxu0 %v19235_v36  ;;  %v16322_v33 = vadd.f32 %v1525_v14, %v1470_v7  ;;  %v12221_v8 = vpop.f32.mrb[44].mxu1  ;;  %v1549_v9 = vrot.slane %v16312_v5, 2  ;;  %4352 = vmatprep.mubr.bf16.mxu0 %v15065_v56  ;;  %v13614_v63 = vpop.f32.mrb[45].mxu0  ;;  %v14275_v41 = vld [vmem:[%s19231_s0 + $0x118] sm:$0xff]  }
 0x160   :  { %4392 = vmatprep.mubr.bf16.mxu1 %v16329_v15  ;;  %v12222_v13 = vpop.f32.mrb[45].mxu1  ;;  %v1533_v26 = vpop.f32.mrb[46].mxu0 }
 0x161   :  { %v12223_v46 = vadd.f32 %v12222_v13, %v12221_v8  ;;  %12648 = vmatpush3.bf16.msra.mxu1 %v14260_v47  ;;  %v1555_v60 = vrot.slane %v16322_v33, 2  ;;  %v12224_v18 = vpop.f32.mrb[46].mxu1  ;;  %1550 = vrot.lane.b32.xlu0 %v1549_v9, %s14845_s21  ;;  %v13615_v10 = vpop.f32.mrb[47].mxu0  ;;  %v14282_v9 = vld [vmem:[%s19231_s0 + $0xa8] sm:$0xff]  }
 0x162   :  { %13695 = vmatpush3.bf16.msra.mxu0 %v14261_v49  ;;  %12649 = vmatprep.subr.bf16.mxu1 %v14262_v24  ;;  %v12225_v25 = vpop.f32.mrb[47].mxu1  ;;  %v14287_v18 = vld [vmem:[%s19231_s0 + $0x130] sm:$0xff]  }
 0x163   :  { %1556 = vrot.lane.b32.xlu1 %v1555_v60, %s14845_s21  ;;  %v1475_v11 = vadd.f32 %v12223_v46, %v16249_v50  ;;  %13696 = vmatprep.subr.bf16.mxu0 %v19235_v36  ;;  %v14268_v50 = vld [vmem:[%s19231_s0 + $0xd0] sm:$0xff]  }
 0x164   :  { %v14286_v60 = vld [vmem:[%s19231_s0 + $0xb0] sm:$0xff]  }
 0x165   :  { %4353 = vmatmul.mubr.bf16.gmra.mrb[128].mxu0 %v15069_v58  ;;  %v16353_v27 = vadd.f32 %v1530_v62, %v1475_v11  ;;  %12650 = vmatpush3.bf16.msra.mxu1 %v14263_v53  ;;  %v14283_v62 = vld [vmem:[%s19231_s0 + $0x128] sm:$0xff]   ;;  %v14284_v53 = vld [vmem:[%s19231_s0 + $0xf0] sm:$0xff]  }
 0x166   :  { %13697 = vmatpush3.bf16.msra.mxu0 %v14264_v4  ;;  %12651 = vmatprep.subr.bf16.mxu1 %v14265_v19 }
 0x167   :  { %13698 = vmatprep.subr.bf16.mxu0 %v19235_v36  ;;  %v1561_v30 = vrot.slane %v16353_v27, 2  ;;  %13700 = vmatprep.mubr.msk.bf16.mxu0 %vm14843_vm0, %v19235_v36 }
 0x169   :  { %12652 = vmatpush3.bf16.msra.mxu1 %v14266_v35  ;;  %1562 = vrot.lane.b32.xlu0 %v1561_v30, %s14845_s21 }
 0x16a   :  { %13699 = vmatpush3.bf16.msra.mxu0 %v14267_v21  ;;  %12714 = vmatprep.subr.bf16.mxu1 %v14269_v29  ;;  %v14288_v21 = vld [vmem:[%s19231_s0 + $0xf8] sm:$0xff]  }
 0x16b   :  { %12680 = vmatprep.subr.bf16.mxu0 %v14268_v50  ;;  %v14289_v50 = vld [vmem:[%s19231_s0 + $0x178] sm:$0xff]  }
 0x16c   :  { %4393 = vmatmul.mubr.bf16.vlgmr.msra.gmra.mrb[132].mxu1 %v16142_v48 }
 0x16d   :  { %13701 = vmatmul.mubr.msk.bf16.vlgmr.msra.gmra.mrb[132].mxu0 %vm563_vm1, %v16108_v42  ;;  %12715 = vmatpush3.bf16.msra.mxu1 %v14271_v22  ;;  %v14278_v42 = vld [vmem:[%s19231_s0 + $0xa0] sm:$0xff]   ;;  %v14290_v22 = vld [vmem:[%s19231_s0 + $0xb8] sm:$0xff]  }
 0x16e   :  { %12681 = vmatpush3.bf16.msra.mxu0 %v14270_v44  ;;  %12716 = vmatprep.subr.bf16.mxu1 %v14273_v16  ;;  %v12252_v48 = vpop.f32.mrb[48].mxu0  ;;  %v14291_v16 = vld [vmem:[%s19231_s0 + $0x138] sm:$0xff]  }
 0x16f   :  { %12682 = vmatprep.subr.bf16.mxu0 %v14272_v20  ;;  %v12286_v59 = vpop.f32.mrb[48].mxu1  ;;  %4400 = vmatprep.mubr.bf16.mxu1 %v16164_v6  ;;  %v12253_v43 = vpop.f32.mrb[49].mxu0  ;;  %v14280_v6 = vld [vmem:[%s19231_s0 + $0xe8] sm:$0xff]  }
 0x170   :  { %13704 = vmatprep.mubr.msk.bf16.mxu0 %vm14843_vm0, %v19235_v36  ;;  %v12287_v14 = vpop.f32.mrb[49].mxu1  ;;  %v12254_v61 = vadd.f32 %v12253_v43, %v12252_v48  ;;  %v12255_v0 = vpop.f32.mrb[50].mxu0  ;;  %v16451_v20 = vld [vmem:[%s19232_s1 + $0x88] ss:$0 sps:$4 sm:$0x33]  }
 0x171   :  { %v12288_v32 = vadd.f32 %v12287_v14, %v12286_v59  ;;  %v12289_v1 = vpop.f32.mrb[50].mxu1  ;;  %12717 = vmatpush3.bf16.msra.mxu1 %v14275_v41  ;;  %v12256_v47 = vpop.f32.mrb[51].mxu0  ;;  %v14292_v41 = vld [vmem:[%s19231_s0 + $0x100] sm:$0xff]   ;;  %v16481_v43 = vld [vmem:[%s19232_s1 + $0xc] ss:$28 sps:$4 sm:$0xff]  }
 0x172   :  { %12683 = vmatpush3.bf16.msra.mxu0 %v14274_v37  ;;  %v12290_v7 = vpop.f32.mrb[51].mxu1  ;;  %12718 = vmatprep.subr.bf16.mxu1 %v14277_v54  ;;  %v12257_v24 = vadd.f32 %v12256_v47, %v12255_v0  ;;  %v14294_v59 = vld [vmem:[%s19231_s0 + $0xc0] sm:$0xff]   ;;  %v14296_v47 = vld [vmem:[%s19231_s0 + $0x108] sm:$0xff]  }
 0x173   :  { %12684 = vmatprep.subr.bf16.mxu0 %v14276_v51  ;;  %v16408_v49 = vadd.f32 %v12288_v32, %v12254_v61  ;;  %v12291_v8 = vadd.f32 %v12290_v7, %v12289_v1  ;;  %v14293_v51 = vld [vmem:[%s19231_s0 + $0x180] sm:$0xff]   ;;  %v14297_v7 = vld [vmem:[%s19231_s0 + $0x188] sm:$0xff]  }
 0x174   :  { %4401 = vmatmul.mubr.bf16.gmra.mrb[136].mxu1 %v16189_v38  ;;  %v14285_v38 = vld [vmem:[%s19231_s0 + $0x170] sm:$0xff]  }
 0x175   :  { %13705 = vmatmul.mubr.msk.bf16.gmra.mrb[136].mxu0 %vm563_vm1, %v16151_v52  ;;  %v16419_v13 = vadd.f32 %v12291_v8, %v12257_v24  ;;  %12719 = vmatpush3.bf16.msra.mxu1 %v14279_v31  ;;  %v16475_v31 = vld [vmem:[%s19232_s1 + $0x4] ss:$28 sps:$4 sm:$0xff]  }
 0x176   :  { %12685 = vmatpush3.bf16.msra.mxu0 %v14278_v42  ;;  %12720 = vmatprep.subr.bf16.mxu1 %v14281_v45  ;;  %v12258_v4 = vpop.f32.mrb[52].mxu0  ;;  %v14295_v42 = vld [vmem:[%s19231_s0 + $0x140] sm:$0xff]  }
 0x177   :  { %12686 = vmatprep.subr.bf16.mxu0 %v14280_v6  ;;  %v12292_v52 = vpop.f32.mrb[52].mxu1  ;;  %4408 = vmatprep.mubr.bf16.mxu1 %v15222_v39  ;;  %v12259_v63 = vpop.f32.mrb[53].mxu0 }
 0x178   :  { %13708 = vmatprep.mubr.msk.bf16.mxu0 %vm14843_vm0, %v19235_v36  ;;  %v12293_v46 = vpop.f32.mrb[53].mxu1  ;;  %v12260_v19 = vadd.f32 %v12259_v63, %v12258_v4  ;;  %v12261_v25 = vpop.f32.mrb[54].mxu0 }
 0x179   :  { %v12294_v26 = vadd.f32 %v12293_v46, %v12292_v52  ;;  %v12295_v10 = vpop.f32.mrb[54].mxu1  ;;  %12721 = vmatpush3.bf16.msra.mxu1 %v14283_v62  ;;  %v12262_v11 = vpop.f32.mrb[55].mxu0  ;;  %v14299_v62 = vld [vmem:[%s19231_s0 + $0x148] sm:$0xff]   ;;  %v14301_v52 = vld [vmem:[%s19231_s0 + $0x190] sm:$0xff]  }
 0x17a   :  { %12687 = vmatpush3.bf16.msra.mxu0 %v14282_v9  ;;  %v12296_v35 = vpop.f32.mrb[55].mxu1  ;;  %12722 = vmatprep.subr.bf16.mxu1 %v14285_v38  ;;  %v12263_v30 = vadd.f32 %v12262_v11, %v12261_v25  ;;  %v14298_v9 = vld [vmem:[%s19231_s0 + $0xc8] sm:$0xff]   ;;  %v14302_v46 = vld [vmem:[%s19231_s0 + $0x210] sm:$0xff]   ;;  %v14304_v25 = vld [vmem:[%s19231_s0 + $0x198] sm:$0xff]  }
 0x17b   :  { %12688 = vmatprep.subr.bf16.mxu0 %v14284_v53  ;;  %v16442_v29 = vadd.f32 %v12294_v26, %v12260_v19  ;;  %v12297_v44 = vadd.f32 %v12296_v35, %v12295_v10  ;;  %v14300_v53 = vld [vmem:[%s19231_s0 + $0x1d0] sm:$0xff]   ;;  %v16516_v19 = vld [vmem:[%s19232_s1] ss:$28 sps:$4 sm:$0xff]   ;;  %v16522_v26 = vld [vmem:[%s19232_s1 + $0x8] ss:$28 sps:$4 sm:$0xff]  }
 0x17c   :  { %4409 = vmatmul.mubr.bf16.gmra.mrb[140].mxu1 %v15224_v40  ;;  %v14305_v10 = vld [vmem:[%s19231_s0 + $0x218] sm:$0xff]   ;;  %v14306_v11 = vld [vmem:[%s19231_s0 + $0x1e0] sm:$0xff]  }
 0x17d   :  { %13709 = vmatmul.mubr.msk.bf16.gmra.mrb[140].mxu0 %vm563_vm1, %v16451_v20  ;;  %v16458_v37 = vadd.f32 %v12297_v44, %v12263_v30  ;;  %12723 = vmatpush3.bf16.msra.mxu1 %v14287_v18  ;;  %v14303_v18 = vld [vmem:[%s19231_s0 + $0x1d8] sm:$0xff]   ;;  %v14307_v44 = vld [vmem:[%s19231_s0 + $0x1a0] sm:$0xff]  }
 0x17e   :  { %12689 = vmatpush3.bf16.msra.mxu0 %v14286_v60  ;;  %12724 = vmatprep.subr.bf16.mxu1 %v14289_v50  ;;  %v12264_v54 = vpop.f32.mrb[56].mxu0  ;;  %v16544_v50 = vld [vmem:[%s19232_s1 + $0x44] ss:$28 sps:$4 sm:$0xff]  }
 0x17f   :  { %12690 = vmatprep.subr.bf16.mxu0 %v14288_v21  ;;  %v12298_v48 = vpop.f32.mrb[56].mxu1  ;;  %5014 = vmatprep.mubr.bf16.mxu0 %v16475_v31  ;;  %v12265_v14 = vpop.f32.mrb[57].mxu0  ;;  %v16538_v21 = vld [vmem:[%s19232_s1 + $0x3c] ss:$28 sps:$4 sm:$0xff]  }
 0x180   :  { %5070 = vmatprep.mubr.bf16.mxu1 %v16481_v43  ;;  %v12299_v61 = vpop.f32.mrb[57].mxu1  ;;  %v12266_v32 = vadd.f32 %v12265_v14, %v12264_v54  ;;  %v12267_v6 = vpop.f32.mrb[58].mxu0 }
 0x181   :  { %v12300_v0 = vadd.f32 %v12299_v61, %v12298_v48  ;;  %v12301_v1 = vpop.f32.mrb[58].mxu1  ;;  %12725 = vmatpush3.bf16.msra.mxu1 %v14291_v16  ;;  %v12268_v24 = vpop.f32.mrb[59].mxu0  ;;  %v14308_v48 = vld [vmem:[%s19231_s0 + $0x220] sm:$0xff]   ;;  %v14309_v61 = vld [vmem:[%s19231_s0 + $0x1e8] sm:$0xff]  }
 0x182   :  { %12691 = vmatpush3.bf16.msra.mxu0 %v14290_v22  ;;  %v12302_v45 = vpop.f32.mrb[59].mxu1  ;;  %12726 = vmatprep.subr.bf16.mxu1 %v14293_v51  ;;  %v16565_v1 = vpop.permute.xlu1 %873 }
 0x183   :  { %12692 = vmatprep.subr.bf16.mxu0 %v14292_v41  ;;  %v16490_v8 = vadd.f32 %v12300_v0, %v12266_v32  ;;  %19258 = vst [vmem:[#allocation5_spill] sm:$0xff] %v16565_v1 }
 0x185   :  { %12727 = vmatpush3.bf16.msra.mxu1 %v14295_v42 }
 0x186   :  { %12693 = vmatpush3.bf16.msra.mxu0 %v14294_v59  ;;  %12728 = vmatprep.subr.bf16.mxu1 %v14297_v7  ;;  %v14311_v7 = vld [vmem:[%s19231_s0 + $0x228] sm:$0xff]  }
 0x187   :  { %12694 = vmatprep.subr.bf16.mxu0 %v14296_v47  ;;  %v2248_v38 = vpop.f32.mrb[60].mxu1  ;;  %v16574_v47 = vld [vmem:[%s19232_s1 + $0x38] ss:$28 sps:$4 sm:$0xff]  }
 0x188   :  { %v13630_v4 = vpop.f32.mrb[61].mxu1 }
 0x189   :  { %v16504_v63 = vpop.f32.mrb[62].mxu1  ;;  %12729 = vmatpush3.bf16.msra.mxu1 %v14299_v62  ;;  %v14312_v4 = vld [vmem:[%s19231_s0 + $0x1f0] sm:$0xff]  }
 0x18a   :  { %12695 = vmatpush3.bf16.msra.mxu0 %v14298_v9  ;;  %v13631_v60 = vpop.f32.mrb[63].mxu1  ;;  %13712 = vmatprep.subr.bf16.mxu1 %v19235_v36 }
 0x18b   :  { %12748 = vmatprep.subr.bf16.mxu0 %v14300_v53 }
 0x18c   :  { %5071 = vmatmul.mubr.bf16.vlgmr.msra.gmra.mrb[144].mxu1 %v16522_v26 }
 0x18d   :  { %5015 = vmatmul.mubr.bf16.vlgmr.msra.gmra.mrb[144].mxu0 %v16516_v19  ;;  %13713 = vmatpush3.bf16.msra.mxu1 %v14302_v46 }
 0x18e   :  { %12749 = vmatpush3.bf16.msra.mxu0 %v14301_v52  ;;  %13714 = vmatprep.subr.bf16.mxu1 %v19235_v36  ;;  %v12320_v35 = vpop.f32.mrb[60].mxu0 }
 0x18f   :  { %12750 = vmatprep.subr.bf16.mxu0 %v14303_v18  ;;  %5022 = vmatprep.mubr.bf16.mxu0 %v16538_v21  ;;  %v16547_v30 = vpop.f32.mrb[64].mxu1  ;;  %v12321_v22 = vpop.f32.mrb[61].mxu0  ;;  %v14314_v18 = vld [vmem:[%s19231_s0 + $0x230] sm:$0xff]  }
 0x190   :  { %5078 = vmatprep.mubr.bf16.mxu1 %v16544_v50  ;;  %v13634_v16 = vpop.f32.mrb[65].mxu1  ;;  %v12322_v41 = vadd.f32 %v12321_v22, %v12320_v35  ;;  %v12323_v51 = vpop.f32.mrb[62].mxu0 }
 0x191   :  { %13715 = vmatpush3.bf16.msra.mxu1 %v14305_v10  ;;  %v12324_v59 = vpop.f32.mrb[63].mxu0  ;;  %v16559_v14 = vpop.f32.mrb[66].mxu1 }
 0x192   :  { %12751 = vmatpush3.bf16.msra.mxu0 %v14304_v25  ;;  %v800_v54 = vpop.permute.xlu0 %799  ;;  %13716 = vmatprep.subr.bf16.mxu1 %v19235_v36  ;;  %v2193_v32 = vadd.f32 %v12322_v41, %v16408_v49  ;;  %v12325_v0 = vadd.f32 %v12324_v59, %v12323_v51  ;;  %v13635_v6 = vpop.f32.mrb[67].mxu1  ;;  %v16580_v49 = vld [vmem:[%s19232_s1 + $0x40] ss:$28 sps:$4 sm:$0xff]  }
 0x193   :  { %v16556_v42 = vadd.f32 %v800_v54, %v16012_v3  ;;  %12752 = vmatprep.subr.bf16.mxu0 %v14306_v11  ;;  %v14310_v3 = vld [vmem:[%s19231_s0 + $0x1a8] sm:$0xff]   ;;  %v14315_v41 = vld [vmem:[%s19231_s0 + $0x1f8] sm:$0xff]   ;;  %v14318_v6 = vld [vmem:[%s19231_s0 + $0x200] sm:$0xff]  }
 0x194   :  { %5079 = vmatmul.mubr.bf16.gmra.mrb[148].mxu1 %v16580_v49  ;;  %v2196_v24 = vadd.f32 %v12325_v0, %v16419_v13  ;;  %v16587_v62 = vadd.f32 %v2248_v38, %v2193_v32 }
 0x195   :  { %v828_v45 = vrot.slane %v16556_v42, 4  ;;  %5023 = vmatmul.mubr.bf16.gmra.mrb[148].mxu0 %v16574_v47  ;;  %13717 = vmatpush3.bf16.msra.mxu1 %v14308_v48 }
 0x196   :  { %12753 = vmatpush3.bf16.msra.mxu0 %v14307_v44  ;;  %v806_v9 = vpop.permute.xlu0 %805  ;;  %13718 = vmatprep.subr.bf16.mxu1 %v19235_v36  ;;  %v12326_v52 = vpop.f32.mrb[64].mxu0  ;;  %v16604_v38 = vadd.f32 %v16504_v63, %v2196_v24  ;;  %v2271_v44 = vrot.slane %v16587_v62, 2 }
 0x197   :  { %v16590_v53 = vadd.f32 %v806_v9, %v16019_v23  ;;  %12754 = vmatprep.subr.bf16.mxu0 %v14309_v61  ;;  %829 = vrot.lane.b32.xlu1 %v828_v45, %s14846_s25  ;;  %v16598_v13 = vpop.f32.mrb[68].mxu1  ;;  %v14313_v23 = vld [vmem:[%s19231_s0 + $0x1b0] sm:$0xff]   ;;  %v12327_v60 = vpop.f32.mrb[65].mxu0 }
 0x198   :  { %5030 = vmatprep.mubr.bf16.mxu0 %v15063_v55  ;;  %5086 = vmatprep.mubr.bf16.mxu1 %v15065_v56  ;;  %v13638_v25 = vpop.f32.mrb[69].mxu1  ;;  %v12328_v10 = vadd.f32 %v12327_v60, %v12326_v52  ;;  %v12329_v11 = vpop.f32.mrb[66].mxu0  ;;  %v2277_v0 = vrot.slane %v16604_v38, 2  ;;  %v14322_v52 = vld [vmem:[%s19231_s0 + $0x208] sm:$0xff]  }
 0x199   :  { %v834_v46 = vrot.slane %v16590_v53, 4  ;;  %13719 = vmatpush3.bf16.msra.mxu1 %v14311_v7  ;;  %v12330_v22 = vpop.f32.mrb[67].mxu0  ;;  %v2267_v16 = vpop.f32.mrb[70].mxu1  ;;  %v14323_v60 = vld [vmem:[%s19231_s0 + $0x288] sm:$0xff]  }
 0x19a   :  { %12755 = vmatpush3.bf16.msra.mxu0 %v14310_v3  ;;  %v812_v35 = vpop.permute.xlu1 %811  ;;  %13720 = vmatprep.subr.bf16.mxu1 %v19235_v36  ;;  %v2201_v51 = vadd.f32 %v12328_v10, %v16442_v29  ;;  %v12331_v54 = vadd.f32 %v12330_v22, %v12329_v11  ;;  %v13639_v48 = vpop.f32.mrb[71].mxu1  ;;  %v14317_v29 = vld [vmem:[%s19231_s0 + $0x238] sm:$0xff]   ;;  %v14327_v16 = vld [vmem:[%s19231_s0 + $0x300] sm:$0xff]  }
 0x19b   :  { %v16613_v63 = vadd.f32 %v812_v35, %v16059_v34  ;;  %12756 = vmatprep.subr.bf16.mxu0 %v14312_v4  ;;  %2272 = vrot.lane.b32.xlu1 %v2271_v44, %s14845_s21  ;;  %v14316_v34 = vld [vmem:[%s19231_s0 + $0x1b8] sm:$0xff]   ;;  %v14321_v4 = vld [vmem:[%s19231_s0 + $0x240] sm:$0xff]   ;;  %v14326_v44 = vld [vmem:[%s19231_s0 + $0x290] sm:$0xff]  }
 0x19c   :  { %835 = vrot.lane.b32.xlu0 %v834_v46, %s14846_s25  ;;  %5087 = vmatmul.mubr.bf16.gmra.mrb[152].mxu1 %v15069_v58  ;;  %v2204_v61 = vadd.f32 %v12331_v54, %v16458_v37  ;;  %v16637_v3 = vadd.f32 %v16547_v30, %v2201_v51  ;;  %v14319_v37 = vld [vmem:[%s19231_s0 + $0x280] sm:$0xff]   ;;  %v16677_v10 = vld [vmem:[%s19232_s1 + $0x18] ss:$28 sps:$4 sm:$0xff]  }
 0x19d   :  { %v840_v59 = vrot.slane %v16613_v63, 4  ;;  %5031 = vmatmul.mubr.bf16.gmra.mrb[152].mxu0 %v15067_v57  ;;  %13721 = vmatpush3.bf16.msra.mxu1 %v14314_v18  ;;  %v14320_v30 = vld [vmem:[%s19231_s0 + $0x1c0] sm:$0xff]  }
 0x19e   :  { %12757 = vmatpush3.bf16.msra.mxu0 %v14313_v23  ;;  %v818_v32 = vpop.permute.xlu1 %817  ;;  %13722 = vmatprep.subr.bf16.mxu1 %v19235_v36  ;;  %v12332_v7 = vpop.f32.mrb[68].mxu0  ;;  %v16652_v24 = vadd.f32 %v16559_v14, %v2204_v61  ;;  %v2283_v14 = vrot.slane %v16637_v3, 2  ;;  %v14329_v48 = vld [vmem:[%s19231_s0 + $0x2c0] sm:$0xff]   ;;  %v14330_v61 = vld [vmem:[%s19231_s0 + $0x298] sm:$0xff]  }
 0x19f   :  { %v16640_v45 = vadd.f32 %v818_v32, %v16068_v2  ;;  %12758 = vmatprep.subr.bf16.mxu0 %v14315_v41  ;;  %841 = vrot.lane.b32.xlu1 %v840_v59, %s14846_s25  ;;  %v12333_v9 = vpop.f32.mrb[69].mxu0 }
 0x1a0   :  { %2278 = vrot.lane.b32.xlu0 %v2277_v0, %s14845_s21  ;;  %13724 = vmatprep.mubr.msk.bf16.mxu1 %vm14843_vm0, %v19235_v36  ;;  %v12334_v23 = vadd.f32 %v12333_v9, %v12332_v7  ;;  %v12335_v46 = vpop.f32.mrb[70].mxu0  ;;  %v2289_v11 = vrot.slane %v16652_v24, 2  ;;  %v14331_v0 = vld [vmem:[%s19231_s0 + $0x308] sm:$0xff]   ;;  %v14335_v9 = vld [vmem:[%s19231_s0 + $0x310] sm:$0xff]  }
 0x1a1   :  { %v846_v2 = vrot.slane %v16640_v45, 4  ;;  %5126 = vmatprep.mubr.bf16.mxu0 %v16329_v15  ;;  %13723 = vmatpush3.bf16.msra.mxu1 %v14317_v29  ;;  %v12336_v18 = vpop.f32.mrb[71].mxu0  ;;  %v14324_v15 = vld [vmem:[%s19231_s0 + $0x1c8] sm:$0xff]   ;;  %v14337_v46 = vld [vmem:[%s19231_s0 + $0x2d0] sm:$0xff]  }
 0x1a2   :  { %12759 = vmatpush3.bf16.msra.mxu0 %v14316_v34  ;;  %12791 = vmatprep.subr.bf16.mxu1 %v14319_v37  ;;  %v2209_v25 = vadd.f32 %v12334_v23, %v16490_v8  ;;  %v14325_v8 = vld [vmem:[%s19231_s0 + $0x248] sm:$0xff]   ;;  %v824_v22 = vpop.permute.xlu0 %823 }
 0x1a3   :  { %12760 = vmatprep.subr.bf16.mxu0 %v14318_v6  ;;  %2284 = vrot.lane.b32.xlu1 %v2283_v14, %s14845_s21  ;;  %v826_v34 = vadd.f32 %v824_v22, %v16112_v17  ;;  %v14332_v17 = vld [vmem:[%s19231_s0 + $0x258] sm:$0xff]   ;;  %v16719_v37 = vld [vmem:[%s19232_s1 + $0x10] ss:$28 sps:$4 sm:$0xff]   ;;  %v14336_v14 = vld [vmem:[%s19231_s0 + $0x260] sm:$0xff]  }
 0x1a4   :  { %847 = vrot.lane.b32.xlu0 %v846_v2, %s14846_s25  ;;  %13725 = vmatmul.mubr.msk.bf16.vlgmr.msra.gmra.mrb[156].mxu1 %vm563_vm1, %v16677_v10  ;;  %v16686_v35 = vadd.f32 %v16598_v13, %v2209_v25  ;;  %v14328_v13 = vld [vmem:[%s19231_s0 + $0x250] sm:$0xff]   ;;  %v14333_v7 = vld [vmem:[%s19231_s0 + $0x2c8] sm:$0xff]   ;;  %v14334_v2 = vld [vmem:[%s19231_s0 + $0x2a0] sm:$0xff]  }
 0x1a5   :  { %12792 = vmatpush3.bf16.msra.mxu1 %v14321_v4  ;;  %13728 = vmatprep.mubr.msk.bf16.mxu1 %vm14843_vm0, %v19235_v36  ;;  %v14339_v22 = vld [vmem:[%s19231_s0 + $0x318] sm:$0xff]  }
 0x1a6   :  { %12761 = vmatpush3.bf16.msra.mxu0 %v14320_v30  ;;  %12793 = vmatprep.subr.bf16.mxu1 %v14323_v60  ;;  %v2295_v51 = vrot.slane %v16686_v35, 2  ;;  %v16728_v30 = vld [vmem:[%s19232_s1 + $0x50] ss:$28 sps:$4 sm:$0xff]  }
 0x1a7   :  { %12762 = vmatprep.subr.bf16.mxu0 %v14322_v52  ;;  %v12363_v41 = vpop.f32.mrb[72].mxu1  ;;  %v16741_v52 = vld [vmem:[%s19232_s1 + $0x4c] ss:$28 sps:$4 sm:$0xff]  }
 0x1a8   :  { %2290 = vrot.lane.b32.xlu0 %v2289_v11, %s14845_s21  ;;  %v12364_v54 = vpop.f32.mrb[73].mxu1  ;;  %2296 = vrot.lane.b32.xlu1 %v2295_v51, %s14845_s21 }
 0x1a9   :  { %v12365_v59 = vadd.f32 %v12364_v54, %v12363_v41  ;;  %v12366_v29 = vpop.f32.mrb[74].mxu1  ;;  %12794 = vmatpush3.bf16.msra.mxu1 %v14325_v8  ;;  %v14340_v54 = vld [vmem:[%s19231_s0 + $0x268] sm:$0xff]  }
 0x1aa   :  { %12763 = vmatpush3.bf16.msra.mxu0 %v14324_v15  ;;  %v12367_v32 = vpop.f32.mrb[75].mxu1  ;;  %12795 = vmatprep.subr.bf16.mxu1 %v14326_v44  ;;  %v14338_v44 = vld [vmem:[%s19231_s0 + $0x2a8] sm:$0xff]  }
 0x1ab   :  { %v12368_v6 = vadd.f32 %v12367_v32, %v12366_v29  ;;  %12825 = vmatprep.subr.bf16.mxu0 %v14327_v16  ;;  %v14341_v29 = vld [vmem:[%s19231_s0 + $0x2d8] sm:$0xff]   ;;  %v14343_v32 = vld [vmem:[%s19231_s0 + $0x320] sm:$0xff]  }
 0x1ac   :  { %867 = vrot.lane.b32.xlu0 %v826_v34, %s14847_s13  ;;  %13729 = vmatmul.mubr.msk.bf16.gmra.mrb[160].mxu1 %vm563_vm1, %v16728_v30  ;;  %v16766_v34 = vld [vmem:[%s19232_s1 + $0x48] ss:$28 sps:$4 sm:$0xff]  }
 0x1ad   :  { %5127 = vmatmul.mubr.bf16.vlgmr.msra.gmra.mrb[156].mxu0 %v16719_v37  ;;  %12796 = vmatpush3.bf16.msra.mxu1 %v14328_v13 }
 0x1ae   :  { %12826 = vmatpush3.bf16.msra.mxu0 %v14329_v48  ;;  %12797 = vmatprep.subr.bf16.mxu1 %v14330_v61  ;;  %v12397_v4 = vpop.f32.mrb[72].mxu0 }
 0x1af   :  { %12827 = vmatprep.subr.bf16.mxu0 %v14331_v0  ;;  %5134 = vmatprep.mubr.bf16.mxu0 %v16741_v52  ;;  %v12369_v23 = vpop.f32.mrb[76].mxu1  ;;  %v12398_v60 = vpop.f32.mrb[73].mxu0 }
 0x1b0   :  { %13732 = vmatprep.mubr.msk.bf16.mxu1 %vm14843_vm0, %v19235_v36  ;;  %v12370_v18 = vpop.f32.mrb[77].mxu1  ;;  %v12399_v25 = vadd.f32 %v12398_v60, %v12397_v4  ;;  %v12400_v15 = vpop.f32.mrb[74].mxu0  ;;  %v14346_v60 = vld [vmem:[%s19231_s0 + $0x2b8] sm:$0xff]  }
 0x1b1   :  { %12798 = vmatpush3.bf16.msra.mxu1 %v14332_v17  ;;  %v12371_v8 = vadd.f32 %v12370_v18, %v12369_v23  ;;  %v12372_v11 = vpop.f32.mrb[78].mxu1  ;;  %v12401_v16 = vpop.f32.mrb[75].mxu0  ;;  %v14347_v18 = vld [vmem:[%s19231_s0 + $0x328] sm:$0xff]  }
 0x1b2   :  { %12828 = vmatpush3.bf16.msra.mxu0 %v14333_v7  ;;  %12799 = vmatprep.subr.bf16.mxu1 %v14334_v2  ;;  %v12373_v41 = vpop.f32.mrb[79].mxu1  ;;  %v12402_v51 = vadd.f32 %v12401_v16, %v12400_v15  ;;  %v16761_v48 = vadd.f32 %v12399_v25, %v12365_v59  ;;  %v14342_v59 = vld [vmem:[%s19231_s0 + $0x2b0] sm:$0xff]   ;;  %v14348_v15 = vld [vmem:[%s19231_s0 + $0x278] sm:$0xff]  }
 0x1b3   :  { %12829 = vmatprep.subr.bf16.mxu0 %v14335_v9  ;;  %v12374_v13 = vadd.f32 %v12373_v41, %v12372_v11  ;;  %v14344_v7 = vld [vmem:[%s19231_s0 + $0x270] sm:$0xff]  }
 0x1b4   :  { %13733 = vmatmul.mubr.msk.bf16.gmra.mrb[164].mxu1 %vm563_vm1, %v16451_v20  ;;  %v16777_v61 = vadd.f32 %v12402_v51, %v12368_v6  ;;  %v14345_v6 = vld [vmem:[%s19231_s0 + $0x2e0] sm:$0xff]   ;;  %v14352_v51 = vld [vmem:[%s19231_s0 + $0x2f0] sm:$0xff]  }
 0x1b5   :  { %5135 = vmatmul.mubr.bf16.gmra.mrb[160].mxu0 %v16766_v34  ;;  %12800 = vmatpush3.bf16.msra.mxu1 %v14336_v14 }
 0x1b6   :  { %12830 = vmatpush3.bf16.msra.mxu0 %v14337_v46  ;;  %12801 = vmatprep.subr.bf16.mxu1 %v14338_v44  ;;  %v12403_v0 = vpop.f32.mrb[76].mxu0  ;;  %v14349_v44 = vld [vmem:[%s19231_s0 + $0x2e8] sm:$0xff]  }
 0x1b7   :  { %12831 = vmatprep.subr.bf16.mxu0 %v14339_v22  ;;  %5142 = vmatprep.mubr.bf16.mxu0 %v15222_v39  ;;  %v12375_v17 = vpop.f32.mrb[80].mxu1  ;;  %v12404_v20 = vpop.f32.mrb[77].mxu0  ;;  %v14350_v22 = vld [vmem:[%s19231_s0 + $0x330] sm:$0xff]  }
 0x1b8   :  { %5749 = vmatprep.mubr.bf16.mxu1 %v16475_v31  ;;  %v12376_v2 = vpop.f32.mrb[81].mxu1  ;;  %v12405_v9 = vadd.f32 %v12404_v20, %v12403_v0  ;;  %v12406_v4 = vpop.f32.mrb[78].mxu0  ;;  %v14356_v20 = vld [vmem:[%s19231_s0 + $0x2f8] sm:$0xff]  }
 0x1b9   :  { %12802 = vmatpush3.bf16.msra.mxu1 %v14340_v54  ;;  %v12377_v23 = vadd.f32 %v12376_v2, %v12375_v17  ;;  %v12378_v14 = vpop.f32.mrb[82].mxu1  ;;  %v12407_v46 = vpop.f32.mrb[79].mxu0 }
 0x1ba   :  { %12832 = vmatpush3.bf16.msra.mxu0 %v14341_v29  ;;  %12803 = vmatprep.subr.bf16.mxu1 %v14342_v59  ;;  %v12379_v31 = vpop.f32.mrb[83].mxu1  ;;  %v12408_v25 = vadd.f32 %v12407_v46, %v12406_v4  ;;  %v16799_v11 = vadd.f32 %v12405_v9, %v12371_v8  ;;  %v14351_v8 = vld [vmem:[%s19231_s0 + $0x380] sm:$0xff]  }
 0x1bb   :  { %12833 = vmatprep.subr.bf16.mxu0 %v14343_v32  ;;  %v14353_v29 = vld [vmem:[%s19231_s0 + $0x340] sm:$0xff]   ;;  %v14354_v32 = vld [vmem:[%s19231_s0 + $0x338] sm:$0xff]  }
 0x1bc   :  { %v16808_v16 = vadd.f32 %v12408_v25, %v12374_v13  ;;  %v14360_v4 = vld [vmem:[%s19231_s0 + $0x3c0] sm:$0xff]  }
 0x1bd   :  { %5143 = vmatmul.mubr.bf16.gmra.mrb[164].mxu0 %v15224_v40  ;;  %12804 = vmatpush3.bf16.msra.mxu1 %v14344_v7  ;;  %v14357_v7 = vld [vmem:[%s19231_s0 + $0x348] sm:$0xff]  }
 0x1be   :  { %12834 = vmatpush3.bf16.msra.mxu0 %v14345_v6  ;;  %12805 = vmatprep.subr.bf16.mxu1 %v14346_v60  ;;  %v12409_v41 = vpop.f32.mrb[80].mxu0  ;;  %v14358_v6 = vld [vmem:[%s19231_s0 + $0x390] sm:$0xff]  }
 0x1bf   :  { %12835 = vmatprep.subr.bf16.mxu0 %v14347_v18  ;;  %5805 = vmatprep.mubr.bf16.mxu0 %v16481_v43  ;;  %v12410_v54 = vpop.f32.mrb[81].mxu0  ;;  %v14355_v43 = vld [vmem:[%s19231_s0 + $0x388] sm:$0xff]  }
 0x1c0   :  { %v12411_v13 = vadd.f32 %v12410_v54, %v12409_v41  ;;  %v12412_v59 = vpop.f32.mrb[82].mxu0 }
 0x1c1   :  { %12806 = vmatpush3.bf16.msra.mxu1 %v14348_v15  ;;  %v12413_v0 = vpop.f32.mrb[83].mxu0  ;;  %v14361_v15 = vld [vmem:[%s19231_s0 + $0x398] sm:$0xff]   ;;  %v14364_v59 = vld [vmem:[%s19231_s0 + $0x3a0] sm:$0xff]  }
 0x1c2   :  { %12836 = vmatpush3.bf16.msra.mxu0 %v14349_v44  ;;  %12859 = vmatprep.subr.bf16.mxu1 %v14351_v8  ;;  %v16826_v17 = vadd.f32 %v12411_v13, %v12377_v23 }
 0x1c3   :  { %12837 = vmatprep.subr.bf16.mxu0 %v14350_v22 }
 0x1c4   :  { %5750 = vmatmul.mubr.bf16.vlgmr.msra.gmra.mrb[168].mxu1 %v16516_v19  ;;  %v14359_v19 = vld [vmem:[%s19231_s0 + $0x350] sm:$0xff]  }
 0x1c5   :  { %12860 = vmatpush3.bf16.msra.mxu1 %v14353_v29  ;;  %5757 = vmatprep.mubr.bf16.mxu1 %v16538_v21 }
 0x1c6   :  { %12838 = vmatpush3.bf16.msra.mxu0 %v14352_v51  ;;  %12861 = vmatprep.subr.bf16.mxu1 %v14355_v43  ;;  %v2982_v9 = vpop.f32.mrb[84].mxu0 }
 0x1c7   :  { %12839 = vmatprep.subr.bf16.mxu0 %v14354_v32  ;;  %v12431_v2 = vpop.f32.mrb[84].mxu1  ;;  %v13654_v14 = vpop.f32.mrb[85].mxu0 }
 0x1c8   :  { %v12432_v23 = vpop.f32.mrb[85].mxu1  ;;  %v2985_v60 = vpop.f32.mrb[86].mxu0 }
 0x1c9   :  { %v12433_v46 = vadd.f32 %v12432_v23, %v12431_v2  ;;  %v12434_v31 = vpop.f32.mrb[86].mxu1  ;;  %12862 = vmatpush3.bf16.msra.mxu1 %v14357_v7  ;;  %v13655_v25 = vpop.f32.mrb[87].mxu0 }
 0x1ca   :  { %12840 = vmatpush3.bf16.msra.mxu0 %v14356_v20  ;;  %v12435_v18 = vpop.f32.mrb[87].mxu1  ;;  %12863 = vmatprep.subr.bf16.mxu1 %v14358_v6  ;;  %v14365_v20 = vld [vmem:[%s19231_s0 + $0x360] sm:$0xff]  }
 0x1cb   :  { %13736 = vmatprep.subr.bf16.mxu0 %v19235_v36  ;;  %v2927_v44 = vadd.f32 %v12433_v46, %v16761_v48  ;;  %v12436_v22 = vadd.f32 %v12435_v18, %v12434_v31  ;;  %v1539_v21 = vpop.permute.xlu0 %1538  ;;  %v14362_v48 = vld [vmem:[%s19231_s0 + $0x358] sm:$0xff]  }
 0x1cc   :  { %5758 = vmatmul.mubr.bf16.gmra.mrb[172].mxu1 %v16574_v47  ;;  %v16856_v51 = vadd.f32 %v1539_v21, %v16278_v28 }
 0x1cd   :  { %5806 = vmatmul.mubr.bf16.vlgmr.msra.gmra.mrb[168].mxu0 %v16522_v26  ;;  %v16852_v8 = vadd.f32 %v2982_v9, %v2927_v44  ;;  %v2930_v41 = vadd.f32 %v12436_v22, %v16777_v61  ;;  %12864 = vmatpush3.bf16.msra.mxu1 %v14359_v19  ;;  %v1545_v54 = vpop.permute.xlu1 %1544  ;;  %v14363_v26 = vld [vmem:[%s19231_s0 + $0x3c8] sm:$0xff]  }
 0x1ce   :  { %19259 = vst [vmem:[#allocation6_spill] sm:$0xff] %v16856_v51  ;;  %13737 = vmatpush3.bf16.msra.mxu0 %v14360_v4  ;;  %12865 = vmatprep.subr.bf16.mxu1 %v14361_v15  ;;  %v1567_v28 = vrot.slane %v16856_v51, 4  ;;  %v2990_v13 = vpop.f32.mrb[88].mxu0  ;;  %v16875_v32 = vadd.f32 %v1545_v54, %v16288_v12  ;;  %v14367_v12 = vld [vmem:[%s19231_s0 + $0x3a8] sm:$0xff]  }
 0x1cf   :  { %13738 = vmatprep.subr.bf16.mxu0 %v19235_v36  ;;  %v3005_v47 = vrot.slane %v16852_v8, 2  ;;  %v16866_v61 = vadd.f32 %v2985_v60, %v2930_v41  ;;  %v12437_v29 = vpop.f32.mrb[88].mxu1  ;;  %5813 = vmatprep.mubr.bf16.mxu0 %v16544_v50  ;;  %v13658_v43 = vpop.f32.mrb[89].mxu0  ;;  %v14366_v50 = vld [vmem:[%s19231_s0 + $0x3d0] sm:$0xff]   ;;  %v14368_v60 = vld [vmem:[%s19231_s0 + $0x368] sm:$0xff]  }
 0x1d0   :  { %5765 = vmatprep.mubr.bf16.mxu1 %v15063_v55  ;;  %v12438_v0 = vpop.f32.mrb[89].mxu1  ;;  %1568 = vrot.lane.b32.xlu1 %v1567_v28, %s14846_s25  ;;  %v2993_v9 = vpop.f32.mrb[90].mxu0  ;;  %v1573_v46 = vrot.slane %v16875_v32, 4  ;;  %v16926_v28 = vld [vmem:[%s19232_s1 + $0x14] ss:$28 sps:$4 sm:$0xff]  }
 0x1d1   :  { %v3011_v7 = vrot.slane %v16866_v61, 2  ;;  %v12439_v6 = vadd.f32 %v12438_v0, %v12437_v29  ;;  %v12440_v2 = vpop.f32.mrb[90].mxu1  ;;  %12866 = vmatpush3.bf16.msra.mxu1 %v14362_v48  ;;  %3006 = vrot.lane.b32.xlu0 %v3005_v47, %s14845_s21  ;;  %v13659_v4 = vpop.f32.mrb[91].mxu0 }
 0x1d2   :  { %13739 = vmatpush3.bf16.msra.mxu0 %v14363_v26  ;;  %v12441_v19 = vpop.f32.mrb[91].mxu1  ;;  %12867 = vmatprep.subr.bf16.mxu1 %v14364_v59  ;;  %v14371_v26 = vld [vmem:[%s19231_s0 + $0x370] sm:$0xff]   ;;  %v14377_v4 = vld [vmem:[%s19231_s0 + $0x318] sm:$0xff]  }
 0x1d3   :  { %v12442_v23 = vadd.f32 %v12441_v19, %v12440_v2  ;;  %v2935_v14 = vadd.f32 %v12439_v6, %v16799_v11  ;;  %13740 = vmatprep.subr.bf16.mxu0 %v19235_v36  ;;  %v1551_v31 = vpop.permute.xlu0 %1550  ;;  %v14374_v2 = vld [vmem:[%s19231_s0 + $0x378] sm:$0xff]  }
 0x1d4   :  { %5766 = vmatmul.mubr.bf16.gmra.mrb[176].mxu1 %v15067_v57  ;;  %v16898_v18 = vadd.f32 %v1551_v31, %v16312_v5  ;;  %3012 = vrot.lane.b32.xlu1 %v3011_v7, %s14845_s21  ;;  %v14370_v5 = vld [vmem:[%s19231_s0 + $0x3b0] sm:$0xff]   ;;  %v14373_v7 = vld [vmem:[%s19231_s0 + $0x3b8] sm:$0xff]   ;;  %v14380_v31 = vld [vmem:[%s19231_s0 + $0x2a0] sm:$0xff]  }
 0x1d5   :  { %5814 = vmatmul.mubr.bf16.gmra.mrb[172].mxu0 %v16580_v49  ;;  %v16900_v25 = vadd.f32 %v2990_v13, %v2935_v14  ;;  %12868 = vmatpush3.bf16.msra.mxu1 %v14365_v20  ;;  %v1557_v11 = vpop.permute.xlu1 %1556  ;;  %v2938_v15 = vadd.f32 %v12442_v23, %v16808_v16  ;;  %v14369_v49 = vld [vmem:[%s19231_s0 + $0x3d8] sm:$0xff]  }
 0x1d6   :  { %13741 = vmatpush3.bf16.msra.mxu0 %v14366_v50  ;;  %1574 = vrot.lane.b32.xlu0 %v1573_v46, %s14846_s25  ;;  %v1579_v44 = vrot.slane %v16898_v18, 4  ;;  %v2998_v16 = vpop.f32.mrb[92].mxu0  ;;  %v16917_v54 = vadd.f32 %v1557_v11, %v16322_v33  ;;  %v14372_v33 = vld [vmem:[%s19231_s0 + $0x3e0] sm:$0xff]   ;;  %v14376_v19 = vld [vmem:[%s19231_s0 + $0x298] sm:$0xff]  }
 0x1d7   :  { %v3017_v22 = vrot.slane %v16900_v25, 2  ;;  %v16913_v21 = vadd.f32 %v2993_v9, %v2938_v15  ;;  %v12443_v41 = vpop.f32.mrb[92].mxu1  ;;  %12869 = vmatprep.subr.bf16.mxu1 %v14367_v12  ;;  %13742 = vmatprep.subr.bf16.mxu0 %v19235_v36  ;;  %v13662_v47 = vpop.f32.mrb[93].mxu0  ;;  %v14378_v14 = vld [vmem:[%s19231_s0 + $0x258] sm:$0xff]   ;;  %v14382_v11 = vld [vmem:[%s19231_s0 + $0x260] sm:$0xff]  }
 0x1d8   :  { %v12444_v48 = vpop.f32.mrb[93].mxu1  ;;  %5821 = vmatprep.mubr.bf16.mxu0 %v15065_v56  ;;  %5861 = vmatprep.mubr.bf16.mxu1 %v16926_v28  ;;  %v3001_v0 = vpop.f32.mrb[94].mxu0  ;;  %v1585_v6 = vrot.slane %v16917_v54, 4  ;;  %v14379_v46 = vld [vmem:[%s19231_s0 + $0x2d8] sm:$0xff]   ;;  %v14383_v15 = vld [vmem:[%s19231_s0 + $0x2e0] sm:$0xff]  }
 0x1d9   :  { %v3023_v29 = vrot.slane %v16913_v21, 2  ;;  %v12445_v13 = vadd.f32 %v12444_v48, %v12443_v41  ;;  %1580 = vrot.lane.b32.xlu1 %v1579_v44, %s14846_s25  ;;  %12870 = vmatpush3.bf16.msra.mxu1 %v14368_v60  ;;  %v12446_v59 = vpop.f32.mrb[94].mxu1  ;;  %v13663_v20 = vpop.f32.mrb[95].mxu0  ;;  %v14386_v41 = vld [vmem:[%s19231_s0 + $0x268] sm:$0xff]  }
 0x1da   :  { %13743 = vmatpush3.bf16.msra.mxu0 %v14369_v49  ;;  %3018 = vrot.lane.b32.xlu0 %v3017_v22, %s14845_s21  ;;  %v12447_v43 = vpop.f32.mrb[95].mxu1  ;;  %v14385_v49 = vld [vmem:[%s19231_s0 + $0x328] sm:$0xff]   ;;  %v14388_v20 = vld [vmem:[%s19231_s0 + $0x2b0] sm:$0xff]  }
 0x1db   :  { %v2943_v50 = vadd.f32 %v12445_v13, %v16826_v17  ;;  %12871 = vmatprep.subr.bf16.mxu1 %v14370_v5  ;;  %13744 = vmatprep.subr.bf16.mxu0 %v19235_v36  ;;  %v1563_v9 = vpop.permute.xlu0 %1562  ;;  %v14375_v17 = vld [vmem:[%s19231_s0 + $0x3e8] sm:$0xff]  }
 0x1dc   :  { %v1565_v23 = vadd.f32 %v1563_v9, %v16353_v27  ;;  %v14381_v27 = vld [vmem:[%s19231_s0 + $0x320] sm:$0xff]  }
 0x1dd   :  { %5822 = vmatmul.mubr.bf16.gmra.mrb[176].mxu0 %v15069_v58  ;;  %v16945_v12 = vadd.f32 %v2998_v16, %v2943_v50  ;;  %3024 = vrot.lane.b32.xlu1 %v3023_v29, %s14845_s21  ;;  %v14387_v29 = vld [vmem:[%s19231_s0 + $0x2e8] sm:$0xff]   ;;  %v14390_v50 = vld [vmem:[%s19231_s0 + $0x270] sm:$0xff]  }
 0x1de   :  { %12872 = vmatpush3.bf16.msra.mxu1 %v14371_v26  ;;  %13745 = vmatpush3.bf16.msra.mxu0 %v14372_v33 }
 0x1df   :  { %1586 = vrot.lane.b32.xlu0 %v1585_v6, %s14846_s25  ;;  %12873 = vmatprep.subr.bf16.mxu1 %v14373_v7  ;;  %v3029_v60 = vrot.slane %v16945_v12, 2  ;;  %v14391_v7 = vld [vmem:[%s19231_s0 + $0x2f0] sm:$0xff]  }
 0x1e0   :  { %13746 = vmatprep.subr.bf16.mxu0 %v19235_v36  ;;  %13748 = vmatprep.mubr.msk.bf16.mxu0 %vm14843_vm0, %v19235_v36 }
 0x1e2   :  { %12874 = vmatpush3.bf16.msra.mxu1 %v14374_v2  ;;  %13747 = vmatpush3.bf16.msra.mxu0 %v14375_v17  ;;  %v14392_v2 = vld [vmem:[%s19231_s0 + $0x2b8] sm:$0xff]  }
 0x1e3   :  { %1606 = vrot.lane.b32.xlu0 %v1565_v23, %s14847_s13  ;;  %12902 = vmatprep.subr.bf16.mxu0 %v14376_v19  ;;  %v14395_v23 = vld [vmem:[%s19231_s0 + $0x2f8] sm:$0xff]  }
 0x1e4   :  { %12936 = vmatprep.subr.bf16.mxu1 %v14377_v4 }
 0x1e5   :  { %5862 = vmatmul.mubr.bf16.vlgmr.msra.gmra.mrb[180].mxu1 %v16719_v37  ;;  %13749 = vmatmul.mubr.msk.bf16.vlgmr.msra.gmra.mrb[180].mxu0 %vm563_vm1, %v16677_v10  ;;  %v14384_v10 = vld [vmem:[%s19231_s0 + $0x2a8] sm:$0xff]  }
 0x1e6   :  { %12937 = vmatpush3.bf16.msra.mxu1 %v14379_v46  ;;  %12903 = vmatpush3.bf16.msra.mxu0 %v14378_v14  ;;  %v12474_v37 = vpop.f32.mrb[96].mxu0 }
 0x1e7   :  { %3030 = vrot.lane.b32.xlu0 %v3029_v60, %s14845_s21  ;;  %v12508_v5 = vpop.f32.mrb[96].mxu1  ;;  %12904 = vmatprep.subr.bf16.mxu0 %v14380_v31  ;;  %v12475_v44 = vpop.f32.mrb[97].mxu0 }
 0x1e8   :  { %12938 = vmatprep.subr.bf16.mxu1 %v14381_v27  ;;  %v12509_v22 = vpop.f32.mrb[97].mxu1  ;;  %5869 = vmatprep.mubr.bf16.mxu1 %v16741_v52  ;;  %v12476_v16 = vadd.f32 %v12475_v44, %v12474_v37  ;;  %v12477_v26 = vpop.f32.mrb[98].mxu0  ;;  %v14389_v52 = vld [vmem:[%s19231_s0 + $0x330] sm:$0xff]   ;;  %v14398_v44 = vld [vmem:[%s19231_s0 + $0x280] sm:$0xff]  }
 0x1e9   :  { %13752 = vmatprep.mubr.msk.bf16.mxu0 %vm14843_vm0, %v19235_v36  ;;  %v12510_v48 = vadd.f32 %v12509_v22, %v12508_v5  ;;  %v12511_v47 = vpop.f32.mrb[98].mxu1  ;;  %v12478_v13 = vpop.f32.mrb[99].mxu0 }
 0x1ea   :  { %12939 = vmatpush3.bf16.msra.mxu1 %v14383_v15  ;;  %12905 = vmatpush3.bf16.msra.mxu0 %v14382_v11  ;;  %v12512_v33 = vpop.f32.mrb[99].mxu1  ;;  %v12479_v0 = vadd.f32 %v12478_v13, %v12477_v26  ;;  %v14396_v15 = vld [vmem:[%s19231_s0 + $0x2c0] sm:$0xff]  }
 0x1eb   :  { %12940 = vmatprep.subr.bf16.mxu1 %v14385_v49  ;;  %v17004_v59 = vadd.f32 %v12510_v48, %v12476_v16  ;;  %v12513_v43 = vadd.f32 %v12512_v33, %v12511_v47  ;;  %12906 = vmatprep.subr.bf16.mxu0 %v14384_v10  ;;  %v14397_v49 = vld [vmem:[%s19231_s0 + $0x340] sm:$0xff]   ;;  %v14401_v48 = vld [vmem:[%s19231_s0 + $0x348] sm:$0xff]  }
 0x1ec   :  { %v14399_v16 = vld [vmem:[%s19231_s0 + $0x300] sm:$0xff]  }
 0x1ed   :  { %5870 = vmatmul.mubr.bf16.gmra.mrb[184].mxu1 %v16766_v34  ;;  %v17016_v6 = vadd.f32 %v12513_v43, %v12479_v0  ;;  %13753 = vmatmul.mubr.msk.bf16.gmra.mrb[184].mxu0 %vm563_vm1, %v16728_v30  ;;  %v14393_v34 = vld [vmem:[%s19231_s0 + $0x338] sm:$0xff]   ;;  %v17071_v13 = vld [vmem:[%s19232_s1 + $0x4] ss:$28 sps:$4 sm:$0xff]   ;;  %v14402_v43 = vld [vmem:[%s19231_s0 + $0x288] sm:$0xff]  }
 0x1ee   :  { %12941 = vmatpush3.bf16.msra.mxu1 %v14387_v29  ;;  %12907 = vmatpush3.bf16.msra.mxu0 %v14386_v41  ;;  %v14394_v30 = vld [vmem:[%s19231_s0 + $0x278] sm:$0xff]   ;;  %v17052_v41 = vld [vmem:[%s19232_s1 + $0x88] ss:$0 sps:$4 sm:$0x33]  }
 0x1ef   :  { %12942 = vmatprep.subr.bf16.mxu1 %v14389_v52  ;;  %v12514_v17 = vpop.f32.mrb[100].mxu1  ;;  %12908 = vmatprep.subr.bf16.mxu0 %v14388_v20  ;;  %v14400_v29 = vld [vmem:[%s19231_s0 + $0x2c8] sm:$0xff]  }
 0x1f0   :  { %v12480_v9 = vpop.f32.mrb[100].mxu0  ;;  %5877 = vmatprep.mubr.bf16.mxu1 %v15222_v39  ;;  %v12515_v4 = vpop.f32.mrb[101].mxu1  ;;  %13756 = vmatprep.mubr.msk.bf16.mxu0 %vm14843_vm0, %v19235_v36  ;;  %v14403_v52 = vld [vmem:[%s19231_s0 + $0x308] sm:$0xff]  }
 0x1f1   :  { %v12481_v19 = vpop.f32.mrb[101].mxu0  ;;  %v12516_v46 = vadd.f32 %v12515_v4, %v12514_v17  ;;  %v12517_v27 = vpop.f32.mrb[102].mxu1  ;;  %v17080_v20 = vld [vmem:[%s19232_s1 + $0xc] ss:$28 sps:$4 sm:$0xff]   ;;  %v14404_v17 = vld [vmem:[%s19231_s0 + $0x2d0] sm:$0xff]  }
 0x1f2   :  { %v12482_v14 = vadd.f32 %v12481_v19, %v12480_v9  ;;  %v12483_v31 = vpop.f32.mrb[102].mxu0  ;;  %12943 = vmatpush3.bf16.msra.mxu1 %v14391_v7  ;;  %12909 = vmatpush3.bf16.msra.mxu0 %v14390_v50  ;;  %v12518_v11 = vpop.f32.mrb[103].mxu1  ;;  %v14405_v19 = vld [vmem:[%s19231_s0 + $0x350] sm:$0xff]  }
 0x1f3   :  { %v12484_v60 = vpop.f32.mrb[103].mxu0  ;;  %12944 = vmatprep.subr.bf16.mxu1 %v14393_v34  ;;  %v12519_v10 = vadd.f32 %v12518_v11, %v12517_v27  ;;  %12910 = vmatprep.subr.bf16.mxu0 %v14392_v2  ;;  %v14410_v11 = vld [vmem:[%s19231_s0 + $0x3d8] sm:$0xff]  }
 0x1f4   :  { %v17041_v37 = vadd.f32 %v12516_v46, %v12482_v14  ;;  %v12485_v5 = vadd.f32 %v12484_v60, %v12483_v31  ;;  %v14406_v14 = vld [vmem:[%s19231_s0 + $0x290] sm:$0xff]   ;;  %v14408_v31 = vld [vmem:[%s19231_s0 + $0x398] sm:$0xff]  }
 0x1f5   :  { %5878 = vmatmul.mubr.bf16.gmra.mrb[188].mxu1 %v15224_v40  ;;  %13757 = vmatmul.mubr.msk.bf16.gmra.mrb[188].mxu0 %vm563_vm1, %v17052_v41 }
 0x1f6   :  { %v17047_v22 = vadd.f32 %v12519_v10, %v12485_v5  ;;  %12945 = vmatpush3.bf16.msra.mxu1 %v14395_v23  ;;  %12911 = vmatpush3.bf16.msra.mxu0 %v14394_v30  ;;  %v14407_v23 = vld [vmem:[%s19231_s0 + $0x310] sm:$0xff]   ;;  %v14411_v5 = vld [vmem:[%s19231_s0 + $0x3a0] sm:$0xff]  }
 0x1f7   :  { %12946 = vmatprep.subr.bf16.mxu1 %v14397_v49  ;;  %v12520_v47 = vpop.f32.mrb[104].mxu1  ;;  %12912 = vmatprep.subr.bf16.mxu0 %v14396_v15  ;;  %v14409_v49 = vld [vmem:[%s19231_s0 + $0x358] sm:$0xff]   ;;  %v17113_v10 = vld [vmem:[%s19232_s1 + $0x8] ss:$28 sps:$4 sm:$0xff]  }
 0x1f8   :  { %v12486_v26 = vpop.f32.mrb[104].mxu0  ;;  %6483 = vmatprep.mubr.bf16.mxu0 %v17071_v13  ;;  %v12521_v0 = vpop.f32.mrb[105].mxu1  ;;  %6539 = vmatprep.mubr.bf16.mxu1 %v17080_v20 }
 0x1f9   :  { %v12487_v33 = vpop.f32.mrb[105].mxu0  ;;  %v12522_v7 = vadd.f32 %v12521_v0, %v12520_v47  ;;  %v12523_v2 = vpop.f32.mrb[106].mxu1  ;;  %v17132_v47 = vld [vmem:[%s19232_s1 + $0x3c] ss:$28 sps:$4 sm:$0xff]   ;;  %v17143_v0 = vld [vmem:[%s19232_s1 + $0x44] ss:$28 sps:$4 sm:$0xff]  }
 0x1fa   :  { %v12488_v50 = vadd.f32 %v12487_v33, %v12486_v26  ;;  %12947 = vmatpush3.bf16.msra.mxu1 %v14399_v16  ;;  %v12489_v34 = vpop.f32.mrb[106].mxu0  ;;  %12913 = vmatpush3.bf16.msra.mxu0 %v14398_v44  ;;  %v12524_v9 = vpop.f32.mrb[107].mxu1  ;;  %v17119_v44 = vld [vmem:[%s19232_s1] ss:$28 sps:$4 sm:$0xff]  }
 0x1fb   :  { %12948 = vmatprep.subr.bf16.mxu1 %v14401_v48  ;;  %v12490_v4 = vpop.f32.mrb[107].mxu0  ;;  %12914 = vmatprep.subr.bf16.mxu0 %v14400_v29  ;;  %v14413_v16 = vld [vmem:[%s19231_s0 + $0x3e0] sm:$0xff]   ;;  %v14414_v29 = vld [vmem:[%s19231_s0 + $0x3a8] sm:$0xff]  }
 0x1fc   :  { %v17089_v30 = vadd.f32 %v12522_v7, %v12488_v50  ;;  %v14412_v48 = vld [vmem:[%s19231_s0 + $0x360] sm:$0xff]   ;;  %v14416_v34 = vld [vmem:[%s19231_s0 + $0x3e8] sm:$0xff]  }
 0x1fe   :  { %12949 = vmatpush3.bf16.msra.mxu1 %v14403_v52  ;;  %12915 = vmatpush3.bf16.msra.mxu0 %v14402_v43 }
 0x1ff   :  { %12950 = vmatprep.subr.bf16.mxu1 %v14405_v19  ;;  %v3716_v46 = vpop.f32.mrb[108].mxu1  ;;  %12916 = vmatprep.subr.bf16.mxu0 %v14404_v17  ;;  %v14415_v17 = vld [vmem:[%s19231_s0 + $0x368] sm:$0xff]  }
 0x200   :  { %v13678_v27 = vpop.f32.mrb[109].mxu1 }
 0x201   :  { %v3719_v60 = vpop.f32.mrb[110].mxu1  ;;  %v17164_v27 = vld [vmem:[%s19232_s1 + $0x40] ss:$28 sps:$4 sm:$0xff]  }
 0x202   :  { %12951 = vmatpush3.bf16.msra.mxu1 %v14407_v23  ;;  %12917 = vmatpush3.bf16.msra.mxu0 %v14406_v14  ;;  %v13679_v15 = vpop.f32.mrb[111].mxu1 }
 0x203   :  { %13760 = vmatprep.subr.bf16.mxu1 %v19235_v36  ;;  %12970 = vmatprep.subr.bf16.mxu0 %v14408_v31  ;;  %v14417_v31 = vld [vmem:[%s19231_s0 + $0x3b0] sm:$0xff]  }
 0x205   :  { %6540 = vmatmul.mubr.bf16.vlgmr.msra.gmra.mrb[192].mxu1 %v17113_v10  ;;  %6484 = vmatmul.mubr.bf16.vlgmr.msra.gmra.mrb[192].mxu0 %v17119_v44 }
 0x206   :  { %13761 = vmatpush3.bf16.msra.mxu1 %v14410_v11  ;;  %12971 = vmatpush3.bf16.msra.mxu0 %v14409_v49 }
 0x207   :  { %13762 = vmatprep.subr.bf16.mxu1 %v19235_v36  ;;  %12972 = vmatprep.subr.bf16.mxu0 %v14411_v5  ;;  %v17138_v52 = vpop.f32.mrb[112].mxu1 }
 0x208   :  { %v12542_v26 = vpop.f32.mrb[108].mxu0  ;;  %6491 = vmatprep.mubr.bf16.mxu0 %v17132_v47  ;;  %6547 = vmatprep.mubr.bf16.mxu1 %v17143_v0  ;;  %v13682_v43 = vpop.f32.mrb[113].mxu1 }
 0x209   :  { %v12543_v33 = vpop.f32.mrb[109].mxu0  ;;  %v17146_v2 = vpop.permute.xlu1 %829 }
 0x20a   :  { %v12544_v50 = vadd.f32 %v12543_v33, %v12542_v26  ;;  %v12545_v7 = vpop.f32.mrb[110].mxu0  ;;  %13763 = vmatpush3.bf16.msra.mxu1 %v14413_v16  ;;  %12973 = vmatpush3.bf16.msra.mxu0 %v14412_v48  ;;  %v17155_v19 = vpop.f32.mrb[114].mxu1  ;;  %v14419_v16 = vld [vmem:[%s19231_s0 + $0x3f0] sm:$0xff]   ;;  %v14420_v33 = vld [vmem:[%s19231_s0 + $0x3b8] sm:$0xff]  }
 0x20b   :  { %v12546_v9 = vpop.f32.mrb[111].mxu0  ;;  %13764 = vmatprep.subr.bf16.mxu1 %v19235_v36  ;;  %12974 = vmatprep.subr.bf16.mxu0 %v14414_v29  ;;  %v13683_v14 = vpop.f32.mrb[115].mxu1  ;;  %v14418_v48 = vld [vmem:[%s19231_s0 + $0x370] sm:$0xff]  }
 0x20c   :  { %v3661_v4 = vadd.f32 %v12544_v50, %v17004_v59  ;;  %v12547_v23 = vadd.f32 %v12546_v9, %v12545_v7  ;;  %v17173_v59 = vld [vmem:[%s19232_s1 + $0x38] ss:$28 sps:$4 sm:$0xff]  }
 0x20d   :  { %6548 = vmatmul.mubr.bf16.gmra.mrb[196].mxu1 %v17164_v27  ;;  %6492 = vmatmul.mubr.bf16.gmra.mrb[196].mxu0 %v17173_v59  ;;  %v2273_v49 = vpop.permute.xlu1 %2272 }
 0x20e   :  { %v17167_v11 = vadd.f32 %v3716_v46, %v3661_v4  ;;  %v3664_v15 = vadd.f32 %v12547_v23, %v17016_v6  ;;  %13765 = vmatpush3.bf16.msra.mxu1 %v14416_v34  ;;  %v836_v5 = vpop.permute.xlu0 %835  ;;  %12975 = vmatpush3.bf16.msra.mxu0 %v14415_v17  ;;  %v17180_v46 = vadd.f32 %v2273_v49, %v16587_v62  ;;  %v14422_v17 = vld [vmem:[%s19231_s0 + $0x3f8] sm:$0xff]  }
 0x20f   :  { %v838_v6 = vadd.f32 %v836_v5, %v16590_v53  ;;  %13766 = vmatprep.subr.bf16.mxu1 %v19235_v36  ;;  %12976 = vmatprep.subr.bf16.mxu0 %v14417_v31  ;;  %v17193_v62 = vpop.f32.mrb[116].mxu1 }
 0x210   :  { %19260 = vst [vmem:[#allocation7_spill] sm:$0xff] %v17180_v46  ;;  %v17187_v26 = vadd.f32 %v3719_v60, %v3664_v15  ;;  %v12548_v29 = vpop.f32.mrb[112].mxu0  ;;  %6499 = vmatprep.mubr.bf16.mxu0 %v15063_v55  ;;  %v2301_v53 = vrot.slane %v17180_v46, 4  ;;  %6555 = vmatprep.mubr.bf16.mxu1 %v15065_v56  ;;  %v14421_v60 = vld [vmem:[%s19231_s0 + $0x378] sm:$0xff]   ;;  %v13686_v50 = vpop.f32.mrb[117].mxu1  ;;  %v3739_v14 = vrot.slane %v17167_v11, 2 }
 0x211   :  { %v12549_v43 = vpop.f32.mrb[113].mxu0  ;;  %852 = vrot.lane.b32.xlu1 %v838_v6, %s14848_s19  ;;  %v17201_v9 = vpop.permute.xlu1 %841 }
 0x212   :  { %v12550_v7 = vadd.f32 %v12549_v43, %v12548_v29  ;;  %v12551_v34 = vpop.f32.mrb[114].mxu0  ;;  %13767 = vmatpush3.bf16.msra.mxu1 %v14419_v16  ;;  %12977 = vmatpush3.bf16.msra.mxu0 %v14418_v48  ;;  %v2279_v23 = vpop.permute.xlu0 %2278  ;;  %v14423_v16 = vld [vmem:[%s19231_s0 + $0x3c0] sm:$0xff]   ;;  %v3745_v6 = vrot.slane %v17187_v26, 2 }
 0x213   :  { %v12552_v4 = vpop.f32.mrb[115].mxu0  ;;  %2302 = vrot.lane.b32.xlu0 %v2301_v53, %s14846_s25  ;;  %v17210_v49 = vadd.f32 %v2279_v23, %v16604_v38  ;;  %12978 = vmatprep.subr.bf16.mxu0 %v14420_v33  ;;  %v3735_v5 = vpop.f32.mrb[118].mxu1  ;;  %v14425_v33 = vld [vmem:[%s19231_s0 + $0x400] sm:$0xff]   ;;  %v14429_v23 = vld [vmem:[%s19231_s0 + $0x270] sm:$0xff]  }
 0x214   :  { %v3669_v31 = vadd.f32 %v12550_v7, %v17041_v37  ;;  %v12553_v15 = vadd.f32 %v12552_v4, %v12551_v34  ;;  %13768 = vmatprep.subr.bf16.mxu1 %v19235_v36  ;;  %v13687_v48 = vpop.f32.mrb[119].mxu1  ;;  %v14426_v7 = vld [vmem:[%s19231_s0 + $0x3c8] sm:$0xff]  }
 0x215   :  { %6556 = vmatmul.mubr.bf16.gmra.mrb[200].mxu1 %v15069_v58  ;;  %3740 = vrot.lane.b32.xlu1 %v3739_v14, %s14845_s21  ;;  %v2285_v29 = vpop.permute.xlu1 %2284  ;;  %v2307_v53 = vrot.slane %v17210_v49, 4  ;;  %v14431_v48 = vld [vmem:[%s19231_s0 + $0x2b8] sm:$0xff]  }
 0x216   :  { %v17220_v37 = vadd.f32 %v17138_v52, %v3669_v31  ;;  %v3672_v38 = vadd.f32 %v12553_v15, %v17047_v22  ;;  %6500 = vmatmul.mubr.bf16.gmra.mrb[200].mxu0 %v15067_v57  ;;  %13769 = vmatpush3.bf16.msra.mxu1 %v14422_v17  ;;  %v848_v43 = vpop.permute.xlu0 %847  ;;  %v14424_v52 = vld [vmem:[%s19231_s0 + $0x380] sm:$0xff]   ;;  %v17243_v34 = vadd.f32 %v2285_v29, %v16637_v3  ;;  %v14430_v3 = vld [vmem:[%s19231_s0 + $0x3d0] sm:$0xff]   ;;  %v14433_v29 = vld [vmem:[%s19231_s0 + $0x278] sm:$0xff]  }
 0x217   :  { %12979 = vmatpush3.bf16.msra.mxu0 %v14421_v60  ;;  %3746 = vrot.lane.b32.xlu0 %v3745_v6, %s14845_s21  ;;  %v14427_v60 = vld [vmem:[%s19231_s0 + $0x2b0] sm:$0xff]   ;;  %v850_v17 = vadd.f32 %v848_v43, %v16640_v45 }
 0x218   :  { %v17233_v22 = vadd.f32 %v17155_v19, %v3672_v38  ;;  %v12554_v50 = vpop.f32.mrb[116].mxu0  ;;  %12980 = vmatprep.subr.bf16.mxu0 %v14423_v16  ;;  %13770 = vmatprep.subr.bf16.mxu1 %v19235_v36  ;;  %v14428_v19 = vld [vmem:[%s19231_s0 + $0x388] sm:$0xff]   ;;  %v3751_v15 = vrot.slane %v17220_v37, 2  ;;  %v17272_v38 = vld [vmem:[%s19232_s1 + $0x18] ss:$28 sps:$4 sm:$0xff]  }
 0x219   :  { %v12555_v4 = vpop.f32.mrb[117].mxu0  ;;  %2308 = vrot.lane.b32.xlu1 %v2307_v53, %s14846_s25  ;;  %13772 = vmatprep.mubr.msk.bf16.mxu1 %vm14843_vm0, %v19235_v36  ;;  %v14434_v53 = vld [vmem:[%s19231_s0 + $0x2c0] sm:$0xff]  }
 0x21a   :  { %v12556_v14 = vadd.f32 %v12555_v4, %v12554_v50  ;;  %13771 = vmatpush3.bf16.msra.mxu1 %v14425_v33  ;;  %v12557_v45 = vpop.f32.mrb[118].mxu0  ;;  %6595 = vmatprep.mubr.bf16.mxu0 %v16926_v28  ;;  %v2291_v31 = vpop.permute.xlu0 %2290  ;;  %v2313_v28 = vrot.slane %v17243_v34, 4  ;;  %v14436_v50 = vld [vmem:[%s19231_s0 + $0x280] sm:$0xff]  }
 0x21b   :  { %12981 = vmatpush3.bf16.msra.mxu0 %v14424_v52  ;;  %857 = vrot.lane.b32.xlu0 %v850_v17, %s14848_s19  ;;  %v12558_v5 = vpop.f32.mrb[119].mxu0  ;;  %v17263_v6 = vadd.f32 %v2291_v31, %v16652_v24  ;;  %v14432_v24 = vld [vmem:[%s19231_s0 + $0x390] sm:$0xff]   ;;  %v2297_v43 = vpop.permute.xlu1 %2296  ;;  %v14439_v45 = vld [vmem:[%s19231_s0 + $0x338] sm:$0xff]  }
 0x21c   :  { %v3677_v16 = vadd.f32 %v12556_v14, %v17089_v30  ;;  %12982 = vmatprep.subr.bf16.mxu0 %v14426_v7  ;;  %13013 = vmatprep.subr.bf16.mxu1 %v14427_v60  ;;  %v14435_v52 = vld [vmem:[%s19231_s0 + $0x330] sm:$0xff]   ;;  %v3757_v60 = vrot.slane %v17233_v22, 2  ;;  %v2299_v14 = vadd.f32 %v2297_v43, %v16686_v35  ;;  %v14440_v5 = vld [vmem:[%s19231_s0 + $0x288] sm:$0xff]  }
 0x21d   :  { %13773 = vmatmul.mubr.msk.bf16.vlgmr.msra.gmra.mrb[204].mxu1 %vm563_vm1, %v17272_v38  ;;  %3752 = vrot.lane.b32.xlu1 %v3751_v15, %s14845_s21  ;;  %v2319_v33 = vrot.slane %v17263_v6, 4  ;;  %v14437_v17 = vld [vmem:[%s19231_s0 + $0x2f0] sm:$0xff]  }
 0x21e   :  { %v17281_v30 = vadd.f32 %v17193_v62, %v3677_v16  ;;  %13014 = vmatpush3.bf16.msra.mxu1 %v14429_v23  ;;  %13776 = vmatprep.mubr.msk.bf16.mxu1 %vm14843_vm0, %v19235_v36  ;;  %v14438_v23 = vld [vmem:[%s19231_s0 + $0x2c8] sm:$0xff]  }
 0x21f   :  { %12983 = vmatpush3.bf16.msra.mxu0 %v14428_v19  ;;  %2314 = vrot.lane.b32.xlu0 %v2313_v28, %s14846_s25  ;;  %v12585_v62 = vpop.f32.mrb[120].mxu1  ;;  %v17320_v35 = vld [vmem:[%s19232_s1 + $0x50] ss:$28 sps:$4 sm:$0xff]  }
 0x220   :  { %12984 = vmatprep.subr.bf16.mxu0 %v14430_v3  ;;  %13015 = vmatprep.subr.bf16.mxu1 %v14431_v48  ;;  %v12586_v7 = vpop.f32.mrb[121].mxu1  ;;  %v3763_v15 = vrot.slane %v17281_v30, 2  ;;  %v17327_v16 = vld [vmem:[%s19232_s1 + $0x10] ss:$28 sps:$4 sm:$0xff]   ;;  %v14441_v48 = vld [vmem:[%s19231_s0 + $0x2f8] sm:$0xff]  }
 0x221   :  { %2320 = vrot.lane.b32.xlu1 %v2319_v33, %s14846_s25  ;;  %v12587_v4 = vadd.f32 %v12586_v7, %v12585_v62  ;;  %v12588_v19 = vpop.f32.mrb[122].mxu1  ;;  %v14442_v28 = vld [vmem:[%s19231_s0 + $0x2d0] sm:$0xff]   ;;  %v17346_v62 = vld [vmem:[%s19232_s1 + $0x4c] ss:$28 sps:$4 sm:$0xff]  }
 0x222   :  { %13016 = vmatpush3.bf16.msra.mxu1 %v14433_v29  ;;  %v12589_v3 = vpop.f32.mrb[123].mxu1  ;;  %v14443_v29 = vld [vmem:[%s19231_s0 + $0x340] sm:$0xff]  }
 0x223   :  { %12985 = vmatpush3.bf16.msra.mxu0 %v14432_v24  ;;  %3758 = vrot.lane.b32.xlu0 %v3757_v60, %s14845_s21  ;;  %v12590_v31 = vadd.f32 %v12589_v3, %v12588_v19 }
 0x224   :  { %13017 = vmatprep.subr.bf16.mxu1 %v14434_v53  ;;  %13047 = vmatprep.subr.bf16.mxu0 %v14435_v52  ;;  %v14444_v53 = vld [vmem:[%s19231_s0 + $0x290] sm:$0xff]   ;;  %v14445_v52 = vld [vmem:[%s19231_s0 + $0x300] sm:$0xff]  }
 0x225   :  { %2340 = vrot.lane.b32.xlu1 %v2299_v14, %s14847_s13  ;;  %13777 = vmatmul.mubr.msk.bf16.gmra.mrb[208].mxu1 %vm563_vm1, %v17320_v35  ;;  %v14447_v14 = vld [vmem:[%s19231_s0 + $0x348] sm:$0xff]  }
 0x226   :  { %6596 = vmatmul.mubr.bf16.vlgmr.msra.gmra.mrb[204].mxu0 %v17327_v16  ;;  %13018 = vmatpush3.bf16.msra.mxu1 %v14436_v50 }
 0x227   :  { %13048 = vmatpush3.bf16.msra.mxu0 %v14437_v17  ;;  %3764 = vrot.lane.b32.xlu0 %v3763_v15, %s14845_s21  ;;  %v12591_v33 = vpop.f32.mrb[124].mxu1 }
 0x228   :  { %v12619_v24 = vpop.f32.mrb[120].mxu0  ;;  %13019 = vmatprep.subr.bf16.mxu1 %v14438_v23  ;;  %13049 = vmatprep.subr.bf16.mxu0 %v14439_v45  ;;  %v12592_v50 = vpop.f32.mrb[125].mxu1  ;;  %v14446_v23 = vld [vmem:[%s19231_s0 + $0x2d8] sm:$0xff]  }
 0x229   :  { %v12620_v43 = vpop.f32.mrb[121].mxu0  ;;  %6603 = vmatprep.mubr.bf16.mxu0 %v17346_v62  ;;  %13780 = vmatprep.mubr.msk.bf16.mxu1 %vm14843_vm0, %v19235_v36  ;;  %v12593_v17 = vadd.f32 %v12592_v50, %v12591_v33  ;;  %v12594_v19 = vpop.f32.mrb[126].mxu1  ;;  %v14449_v33 = vld [vmem:[%s19231_s0 + $0x308] sm:$0xff]  }
 0x22a   :  { %v12621_v7 = vadd.f32 %v12620_v43, %v12619_v24  ;;  %v12622_v60 = vpop.f32.mrb[122].mxu0  ;;  %13020 = vmatpush3.bf16.msra.mxu1 %v14440_v5  ;;  %v12595_v45 = vpop.f32.mrb[127].mxu1  ;;  %v14448_v5 = vld [vmem:[%s19231_s0 + $0x298] sm:$0xff]   ;;  %v14453_v43 = vld [vmem:[%s19231_s0 + $0x310] sm:$0xff]  }
 0x22b   :  { %13050 = vmatpush3.bf16.msra.mxu0 %v14441_v48  ;;  %v12623_v3 = vpop.f32.mrb[123].mxu0  ;;  %13021 = vmatprep.subr.bf16.mxu1 %v14442_v28  ;;  %v12596_v24 = vadd.f32 %v12595_v45, %v12594_v19  ;;  %v14450_v28 = vld [vmem:[%s19231_s0 + $0x2e0] sm:$0xff]   ;;  %v14455_v45 = vld [vmem:[%s19231_s0 + $0x358] sm:$0xff]  }
 0x22c   :  { %v17360_v15 = vadd.f32 %v12621_v7, %v12587_v4  ;;  %v12624_v36 = vadd.f32 %v12623_v3, %v12622_v60  ;;  %13051 = vmatprep.subr.bf16.mxu0 %v14443_v29  ;;  %v17375_v4 = vld [vmem:[%s19232_s1 + $0x48] ss:$28 sps:$4 sm:$0xff]  }
 0x22d   :  { %13781 = vmatmul.mubr.msk.bf16.gmra.mrb[212].mxu1 %vm563_vm1, %v17052_v41  ;;  %v14451_v41 = vld [vmem:[%s19231_s0 + $0x350] sm:$0xff]   ;;  %v14454_v3 = vld [vmem:[%s19231_s0 + $0x2e8] sm:$0xff]  }
 0x22e   :  { %v17370_v48 = vadd.f32 %v12624_v36, %v12590_v31  ;;  %6604 = vmatmul.mubr.bf16.gmra.mrb[208].mxu0 %v17375_v4  ;;  %13022 = vmatpush3.bf16.msra.mxu1 %v14444_v53  ;;  %v14452_v53 = vld [vmem:[%s19231_s0 + $0x2a0] sm:$0xff]  }
 0x22f   :  { %13052 = vmatpush3.bf16.msra.mxu0 %v14445_v52  ;;  %13023 = vmatprep.subr.bf16.mxu1 %v14446_v23  ;;  %v12597_v31 = vpop.f32.mrb[128].mxu1 }
 0x230   :  { %v12625_v36 = vpop.f32.mrb[124].mxu0  ;;  %13053 = vmatprep.subr.bf16.mxu0 %v14447_v14  ;;  %6611 = vmatprep.mubr.bf16.mxu0 %v15222_v39  ;;  %v12598_v52 = vpop.f32.mrb[129].mxu1 }
 0x231   :  { %v12626_v29 = vpop.f32.mrb[125].mxu0  ;;  %7217 = vmatprep.mubr.bf16.mxu1 %v17071_v13  ;;  %v12599_v60 = vadd.f32 %v12598_v52, %v12597_v31  ;;  %v12600_v19 = vpop.f32.mrb[130].mxu1  ;;  %v14460_v31 = vld [vmem:[%s19231_s0 + $0x320] sm:$0xff]  }
 0x232   :  { %v12627_v50 = vadd.f32 %v12626_v29, %v12625_v36  ;;  %v12628_v7 = vpop.f32.mrb[126].mxu0  ;;  %13024 = vmatpush3.bf16.msra.mxu1 %v14448_v5  ;;  %v12601_v14 = vpop.f32.mrb[131].mxu1  ;;  %v14456_v5 = vld [vmem:[%s19231_s0 + $0x2a8] sm:$0xff]  }
 0x233   :  { %13054 = vmatpush3.bf16.msra.mxu0 %v14449_v33  ;;  %v12629_v23 = vpop.f32.mrb[127].mxu0  ;;  %13025 = vmatprep.subr.bf16.mxu1 %v14450_v28  ;;  %v14457_v28 = vld [vmem:[%s19231_s0 + $0x318] sm:$0xff]   ;;  %v14464_v19 = vld [vmem:[%s19231_s0 + $0x328] sm:$0xff]   ;;  %v14466_v14 = vld [vmem:[%s19231_s0 + $0x3c0] sm:$0xff]  }
 0x234   :  { %v17398_v46 = vadd.f32 %v12627_v50, %v12593_v17  ;;  %v12630_v13 = vadd.f32 %v12629_v23, %v12628_v7  ;;  %13055 = vmatprep.subr.bf16.mxu0 %v14451_v41  ;;  %v14459_v17 = vld [vmem:[%s19231_s0 + $0x3b0] sm:$0xff]   ;;  %v14463_v50 = vld [vmem:[%s19231_s0 + $0x3b8] sm:$0xff]   ;;  %v14462_v7 = vld [vmem:[%s19231_s0 + $0x368] sm:$0xff]  }
 0x235   :  { %v14465_v23 = vld [vmem:[%s19231_s0 + $0x378] sm:$0xff]  }
 0x236   :  { %v17403_v33 = vadd.f32 %v12630_v13, %v12596_v24  ;;  %6612 = vmatmul.mubr.bf16.gmra.mrb[212].mxu0 %v15224_v40  ;;  %13026 = vmatpush3.bf16.msra.mxu1 %v14452_v53  ;;  %v14458_v24 = vld [vmem:[%s19231_s0 + $0x360] sm:$0xff]  }
 0x237   :  { %13056 = vmatpush3.bf16.msra.mxu0 %v14453_v43  ;;  %13027 = vmatprep.subr.bf16.mxu1 %v14454_v3  ;;  %v14461_v43 = vld [vmem:[%s19231_s0 + $0x370] sm:$0xff]  }
 0x238   :  { %v12631_v41 = vpop.f32.mrb[128].mxu0  ;;  %13057 = vmatprep.subr.bf16.mxu0 %v14455_v45  ;;  %7273 = vmatprep.mubr.bf16.mxu0 %v17080_v20  ;;  %v14467_v45 = vld [vmem:[%s19231_s0 + $0x380] sm:$0xff]  }
 0x239   :  { %v12632_v36 = vpop.f32.mrb[129].mxu0 }
 0x23a   :  { %v12633_v29 = vadd.f32 %v12632_v36, %v12631_v41  ;;  %13028 = vmatpush3.bf16.msra.mxu1 %v14456_v5  ;;  %v12634_v53 = vpop.f32.mrb[130].mxu0  ;;  %v14468_v36 = vld [vmem:[%s19231_s0 + $0x3f0] sm:$0xff]  }
 0x23b   :  { %13058 = vmatpush3.bf16.msra.mxu0 %v14457_v28  ;;  %v12635_v52 = vpop.f32.mrb[131].mxu0  ;;  %13081 = vmatprep.subr.bf16.mxu1 %v14459_v17 }
 0x23c   :  { %v17425_v20 = vadd.f32 %v12633_v29, %v12599_v60  ;;  %13059 = vmatprep.subr.bf16.mxu0 %v14458_v24  ;;  %v17438_v60 = vpop.permute.xlu0 %867  ;;  %v19262_v52 = vmov 0.0  }
 0x23d   :  { %7218 = vmatmul.mubr.bf16.vlgmr.msra.gmra.mrb[216].mxu1 %v17119_v44 }
 0x23e   :  { %13082 = vmatpush3.bf16.msra.mxu1 %v14461_v43  ;;  %7225 = vmatprep.mubr.bf16.mxu1 %v17132_v47 }
 0x23f   :  { %13060 = vmatpush3.bf16.msra.mxu0 %v14460_v31  ;;  %13083 = vmatprep.subr.bf16.mxu1 %v14463_v50  ;;  %v12653_v44 = vpop.f32.mrb[132].mxu1  ;;  %v14469_v31 = vld [vmem:[%s19231_s0 + $0x3c8] sm:$0xff]  }
 0x240   :  { %13061 = vmatprep.subr.bf16.mxu0 %v14462_v7  ;;  %v4450_v3 = vpop.f32.mrb[132].mxu0  ;;  %v12654_v13 = vpop.f32.mrb[133].mxu1  ;;  %v14470_v7 = vld [vmem:[%s19231_s0 + $0x388] sm:$0xff]  }
 0x241   :  { %v13702_v5 = vpop.f32.mrb[133].mxu0  ;;  %v12655_v28 = vadd.f32 %v12654_v13, %v12653_v44  ;;  %v12656_v17 = vpop.f32.mrb[134].mxu1 }
 0x242   :  { %13084 = vmatpush3.bf16.msra.mxu1 %v14465_v23  ;;  %v4453_v47 = vpop.f32.mrb[134].mxu0  ;;  %v12657_v41 = vpop.f32.mrb[135].mxu1 }
 0x243   :  { %13062 = vmatpush3.bf16.msra.mxu0 %v14464_v19  ;;  %v13703_v24 = vpop.f32.mrb[135].mxu0  ;;  %13085 = vmatprep.subr.bf16.mxu1 %v14466_v14  ;;  %v4395_v29 = vadd.f32 %v12655_v28, %v17360_v15  ;;  %v12658_v53 = vadd.f32 %v12657_v41, %v12656_v17  ;;  %v17453_v43 = vpop.permute.xlu1 %1568  ;;  %v14471_v15 = vld [vmem:[%s19231_s0 + $0x3f8] sm:$0xff]   ;;  %v14472_v14 = vld [vmem:[%s19231_s0 + $0x3d0] sm:$0xff]  }
 0x244   :  { %19261 = vst [vmem:[#allocation8_spill] sm:$0xff] %v17453_v43  ;;  %13784 = vmatprep.subr.bf16.mxu0 %v19262_v52  ;;  %v3007_v50 = vpop.permute.xlu0 %3006 }
 0x245   :  { %7226 = vmatmul.mubr.bf16.gmra.mrb[220].mxu1 %v17173_v59  ;;  %v17460_v19 = vadd.f32 %v4450_v3, %v4395_v29  ;;  %v4398_v23 = vadd.f32 %v12658_v53, %v17370_v48 }
 0x246   :  { %7274 = vmatmul.mubr.bf16.vlgmr.msra.gmra.mrb[216].mxu0 %v17113_v10  ;;  %13086 = vmatpush3.bf16.msra.mxu1 %v14467_v45  ;;  %v17475_v10 = vadd.f32 %v3007_v50, %v16852_v8  ;;  %v14474_v8 = vld [vmem:[%s19231_s0 + $0x400] sm:$0xff]   ;;  %v14476_v50 = vld [vmem:[%s19231_s0 + $0x398] sm:$0xff]  }
 0x247   :  { %13785 = vmatpush3.bf16.msra.mxu0 %v14468_v36  ;;  %13087 = vmatprep.subr.bf16.mxu1 %v14469_v31  ;;  %v17470_v44 = vadd.f32 %v4453_v47, %v4398_v23  ;;  %v3013_v59 = vpop.permute.xlu1 %3012  ;;  %v12659_v3 = vpop.f32.mrb[136].mxu1 }
 0x248   :  { %13786 = vmatprep.subr.bf16.mxu0 %v19262_v52  ;;  %7281 = vmatprep.mubr.bf16.mxu0 %v17143_v0  ;;  %19263 = vst [vmem:[#allocation9_spill] sm:$0xff] %v17475_v10  ;;  %v17478_v48 = vadd.f32 %v3013_v59, %v16866_v61  ;;  %v1575_v45 = vpop.permute.xlu0 %1574  ;;  %v12660_v13 = vpop.f32.mrb[137].mxu1  ;;  %v14473_v0 = vld [vmem:[%s19231_s0 + $0x390] sm:$0xff]  }
 0x249   :  { %7233 = vmatprep.mubr.bf16.mxu1 %v15063_v55  ;;  %v1577_v5 = vadd.f32 %v1575_v45, %v16875_v32  ;;  %v12661_v28 = vadd.f32 %v12660_v13, %v12659_v3  ;;  %v12662_v17 = vpop.f32.mrb[138].mxu1  ;;  %v4458_v47 = vpop.f32.mrb[136].mxu0  ;;  %v14475_v32 = vld [vmem:[%s19231_s0 + $0x3d8] sm:$0xff]   ;;  %v4479_v3 = vrot.slane %v17470_v44, 2  ;;  %v14478_v45 = vld [vmem:[%s19231_s0 + $0x3e0] sm:$0xff]  }
 0x24a   :  { %13088 = vmatpush3.bf16.msra.mxu1 %v14470_v7  ;;  %v3041_v61 = vrot.slane %v17478_v48, 4  ;;  %v12663_v41 = vpop.f32.mrb[139].mxu1  ;;  %v13706_v24 = vpop.f32.mrb[137].mxu0  ;;  %v3035_v7 = vrot.slane %v17475_v10, 4 }
 0x24b   :  { %13787 = vmatpush3.bf16.msra.mxu0 %v14471_v15  ;;  %13089 = vmatprep.subr.bf16.mxu1 %v14472_v14  ;;  %v12664_v36 = vadd.f32 %v12663_v41, %v12662_v17  ;;  %v17492_v31 = vpop.permute.xlu1 %1580  ;;  %v4403_v29 = vadd.f32 %v12661_v28, %v17398_v46  ;;  %v4461_v53 = vpop.f32.mrb[138].mxu0  ;;  %v14477_v15 = vld [vmem:[%s19231_s0 + $0x408] sm:$0xff]   ;;  %v14479_v41 = vld [vmem:[%s19231_s0 + $0x3a0] sm:$0xff]  }
 0x24c   :  { %1591 = vrot.lane.b32.xlu1 %v1577_v5, %s14848_s19  ;;  %13788 = vmatprep.subr.bf16.mxu0 %v19262_v52  ;;  %v3019_v23 = vpop.permute.xlu0 %3018  ;;  %v13707_v14 = vpop.f32.mrb[139].mxu0 }
 0x24d   :  { %3042 = vrot.lane.b32.xlu0 %v3041_v61, %s14846_s25  ;;  %7234 = vmatmul.mubr.bf16.gmra.mrb[224].mxu1 %v15067_v57  ;;  %v17506_v46 = vadd.f32 %v4458_v47, %v4403_v29  ;;  %v4406_v59 = vadd.f32 %v12664_v36, %v17403_v33  ;;  %v4473_v47 = vrot.slane %v17460_v19, 2  ;;  %v14481_v29 = vld [vmem:[%s19231_s0 + $0x3e8] sm:$0xff]   ;;  %v14483_v14 = vld [vmem:[%s19231_s0 + $0x418] sm:$0xff]  }
 0x24e   :  { %7282 = vmatmul.mubr.bf16.gmra.mrb[220].mxu0 %v17164_v27  ;;  %13090 = vmatpush3.bf16.msra.mxu1 %v14473_v0  ;;  %v17519_v27 = vadd.f32 %v3019_v23, %v16900_v25  ;;  %v17531_v25 = vld [vmem:[%s19232_s1 + $0x14] ss:$28 sps:$4 sm:$0xff]  }
 0x24f   :  { %13789 = vmatpush3.bf16.msra.mxu0 %v14474_v8  ;;  %13091 = vmatprep.subr.bf16.mxu1 %v14475_v32  ;;  %v17514_v13 = vadd.f32 %v4461_v53, %v4406_v59  ;;  %v3025_v5 = vpop.permute.xlu1 %3024  ;;  %v12665_v28 = vpop.f32.mrb[140].mxu1 }
 0x250   :  { %3036 = vrot.lane.b32.xlu1 %v3035_v7, %s14846_s25  ;;  %13790 = vmatprep.subr.bf16.mxu0 %v19262_v52  ;;  %v12666_v17 = vpop.f32.mrb[141].mxu1  ;;  %v4466_v61 = vpop.f32.mrb[140].mxu0  ;;  %v17535_v32 = vadd.f32 %v3025_v5, %v16913_v21  ;;  %v14482_v21 = vld [vmem:[%s19231_s0 + $0x3a8] sm:$0xff]   ;;  %v3047_v23 = vrot.slane %v17519_v27, 4 }
 0x251   :  { %4480 = vrot.lane.b32.xlu0 %v4479_v3, %s14845_s21  ;;  %v1587_v33 = vpop.permute.xlu0 %1586  ;;  %7289 = vmatprep.mubr.bf16.mxu0 %v15065_v56  ;;  %v12667_v8 = vadd.f32 %v12666_v17, %v12665_v28  ;;  %v12668_v24 = vpop.f32.mrb[142].mxu1  ;;  %v14484_v5 = vld [vmem:[%s19231_s0 + $0x2c8] sm:$0xff]   ;;  %v4485_v17 = vrot.slane %v17506_v46, 2 }
 0x252   :  { %v1589_v0 = vadd.f32 %v1587_v33, %v16917_v54  ;;  %13092 = vmatpush3.bf16.msra.mxu1 %v14476_v50  ;;  %7329 = vmatprep.mubr.bf16.mxu1 %v17531_v25  ;;  %v14480_v54 = vld [vmem:[%s19231_s0 + $0x410] sm:$0xff]   ;;  %v12669_v36 = vpop.f32.mrb[143].mxu1  ;;  %v13710_v53 = vpop.f32.mrb[141].mxu0  ;;  %v14486_v33 = vld [vmem:[%s19231_s0 + $0x288] sm:$0xff]  }
 0x253   :  { %13791 = vmatpush3.bf16.msra.mxu0 %v14477_v15  ;;  %13093 = vmatprep.subr.bf16.mxu1 %v14478_v45  ;;  %v4411_v50 = vadd.f32 %v12667_v8, %v17425_v20  ;;  %v4469_v7 = vpop.f32.mrb[142].mxu0  ;;  %v3053_v20 = vrot.slane %v17535_v32, 4  ;;  %v14485_v45 = vld [vmem:[%s19231_s0 + $0x348] sm:$0xff]   ;;  %v14489_v8 = vld [vmem:[%s19231_s0 + $0x350] sm:$0xff]  }
 0x254   :  { %4474 = vrot.lane.b32.xlu1 %v4473_v47, %s14845_s21  ;;  %13792 = vmatprep.subr.bf16.mxu0 %v19262_v52  ;;  %v13711_v59 = vpop.f32.mrb[143].mxu0  ;;  %v14491_v24 = vld [vmem:[%s19231_s0 + $0x310] sm:$0xff]  }
 0x255   :  { %1596 = vrot.lane.b32.xlu0 %v1589_v0, %s14848_s19  ;;  %v17551_v15 = vpop.permute.xlu0 %1606  ;;  %v17556_v3 = vadd.f32 %v4466_v61, %v4411_v50  ;;  %v14487_v0 = vld [vmem:[%s19231_s0 + $0x308] sm:$0xff]   ;;  %v14488_v61 = vld [vmem:[%s19231_s0 + $0x2d0] sm:$0xff]  }
 0x256   :  { %19264 = vst [vmem:[#allocation10_spill] sm:$0xff] %v17551_v15  ;;  %7290 = vmatmul.mubr.bf16.gmra.mrb[224].mxu0 %v15069_v58  ;;  %13094 = vmatpush3.bf16.msra.mxu1 %v14479_v41  ;;  %v4491_v41 = vrot.slane %v17514_v13, 2  ;;  %v14529_v15 = vld [vmem:[%s19231_s0 + $0x3a8] sm:$0xff]  }
 0x257   :  { %19265 = vst [vmem:[#allocation11_spill] sm:$0xff] %v17556_v3  ;;  %13793 = vmatpush3.bf16.msra.mxu0 %v14480_v54  ;;  %13095 = vmatprep.subr.bf16.mxu1 %v14481_v29  ;;  %v4497_v54 = vrot.slane %v17556_v3, 2 }
 0x258   :  { %3048 = vrot.lane.b32.xlu1 %v3047_v23, %s14846_s25  ;;  %13794 = vmatprep.subr.bf16.mxu0 %v19262_v52 }
 0x259   :  { %3054 = vrot.lane.b32.xlu0 %v3053_v20, %s14846_s25  ;;  %v3031_v28 = vpop.permute.xlu0 %3030  ;;  %13796 = vmatprep.mubr.msk.bf16.mxu0 %vm14843_vm0, %v19262_v52  ;;  %v14495_v20 = vld [vmem:[%s19231_s0 + $0x318] sm:$0xff]  }
 0x25a   :  { %v3033_v47 = vadd.f32 %v3031_v28, %v16945_v12  ;;  %13096 = vmatpush3.bf16.msra.mxu1 %v14482_v21  ;;  %v14490_v12 = vld [vmem:[%s19231_s0 + $0x290] sm:$0xff]   ;;  %v14494_v21 = vld [vmem:[%s19231_s0 + $0x298] sm:$0xff]  }
 0x25b   :  { %13795 = vmatpush3.bf16.msra.mxu0 %v14483_v14  ;;  %13158 = vmatprep.subr.bf16.mxu1 %v14485_v45 }
 0x25c   :  { %4486 = vrot.lane.b32.xlu1 %v4485_v17, %s14845_s21  ;;  %13124 = vmatprep.subr.bf16.mxu0 %v14484_v5 }
 0x25d   :  { %3074 = vrot.lane.b32.xlu0 %v3033_v47, %s14847_s13  ;;  %7330 = vmatmul.mubr.bf16.vlgmr.msra.gmra.mrb[228].mxu1 %v17327_v16  ;;  %v14493_v16 = vld [vmem:[%s19231_s0 + $0x358] sm:$0xff]   ;;  %v14496_v47 = vld [vmem:[%s19231_s0 + $0x2e0] sm:$0xff]  }
 0x25e   :  { %13797 = vmatmul.mubr.msk.bf16.vlgmr.msra.gmra.mrb[228].mxu0 %vm563_vm1, %v17272_v38  ;;  %13159 = vmatpush3.bf16.msra.mxu1 %v14487_v0  ;;  %v14492_v38 = vld [vmem:[%s19231_s0 + $0x2d8] sm:$0xff]   ;;  %v14498_v0 = vld [vmem:[%s19231_s0 + $0x2a0] sm:$0xff]  }
 0x25f   :  { %13125 = vmatpush3.bf16.msra.mxu0 %v14486_v33  ;;  %13160 = vmatprep.subr.bf16.mxu1 %v14489_v8  ;;  %v12730_v29 = vpop.f32.mrb[144].mxu1  ;;  %v14499_v8 = vld [vmem:[%s19231_s0 + $0x320] sm:$0xff]  }
 0x260   :  { %4492 = vrot.lane.b32.xlu1 %v4491_v41, %s14845_s21  ;;  %v12696_v36 = vpop.f32.mrb[144].mxu0  ;;  %13126 = vmatprep.subr.bf16.mxu0 %v14488_v61  ;;  %v12731_v50 = vpop.f32.mrb[145].mxu1 }
 0x261   :  { %4498 = vrot.lane.b32.xlu0 %v4497_v54, %s14845_s21  ;;  %v12697_v53 = vpop.f32.mrb[145].mxu0  ;;  %7337 = vmatprep.mubr.bf16.mxu1 %v17346_v62  ;;  %v12732_v23 = vadd.f32 %v12731_v50, %v12730_v29  ;;  %v12733_v59 = vpop.f32.mrb[146].mxu1  ;;  %v14497_v62 = vld [vmem:[%s19231_s0 + $0x360] sm:$0xff]  }
 0x262   :  { %v12698_v7 = vadd.f32 %v12697_v53, %v12696_v36  ;;  %v12699_v14 = vpop.f32.mrb[146].mxu0  ;;  %13161 = vmatpush3.bf16.msra.mxu1 %v14491_v24  ;;  %13800 = vmatprep.mubr.msk.bf16.mxu0 %vm14843_vm0, %v19262_v52  ;;  %v12734_v5 = vpop.f32.mrb[147].mxu1  ;;  %v14503_v36 = vld [vmem:[%s19231_s0 + $0x328] sm:$0xff]  }
 0x263   :  { %13127 = vmatpush3.bf16.msra.mxu0 %v14490_v12  ;;  %v12700_v45 = vpop.f32.mrb[147].mxu0  ;;  %13162 = vmatprep.subr.bf16.mxu1 %v14493_v16  ;;  %v12735_v17 = vadd.f32 %v12734_v5, %v12733_v59  ;;  %v14500_v12 = vld [vmem:[%s19231_s0 + $0x2e8] sm:$0xff]  }
 0x264   :  { %v17618_v28 = vadd.f32 %v12732_v23, %v12698_v7  ;;  %v12701_v33 = vadd.f32 %v12700_v45, %v12699_v14  ;;  %13128 = vmatprep.subr.bf16.mxu0 %v14492_v38  ;;  %v14504_v23 = vld [vmem:[%s19231_s0 + $0x2f0] sm:$0xff]  }
 0x265   :  { %7338 = vmatmul.mubr.bf16.gmra.mrb[232].mxu1 %v17375_v4  ;;  %v14501_v4 = vld [vmem:[%s19231_s0 + $0x368] sm:$0xff]   ;;  %v14505_v14 = vld [vmem:[%s19231_s0 + $0x370] sm:$0xff]  }
 0x266   :  { %v17630_v61 = vadd.f32 %v12735_v17, %v12701_v33  ;;  %13163 = vmatpush3.bf16.msra.mxu1 %v14495_v20  ;;  %13801 = vmatmul.mubr.msk.bf16.gmra.mrb[232].mxu0 %vm563_vm1, %v17320_v35  ;;  %v14502_v35 = vld [vmem:[%s19231_s0 + $0x2a8] sm:$0xff]   ;;  %v14506_v45 = vld [vmem:[%s19231_s0 + $0x2b0] sm:$0xff]  }
 0x267   :  { %13129 = vmatpush3.bf16.msra.mxu0 %v14494_v21  ;;  %13164 = vmatprep.subr.bf16.mxu1 %v14497_v62  ;;  %v12736_v24 = vpop.f32.mrb[148].mxu1  ;;  %v17666_v33 = vld [vmem:[%s19232_s1 + $0x88] ss:$0 sps:$4 sm:$0x33]   ;;  %v14507_v17 = vld [vmem:[%s19231_s0 + $0x330] sm:$0xff]  }
 0x268   :  { %v12702_v41 = vpop.f32.mrb[148].mxu0  ;;  %13130 = vmatprep.subr.bf16.mxu0 %v14496_v47  ;;  %7345 = vmatprep.mubr.bf16.mxu1 %v15222_v39  ;;  %v12737_v16 = vpop.f32.mrb[149].mxu1  ;;  %v14509_v47 = vld [vmem:[%s19231_s0 + $0x378] sm:$0xff]  }
 0x269   :  { %v12703_v54 = vpop.f32.mrb[149].mxu0  ;;  %13804 = vmatprep.mubr.msk.bf16.mxu0 %vm14843_vm0, %v19262_v52  ;;  %v12738_v38 = vadd.f32 %v12737_v16, %v12736_v24  ;;  %v12739_v50 = vpop.f32.mrb[150].mxu1  ;;  %v14510_v16 = vld [vmem:[%s19231_s0 + $0x2b8] sm:$0xff]  }
 0x26a   :  { %v12704_v29 = vadd.f32 %v12703_v54, %v12702_v41  ;;  %v12705_v53 = vpop.f32.mrb[150].mxu0  ;;  %13165 = vmatpush3.bf16.msra.mxu1 %v14499_v8  ;;  %v12740_v7 = vpop.f32.mrb[151].mxu1  ;;  %v17685_v41 = vld [vmem:[%s19232_s1 + $0x4] ss:$28 sps:$4 sm:$0xff]  }
 0x26b   :  { %13131 = vmatpush3.bf16.msra.mxu0 %v14498_v0  ;;  %v12706_v21 = vpop.f32.mrb[151].mxu0  ;;  %13166 = vmatprep.subr.bf16.mxu1 %v14501_v4  ;;  %v12741_v62 = vadd.f32 %v12740_v7, %v12739_v50  ;;  %v14511_v4 = vld [vmem:[%s19231_s0 + $0x338] sm:$0xff]   ;;  %v14513_v7 = vld [vmem:[%s19231_s0 + $0x380] sm:$0xff]  }
 0x26c   :  { %v17655_v59 = vadd.f32 %v12738_v38, %v12704_v29  ;;  %v12707_v20 = vadd.f32 %v12706_v21, %v12705_v53  ;;  %13132 = vmatprep.subr.bf16.mxu0 %v14500_v12  ;;  %v14508_v12 = vld [vmem:[%s19231_s0 + $0x2f8] sm:$0xff]   ;;  %v14512_v21 = vld [vmem:[%s19231_s0 + $0x300] sm:$0xff]  }
 0x26d   :  { %7346 = vmatmul.mubr.bf16.gmra.mrb[236].mxu1 %v15224_v40 }
 0x26e   :  { %v17661_v5 = vadd.f32 %v12741_v62, %v12707_v20  ;;  %13167 = vmatpush3.bf16.msra.mxu1 %v14503_v36  ;;  %13805 = vmatmul.mubr.msk.bf16.gmra.mrb[236].mxu0 %vm563_vm1, %v17666_v33  ;;  %v14515_v20 = vld [vmem:[%s19231_s0 + $0x340] sm:$0xff]  }
 0x26f   :  { %13133 = vmatpush3.bf16.msra.mxu0 %v14502_v35  ;;  %13168 = vmatprep.subr.bf16.mxu1 %v14505_v14  ;;  %v12742_v8 = vpop.f32.mrb[152].mxu1  ;;  %v17694_v35 = vld [vmem:[%s19232_s1 + $0xc] ss:$28 sps:$4 sm:$0xff]   ;;  %v14514_v62 = vld [vmem:[%s19231_s0 + $0x2c0] sm:$0xff]  }
 0x270   :  { %v12708_v0 = vpop.f32.mrb[152].mxu0  ;;  %13134 = vmatprep.subr.bf16.mxu0 %v14504_v23  ;;  %7951 = vmatprep.mubr.bf16.mxu0 %v17685_v41  ;;  %v12743_v54 = vpop.f32.mrb[153].mxu1 }
 0x271   :  { %v12709_v24 = vpop.f32.mrb[153].mxu0  ;;  %8007 = vmatprep.mubr.bf16.mxu1 %v17694_v35  ;;  %v12744_v29 = vadd.f32 %v12743_v54, %v12742_v8  ;;  %v12745_v38 = vpop.f32.mrb[154].mxu1  ;;  %v14518_v8 = vld [vmem:[%s19231_s0 + $0x408] sm:$0xff]  }
 0x272   :  { %v12710_v36 = vadd.f32 %v12709_v24, %v12708_v0  ;;  %13169 = vmatpush3.bf16.msra.mxu1 %v14507_v17  ;;  %v12711_v53 = vpop.f32.mrb[154].mxu0  ;;  %v12746_v50 = vpop.f32.mrb[155].mxu1  ;;  %v14516_v17 = vld [vmem:[%s19231_s0 + $0x3c8] sm:$0xff]   ;;  %v14519_v24 = vld [vmem:[%s19231_s0 + $0x3d0] sm:$0xff]  }
 0x273   :  { %13135 = vmatpush3.bf16.msra.mxu0 %v14506_v45  ;;  %13170 = vmatprep.subr.bf16.mxu1 %v14509_v47  ;;  %v12712_v23 = vpop.f32.mrb[155].mxu0  ;;  %v17727_v54 = vld [vmem:[%s19232_s1 + $0x8] ss:$28 sps:$4 sm:$0xff]   ;;  %v17746_v53 = vld [vmem:[%s19232_s1 + $0x3c] ss:$28 sps:$4 sm:$0xff]  }
 0x274   :  { %v17703_v14 = vadd.f32 %v12744_v29, %v12710_v36  ;;  %13136 = vmatprep.subr.bf16.mxu0 %v14508_v12  ;;  %v14521_v36 = vld [vmem:[%s19231_s0 + $0x410] sm:$0xff]   ;;  %v14522_v50 = vld [vmem:[%s19231_s0 + $0x3d8] sm:$0xff]   ;;  %v17757_v23 = vld [vmem:[%s19232_s1 + $0x44] ss:$28 sps:$4 sm:$0xff]  }
 0x275   :  { %v14520_v29 = vld [vmem:[%s19231_s0 + $0x390] sm:$0xff]  }
 0x276   :  { %13171 = vmatpush3.bf16.msra.mxu1 %v14511_v4  ;;  %v14517_v4 = vld [vmem:[%s19231_s0 + $0x388] sm:$0xff]  }
 0x277   :  { %13137 = vmatpush3.bf16.msra.mxu0 %v14510_v16  ;;  %13172 = vmatprep.subr.bf16.mxu1 %v14513_v7  ;;  %v5184_v45 = vpop.f32.mrb[156].mxu1  ;;  %v17733_v16 = vld [vmem:[%s19232_s1] ss:$28 sps:$4 sm:$0xff]  }
 0x278   :  { %13138 = vmatprep.subr.bf16.mxu0 %v14512_v21  ;;  %v13726_v47 = vpop.f32.mrb[157].mxu1 }
 0x279   :  { %v5187_v0 = vpop.f32.mrb[158].mxu1  ;;  %v14524_v47 = vld [vmem:[%s19231_s0 + $0x418] sm:$0xff]  }
 0x27a   :  { %13173 = vmatpush3.bf16.msra.mxu1 %v14515_v20  ;;  %v13727_v12 = vpop.f32.mrb[159].mxu1 }
 0x27b   :  { %13139 = vmatpush3.bf16.msra.mxu0 %v14514_v62  ;;  %13808 = vmatprep.subr.bf16.mxu1 %v19262_v52 }
 0x27c   :  { %13192 = vmatprep.subr.bf16.mxu0 %v14516_v17 }
 0x27d   :  { %8008 = vmatmul.mubr.bf16.vlgmr.msra.gmra.mrb[240].mxu1 %v17727_v54 }
 0x27e   :  { %7952 = vmatmul.mubr.bf16.vlgmr.msra.gmra.mrb[240].mxu0 %v17733_v16  ;;  %13809 = vmatpush3.bf16.msra.mxu1 %v14518_v8 }
 0x27f   :  { %13193 = vmatpush3.bf16.msra.mxu0 %v14517_v4  ;;  %13810 = vmatprep.subr.bf16.mxu1 %v19262_v52  ;;  %v17752_v21 = vpop.f32.mrb[160].mxu1 }
 0x280   :  { %v12764_v38 = vpop.f32.mrb[156].mxu0  ;;  %13194 = vmatprep.subr.bf16.mxu0 %v14519_v24  ;;  %7959 = vmatprep.mubr.bf16.mxu0 %v17746_v53  ;;  %v13730_v20 = vpop.f32.mrb[161].mxu1  ;;  %v14523_v24 = vld [vmem:[%s19231_s0 + $0x398] sm:$0xff]  }
 0x281   :  { %v12765_v7 = vpop.f32.mrb[157].mxu0  ;;  %8015 = vmatprep.mubr.bf16.mxu1 %v17757_v23  ;;  %v17763_v8 = vpop.f32.mrb[162].mxu1  ;;  %v14525_v20 = vld [vmem:[%s19231_s0 + $0x3e0] sm:$0xff]  }
 0x282   :  { %v12766_v62 = vadd.f32 %v12765_v7, %v12764_v38  ;;  %v12767_v17 = vpop.f32.mrb[158].mxu0  ;;  %13811 = vmatpush3.bf16.msra.mxu1 %v14521_v36  ;;  %v13731_v36 = vpop.f32.mrb[163].mxu1 }
 0x283   :  { %13195 = vmatpush3.bf16.msra.mxu0 %v14520_v29  ;;  %v12768_v12 = vpop.f32.mrb[159].mxu0  ;;  %v17765_v4 = vpop.permute.xlu1 %852  ;;  %13812 = vmatprep.subr.bf16.mxu1 %v19262_v52  ;;  %v17778_v29 = vld [vmem:[%s19232_s1 + $0x40] ss:$28 sps:$4 sm:$0xff]  }
 0x284   :  { %v5129_v38 = vadd.f32 %v12766_v62, %v17618_v28  ;;  %v12769_v7 = vadd.f32 %v12768_v12, %v12767_v17  ;;  %13196 = vmatprep.subr.bf16.mxu0 %v14522_v50  ;;  %v17789_v50 = vld [vmem:[%s19232_s1 + $0x38] ss:$28 sps:$4 sm:$0xff]   ;;  %v14527_v62 = vld [vmem:[%s19231_s0 + $0x420] sm:$0xff]  }
 0x285   :  { %8016 = vmatmul.mubr.bf16.gmra.mrb[244].mxu1 %v17778_v29  ;;  %v17781_v3 = vpop.permute.xlu0 %2302 }
 0x286   :  { %19266 = vst [vmem:[#allocation12_spill] sm:$0xff] %v17781_v3  ;;  %v17783_v10 = vadd.f32 %v5184_v45, %v5129_v38  ;;  %v5132_v28 = vadd.f32 %v12769_v7, %v17630_v61  ;;  %7960 = vmatmul.mubr.bf16.gmra.mrb[244].mxu0 %v17789_v50  ;;  %13813 = vmatpush3.bf16.msra.mxu1 %v14524_v47  ;;  %v14526_v61 = vld [vmem:[%s19231_s0 + $0x3a0] sm:$0xff]   ;;  %v14528_v47 = vld [vmem:[%s19231_s0 + $0x3e8] sm:$0xff]  }
 0x287   :  { %13197 = vmatpush3.bf16.msra.mxu0 %v14523_v24  ;;  %v3741_v17 = vpop.permute.xlu1 %3740  ;;  %13814 = vmatprep.subr.bf16.mxu1 %v19262_v52  ;;  %v17808_v24 = vpop.f32.mrb[164].mxu1 }
 0x288   :  { %19267 = vst [vmem:[#allocation13_spill] sm:$0xff] %v17783_v10  ;;  %v17799_v45 = vadd.f32 %v5187_v0, %v5132_v28  ;;  %v12770_v12 = vpop.f32.mrb[160].mxu0  ;;  %v17802_v38 = vadd.f32 %v3741_v17, %v17167_v11  ;;  %13198 = vmatprep.subr.bf16.mxu0 %v14525_v20  ;;  %7967 = vmatprep.mubr.bf16.mxu0 %v15063_v55  ;;  %v14530_v11 = vld [vmem:[%s19231_s0 + $0x428] sm:$0xff]   ;;  %v13734_v20 = vpop.f32.mrb[165].mxu1 }
 0x289   :  { %v12771_v7 = vpop.f32.mrb[161].mxu0  ;;  %v3747_v36 = vpop.permute.xlu0 %3746  ;;  %8023 = vmatprep.mubr.bf16.mxu1 %v15065_v56 }
 0x28a   :  { %19268 = vst [vmem:[#allocation14_spill] sm:$0xff] %v17799_v45  ;;  %19269 = vst [vmem:[#allocation15_spill] sm:$0xff] %v17802_v38  ;;  %v3769_v0 = vrot.slane %v17802_v38, 4  ;;  %v12772_v28 = vadd.f32 %v12771_v7, %v12770_v12  ;;  %v12773_v10 = vpop.f32.mrb[162].mxu0  ;;  %13815 = vmatpush3.bf16.msra.mxu1 %v14527_v62  ;;  %v5203_v62 = vpop.f32.mrb[166].mxu1  ;;  %v17826_v7 = vadd.f32 %v3747_v36, %v17187_v26 }
 0x28b   :  { %13199 = vmatpush3.bf16.msra.mxu0 %v14526_v61  ;;  %v12774_v17 = vpop.f32.mrb[163].mxu0  ;;  %v2309_v3 = vpop.permute.xlu1 %2308  ;;  %13816 = vmatprep.subr.bf16.mxu1 %v19262_v52  ;;  %v14531_v61 = vld [vmem:[%s19231_s0 + $0x3f0] sm:$0xff]  }
 0x28c   :  { %v5137_v43 = vadd.f32 %v12772_v28, %v17655_v59  ;;  %v12775_v38 = vadd.f32 %v12774_v17, %v12773_v10  ;;  %v2311_v12 = vadd.f32 %v2309_v3, %v17210_v49  ;;  %13200 = vmatprep.subr.bf16.mxu0 %v14528_v47  ;;  %3770 = vrot.lane.b32.xlu1 %v3769_v0, %s14846_s25  ;;  %v13735_v51 = vpop.f32.mrb[167].mxu1  ;;  %v14533_v10 = vld [vmem:[%s19231_s0 + $0x430] sm:$0xff]   ;;  %v5213_v59 = vrot.slane %v17799_v45, 2  ;;  %v14536_v0 = vld [vmem:[%s19231_s0 + $0x3b8] sm:$0xff]  }
 0x28d   :  { %8024 = vmatmul.mubr.bf16.gmra.mrb[248].mxu1 %v15069_v58  ;;  %v858_v20 = vpop.permute.xlu0 %857  ;;  %v14532_v51 = vld [vmem:[%s19231_s0 + $0x3b0] sm:$0xff]  }
 0x28e   :  { %v17833_v49 = vadd.f32 %v17752_v21, %v5137_v43  ;;  %v5140_v3 = vadd.f32 %v12775_v38, %v17661_v5  ;;  %7968 = vmatmul.mubr.bf16.gmra.mrb[248].mxu0 %v15067_v57  ;;  %13817 = vmatpush3.bf16.msra.mxu1 %v14530_v11  ;;  %v14535_v5 = vld [vmem:[%s19231_s0 + $0x2e0] sm:$0xff]   ;;  %v844_v21 = vadd.f32 %v17201_v9, %v16613_v63  ;;  %v3775_v38 = vrot.slane %v17826_v7, 4 }
 0x28f   :  { %13201 = vmatpush3.bf16.msra.mxu0 %v14529_v15  ;;  %2325 = vrot.lane.b32.xlu0 %v2311_v12, %s14848_s19  ;;  %v3753_v26 = vpop.permute.xlu1 %3752  ;;  %v14534_v15 = vld [vmem:[%s19231_s0 + $0x3f8] sm:$0xff]   ;;  %v14537_v63 = vld [vmem:[%s19231_s0 + $0x2a0] sm:$0xff]   ;;  %v14539_v12 = vld [vmem:[%s19231_s0 + $0x2e8] sm:$0xff]  }
 0x290   :  { %v17843_v47 = vadd.f32 %v17763_v8, %v5140_v3  ;;  %v12776_v43 = vpop.f32.mrb[164].mxu0  ;;  %13202 = vmatprep.subr.bf16.mxu0 %v14531_v61  ;;  %13818 = vmatprep.subr.bf16.mxu1 %v19262_v52  ;;  %v14538_v9 = vld [vmem:[%s19231_s0 + $0x400] sm:$0xff]   ;;  %v860_v17 = vadd.f32 %v858_v20, %v844_v21  ;;  %v17878_v3 = vld [vmem:[%s19232_s1 + $0x18] ss:$28 sps:$4 sm:$0xff]   ;;  %v5219_v20 = vrot.slane %v17833_v49, 2 }
 0x291   :  { %v12777_v36 = vpop.f32.mrb[165].mxu0  ;;  %5214 = vrot.lane.b32.xlu1 %v5213_v59, %s14845_s21  ;;  %v17856_v8 = vpop.permute.xlu0 %2314  ;;  %13820 = vmatprep.mubr.msk.bf16.mxu1 %vm14843_vm0, %v19262_v52 }
 0x292   :  { %v12778_v28 = vadd.f32 %v12777_v36, %v12776_v43  ;;  %13819 = vmatpush3.bf16.msra.mxu1 %v14533_v10  ;;  %v12779_v11 = vpop.f32.mrb[166].mxu0  ;;  %8063 = vmatprep.mubr.bf16.mxu0 %v17531_v25  ;;  %v14541_v43 = vld [vmem:[%s19231_s0 + $0x2a8] sm:$0xff]  }
 0x293   :  { %13203 = vmatpush3.bf16.msra.mxu0 %v14532_v51  ;;  %3776 = vrot.lane.b32.xlu0 %v3775_v38, %s14846_s25  ;;  %v12780_v62 = vpop.f32.mrb[167].mxu0  ;;  %v2321_v10 = vpop.permute.xlu1 %2320  ;;  %v14543_v38 = vld [vmem:[%s19231_s0 + $0x360] sm:$0xff]  }
 0x294   :  { %v5145_v61 = vadd.f32 %v12778_v28, %v17703_v14  ;;  %13204 = vmatprep.subr.bf16.mxu0 %v14534_v15  ;;  %13235 = vmatprep.subr.bf16.mxu1 %v14535_v5  ;;  %v14540_v14 = vld [vmem:[%s19231_s0 + $0x3c0] sm:$0xff]   ;;  %v17899_v15 = vadd.f32 %v3753_v26, %v17220_v37  ;;  %v2323_v5 = vadd.f32 %v2321_v10, %v17263_v6  ;;  %v14544_v37 = vld [vmem:[%s19231_s0 + $0x2b0] sm:$0xff]   ;;  %v14546_v28 = vld [vmem:[%s19231_s0 + $0x2f8] sm:$0xff]  }
 0x295   :  { %13821 = vmatmul.mubr.msk.bf16.vlgmr.msra.gmra.mrb[252].mxu1 %vm563_vm1, %v17878_v3  ;;  %862 = vrot.lane.b32.xlu1 %v860_v17, %s14849_s28  ;;  %v3759_v25 = vpop.permute.xlu0 %3758  ;;  %v14545_v26 = vld [vmem:[%s19231_s0 + $0x320] sm:$0xff]   ;;  %v14548_v62 = vld [vmem:[%s19231_s0 + $0x2b8] sm:$0xff]  }
 0x296   :  { %v17888_v59 = vadd.f32 %v17808_v24, %v5145_v61  ;;  %13236 = vmatpush3.bf16.msra.mxu1 %v14537_v63  ;;  %v17891_v51 = vadd.f32 %v3759_v25, %v17233_v22  ;;  %13824 = vmatprep.mubr.msk.bf16.mxu1 %vm14843_vm0, %v19262_v52  ;;  %v14542_v22 = vld [vmem:[%s19231_s0 + $0x2f0] sm:$0xff]   ;;  %v14547_v63 = vld [vmem:[%s19231_s0 + $0x368] sm:$0xff]  }
 0x297   :  { %13205 = vmatpush3.bf16.msra.mxu0 %v14536_v0  ;;  %5220 = vrot.lane.b32.xlu0 %v5219_v20, %s14845_s21  ;;  %v12807_v21 = vpop.f32.mrb[168].mxu1  ;;  %v17933_v61 = vld [vmem:[%s19232_s1 + $0x50] ss:$28 sps:$4 sm:$0xff]  }
 0x298   :  { %19270 = vst [vmem:[#allocation16_spill] sm:$0xff] %v17888_v59  ;;  %v3787_v24 = vrot.slane %v17891_v51, 4  ;;  %13206 = vmatprep.subr.bf16.mxu0 %v14538_v9  ;;  %13237 = vmatprep.subr.bf16.mxu1 %v14539_v12  ;;  %v12808_v6 = vpop.f32.mrb[169].mxu1  ;;  %v3781_v9 = vrot.slane %v17899_v15, 4  ;;  %v5225_v12 = vrot.slane %v17843_v47, 2  ;;  %v14549_v20 = vld [vmem:[%s19231_s0 + $0x328] sm:$0xff]  }
 0x299   :  { %2330 = vrot.lane.b32.xlu1 %v2323_v5, %s14848_s19  ;;  %v12809_v36 = vadd.f32 %v12808_v6, %v12807_v21  ;;  %v12810_v0 = vpop.f32.mrb[170].mxu1  ;;  %v3765_v10 = vpop.permute.xlu0 %3764  ;;  %v17940_v25 = vld [vmem:[%s19232_s1 + $0x10] ss:$28 sps:$4 sm:$0xff]  }
 0x29a   :  { %13238 = vmatpush3.bf16.msra.mxu1 %v14541_v43  ;;  %v12811_v11 = vpop.f32.mrb[171].mxu1  ;;  %v14551_v5 = vld [vmem:[%s19231_s0 + $0x370] sm:$0xff]   ;;  %v3767_v21 = vadd.f32 %v3765_v10, %v17281_v30 }
 0x29b   :  { %13207 = vmatpush3.bf16.msra.mxu0 %v14540_v14  ;;  %3788 = vrot.lane.b32.xlu0 %v3787_v24, %s14846_s25  ;;  %v12812_v17 = vadd.f32 %v12811_v11, %v12810_v0  ;;  %v14550_v14 = vld [vmem:[%s19231_s0 + $0x300] sm:$0xff]   ;;  %v14553_v6 = vld [vmem:[%s19231_s0 + $0x330] sm:$0xff]   ;;  %v14555_v11 = vld [vmem:[%s19231_s0 + $0x378] sm:$0xff]  }
 0x29c   :  { %13239 = vmatprep.subr.bf16.mxu1 %v14542_v22  ;;  %13269 = vmatprep.subr.bf16.mxu0 %v14543_v38  ;;  %v14552_v24 = vld [vmem:[%s19231_s0 + $0x2c0] sm:$0xff]  }
 0x29d   :  { %3782 = vrot.lane.b32.xlu1 %v3781_v9, %s14846_s25  ;;  %13825 = vmatmul.mubr.msk.bf16.gmra.mrb[0].mxu1 %vm563_vm1, %v17933_v61  ;;  %v14554_v9 = vld [vmem:[%s19231_s0 + $0x308] sm:$0xff]  }
 0x29e   :  { %8064 = vmatmul.mubr.bf16.vlgmr.msra.gmra.mrb[252].mxu0 %v17940_v25  ;;  %13240 = vmatpush3.bf16.msra.mxu1 %v14544_v37  ;;  %v17960_v37 = vld [vmem:[%s19232_s1 + $0x4c] ss:$28 sps:$4 sm:$0xff]  }
 0x29f   :  { %13270 = vmatpush3.bf16.msra.mxu0 %v14545_v26  ;;  %5226 = vrot.lane.b32.xlu0 %v5225_v12, %s14845_s21  ;;  %v12813_v22 = vpop.f32.mrb[172].mxu1 }
 0x2a0   :  { %v12841_v43 = vpop.f32.mrb[168].mxu0  ;;  %13241 = vmatprep.subr.bf16.mxu1 %v14546_v28  ;;  %13271 = vmatprep.subr.bf16.mxu0 %v14547_v63  ;;  %v12814_v26 = vpop.f32.mrb[173].mxu1 }
 0x2a1   :  { %v12842_v38 = vpop.f32.mrb[169].mxu0  ;;  %8071 = vmatprep.mubr.bf16.mxu0 %v17960_v37  ;;  %13828 = vmatprep.mubr.msk.bf16.mxu1 %vm14843_vm0, %v19262_v52  ;;  %v12815_v30 = vadd.f32 %v12814_v26, %v12813_v22  ;;  %v12816_v63 = vpop.f32.mrb[174].mxu1  ;;  %v14556_v22 = vld [vmem:[%s19231_s0 + $0x2c8] sm:$0xff]   ;;  %v14561_v26 = vld [vmem:[%s19231_s0 + $0x340] sm:$0xff]  }
 0x2a2   :  { %v12843_v0 = vadd.f32 %v12842_v38, %v12841_v43  ;;  %v12844_v28 = vpop.f32.mrb[170].mxu0  ;;  %13242 = vmatpush3.bf16.msra.mxu1 %v14548_v62  ;;  %v12817_v10 = vpop.f32.mrb[175].mxu1  ;;  %v14557_v38 = vld [vmem:[%s19231_s0 + $0x338] sm:$0xff]  }
 0x2a3   :  { %13272 = vmatpush3.bf16.msra.mxu0 %v14549_v20  ;;  %v12845_v12 = vpop.f32.mrb[171].mxu0  ;;  %3808 = vrot.lane.b32.xlu0 %v3767_v21, %s14847_s13  ;;  %v12818_v62 = vadd.f32 %v12817_v10, %v12816_v63  ;;  %v14562_v10 = vld [vmem:[%s19231_s0 + $0x318] sm:$0xff]  }
 0x2a4   :  { %v17975_v59 = vadd.f32 %v12843_v0, %v12809_v36  ;;  %v12846_v43 = vadd.f32 %v12845_v12, %v12844_v28  ;;  %13243 = vmatprep.subr.bf16.mxu1 %v14550_v14  ;;  %13273 = vmatprep.subr.bf16.mxu0 %v14551_v5  ;;  %v17990_v36 = vld [vmem:[%s19232_s1 + $0x48] ss:$28 sps:$4 sm:$0xff]   ;;  %v14558_v14 = vld [vmem:[%s19231_s0 + $0x310] sm:$0xff]  }
 0x2a5   :  { %13829 = vmatmul.mubr.msk.bf16.gmra.mrb[4].mxu1 %vm563_vm1, %v17666_v33  ;;  %v14559_v33 = vld [vmem:[%s19231_s0 + $0x380] sm:$0xff]  }
 0x2a6   :  { %v17985_v20 = vadd.f32 %v12846_v43, %v12812_v17  ;;  %8072 = vmatmul.mubr.bf16.gmra.mrb[0].mxu0 %v17990_v36  ;;  %13244 = vmatpush3.bf16.msra.mxu1 %v14552_v24  ;;  %v14560_v24 = vld [vmem:[%s19231_s0 + $0x2d0] sm:$0xff]   ;;  %v14563_v43 = vld [vmem:[%s19231_s0 + $0x388] sm:$0xff]  }
 0x2a7   :  { %13274 = vmatpush3.bf16.msra.mxu0 %v14553_v6  ;;  %13245 = vmatprep.subr.bf16.mxu1 %v14554_v9  ;;  %v12819_v5 = vpop.f32.mrb[176].mxu1 }
 0x2a8   :  { %v12847_v17 = vpop.f32.mrb[172].mxu0  ;;  %13275 = vmatprep.subr.bf16.mxu0 %v14555_v11  ;;  %8079 = vmatprep.mubr.bf16.mxu0 %v15222_v39  ;;  %v12820_v6 = vpop.f32.mrb[177].mxu1 }
 0x2a9   :  { %v12848_v21 = vpop.f32.mrb[173].mxu0  ;;  %8685 = vmatprep.mubr.bf16.mxu1 %v17685_v41  ;;  %v12821_v63 = vadd.f32 %v12820_v6, %v12819_v5  ;;  %v12822_v9 = vpop.f32.mrb[178].mxu1  ;;  %v14568_v5 = vld [vmem:[%s19231_s0 + $0x350] sm:$0xff]  }
 0x2aa   :  { %v12849_v0 = vadd.f32 %v12848_v21, %v12847_v17  ;;  %v12850_v28 = vpop.f32.mrb[174].mxu0  ;;  %13246 = vmatpush3.bf16.msra.mxu1 %v14556_v22  ;;  %v12823_v12 = vpop.f32.mrb[179].mxu1  ;;  %v14564_v22 = vld [vmem:[%s19231_s0 + $0x2d8] sm:$0xff]  }
 0x2ab   :  { %13276 = vmatpush3.bf16.msra.mxu0 %v14557_v38  ;;  %v12851_v11 = vpop.f32.mrb[175].mxu0  ;;  %13247 = vmatprep.subr.bf16.mxu1 %v14558_v14  ;;  %v14565_v14 = vld [vmem:[%s19231_s0 + $0x348] sm:$0xff]   ;;  %v14572_v9 = vld [vmem:[%s19231_s0 + $0x358] sm:$0xff]   ;;  %v18056_v12 = vpop.permute.xlu1 %2340 }
 0x2ac   :  { %v18013_v45 = vadd.f32 %v12849_v0, %v12815_v30  ;;  %v12852_v41 = vadd.f32 %v12851_v11, %v12850_v28  ;;  %13277 = vmatprep.subr.bf16.mxu0 %v14559_v33  ;;  %v14567_v30 = vld [vmem:[%s19231_s0 + $0x3e0] sm:$0xff]   ;;  %v14571_v0 = vld [vmem:[%s19231_s0 + $0x3e8] sm:$0xff]   ;;  %v14570_v28 = vld [vmem:[%s19231_s0 + $0x398] sm:$0xff]  }
 0x2ad   :  { %v14573_v11 = vld [vmem:[%s19231_s0 + $0x3a8] sm:$0xff]  }
 0x2ae   :  { %v18018_v38 = vadd.f32 %v12852_v41, %v12818_v62  ;;  %8080 = vmatmul.mubr.bf16.gmra.mrb[4].mxu0 %v15224_v40  ;;  %13248 = vmatpush3.bf16.msra.mxu1 %v14560_v24  ;;  %v14566_v62 = vld [vmem:[%s19231_s0 + $0x390] sm:$0xff]  }
 0x2af   :  { %13278 = vmatpush3.bf16.msra.mxu0 %v14561_v26  ;;  %13249 = vmatprep.subr.bf16.mxu1 %v14562_v10  ;;  %v14569_v26 = vld [vmem:[%s19231_s0 + $0x3a0] sm:$0xff]   ;;  %v14575_v10 = vld [vmem:[%s19231_s0 + $0x3b0] sm:$0xff]  }
 0x2b0   :  { %v12853_v33 = vpop.f32.mrb[176].mxu0  ;;  %13279 = vmatprep.subr.bf16.mxu0 %v14563_v43  ;;  %8741 = vmatprep.mubr.bf16.mxu0 %v17694_v35 }
 0x2b1   :  { %v12854_v17 = vpop.f32.mrb[177].mxu0 }
 0x2b2   :  { %v12855_v21 = vadd.f32 %v12854_v17, %v12853_v33  ;;  %13250 = vmatpush3.bf16.msra.mxu1 %v14564_v22  ;;  %v12856_v24 = vpop.f32.mrb[178].mxu0  ;;  %v14577_v22 = vld [vmem:[%s19231_s0 + $0x3f8] sm:$0xff]  }
 0x2b3   :  { %13280 = vmatpush3.bf16.msra.mxu0 %v14565_v14  ;;  %v12857_v6 = vpop.f32.mrb[179].mxu0  ;;  %13303 = vmatprep.subr.bf16.mxu1 %v14567_v30 }
 0x2b4   :  { %v18040_v35 = vadd.f32 %v12855_v21, %v12821_v63  ;;  %13281 = vmatprep.subr.bf16.mxu0 %v14566_v62  ;;  %v14574_v63 = vld [vmem:[%s19231_s0 + $0x3f0] sm:$0xff]  }
 0x2b5   :  { %8686 = vmatmul.mubr.bf16.vlgmr.msra.gmra.mrb[8].mxu1 %v17733_v16 }
 0x2b6   :  { %13304 = vmatpush3.bf16.msra.mxu1 %v14569_v26  ;;  %8693 = vmatprep.mubr.bf16.mxu1 %v17746_v53  ;;  %v14576_v53 = vld [vmem:[%s19231_s0 + $0x420] sm:$0xff]   ;;  %v14578_v26 = vld [vmem:[%s19231_s0 + $0x3b8] sm:$0xff]  }
 0x2b7   :  { %13282 = vmatpush3.bf16.msra.mxu0 %v14568_v5  ;;  %13305 = vmatprep.subr.bf16.mxu1 %v14571_v0 }
 0x2b8   :  { %v12875_v16 = vpop.f32.mrb[180].mxu1  ;;  %13283 = vmatprep.subr.bf16.mxu0 %v14570_v28  ;;  %v5919_v41 = vpop.f32.mrb[180].mxu0 }
 0x2b9   :  { %v12876_v43 = vpop.f32.mrb[181].mxu1  ;;  %v13750_v33 = vpop.f32.mrb[181].mxu0 }
 0x2ba   :  { %v12877_v14 = vadd.f32 %v12876_v43, %v12875_v16  ;;  %v12878_v30 = vpop.f32.mrb[182].mxu1  ;;  %13306 = vmatpush3.bf16.msra.mxu1 %v14573_v11  ;;  %v5922_v17 = vpop.f32.mrb[182].mxu0 }
 0x2bb   :  { %13284 = vmatpush3.bf16.msra.mxu0 %v14572_v9  ;;  %v12879_v62 = vpop.f32.mrb[183].mxu1  ;;  %13307 = vmatprep.subr.bf16.mxu1 %v14574_v63  ;;  %v13751_v24 = vpop.f32.mrb[183].mxu0 }
 0x2bc   :  { %v5864_v5 = vadd.f32 %v12877_v14, %v17975_v59  ;;  %v12880_v21 = vadd.f32 %v12879_v62, %v12878_v30  ;;  %13832 = vmatprep.subr.bf16.mxu0 %v19262_v52  ;;  %v14579_v59 = vld [vmem:[%s19231_s0 + $0x428] sm:$0xff]  }
 0x2bd   :  { %8694 = vmatmul.mubr.bf16.gmra.mrb[12].mxu1 %v17789_v50  ;;  %v14580_v50 = vld [vmem:[%s19231_s0 + $0x400] sm:$0xff]   ;;  %v14583_v14 = vld [vmem:[%s19231_s0 + $0x408] sm:$0xff]  }
 0x2be   :  { %v18073_v6 = vadd.f32 %v5919_v41, %v5864_v5  ;;  %v5867_v0 = vadd.f32 %v12880_v21, %v17985_v20  ;;  %8742 = vmatmul.mubr.bf16.vlgmr.msra.gmra.mrb[8].mxu0 %v17727_v54  ;;  %v18077_v28 = vpop.permute.xlu1 %1591  ;;  %13308 = vmatpush3.bf16.msra.mxu1 %v14575_v10  ;;  %v14584_v21 = vld [vmem:[%s19231_s0 + $0x3c8] sm:$0xff]  }
 0x2bf   :  { %13833 = vmatpush3.bf16.msra.mxu0 %v14576_v53  ;;  %v3043_v9 = vpop.permute.xlu0 %3042  ;;  %13309 = vmatprep.subr.bf16.mxu1 %v14577_v22  ;;  %v14582_v53 = vld [vmem:[%s19231_s0 + $0x430] sm:$0xff]  }
 0x2c0   :  { %v18085_v11 = vadd.f32 %v5922_v17, %v5867_v0  ;;  %v3045_v20 = vadd.f32 %v3043_v9, %v17478_v48  ;;  %v12881_v63 = vpop.f32.mrb[184].mxu1  ;;  %13834 = vmatprep.subr.bf16.mxu0 %v19262_v52  ;;  %8749 = vmatprep.mubr.bf16.mxu0 %v17757_v23  ;;  %v5927_v16 = vpop.f32.mrb[184].mxu0  ;;  %v14581_v48 = vld [vmem:[%s19231_s0 + $0x3c0] sm:$0xff]  }
 0x2c1   :  { %v12882_v54 = vpop.f32.mrb[185].mxu1  ;;  %8701 = vmatprep.mubr.bf16.mxu1 %v15063_v55  ;;  %v13754_v17 = vpop.f32.mrb[185].mxu0 }
 0x2c2   :  { %19271 = vst [vmem:[#allocation17_spill] sm:$0xff] %v18085_v11  ;;  %v12883_v10 = vadd.f32 %v12882_v54, %v12881_v63  ;;  %v18091_v43 = vpop.permute.xlu1 %3036  ;;  %3059 = vrot.lane.b32.xlu1 %v3045_v20, %s14848_s19  ;;  %v12884_v41 = vpop.f32.mrb[186].mxu1  ;;  %13310 = vmatpush3.bf16.msra.mxu1 %v14578_v26  ;;  %v14589_v17 = vld [vmem:[%s19231_s0 + $0x418] sm:$0xff]  }
 0x2c3   :  { %13835 = vmatpush3.bf16.msra.mxu0 %v14579_v59  ;;  %v4481_v23 = vpop.permute.xlu0 %4480  ;;  %v12885_v22 = vpop.f32.mrb[187].mxu1  ;;  %13311 = vmatprep.subr.bf16.mxu1 %v14580_v50  ;;  %v14585_v50 = vld [vmem:[%s19231_s0 + $0x438] sm:$0xff]  }
 0x2c4   :  { %v18104_v30 = vadd.f32 %v4481_v23, %v17470_v44  ;;  %v12886_v33 = vadd.f32 %v12885_v22, %v12884_v41  ;;  %v5872_v62 = vadd.f32 %v12883_v10, %v18013_v45  ;;  %13836 = vmatprep.subr.bf16.mxu0 %v19262_v52  ;;  %v5930_v5 = vpop.f32.mrb[186].mxu0  ;;  %v14588_v22 = vld [vmem:[%s19231_s0 + $0x440] sm:$0xff]  }
 0x2c5   :  { %8702 = vmatmul.mubr.bf16.gmra.mrb[16].mxu1 %v15067_v57  ;;  %v13755_v0 = vpop.f32.mrb[187].mxu0 }
 0x2c6   :  { %v4509_v24 = vrot.slane %v18104_v30, 4  ;;  %v18113_v26 = vadd.f32 %v5927_v16, %v5872_v62  ;;  %8750 = vmatmul.mubr.bf16.gmra.mrb[12].mxu0 %v17778_v29  ;;  %v4475_v44 = vpop.permute.xlu1 %4474  ;;  %13312 = vmatpush3.bf16.msra.mxu1 %v14581_v48  ;;  %v5875_v45 = vadd.f32 %v12886_v33, %v18018_v38  ;;  %v14586_v38 = vld [vmem:[%s19231_s0 + $0x410] sm:$0xff]  }
 0x2c7   :  { %v18118_v59 = vadd.f32 %v4475_v44, %v17460_v19  ;;  %13837 = vmatpush3.bf16.msra.mxu0 %v14582_v53  ;;  %v1597_v9 = vpop.permute.xlu0 %1596  ;;  %13313 = vmatprep.subr.bf16.mxu1 %v14583_v14  ;;  %v18135_v16 = vld [vmem:[%s19232_s1 + $0x14] ss:$28 sps:$4 sm:$0xff]  }
 0x2c8   :  { %19272 = vst [vmem:[#allocation18_spill] sm:$0xff] %v18113_v26  ;;  %v18123_v20 = vadd.f32 %v5930_v5, %v5875_v45  ;;  %4510 = vrot.lane.b32.xlu0 %v4509_v24, %s14846_s25  ;;  %v12887_v29 = vpop.f32.mrb[188].mxu1  ;;  %13838 = vmatprep.subr.bf16.mxu0 %v19262_v52  ;;  %v5935_v54 = vpop.f32.mrb[188].mxu0  ;;  %v14587_v48 = vld [vmem:[%s19231_s0 + $0x3d0] sm:$0xff]   ;;  %v14591_v24 = vld [vmem:[%s19231_s0 + $0x448] sm:$0xff]  }
 0x2c9   :  { %19273 = vst [vmem:[#allocation19_spill] sm:$0xff] %v18118_v59  ;;  %v4503_v19 = vrot.slane %v18118_v59, 4  ;;  %v12888_v63 = vpop.f32.mrb[189].mxu1  ;;  %8757 = vmatprep.mubr.bf16.mxu0 %v15065_v56  ;;  %8797 = vmatprep.mubr.bf16.mxu1 %v18135_v16  ;;  %v13758_v5 = vpop.f32.mrb[189].mxu0 }
 0x2ca   :  { %v12889_v10 = vadd.f32 %v12888_v63, %v12887_v29  ;;  %v18138_v41 = vpop.permute.xlu1 %3048  ;;  %13314 = vmatpush3.bf16.msra.mxu1 %v14584_v21  ;;  %v12890_v53 = vpop.f32.mrb[190].mxu1  ;;  %v14590_v21 = vld [vmem:[%s19231_s0 + $0x3d8] sm:$0xff]   ;;  %v1583_v29 = vadd.f32 %v17492_v31, %v16898_v18  ;;  %v14603_v5 = vld [vmem:[%s19231_s0 + $0x348] sm:$0xff]  }
 0x2cb   :  { %13839 = vmatpush3.bf16.msra.mxu0 %v14585_v50  ;;  %4504 = vrot.lane.b32.xlu1 %v4503_v19, %s14846_s25  ;;  %v3055_v23 = vpop.permute.xlu0 %3054  ;;  %v12891_v14 = vpop.f32.mrb[191].mxu1  ;;  %v14592_v50 = vld [vmem:[%s19231_s0 + $0x2f8] sm:$0xff]   ;;  %v14596_v53 = vld [vmem:[%s19231_s0 + $0x300] sm:$0xff]  }
 0x2cc   :  { %v3057_v33 = vadd.f32 %v3055_v23, %v17535_v32  ;;  %v5880_v62 = vadd.f32 %v12889_v10, %v18040_v35  ;;  %13315 = vmatprep.subr.bf16.mxu1 %v14586_v38  ;;  %13840 = vmatprep.subr.bf16.mxu0 %v19262_v52  ;;  %v5938_v44 = vpop.f32.mrb[190].mxu0  ;;  %v5948_v32 = vrot.slane %v18085_v11, 2  ;;  %v5954_v38 = vrot.slane %v18113_v26, 2  ;;  %v14593_v19 = vld [vmem:[%s19231_s0 + $0x378] sm:$0xff]   ;;  %v14600_v14 = vld [vmem:[%s19231_s0 + $0x308] sm:$0xff]  }
 0x2cd   :  { %v13759_v0 = vpop.f32.mrb[191].mxu0  ;;  %v14594_v63 = vld [vmem:[%s19231_s0 + $0x2b8] sm:$0xff]  }
 0x2ce   :  { %v18160_v35 = vadd.f32 %v5935_v54, %v5880_v62  ;;  %8758 = vmatmul.mubr.bf16.gmra.mrb[16].mxu0 %v15069_v58  ;;  %v4487_v45 = vpop.permute.xlu1 %4486  ;;  %3064 = vrot.lane.b32.xlu0 %v3057_v33, %s14848_s19  ;;  %v1599_v54 = vadd.f32 %v1597_v9, %v1583_v29  ;;  %v14595_v10 = vld [vmem:[%s19231_s0 + $0x338] sm:$0xff]  }
 0x2cf   :  { %13316 = vmatpush3.bf16.msra.mxu1 %v14587_v48  ;;  %13841 = vmatpush3.bf16.msra.mxu0 %v14588_v22  ;;  %v18181_v18 = vadd.f32 %v4487_v45, %v17506_v46  ;;  %v14597_v46 = vld [vmem:[%s19231_s0 + $0x380] sm:$0xff]   ;;  %v14604_v45 = vld [vmem:[%s19231_s0 + $0x310] sm:$0xff]  }
 0x2d0   :  { %19274 = vst [vmem:[#allocation20_spill] sm:$0xff] %v18160_v35  ;;  %5949 = vrot.lane.b32.xlu1 %v5948_v32, %s14845_s21  ;;  %13317 = vmatprep.subr.bf16.mxu1 %v14589_v17  ;;  %v14599_v22 = vld [vmem:[%s19231_s0 + $0x340] sm:$0xff]   ;;  %v14602_v17 = vld [vmem:[%s19231_s0 + $0x2c8] sm:$0xff]  }
 0x2d1   :  { %13842 = vmatprep.subr.bf16.mxu0 %v19262_v52  ;;  %13844 = vmatprep.mubr.msk.bf16.mxu0 %vm14843_vm0, %v19262_v52  ;;  %19275 = vst [vmem:[#allocation21_spill] sm:$0xff] %v18181_v18  ;;  %v4515_v23 = vrot.slane %v18181_v18, 4 }
 0x2d2   :  { %v4493_v31 = vpop.permute.xlu1 %4492  ;;  %5955 = vrot.lane.b32.xlu0 %v5954_v38, %s14845_s21 }
 0x2d3   :  { %v18188_v48 = vadd.f32 %v4493_v31, %v17514_v13  ;;  %13318 = vmatpush3.bf16.msra.mxu1 %v14590_v21  ;;  %13843 = vmatpush3.bf16.msra.mxu0 %v14591_v24  ;;  %v14598_v13 = vld [vmem:[%s19231_s0 + $0x2c0] sm:$0xff]   ;;  %v5960_v21 = vrot.slane %v18123_v20, 2  ;;  %v14606_v31 = vld [vmem:[%s19231_s0 + $0x2d0] sm:$0xff]  }
 0x2d4   :  { %1601 = vrot.lane.b32.xlu1 %v1599_v54, %s14849_s28  ;;  %13346 = vmatprep.subr.bf16.mxu0 %v14592_v50 }
 0x2d5   :  { %v4521_v9 = vrot.slane %v18188_v48, 4  ;;  %13380 = vmatprep.subr.bf16.mxu1 %v14593_v19 }
 0x2d6   :  { %8798 = vmatmul.mubr.bf16.vlgmr.msra.gmra.mrb[20].mxu1 %v17940_v25  ;;  %13845 = vmatmul.mubr.msk.bf16.vlgmr.msra.gmra.mrb[20].mxu0 %vm563_vm1, %v17878_v3  ;;  %v14601_v25 = vld [vmem:[%s19231_s0 + $0x388] sm:$0xff]  }
 0x2d7   :  { %13347 = vmatpush3.bf16.msra.mxu0 %v14594_v63  ;;  %13381 = vmatpush3.bf16.msra.mxu1 %v14595_v10  ;;  %v14607_v10 = vld [vmem:[%s19231_s0 + $0x350] sm:$0xff]  }
 0x2d8   :  { %4516 = vrot.lane.b32.xlu1 %v4515_v23, %s14846_s25  ;;  %4522 = vrot.lane.b32.xlu0 %v4521_v9, %s14846_s25  ;;  %v12952_v33 = vpop.f32.mrb[192].mxu1  ;;  %v12918_v3 = vpop.f32.mrb[192].mxu0  ;;  %v14610_v23 = vld [vmem:[%s19231_s0 + $0x2d8] sm:$0xff]  }
 0x2d9   :  { %v12953_v62 = vpop.f32.mrb[193].mxu1  ;;  %13348 = vmatprep.subr.bf16.mxu0 %v14596_v53  ;;  %13382 = vmatprep.subr.bf16.mxu1 %v14597_v46  ;;  %v12919_v24 = vpop.f32.mrb[193].mxu0  ;;  %v14608_v46 = vld [vmem:[%s19231_s0 + $0x318] sm:$0xff]  }
 0x2da   :  { %v12954_v44 = vadd.f32 %v12953_v62, %v12952_v33  ;;  %v12955_v32 = vpop.f32.mrb[194].mxu1  ;;  %8805 = vmatprep.mubr.bf16.mxu1 %v17960_v37  ;;  %13848 = vmatprep.mubr.msk.bf16.mxu0 %vm14843_vm0, %v19262_v52  ;;  %v12920_v0 = vadd.f32 %v12919_v24, %v12918_v3  ;;  %v12921_v50 = vpop.f32.mrb[194].mxu0  ;;  %v14605_v37 = vld [vmem:[%s19231_s0 + $0x390] sm:$0xff]   ;;  %v14612_v3 = vld [vmem:[%s19231_s0 + $0x320] sm:$0xff]  }
 0x2db   :  { %13349 = vmatpush3.bf16.msra.mxu0 %v14598_v13  ;;  %13383 = vmatpush3.bf16.msra.mxu1 %v14599_v22  ;;  %v12956_v29 = vpop.f32.mrb[195].mxu1  ;;  %v12922_v38 = vpop.f32.mrb[195].mxu0  ;;  %v14611_v22 = vld [vmem:[%s19231_s0 + $0x358] sm:$0xff]  }
 0x2dc   :  { %5961 = vrot.lane.b32.xlu1 %v5960_v21, %s14845_s21  ;;  %v12957_v19 = vadd.f32 %v12956_v29, %v12955_v32  ;;  %13350 = vmatprep.subr.bf16.mxu0 %v14600_v14  ;;  %v18233_v63 = vadd.f32 %v12954_v44, %v12920_v0  ;;  %v12923_v54 = vadd.f32 %v12922_v38, %v12921_v50  ;;  %v14613_v44 = vld [vmem:[%s19231_s0 + $0x3a0] sm:$0xff]   ;;  %v18276_v50 = vld [vmem:[%s19232_s1 + $0x88] ss:$0 sps:$4 sm:$0x33]  }
 0x2dd   :  { %13384 = vmatprep.subr.bf16.mxu1 %v14601_v25  ;;  %v14614_v0 = vld [vmem:[%s19231_s0 + $0x2e0] sm:$0xff]  }
 0x2de   :  { %8806 = vmatmul.mubr.bf16.gmra.mrb[24].mxu1 %v17990_v36  ;;  %13849 = vmatmul.mubr.msk.bf16.gmra.mrb[24].mxu0 %vm563_vm1, %v17933_v61  ;;  %v18244_v53 = vadd.f32 %v12957_v19, %v12923_v54  ;;  %v14609_v36 = vld [vmem:[%s19231_s0 + $0x398] sm:$0xff]   ;;  %v14615_v29 = vld [vmem:[%s19231_s0 + $0x360] sm:$0xff]   ;;  %v14616_v19 = vld [vmem:[%s19231_s0 + $0x328] sm:$0xff]  }
 0x2df   :  { %13351 = vmatpush3.bf16.msra.mxu0 %v14602_v17  ;;  %13385 = vmatpush3.bf16.msra.mxu1 %v14603_v5  ;;  %v14617_v54 = vld [vmem:[%s19231_s0 + $0x3a8] sm:$0xff]  }
 0x2e0   :  { %v12958_v9 = vpop.f32.mrb[196].mxu1  ;;  %13352 = vmatprep.subr.bf16.mxu0 %v14604_v45  ;;  %13386 = vmatprep.subr.bf16.mxu1 %v14605_v37  ;;  %v12924_v61 = vpop.f32.mrb[196].mxu0 }
 0x2e1   :  { %v12959_v13 = vpop.f32.mrb[197].mxu1  ;;  %8813 = vmatprep.mubr.bf16.mxu1 %v15222_v39  ;;  %13852 = vmatprep.mubr.msk.bf16.mxu0 %vm14843_vm0, %v19262_v52  ;;  %v12925_v14 = vpop.f32.mrb[197].mxu0 }
 0x2e2   :  { %v12960_v33 = vadd.f32 %v12959_v13, %v12958_v9  ;;  %v12961_v25 = vpop.f32.mrb[198].mxu1  ;;  %v12926_v62 = vadd.f32 %v12925_v14, %v12924_v61  ;;  %v12927_v17 = vpop.f32.mrb[198].mxu0  ;;  %v18297_v9 = vld [vmem:[%s19232_s1 + $0x4] ss:$28 sps:$4 sm:$0xff]  }
 0x2e3   :  { %13353 = vmatpush3.bf16.msra.mxu0 %v14606_v31  ;;  %13387 = vmatpush3.bf16.msra.mxu1 %v14607_v10  ;;  %v12962_v5 = vpop.f32.mrb[199].mxu1  ;;  %v12928_v21 = vpop.f32.mrb[199].mxu0 }
 0x2e4   :  { %v12963_v24 = vadd.f32 %v12962_v5, %v12961_v25  ;;  %13354 = vmatprep.subr.bf16.mxu0 %v14608_v46  ;;  %13388 = vmatprep.subr.bf16.mxu1 %v14609_v36  ;;  %v18267_v32 = vadd.f32 %v12960_v33, %v12926_v62  ;;  %v12929_v45 = vadd.f32 %v12928_v21, %v12927_v17  ;;  %v14618_v46 = vld [vmem:[%s19231_s0 + $0x2e8] sm:$0xff]   ;;  %v14620_v25 = vld [vmem:[%s19231_s0 + $0x330] sm:$0xff]  }
 0x2e5   :  { %v18303_v36 = vld [vmem:[%s19232_s1 + $0xc] ss:$28 sps:$4 sm:$0xff]   ;;  %v14621_v62 = vld [vmem:[%s19231_s0 + $0x3b0] sm:$0xff]  }
 0x2e6   :  { %8814 = vmatmul.mubr.bf16.gmra.mrb[28].mxu1 %v15224_v40  ;;  %13853 = vmatmul.mubr.msk.bf16.gmra.mrb[28].mxu0 %vm563_vm1, %v18276_v50  ;;  %v18283_v38 = vadd.f32 %v12963_v24, %v12929_v45  ;;  %v14619_v33 = vld [vmem:[%s19231_s0 + $0x368] sm:$0xff]   ;;  %v14622_v21 = vld [vmem:[%s19231_s0 + $0x2f0] sm:$0xff]   ;;  %v14624_v45 = vld [vmem:[%s19231_s0 + $0x3f8] sm:$0xff]  }
 0x2e7   :  { %13355 = vmatpush3.bf16.msra.mxu0 %v14610_v23  ;;  %13389 = vmatpush3.bf16.msra.mxu1 %v14611_v22  ;;  %v14623_v24 = vld [vmem:[%s19231_s0 + $0x370] sm:$0xff]  }
 0x2e8   :  { %v12964_v37 = vpop.f32.mrb[200].mxu1  ;;  %13356 = vmatprep.subr.bf16.mxu0 %v14612_v3  ;;  %13390 = vmatprep.subr.bf16.mxu1 %v14613_v44 }
 0x2e9   :  { %v12930_v31 = vpop.f32.mrb[200].mxu0  ;;  %v12965_v10 = vpop.f32.mrb[201].mxu1  ;;  %9419 = vmatprep.mubr.bf16.mxu0 %v18297_v9  ;;  %9475 = vmatprep.mubr.bf16.mxu1 %v18303_v36 }
 0x2ea   :  { %v12931_v61 = vpop.f32.mrb[201].mxu0  ;;  %v12966_v13 = vadd.f32 %v12965_v10, %v12964_v37  ;;  %v12967_v23 = vpop.f32.mrb[202].mxu1  ;;  %v18339_v10 = vld [vmem:[%s19232_s1] ss:$28 sps:$4 sm:$0xff]  }
 0x2eb   :  { %v12932_v22 = vadd.f32 %v12931_v61, %v12930_v31  ;;  %13357 = vmatpush3.bf16.msra.mxu0 %v14614_v0  ;;  %13391 = vmatpush3.bf16.msra.mxu1 %v14615_v29  ;;  %v12968_v14 = vpop.f32.mrb[203].mxu1  ;;  %v12933_v3 = vpop.f32.mrb[202].mxu0  ;;  %v14627_v31 = vld [vmem:[%s19231_s0 + $0x400] sm:$0xff]  }
 0x2ec   :  { %13358 = vmatprep.subr.bf16.mxu0 %v14616_v19  ;;  %13392 = vmatprep.subr.bf16.mxu1 %v14617_v54  ;;  %v12934_v17 = vpop.f32.mrb[203].mxu0  ;;  %v14625_v19 = vld [vmem:[%s19231_s0 + $0x3b8] sm:$0xff]   ;;  %v14628_v61 = vld [vmem:[%s19231_s0 + $0x3c0] sm:$0xff]  }
 0x2ed   :  { %v18315_v5 = vadd.f32 %v12966_v13, %v12932_v22  ;;  %v14626_v54 = vld [vmem:[%s19231_s0 + $0x438] sm:$0xff]   ;;  %v18351_v13 = vpop.permute.xlu0 %3074  ;;  %v14629_v23 = vld [vmem:[%s19231_s0 + $0x440] sm:$0xff]   ;;  %v14630_v22 = vld [vmem:[%s19231_s0 + $0x408] sm:$0xff]  }
 0x2ee   :  { %v18371_v3 = vld [vmem:[%s19232_s1 + $0x44] ss:$28 sps:$4 sm:$0xff]   ;;  %v14632_v17 = vld [vmem:[%s19231_s0 + $0x448] sm:$0xff]  }
 0x2ef   :  { %13359 = vmatpush3.bf16.msra.mxu0 %v14618_v46  ;;  %13393 = vmatpush3.bf16.msra.mxu1 %v14619_v33  ;;  %v18345_v46 = vld [vmem:[%s19232_s1 + $0x8] ss:$28 sps:$4 sm:$0xff]  }
 0x2f0   :  { %v6653_v44 = vpop.f32.mrb[204].mxu1  ;;  %13360 = vmatprep.subr.bf16.mxu0 %v14620_v25  ;;  %13394 = vmatprep.subr.bf16.mxu1 %v14621_v62  ;;  %v18365_v25 = vld [vmem:[%s19232_s1 + $0x3c] ss:$28 sps:$4 sm:$0xff]   ;;  %v14631_v62 = vld [vmem:[%s19231_s0 + $0x3c8] sm:$0xff]  }
 0x2f1   :  { %v13774_v0 = vpop.f32.mrb[205].mxu1  ;;  %v18386_v59 = vpop.permute.xlu0 %4498 }
 0x2f2   :  { %v6656_v29 = vpop.f32.mrb[206].mxu1 }
 0x2f3   :  { %13361 = vmatpush3.bf16.msra.mxu0 %v14622_v21  ;;  %13395 = vmatpush3.bf16.msra.mxu1 %v14623_v24  ;;  %v13775_v37 = vpop.f32.mrb[207].mxu1 }
 0x2f4   :  { %13414 = vmatprep.subr.bf16.mxu0 %v14624_v45  ;;  %13856 = vmatprep.subr.bf16.mxu1 %v19262_v52 }
 0x2f6   :  { %9420 = vmatmul.mubr.bf16.vlgmr.msra.gmra.mrb[32].mxu0 %v18339_v10  ;;  %9476 = vmatmul.mubr.bf16.vlgmr.msra.gmra.mrb[32].mxu1 %v18345_v46 }
 0x2f7   :  { %13415 = vmatpush3.bf16.msra.mxu0 %v14625_v19  ;;  %13857 = vmatpush3.bf16.msra.mxu1 %v14626_v54 }
 0x2f8   :  { %13416 = vmatprep.subr.bf16.mxu0 %v14627_v31  ;;  %13858 = vmatprep.subr.bf16.mxu1 %v19262_v52  ;;  %v18360_v14 = vpop.f32.mrb[208].mxu1  ;;  %v14633_v31 = vld [vmem:[%s19231_s0 + $0x410] sm:$0xff]  }
 0x2f9   :  { %v12986_v33 = vpop.f32.mrb[204].mxu0  ;;  %9427 = vmatprep.mubr.bf16.mxu0 %v18365_v25  ;;  %9483 = vmatprep.mubr.bf16.mxu1 %v18371_v3  ;;  %v13778_v21 = vpop.f32.mrb[209].mxu1 }
 0x2fa   :  { %v12987_v24 = vpop.f32.mrb[205].mxu0  ;;  %v18380_v45 = vpop.f32.mrb[210].mxu1 }
 0x2fb   :  { %v12988_v0 = vadd.f32 %v12987_v24, %v12986_v33  ;;  %v12989_v19 = vpop.f32.mrb[206].mxu0  ;;  %13417 = vmatpush3.bf16.msra.mxu0 %v14628_v61  ;;  %13859 = vmatpush3.bf16.msra.mxu1 %v14629_v23  ;;  %v13779_v37 = vpop.f32.mrb[211].mxu1  ;;  %v18392_v33 = vld [vmem:[%s19232_s1 + $0x38] ss:$28 sps:$4 sm:$0xff]   ;;  %v18398_v61 = vld [vmem:[%s19232_s1 + $0x40] ss:$28 sps:$4 sm:$0xff]  }
 0x2fc   :  { %v12990_v54 = vpop.f32.mrb[207].mxu0  ;;  %13418 = vmatprep.subr.bf16.mxu0 %v14630_v22  ;;  %13860 = vmatprep.subr.bf16.mxu1 %v19262_v52 }
 0x2fd   :  { %v6598_v21 = vadd.f32 %v12988_v0, %v18233_v63  ;;  %v12991_v35 = vadd.f32 %v12990_v54, %v12989_v19  ;;  %v14634_v63 = vld [vmem:[%s19231_s0 + $0x3d0] sm:$0xff]   ;;  %v14636_v19 = vld [vmem:[%s19231_s0 + $0x418] sm:$0xff]  }
 0x2fe   :  { %9428 = vmatmul.mubr.bf16.gmra.mrb[36].mxu0 %v18392_v33  ;;  %9484 = vmatmul.mubr.bf16.gmra.mrb[36].mxu1 %v18398_v61  ;;  %v18401_v23 = vpop.permute.xlu1 %3770  ;;  %v14635_v0 = vld [vmem:[%s19231_s0 + $0x450] sm:$0xff]  }
 0x2ff   :  { %v18406_v22 = vadd.f32 %v6653_v44, %v6598_v21  ;;  %v6601_v24 = vadd.f32 %v12991_v35, %v18244_v53  ;;  %13419 = vmatpush3.bf16.msra.mxu0 %v14631_v62  ;;  %13861 = vmatpush3.bf16.msra.mxu1 %v14632_v17  ;;  %v14637_v35 = vld [vmem:[%s19231_s0 + $0x3d8] sm:$0xff]  }
 0x300   :  { %13420 = vmatprep.subr.bf16.mxu0 %v14633_v31  ;;  %13862 = vmatprep.subr.bf16.mxu1 %v19262_v52  ;;  %v18416_v37 = vpop.f32.mrb[212].mxu1 }
 0x301   :  { %19276 = vst [vmem:[#allocation22_spill] sm:$0xff] %v18406_v22  ;;  %v18418_v54 = vadd.f32 %v6656_v29, %v6601_v24  ;;  %v12992_v44 = vpop.f32.mrb[208].mxu0  ;;  %v18420_v21 = vpop.permute.xlu0 %2325  ;;  %9435 = vmatprep.mubr.bf16.mxu0 %v15063_v55  ;;  %9491 = vmatprep.mubr.bf16.mxu1 %v15065_v56  ;;  %v14638_v29 = vld [vmem:[%s19231_s0 + $0x458] sm:$0xff]   ;;  %v14639_v24 = vld [vmem:[%s19231_s0 + $0x420] sm:$0xff]   ;;  %v832_v22 = vadd.f32 %v17146_v2, %v16556_v42 }
 0x302   :  { %v12993_v53 = vpop.f32.mrb[209].mxu0  ;;  %v13782_v62 = vpop.f32.mrb[213].mxu1  ;;  %v14641_v2 = vld [vmem:[%s19231_s0 + $0x460] sm:$0xff]  }
 0x303   :  { %v12994_v17 = vadd.f32 %v12993_v53, %v12992_v44  ;;  %v12995_v31 = vpop.f32.mrb[210].mxu0  ;;  %13421 = vmatpush3.bf16.msra.mxu0 %v14634_v63  ;;  %13863 = vmatpush3.bf16.msra.mxu1 %v14635_v0  ;;  %v18427_v11 = vpop.permute.xlu1 %5214  ;;  %v855_v26 = vadd.f32 %v17765_v4, %v832_v22  ;;  %v14642_v4 = vld [vmem:[%s19231_s0 + $0x428] sm:$0xff]  }
 0x304   :  { %19277 = vst [vmem:[#allocation23_spill] sm:$0xff] %v18427_v11  ;;  %v12996_v18 = vpop.f32.mrb[211].mxu0  ;;  %13422 = vmatprep.subr.bf16.mxu0 %v14636_v19  ;;  %13864 = vmatprep.subr.bf16.mxu1 %v19262_v52  ;;  %v6672_v44 = vpop.f32.mrb[214].mxu1  ;;  %v14640_v11 = vld [vmem:[%s19231_s0 + $0x3e0] sm:$0xff]  }
 0x305   :  { %v6606_v63 = vadd.f32 %v12994_v17, %v18267_v32  ;;  %v12997_v0 = vadd.f32 %v12996_v18, %v12995_v31  ;;  %v3777_v53 = vpop.permute.xlu0 %3776  ;;  %v13783_v62 = vpop.f32.mrb[215].mxu1 }
 0x306   :  { %9436 = vmatmul.mubr.bf16.gmra.mrb[40].mxu0 %v15067_v57  ;;  %9492 = vmatmul.mubr.bf16.gmra.mrb[40].mxu1 %v15069_v58  ;;  %v3779_v42 = vadd.f32 %v3777_v53, %v17826_v7  ;;  %v14643_v7 = vld [vmem:[%s19231_s0 + $0x310] sm:$0xff]  }
 0x307   :  { %v18450_v18 = vadd.f32 %v18360_v14, %v6606_v63  ;;  %v6609_v32 = vadd.f32 %v12997_v0, %v18283_v38  ;;  %13423 = vmatpush3.bf16.msra.mxu0 %v14637_v35  ;;  %13865 = vmatpush3.bf16.msra.mxu1 %v14638_v29  ;;  %v863_v19 = vpop.permute.xlu1 %862  ;;  %v2317_v35 = vadd.f32 %v17856_v8, %v17243_v34  ;;  %v14645_v63 = vld [vmem:[%s19231_s0 + $0x2d0] sm:$0xff]  }
 0x308   :  { %v865_v22 = vadd.f32 %v863_v19, %v855_v26  ;;  %3793 = vrot.lane.b32.xlu1 %v3779_v42, %s14848_s19  ;;  %13424 = vmatprep.subr.bf16.mxu0 %v14639_v24  ;;  %v14644_v26 = vld [vmem:[%s19231_s0 + $0x3e8] sm:$0xff]   ;;  %v14646_v0 = vld [vmem:[%s19231_s0 + $0x430] sm:$0xff]   ;;  %v14650_v19 = vld [vmem:[%s19231_s0 + $0x320] sm:$0xff]  }
 0x309   :  { %v18461_v14 = vadd.f32 %v18380_v45, %v6609_v32  ;;  %v12998_v17 = vpop.f32.mrb[212].mxu0  ;;  %13866 = vmatprep.subr.bf16.mxu1 %v19262_v52  ;;  %v18464_v38 = vpop.permute.xlu0 %5220  ;;  %13868 = vmatprep.mubr.msk.bf16.mxu1 %vm14843_vm0, %v19262_v52  ;;  %v6682_v45 = vrot.slane %v18418_v54, 2  ;;  %v14648_v42 = vld [vmem:[%s19231_s0 + $0x3f0] sm:$0xff]  }
 0x30a   :  { %v870_v31 = vadd.f32 %v17438_v60, %v865_v22  ;;  %v12999_v29 = vpop.f32.mrb[213].mxu0  ;;  %9531 = vmatprep.mubr.bf16.mxu0 %v18135_v16 }
 0x30b   :  { %v13000_v24 = vadd.f32 %v12999_v29, %v12998_v17  ;;  %13425 = vmatpush3.bf16.msra.mxu0 %v14640_v11  ;;  %13867 = vmatpush3.bf16.msra.mxu1 %v14641_v2  ;;  %v2331_v44 = vpop.permute.xlu1 %2330  ;;  %v13001_v34 = vpop.f32.mrb[214].mxu0  ;;  %v14647_v11 = vld [vmem:[%s19231_s0 + $0x318] sm:$0xff]   ;;  %v14654_v29 = vld [vmem:[%s19231_s0 + $0x328] sm:$0xff]  }
 0x30c   :  { %v876_v60 = vadd.f32 %v16565_v1, %v870_v31  ;;  %v2333_v8 = vadd.f32 %v2331_v44, %v2317_v35  ;;  %6683 = vrot.lane.b32.xlu1 %v6682_v45, %s14845_s21  ;;  %13426 = vmatprep.subr.bf16.mxu0 %v14642_v4  ;;  %v13002_v16 = vpop.f32.mrb[215].mxu0  ;;  %v18494_v2 = vld [vmem:[%s19232_s1 + $0x18] ss:$28 sps:$4 sm:$0xff]   ;;  %v18537_v34 = vld [vmem:[%s19232_s1 + $0x10] ss:$28 sps:$4 sm:$0xff]  }
 0x30d   :  { %v6614_v53 = vadd.f32 %v13000_v24, %v18315_v5  ;;  %13457 = vmatprep.subr.bf16.mxu1 %v14643_v7  ;;  %v3789_v62 = vpop.permute.xlu0 %3788  ;;  %v14649_v5 = vld [vmem:[%s19231_s0 + $0x2d8] sm:$0xff]   ;;  %v14651_v7 = vld [vmem:[%s19231_s0 + $0x390] sm:$0xff]   ;;  %v6688_v24 = vrot.slane %v18450_v18, 2  ;;  %v6694_v16 = vrot.slane %v18461_v14, 2 }
 0x30e   :  { %14700 = vtanh.f32 %v876_v60  ;;  %13869 = vmatmul.mubr.msk.bf16.vlgmr.msra.gmra.mrb[44].mxu1 %vm563_vm1, %v18494_v2  ;;  %2335 = vrot.lane.b32.xlu0 %v2333_v8, %s14849_s28  ;;  %v3791_v4 = vadd.f32 %v3789_v62, %v17891_v51  ;;  %v14653_v51 = vld [vmem:[%s19231_s0 + $0x350] sm:$0xff]   ;;  %v14655_v44 = vld [vmem:[%s19231_s0 + $0x398] sm:$0xff]   ;;  %v14659_v8 = vld [vmem:[%s19231_s0 + $0x3a0] sm:$0xff]  }
 0x30f   :  { %v18503_v32 = vadd.f32 %v18416_v37, %v6614_v53  ;;  %13427 = vmatpush3.bf16.msra.mxu0 %v14644_v26  ;;  %13458 = vmatpush3.bf16.msra.mxu1 %v14645_v63  ;;  %v14652_v37 = vld [vmem:[%s19231_s0 + $0x2e0] sm:$0xff]   ;;  %v14656_v63 = vld [vmem:[%s19231_s0 + $0x2e8] sm:$0xff]   ;;  %v14658_v60 = vld [vmem:[%s19231_s0 + $0x330] sm:$0xff]  }
 0x310   :  { %v13029_v22 = vpop.f32.mrb[216].mxu1  ;;  %13428 = vmatprep.subr.bf16.mxu0 %v14646_v0  ;;  %13459 = vmatprep.subr.bf16.mxu1 %v14647_v11  ;;  %v14657_v0 = vld [vmem:[%s19231_s0 + $0x358] sm:$0xff]  }
 0x311   :  { %19278 = vst [vmem:[#allocation24_spill] sm:$0xff] %v18503_v32  ;;  %v13030_v17 = vpop.f32.mrb[217].mxu1  ;;  %13872 = vmatprep.mubr.msk.bf16.mxu1 %vm14843_vm0, %v19262_v52 }
 0x312   :  { %v13031_v26 = vadd.f32 %v13030_v17, %v13029_v22  ;;  %v13032_v35 = vpop.f32.mrb[218].mxu1  ;;  %3798 = vrot.lane.b32.xlu0 %v3791_v4, %s14848_s19  ;;  %v14661_v4 = vld [vmem:[%s19231_s0 + $0x360] sm:$0xff]  }
 0x313   :  { %13429 = vmatpush3.bf16.msra.mxu0 %v14648_v42  ;;  %13460 = vmatpush3.bf16.msra.mxu1 %v14649_v5  ;;  %v13033_v31 = vpop.f32.mrb[219].mxu1  ;;  %v18552_v42 = vld [vmem:[%s19232_s1 + $0x50] ss:$28 sps:$4 sm:$0xff]  }
 0x314   :  { %v13034_v45 = vadd.f32 %v13033_v31, %v13032_v35  ;;  %13461 = vmatprep.subr.bf16.mxu1 %v14650_v19  ;;  %13491 = vmatprep.subr.bf16.mxu0 %v14651_v7  ;;  %v18559_v5 = vld [vmem:[%s19232_s1 + $0x4c] ss:$28 sps:$4 sm:$0xff]   ;;  %v14660_v19 = vld [vmem:[%s19231_s0 + $0x2f0] sm:$0xff]   ;;  %v14662_v35 = vld [vmem:[%s19231_s0 + $0x338] sm:$0xff]  }
 0x316   :  { %9532 = vmatmul.mubr.bf16.vlgmr.msra.gmra.mrb[44].mxu0 %v18537_v34  ;;  %6689 = vrot.lane.b32.xlu0 %v6688_v24, %s14845_s21 }
 0x317   :  { %13462 = vmatpush3.bf16.msra.mxu1 %v14652_v37  ;;  %13492 = vmatpush3.bf16.msra.mxu0 %v14653_v51 }
 0x318   :  { %v14701_v11 = vpop.eup %14700  ;;  %13463 = vmatprep.subr.bf16.mxu1 %v14654_v29  ;;  %13493 = vmatprep.subr.bf16.mxu0 %v14655_v44  ;;  %v13035_v53 = vpop.f32.mrb[220].mxu1 }
 0x319   :  { %879 = vst.msk [vmem:[#allocation2] sm:$0x3] %vm878_vm2, %v14701_v11  ;;  %v13063_v62 = vpop.f32.mrb[216].mxu0  ;;  %13873 = vmatmul.mubr.msk.bf16.gmra.mrb[48].mxu1 %vm563_vm1, %v18552_v42  ;;  %9539 = vmatprep.mubr.bf16.mxu0 %v18559_v5  ;;  %v13036_v22 = vpop.f32.mrb[221].mxu1  ;;  %v14663_v11 = vld [vmem:[%s19231_s0 + $0x3a8] sm:$0xff]  }
 0x31a   :  { %v13064_v7 = vpop.f32.mrb[217].mxu0  ;;  %6695 = vrot.lane.b32.xlu0 %v6694_v16, %s14845_s21  ;;  %v13037_v17 = vadd.f32 %v13036_v22, %v13035_v53  ;;  %v13038_v37 = vpop.f32.mrb[222].mxu1  ;;  %13876 = vmatprep.mubr.msk.bf16.mxu1 %vm14843_vm0, %v19262_v52  ;;  %v18582_v22 = vld [vmem:[%s19232_s1 + $0x48] ss:$28 sps:$4 sm:$0xff]  }
 0x31b   :  { %v13065_v51 = vadd.f32 %v13064_v7, %v13063_v62  ;;  %v13066_v31 = vpop.f32.mrb[218].mxu0  ;;  %13464 = vmatpush3.bf16.msra.mxu1 %v14656_v63  ;;  %13494 = vmatpush3.bf16.msra.mxu0 %v14657_v0  ;;  %v13039_v29 = vpop.f32.mrb[223].mxu1  ;;  %v14664_v63 = vld [vmem:[%s19231_s0 + $0x2f8] sm:$0xff]  }
 0x31c   :  { %v13067_v24 = vpop.f32.mrb[219].mxu0  ;;  %13465 = vmatprep.subr.bf16.mxu1 %v14658_v60  ;;  %13495 = vmatprep.subr.bf16.mxu0 %v14659_v8  ;;  %v13040_v44 = vadd.f32 %v13039_v29, %v13038_v37  ;;  %v14666_v60 = vld [vmem:[%s19231_s0 + $0x340] sm:$0xff]   ;;  %v14667_v8 = vld [vmem:[%s19231_s0 + $0x3b0] sm:$0xff]  }
 0x31d   :  { %v18577_v16 = vadd.f32 %v13065_v51, %v13031_v26  ;;  %v13068_v53 = vadd.f32 %v13067_v24, %v13066_v31  ;;  %v14665_v26 = vld [vmem:[%s19231_s0 + $0x368] sm:$0xff]  }
 0x31e   :  { %9540 = vmatmul.mubr.bf16.gmra.mrb[48].mxu0 %v18582_v22 }
 0x31f   :  { %v18588_v0 = vadd.f32 %v13068_v53, %v13034_v45  ;;  %13466 = vmatpush3.bf16.msra.mxu1 %v14660_v19  ;;  %13496 = vmatpush3.bf16.msra.mxu0 %v14661_v4 }
 0x320   :  { %13467 = vmatprep.subr.bf16.mxu1 %v14662_v35  ;;  %13497 = vmatprep.subr.bf16.mxu0 %v14663_v11  ;;  %v13041_v62 = vpop.f32.mrb[224].mxu1 }
 0x321   :  { %8 = vsyncpa [#allocation3], 0  ;;  %v13069_v45 = vpop.f32.mrb[220].mxu0  ;;  %13877 = vmatmul.mubr.msk.bf16.gmra.mrb[52].mxu1 %vm563_vm1, %v18276_v50  ;;  %9547 = vmatprep.mubr.bf16.mxu0 %v15222_v39  ;;  %v13042_v19 = vpop.f32.mrb[225].mxu1  ;;  %v14668_v31 = vld [vmem:[%s19231_s0 + $0x300] sm:$0xff]   ;;  %v14669_v50 = vld [vmem:[%s19231_s0 + $0x370] sm:$0xff]  }
 0x322   :  { %v13070_v4 = vpop.f32.mrb[221].mxu0  ;;  %v13043_v7 = vadd.f32 %v13042_v19, %v13041_v62  ;;  %v13044_v37 = vpop.f32.mrb[226].mxu1  ;;  %10153 = vmatprep.mubr.bf16.mxu1 %v18297_v9  ;;  %v14670_v9 = vld [vmem:[%s19231_s0 + $0x348] sm:$0xff]   ;;  %v14671_v11 = vld [vmem:[%s19231_s0 + $0x3b8] sm:$0xff]  }
 0x323   :  { %v13071_v35 = vadd.f32 %v13070_v4, %v13069_v45  ;;  %v13072_v51 = vpop.f32.mrb[222].mxu0  ;;  %13468 = vmatpush3.bf16.msra.mxu1 %v14664_v63  ;;  %13498 = vmatpush3.bf16.msra.mxu0 %v14665_v26  ;;  %v13045_v29 = vpop.f32.mrb[227].mxu1  ;;  %v14676_v37 = vld [vmem:[%s19231_s0 + $0x380] sm:$0xff]  }
 0x324   :  { %v13073_v24 = vpop.f32.mrb[223].mxu0  ;;  %13469 = vmatprep.subr.bf16.mxu1 %v14666_v60  ;;  %13499 = vmatprep.subr.bf16.mxu0 %v14667_v8  ;;  %v14672_v60 = vld [vmem:[%s19231_s0 + $0x308] sm:$0xff]   ;;  %v14673_v8 = vld [vmem:[%s19231_s0 + $0x378] sm:$0xff]  }
 0x325   :  { %v18615_v53 = vadd.f32 %v13071_v35, %v13037_v17  ;;  %v13074_v63 = vadd.f32 %v13073_v24, %v13072_v51  ;;  %v14674_v17 = vld [vmem:[%s19231_s0 + $0x3c0] sm:$0xff]   ;;  %v14677_v35 = vld [vmem:[%s19231_s0 + $0x3d0] sm:$0xff]   ;;  %v14680_v29 = vld [vmem:[%s19231_s0 + $0x388] sm:$0xff]  }
 0x326   :  { %9548 = vmatmul.mubr.bf16.gmra.mrb[52].mxu0 %v15224_v40  ;;  %v14681_v24 = vld [vmem:[%s19231_s0 + $0x3d8] sm:$0xff]  }
 0x327   :  { %v18618_v26 = vadd.f32 %v13074_v63, %v13040_v44  ;;  %13470 = vmatpush3.bf16.msra.mxu1 %v14668_v31  ;;  %13500 = vmatpush3.bf16.msra.mxu0 %v14669_v50  ;;  %v14675_v44 = vld [vmem:[%s19231_s0 + $0x410] sm:$0xff]   ;;  %v14679_v31 = vld [vmem:[%s19231_s0 + $0x418] sm:$0xff]  }
 0x328   :  { %13471 = vmatprep.subr.bf16.mxu1 %v14670_v9  ;;  %13501 = vmatprep.subr.bf16.mxu0 %v14671_v11  ;;  %v18654_v9 = vpop.permute.xlu0 %5226 }
 0x329   :  { %v13075_v62 = vpop.f32.mrb[224].mxu0  ;;  %10209 = vmatprep.mubr.bf16.mxu0 %v18303_v36  ;;  %v14678_v36 = vld [vmem:[%s19231_s0 + $0x3c8] sm:$0xff]  }
 0x32a   :  { %v13076_v45 = vpop.f32.mrb[225].mxu0 }
 0x32b   :  { %v13077_v19 = vadd.f32 %v13076_v45, %v13075_v62  ;;  %13472 = vmatpush3.bf16.msra.mxu1 %v14672_v60  ;;  %13502 = vmatpush3.bf16.msra.mxu0 %v14673_v8  ;;  %v13078_v4 = vpop.f32.mrb[226].mxu0  ;;  %v14683_v45 = vld [vmem:[%s19231_s0 + $0x3e0] sm:$0xff]  }
 0x32c   :  { %v13079_v51 = vpop.f32.mrb[227].mxu0  ;;  %13503 = vmatprep.subr.bf16.mxu0 %v14674_v17  ;;  %13525 = vmatprep.subr.bf16.mxu1 %v14675_v44  ;;  %v18666_v4 = vpop.permute.xlu1 %3782 }
 0x32d   :  { %v18645_v50 = vadd.f32 %v13077_v19, %v13043_v7  ;;  %v14682_v7 = vld [vmem:[%s19231_s0 + $0x420] sm:$0xff]   ;;  %v14684_v19 = vld [vmem:[%s19231_s0 + $0x450] sm:$0xff]   ;;  %v14685_v51 = vld [vmem:[%s19231_s0 + $0x428] sm:$0xff]  }
 0x32e   :  { %10154 = vmatmul.mubr.bf16.vlgmr.msra.gmra.mrb[56].mxu1 %v18339_v10 }
 0x32f   :  { %13504 = vmatpush3.bf16.msra.mxu0 %v14676_v37  ;;  %13526 = vmatpush3.bf16.msra.mxu1 %v14677_v35 }
 0x330   :  { %v13097_v11 = vpop.f32.mrb[228].mxu1  ;;  %13505 = vmatprep.subr.bf16.mxu0 %v14678_v36  ;;  %13527 = vmatprep.subr.bf16.mxu1 %v14679_v31 }
 0x331   :  { %v13098_v10 = vpop.f32.mrb[229].mxu1  ;;  %v7387_v63 = vpop.f32.mrb[228].mxu0  ;;  %10161 = vmatprep.mubr.bf16.mxu1 %v18365_v25 }
 0x332   :  { %v13099_v60 = vadd.f32 %v13098_v10, %v13097_v11  ;;  %v13100_v8 = vpop.f32.mrb[230].mxu1  ;;  %v13798_v17 = vpop.f32.mrb[229].mxu0 }
 0x333   :  { %13506 = vmatpush3.bf16.msra.mxu0 %v14680_v29  ;;  %13528 = vmatpush3.bf16.msra.mxu1 %v14681_v24  ;;  %v13101_v44 = vpop.f32.mrb[231].mxu1  ;;  %v7390_v62 = vpop.f32.mrb[230].mxu0  ;;  %v14687_v24 = vld [vmem:[%s19231_s0 + $0x458] sm:$0xff]  }
 0x334   :  { %v7332_v37 = vadd.f32 %v13099_v60, %v18577_v16  ;;  %v13102_v25 = vadd.f32 %v13101_v44, %v13100_v8  ;;  %v13799_v35 = vpop.f32.mrb[231].mxu0  ;;  %13529 = vmatprep.subr.bf16.mxu1 %v14682_v7  ;;  %13880 = vmatprep.subr.bf16.mxu0 %v19262_v52  ;;  %v18678_v29 = vpop.permute.xlu0 %3808  ;;  %v14686_v16 = vld [vmem:[%s19231_s0 + $0x3e8] sm:$0xff]  }
 0x335   :  { %v18686_v11 = vpop.permute.xlu1 %3059 }
 0x336   :  { %v18673_v36 = vadd.f32 %v7387_v63, %v7332_v37  ;;  %v7335_v31 = vadd.f32 %v13102_v25, %v18588_v0  ;;  %10210 = vmatmul.mubr.bf16.vlgmr.msra.gmra.mrb[56].mxu0 %v18345_v46  ;;  %10162 = vmatmul.mubr.bf16.gmra.mrb[60].mxu1 %v18392_v33  ;;  %v14688_v46 = vld [vmem:[%s19231_s0 + $0x430] sm:$0xff]   ;;  %v14691_v25 = vld [vmem:[%s19231_s0 + $0x438] sm:$0xff]  }
 0x337   :  { %13530 = vmatpush3.bf16.msra.mxu1 %v14683_v45  ;;  %13881 = vmatpush3.bf16.msra.mxu0 %v14684_v19  ;;  %v14690_v45 = vld [vmem:[%s19231_s0 + $0x460] sm:$0xff]  }
 0x338   :  { %v18688_v7 = vadd.f32 %v7390_v62, %v7335_v31  ;;  %v13103_v0 = vpop.f32.mrb[232].mxu1  ;;  %13531 = vmatprep.subr.bf16.mxu1 %v14685_v51  ;;  %13882 = vmatprep.subr.bf16.mxu0 %v19262_v52  ;;  %v14689_v62 = vld [vmem:[%s19231_s0 + $0x3f0] sm:$0xff]  }
 0x339   :  { %v13104_v33 = vpop.f32.mrb[233].mxu1  ;;  %10217 = vmatprep.mubr.bf16.mxu0 %v18371_v3  ;;  %v7395_v10 = vpop.f32.mrb[232].mxu0  ;;  %10169 = vmatprep.mubr.bf16.mxu1 %v15063_v55 }
 0x33a   :  { %v7416_v63 = vrot.slane %v18688_v7, 2  ;;  %v13105_v60 = vadd.f32 %v13104_v33, %v13103_v0  ;;  %v13106_v8 = vpop.f32.mrb[234].mxu1  ;;  %v13802_v44 = vpop.f32.mrb[233].mxu0 }
 0x33b   :  { %13532 = vmatpush3.bf16.msra.mxu1 %v14686_v16  ;;  %v13107_v17 = vpop.f32.mrb[235].mxu1  ;;  %13883 = vmatpush3.bf16.msra.mxu0 %v14687_v24  ;;  %v18703_v3 = vpop.permute.xlu0 %4510  ;;  %v14692_v24 = vld [vmem:[%s19231_s0 + $0x3f8] sm:$0xff]   ;;  %v19280_v44 = vld [vmem:[#allocation6_spill] sm:$0xff] }
 0x33c   :  { %v13108_v19 = vadd.f32 %v13107_v17, %v13106_v8  ;;  %7417 = vrot.lane.b32.xlu1 %v7416_v63, %s14845_s21  ;;  %v7340_v55 = vadd.f32 %v13105_v60, %v18615_v53  ;;  %13533 = vmatprep.subr.bf16.mxu1 %v14688_v46  ;;  %v7398_v37 = vpop.f32.mrb[234].mxu0  ;;  %v3051_v53 = vadd.f32 %v18138_v41, %v17519_v27  ;;  %v14694_v27 = vld [vmem:[%s19231_s0 + $0x440] sm:$0xff]   ;;  %v14816_v63 = vld [vmem:[%s19232_s1 + $0x14] ss:$28 sps:$4 sm:$0xff]  }
 0x33d   :  { %v18710_v35 = vpop.permute.xlu1 %4504  ;;  %13884 = vmatprep.subr.bf16.mxu0 %v19262_v52  ;;  %v13803_v51 = vpop.f32.mrb[235].mxu0 }
 0x33e   :  { %19279 = vst [vmem:[#allocation25_spill] sm:$0xff] %v18710_v35  ;;  %v18713_v31 = vadd.f32 %v7395_v10, %v7340_v55  ;;  %10218 = vmatmul.mubr.bf16.gmra.mrb[60].mxu0 %v18398_v61  ;;  %v7343_v16 = vadd.f32 %v13108_v19, %v18618_v26  ;;  %10170 = vmatmul.mubr.bf16.gmra.mrb[64].mxu1 %v15067_v57  ;;  %v14693_v57 = vld [vmem:[%s19231_s0 + $0x468] sm:$0xff]  }
 0x33f   :  { %13534 = vmatpush3.bf16.msra.mxu1 %v14689_v62  ;;  %13885 = vmatpush3.bf16.msra.mxu0 %v14690_v45  ;;  %v19281_v62 = vld [vmem:[#allocation8_spill] sm:$0xff]  ;;  %v14697_v51 = vld [vmem:[%s19231_s0 + $0x448] sm:$0xff]  }
 0x340   :  { %v7422_v0 = vrot.slane %v18713_v31, 2  ;;  %v18724_v46 = vadd.f32 %v7398_v37, %v7343_v16  ;;  %v3065_v33 = vpop.permute.xlu0 %3064  ;;  %v13109_v10 = vpop.f32.mrb[236].mxu1  ;;  %13535 = vmatprep.subr.bf16.mxu1 %v14691_v25  ;;  %13886 = vmatprep.subr.bf16.mxu0 %v19262_v52  ;;  %v1571_v45 = vadd.f32 %v19281_v62, %v19280_v44  ;;  %v14696_v25 = vld [vmem:[%s19231_s0 + $0x470] sm:$0xff]  }
 0x341   :  { %v3067_v41 = vadd.f32 %v3065_v33, %v3051_v53  ;;  %v13110_v61 = vpop.f32.mrb[237].mxu1  ;;  %10225 = vmatprep.mubr.bf16.mxu0 %v15065_v56  ;;  %v7403_v26 = vpop.f32.mrb[236].mxu0  ;;  %10265 = vmatprep.mubr.bf16.mxu1 %v14816_v63  ;;  %v14695_v56 = vld [vmem:[%s19231_s0 + $0x400] sm:$0xff]  }
 0x342   :  { %v18737_v60 = vpop.permute.xlu1 %5949  ;;  %v13111_v8 = vadd.f32 %v13110_v61, %v13109_v10  ;;  %7423 = vrot.lane.b32.xlu0 %v7422_v0, %s14845_s21  ;;  %v13112_v17 = vpop.f32.mrb[238].mxu1  ;;  %v1594_v53 = vadd.f32 %v18077_v28, %v1571_v45  ;;  %v14699_v28 = vld [vmem:[%s19231_s0 + $0x478] sm:$0xff]  }
 0x343   :  { %13536 = vmatpush3.bf16.msra.mxu1 %v14692_v24  ;;  %3069 = vrot.lane.b32.xlu1 %v3067_v41, %s14849_s28  ;;  %v13113_v19 = vpop.f32.mrb[239].mxu1  ;;  %v13806_v55 = vpop.f32.mrb[237].mxu0  ;;  %v7428_v24 = vrot.slane %v18724_v46, 2 }
 0x344   :  { %13887 = vmatpush3.bf16.msra.mxu0 %v14693_v57  ;;  %v7348_v37 = vadd.f32 %v13111_v8, %v18645_v50  ;;  %13537 = vmatprep.subr.bf16.mxu1 %v14694_v27  ;;  %v7406_v16 = vpop.f32.mrb[238].mxu0  ;;  %v14698_v57 = vld [vmem:[%s19231_s0 + $0x408] sm:$0xff]  }
 0x345   :  { %13888 = vmatprep.subr.bf16.mxu0 %v19262_v52  ;;  %v13807_v0 = vpop.f32.mrb[239].mxu0  ;;  %v19283_v27 = vld [vmem:[#allocation10_spill] sm:$0xff] }
 0x346   :  { %v1602_v33 = vpop.permute.xlu1 %1601  ;;  %v18756_v10 = vadd.f32 %v7403_v26, %v7348_v37  ;;  %10226 = vmatmul.mubr.bf16.gmra.mrb[64].mxu0 %v15069_v58 }
 0x347   :  { %v1604_v50 = vadd.f32 %v1602_v33, %v1594_v53  ;;  %13538 = vmatpush3.bf16.msra.mxu1 %v14695_v56  ;;  %7429 = vrot.lane.b32.xlu1 %v7428_v24, %s14845_s21 }
 0x348   :  { %19282 = vst [vmem:[#allocation6_spill] sm:$0xff] %v18756_v10  ;;  %13889 = vmatpush3.bf16.msra.mxu0 %v14696_v25  ;;  %13539 = vmatprep.subr.bf16.mxu1 %v14697_v51 }
 0x349   :  { %v1609_v41 = vadd.f32 %v19283_v27, %v1604_v50  ;;  %13890 = vmatprep.subr.bf16.mxu0 %v19262_v52  ;;  %13892 = vmatprep.mubr.msk.bf16.mxu0 %vm14843_vm0, %v19262_v52 }
 0x34b   :  { %v1610_v58 = vadd.f32 %v1609_v41, %v16565_v1  ;;  %13540 = vmatpush3.bf16.msra.mxu1 %v14698_v57  ;;  %v14817_v41 = vld [vmem:[%s19232_s1 + $0x88] ss:$0 sps:$4 sm:$0x33]   ;;  %s14850_s1 = smov [#allocation2]  }
 0x34c   :  { %13891 = vmatpush3.bf16.msra.mxu0 %v14699_v28 }
 0x34d   :  { %14702 = vtanh.f32 %v1610_v58 }
 0x34e   :  { %10266 = vmatmul.mubr.bf16.vlgmr.msra.gmra.mrb[68].mxu1 %v18537_v34 }
 0x34f   :  { %13893 = vmatmul.mubr.msk.bf16.vlgmr.msra.gmra.mrb[68].mxu0 %vm563_vm1, %v18494_v2  ;;  %10273 = vmatprep.mubr.bf16.mxu1 %v18559_v5 }
 0x350   :  { %v13174_v61 = vpop.f32.mrb[240].mxu1  ;;  %13896 = vmatprep.mubr.msk.bf16.mxu0 %vm14843_vm0, %v19262_v52 }
 0x351   :  { %v13140_v26 = vpop.f32.mrb[240].mxu0  ;;  %v13175_v63 = vpop.f32.mrb[241].mxu1 }
 0x352   :  { %v13141_v8 = vpop.f32.mrb[241].mxu0  ;;  %v13176_v17 = vadd.f32 %v13175_v63, %v13174_v61  ;;  %v13177_v44 = vpop.f32.mrb[242].mxu1 }
 0x353   :  { %v13142_v62 = vadd.f32 %v13141_v8, %v13140_v26  ;;  %v13143_v45 = vpop.f32.mrb[242].mxu0  ;;  %v13178_v56 = vpop.f32.mrb[243].mxu1 }
 0x354   :  { %v13144_v19 = vpop.f32.mrb[243].mxu0  ;;  %v13179_v55 = vadd.f32 %v13178_v56, %v13177_v44 }
 0x355   :  { %v8010_v34 = vadd.f32 %v13176_v17, %v13142_v62  ;;  %v13145_v37 = vadd.f32 %v13144_v19, %v13143_v45 }
 0x356   :  { %10274 = vmatmul.mubr.bf16.gmra.mrb[72].mxu1 %v18582_v22 }
 0x357   :  { %v14703_v2 = vpop.eup %14702  ;;  %v8013_v5 = vadd.f32 %v13179_v55, %v13145_v37  ;;  %13897 = vmatmul.mubr.msk.bf16.gmra.mrb[72].mxu0 %vm563_vm1, %v18552_v42  ;;  %10281 = vmatprep.mubr.bf16.mxu1 %v15222_v39 }
 0x358   :  { %1613 = vst.msk [vmem:[#allocation2 + $0x2] sm:$0x3] %vm878_vm2, %v14703_v2  ;;  %v13180_v25 = vpop.f32.mrb[244].mxu1  ;;  %13900 = vmatprep.mubr.msk.bf16.mxu0 %vm14843_vm0, %v19262_v52 }
 0x359   :  { %v13146_v51 = vpop.f32.mrb[244].mxu0  ;;  %v13181_v16 = vpop.f32.mrb[245].mxu1 }
 0x35a   :  { %v13147_v53 = vpop.f32.mrb[245].mxu0  ;;  %v13182_v24 = vadd.f32 %v13181_v16, %v13180_v25  ;;  %v13183_v0 = vpop.f32.mrb[246].mxu1 }
 0x35b   :  { %v13148_v33 = vadd.f32 %v13147_v53, %v13146_v51  ;;  %v13149_v22 = vpop.f32.mrb[246].mxu0  ;;  %v13184_v50 = vpop.f32.mrb[247].mxu1 }
 0x35c   :  { %v13150_v57 = vpop.f32.mrb[247].mxu0  ;;  %v13185_v28 = vadd.f32 %v13184_v50, %v13183_v0 }
 0x35d   :  { %v8018_v27 = vadd.f32 %v13182_v24, %v13148_v33  ;;  %v13151_v42 = vadd.f32 %v13150_v57, %v13149_v22  ;;  %v18789_v22 = vpop.permute.xlu0 %5955 }
 0x35e   :  { %10282 = vmatmul.mubr.bf16.gmra.mrb[76].mxu1 %v15224_v40 }
 0x35f   :  { %v8021_v39 = vadd.f32 %v13185_v28, %v13151_v42  ;;  %13901 = vmatmul.mubr.msk.bf16.gmra.mrb[76].mxu0 %vm563_vm1, %v14817_v41 }
 0x360   :  { %v13186_v52 = vpop.f32.mrb[248].mxu1 }
 0x361   :  { %v13152_v58 = vpop.f32.mrb[248].mxu0  ;;  %v13187_v61 = vpop.f32.mrb[249].mxu1 }
 0x362   :  { %v13153_v26 = vpop.f32.mrb[249].mxu0  ;;  %v13188_v63 = vadd.f32 %v13187_v61, %v13186_v52  ;;  %v13189_v8 = vpop.f32.mrb[250].mxu1 }
 0x363   :  { %v13154_v17 = vadd.f32 %v13153_v26, %v13152_v58  ;;  %v13190_v44 = vpop.f32.mrb[251].mxu1  ;;  %v13155_v62 = vpop.f32.mrb[250].mxu0 }
 0x364   :  { %v13156_v45 = vpop.f32.mrb[251].mxu0 }
 0x365   :  { %v8026_v56 = vadd.f32 %v13188_v63, %v13154_v17  ;;  %v18795_v63 = vpop.permute.xlu0 %4522 }
 0x368   :  { %v8121_v19 = vpop.f32.mrb[252].mxu1 }
 0x369   :  { %v13822_v40 = vpop.f32.mrb[253].mxu1 }
 0x36a   :  { %v8124_v55 = vpop.f32.mrb[254].mxu1 }
 0x36b   :  { %v13823_v37 = vpop.f32.mrb[255].mxu1 }
 0x36c   :  { %v19284_v37 = vld [vmem:[#allocation7_spill] sm:$0xff] }
 0x370   :  { %v8129_v2 = vpop.f32.mrb[0].mxu1 }
 0x371   :  { %v13208_v25 = vpop.f32.mrb[252].mxu0  ;;  %v13826_v51 = vpop.f32.mrb[1].mxu1 }
 0x372   :  { %v13209_v16 = vpop.f32.mrb[253].mxu0  ;;  %v8132_v53 = vpop.f32.mrb[2].mxu1 }
 0x373   :  { %v13210_v24 = vadd.f32 %v13209_v16, %v13208_v25  ;;  %v13211_v0 = vpop.f32.mrb[254].mxu0  ;;  %v13827_v33 = vpop.f32.mrb[3].mxu1  ;;  %v19285_v25 = vld [vmem:[#allocation12_spill] sm:$0xff] }
 0x374   :  { %v13212_v50 = vpop.f32.mrb[255].mxu0 }
 0x375   :  { %v8066_v57 = vadd.f32 %v13210_v24, %v8010_v34  ;;  %v13213_v28 = vadd.f32 %v13212_v50, %v13211_v0  ;;  %v2305_v34 = vadd.f32 %v19285_v25, %v19284_v37 }
 0x377   :  { %v18791_v42 = vadd.f32 %v8121_v19, %v8066_v57  ;;  %v8069_v41 = vadd.f32 %v13213_v28, %v8013_v5  ;;  %v2328_v5 = vadd.f32 %v18420_v21, %v2305_v34  ;;  %v3785_v28 = vadd.f32 %v18666_v4, %v17899_v15 }
 0x378   :  { %v8137_v52 = vpop.f32.mrb[4].mxu1 }
 0x379   :  { %v18793_v58 = vadd.f32 %v8124_v55, %v8069_v41  ;;  %v13214_v61 = vpop.f32.mrb[0].mxu0  ;;  %v13830_v26 = vpop.f32.mrb[5].mxu1 }
 0x37a   :  { %v13215_v8 = vpop.f32.mrb[1].mxu0  ;;  %v8140_v62 = vpop.f32.mrb[6].mxu1 }
 0x37b   :  { %v13216_v17 = vadd.f32 %v13215_v8, %v13214_v61  ;;  %v13217_v44 = vpop.f32.mrb[2].mxu0  ;;  %v13831_v40 = vpop.f32.mrb[7].mxu1 }
 0x37c   :  { %v13218_v45 = vpop.f32.mrb[3].mxu0 }
 0x37d   :  { %v8074_v51 = vadd.f32 %v13216_v17, %v8018_v27  ;;  %v13219_v19 = vadd.f32 %v13218_v45, %v13217_v44 }
 0x37f   :  { %v18800_v16 = vadd.f32 %v8129_v2, %v8074_v51  ;;  %v8077_v55 = vadd.f32 %v13219_v19, %v8021_v39 }
 0x380   :  { %v2336_v24 = vpop.permute.xlu0 %2335 }
 0x381   :  { %v18802_v0 = vadd.f32 %v8132_v53, %v8077_v55  ;;  %v13220_v33 = vpop.f32.mrb[4].mxu0  ;;  %v2338_v50 = vadd.f32 %v2336_v24, %v2328_v5 }
 0x382   :  { %v13221_v57 = vpop.f32.mrb[5].mxu0 }
 0x383   :  { %v2343_v41 = vadd.f32 %v18056_v12, %v2338_v50  ;;  %v13222_v61 = vadd.f32 %v13221_v57, %v13220_v33  ;;  %v8162_v27 = vrot.slane %v18802_v0, 2  ;;  %v13223_v26 = vpop.f32.mrb[6].mxu0 }
 0x384   :  { %v3799_v8 = vpop.permute.xlu0 %3798  ;;  %v13224_v21 = vpop.f32.mrb[7].mxu0 }
 0x385   :  { %v2344_v2 = vadd.f32 %v2343_v41, %v16565_v1  ;;  %v8082_v39 = vadd.f32 %v13222_v61, %v8026_v56  ;;  %8163 = vrot.lane.b32.xlu0 %v8162_v27, %s14845_s21  ;;  %v3801_v53 = vadd.f32 %v3799_v8, %v3785_v28  ;;  %v18814_v41 = vpop.permute.xlu1 %4516 }
 0x387   :  { %14704 = vtanh.f32 %v2344_v2  ;;  %v18810_v17 = vadd.f32 %v8137_v52, %v8082_v39  ;;  %3803 = vrot.lane.b32.xlu1 %v3801_v53, %s14849_s28 }
 0x388   :  { %v13251_v15 = vpop.f32.mrb[8].mxu1 }
 0x389   :  { %19286 = vst [vmem:[#allocation8_spill] sm:$0xff] %v18810_v17  ;;  %v13252_v4 = vpop.f32.mrb[9].mxu1 }
 0x38a   :  { %v13253_v12 = vadd.f32 %v13252_v4, %v13251_v15  ;;  %v13254_v44 = vpop.f32.mrb[10].mxu1 }
 0x38b   :  { %v13255_v62 = vpop.f32.mrb[11].mxu1 }
 0x38c   :  { %v13256_v45 = vadd.f32 %v13255_v62, %v13254_v44 }
 0x390   :  { %v13257_v40 = vpop.f32.mrb[12].mxu1 }
 0x391   :  { %v14705_v37 = vpop.eup %14704  ;;  %v13285_v25 = vpop.f32.mrb[8].mxu0 }
 0x392   :  { %v13258_v34 = vpop.f32.mrb[13].mxu1  ;;  %2347 = vst.msk [vmem:[#allocation2 + $0x4] sm:$0x3] %vm878_vm2, %v14705_v37  ;;  %v13286_v56 = vpop.f32.mrb[9].mxu0 }
 0x393   :  { %v13259_v51 = vadd.f32 %v13258_v34, %v13257_v40  ;;  %v13260_v19 = vpop.f32.mrb[14].mxu1  ;;  %v13287_v5 = vadd.f32 %v13286_v56, %v13285_v25  ;;  %v13288_v52 = vpop.f32.mrb[10].mxu0 }
 0x394   :  { %v13261_v55 = vpop.f32.mrb[15].mxu1  ;;  %v13289_v24 = vpop.f32.mrb[11].mxu0 }
 0x395   :  { %v13262_v33 = vadd.f32 %v13261_v55, %v13260_v19  ;;  %v8744_v50 = vadd.f32 %v13287_v5, %v13253_v12  ;;  %v13290_v57 = vadd.f32 %v13289_v24, %v13288_v52  ;;  %v18816_v40 = vpop.permute.xlu1 %5961 }
 0x397   :  { %v8747_v28 = vadd.f32 %v13290_v57, %v13256_v45 }
 0x398   :  { %v13263_v61 = vpop.f32.mrb[16].mxu1 }
 0x399   :  { %v13291_v27 = vpop.f32.mrb[12].mxu0  ;;  %v13264_v26 = vpop.f32.mrb[17].mxu1 }
 0x39a   :  { %v13292_v8 = vpop.f32.mrb[13].mxu0  ;;  %v13265_v21 = vadd.f32 %v13264_v26, %v13263_v61  ;;  %v13266_v2 = vpop.f32.mrb[18].mxu1 }
 0x39b   :  { %v13293_v39 = vadd.f32 %v13292_v8, %v13291_v27  ;;  %v13294_v53 = vpop.f32.mrb[14].mxu0  ;;  %v13267_v15 = vpop.f32.mrb[19].mxu1 }
 0x39c   :  { %v13295_v4 = vpop.f32.mrb[15].mxu0  ;;  %v18818_v25 = vpop.permute.xlu1 %3793 }
 0x39d   :  { %v8752_v44 = vadd.f32 %v13293_v39, %v13259_v51  ;;  %v13296_v62 = vadd.f32 %v13295_v4, %v13294_v53 }
 0x39f   :  { %v8755_v37 = vadd.f32 %v13296_v62, %v13262_v33 }
 0x3a0   :  { %v18820_v52 = vpop.permute.xlu1 %6683 }
 0x3a1   :  { %v13297_v12 = vpop.f32.mrb[16].mxu0 }
 0x3a2   :  { %v13298_v45 = vpop.f32.mrb[17].mxu0 }
 0x3a3   :  { %v13299_v34 = vadd.f32 %v13298_v45, %v13297_v12  ;;  %v13300_v56 = vpop.f32.mrb[18].mxu0  ;;  %v19288_v45 = vld [vmem:[#allocation9_spill] sm:$0xff] }
 0x3a4   :  { %v13301_v19 = vpop.f32.mrb[19].mxu0 }
 0x3a5   :  { %v8760_v5 = vadd.f32 %v13299_v34, %v13265_v21  ;;  %v3039_v34 = vadd.f32 %v18091_v43, %v19288_v45 }
 0x3a9   :  { %v13319_v55 = vpop.f32.mrb[20].mxu1  ;;  %v8855_v24 = vpop.f32.mrb[20].mxu0 }
 0x3aa   :  { %v13320_v57 = vpop.f32.mrb[21].mxu1  ;;  %v13846_v61 = vpop.f32.mrb[21].mxu0 }
 0x3ab   :  { %v13321_v27 = vadd.f32 %v13320_v57, %v13319_v55  ;;  %v13322_v51 = vpop.f32.mrb[22].mxu1  ;;  %v8858_v26 = vpop.f32.mrb[22].mxu0 }
 0x3ac   :  { %v13323_v8 = vpop.f32.mrb[23].mxu1  ;;  %v13847_v2 = vpop.f32.mrb[23].mxu0 }
 0x3ad   :  { %v8800_v33 = vadd.f32 %v13321_v27, %v8744_v50  ;;  %v13324_v39 = vadd.f32 %v13323_v8, %v13322_v51  ;;  %v3062_v50 = vadd.f32 %v18686_v11, %v3039_v34 }
 0x3ae   :  { %v18824_v4 = vpop.permute.xlu1 %7417 }
 0x3af   :  { %v18822_v53 = vadd.f32 %v8855_v24, %v8800_v33  ;;  %v8803_v15 = vadd.f32 %v13324_v39, %v8747_v28  ;;  %19287 = vst [vmem:[#allocation10_spill] sm:$0xff] %v18824_v4 }
 0x3b1   :  { %v18826_v62 = vadd.f32 %v8858_v26, %v8803_v15  ;;  %v13325_v21 = vpop.f32.mrb[24].mxu1  ;;  %v8863_v12 = vpop.f32.mrb[24].mxu0 }
 0x3b2   :  { %v13326_v56 = vpop.f32.mrb[25].mxu1  ;;  %v13850_v19 = vpop.f32.mrb[25].mxu0 }
 0x3b3   :  { %v13327_v55 = vadd.f32 %v13326_v56, %v13325_v21  ;;  %v13328_v57 = vpop.f32.mrb[26].mxu1  ;;  %v8866_v61 = vpop.f32.mrb[26].mxu0 }
 0x3b4   :  { %v13329_v27 = vpop.f32.mrb[27].mxu1  ;;  %v13851_v8 = vpop.f32.mrb[27].mxu0 }
 0x3b5   :  { %v13330_v24 = vadd.f32 %v13329_v27, %v13328_v57  ;;  %v3070_v51 = vpop.permute.xlu1 %3069  ;;  %v8808_v28 = vadd.f32 %v13327_v55, %v8752_v44 }
 0x3b6   :  { %v3072_v2 = vadd.f32 %v3070_v51, %v3062_v50 }
 0x3b7   :  { %v18831_v26 = vadd.f32 %v8863_v12, %v8808_v28  ;;  %v8811_v33 = vadd.f32 %v13330_v24, %v8755_v37 }
 0x3b8   :  { %v3077_v39 = vadd.f32 %v18351_v13, %v3072_v2 }
 0x3b9   :  { %v18834_v15 = vadd.f32 %v8866_v61, %v8811_v33  ;;  %v13331_v43 = vpop.f32.mrb[28].mxu1  ;;  %v8871_v56 = vpop.f32.mrb[28].mxu0 }
 0x3ba   :  { %v3078_v21 = vadd.f32 %v3077_v39, %v16565_v1  ;;  %v13332_v45 = vpop.f32.mrb[29].mxu1  ;;  %v13854_v57 = vpop.f32.mrb[29].mxu0 }
 0x3bb   :  { %v8896_v11 = vrot.slane %v18834_v15, 2  ;;  %v13333_v34 = vadd.f32 %v13332_v45, %v13331_v43  ;;  %v13334_v19 = vpop.f32.mrb[30].mxu1  ;;  %v8874_v55 = vpop.f32.mrb[30].mxu0 }
 0x3bc   :  { %14706 = vtanh.f32 %v3078_v21  ;;  %v13335_v44 = vpop.f32.mrb[31].mxu1  ;;  %v13855_v12 = vpop.f32.mrb[31].mxu0 }
 0x3bd   :  { %8897 = vrot.lane.b32.xlu1 %v8896_v11, %s14845_s21  ;;  %v8816_v37 = vadd.f32 %v13333_v34, %v8760_v5 }
 0x3bf   :  { %v18839_v13 = vadd.f32 %v8871_v56, %v8816_v37 }
 0x3c1   :  { %19289 = vst [vmem:[#allocation7_spill] sm:$0xff] %v18839_v13 }
 0x3c6   :  { %v14707_v61 = vpop.eup %14706 }
 0x3c7   :  { %3081 = vst.msk [vmem:[#allocation2 + $0x6] sm:$0x3] %vm878_vm2, %v14707_v61 }
 0x3c9   :  { %v13362_v50 = vpop.f32.mrb[32].mxu0  ;;  %v13396_v27 = vpop.f32.mrb[32].mxu1 }
 0x3ca   :  { %v13363_v24 = vpop.f32.mrb[33].mxu0  ;;  %v13397_v51 = vpop.f32.mrb[33].mxu1 }
 0x3cb   :  { %v13364_v28 = vadd.f32 %v13363_v24, %v13362_v50  ;;  %v13398_v8 = vadd.f32 %v13397_v51, %v13396_v27  ;;  %v13365_v2 = vpop.f32.mrb[34].mxu0  ;;  %v13399_v33 = vpop.f32.mrb[34].mxu1 }
 0x3cc   :  { %v13366_v39 = vpop.f32.mrb[35].mxu0  ;;  %v13400_v43 = vpop.f32.mrb[35].mxu1 }
 0x3cd   :  { %v9478_v21 = vadd.f32 %v13398_v8, %v13364_v28  ;;  %v13367_v45 = vadd.f32 %v13366_v39, %v13365_v2  ;;  %v13401_v11 = vadd.f32 %v13400_v43, %v13399_v33 }
 0x3cf   :  { %v9481_v5 = vadd.f32 %v13401_v11, %v13367_v45 }
 0x3d1   :  { %v13368_v34 = vpop.f32.mrb[36].mxu0  ;;  %v13402_v56 = vpop.f32.mrb[36].mxu1 }
 0x3d2   :  { %v13369_v19 = vpop.f32.mrb[37].mxu0  ;;  %v13403_v57 = vpop.f32.mrb[37].mxu1 }
 0x3d3   :  { %v13370_v44 = vadd.f32 %v13369_v19, %v13368_v34  ;;  %v13404_v55 = vadd.f32 %v13403_v57, %v13402_v56  ;;  %v13371_v37 = vpop.f32.mrb[38].mxu0  ;;  %v13405_v12 = vpop.f32.mrb[38].mxu1 }
 0x3d4   :  { %v13372_v61 = vpop.f32.mrb[39].mxu0  ;;  %v13406_v35 = vpop.f32.mrb[39].mxu1 }
 0x3d5   :  { %v9486_v50 = vadd.f32 %v13404_v55, %v13370_v44  ;;  %v13373_v27 = vadd.f32 %v13372_v61, %v13371_v37  ;;  %v13407_v24 = vadd.f32 %v13406_v35, %v13405_v12 }
 0x3d7   :  { %v9489_v51 = vadd.f32 %v13407_v24, %v13373_v27 }
 0x3d9   :  { %v13374_v17 = vpop.f32.mrb[40].mxu0  ;;  %v13408_v32 = vpop.f32.mrb[40].mxu1 }
 0x3da   :  { %v13375_v28 = vpop.f32.mrb[41].mxu0  ;;  %v13409_v8 = vpop.f32.mrb[41].mxu1 }
 0x3db   :  { %v13376_v2 = vadd.f32 %v13375_v28, %v13374_v17  ;;  %v13410_v33 = vadd.f32 %v13409_v8, %v13408_v32  ;;  %v13411_v39 = vpop.f32.mrb[42].mxu1  ;;  %v13377_v43 = vpop.f32.mrb[42].mxu0 }
 0x3dc   :  { %v13412_v45 = vpop.f32.mrb[43].mxu1  ;;  %v13378_v11 = vpop.f32.mrb[43].mxu0 }
 0x3dd   :  { %v9494_v34 = vadd.f32 %v13410_v33, %v13376_v2 }
 0x3e1   :  { %v9589_v56 = vpop.f32.mrb[44].mxu1 }
 0x3e2   :  { %v13870_v19 = vpop.f32.mrb[45].mxu1 }
 0x3e3   :  { %v9592_v57 = vpop.f32.mrb[46].mxu1 }
 0x3e4   :  { %v13871_v13 = vpop.f32.mrb[47].mxu1 }
 0x3e9   :  { %v13430_v10 = vpop.f32.mrb[44].mxu0 }
 0x3ea   :  { %v13431_v44 = vpop.f32.mrb[45].mxu0 }
 0x3eb   :  { %v13432_v55 = vadd.f32 %v13431_v44, %v13430_v10  ;;  %v13433_v35 = vpop.f32.mrb[46].mxu0  ;;  %v18846_v10 = vpop.permute.xlu1 %7429 }
 0x3ec   :  { %v13434_v37 = vpop.f32.mrb[47].mxu0  ;;  %v9597_v12 = vpop.f32.mrb[48].mxu1 }
 0x3ed   :  { %v9534_v61 = vadd.f32 %v13432_v55, %v9478_v21  ;;  %v13435_v27 = vadd.f32 %v13434_v37, %v13433_v35  ;;  %v13874_v24 = vpop.f32.mrb[49].mxu1  ;;  %v19290_v55 = vld [vmem:[#allocation15_spill] sm:$0xff] }
 0x3ee   :  { %v9600_v17 = vpop.f32.mrb[50].mxu1  ;;  %v3773_v35 = vadd.f32 %v18401_v23, %v19290_v55 }
 0x3ef   :  { %v18842_v32 = vadd.f32 %v9589_v56, %v9534_v61  ;;  %v9537_v28 = vadd.f32 %v13435_v27, %v9481_v5  ;;  %v13875_v8 = vpop.f32.mrb[51].mxu1 }
 0x3f0   :  { %v3796_v61 = vadd.f32 %v18818_v25, %v3773_v35  ;;  %v8156_v25 = vrot.slane %v18800_v16, 2 }
 0x3f1   :  { %v18844_v39 = vadd.f32 %v9592_v57, %v9537_v28  ;;  %v13436_v2 = vpop.f32.mrb[48].mxu0 }
 0x3f2   :  { %v13437_v33 = vpop.f32.mrb[49].mxu0 }
 0x3f3   :  { %v13438_v43 = vadd.f32 %v13437_v33, %v13436_v2  ;;  %v13439_v13 = vpop.f32.mrb[50].mxu0 }
 0x3f4   :  { %v13440_v45 = vpop.f32.mrb[51].mxu0  ;;  %v9605_v11 = vpop.f32.mrb[52].mxu1 }
 0x3f5   :  { %v9542_v19 = vadd.f32 %v13438_v43, %v9486_v50  ;;  %v13441_v44 = vadd.f32 %v13440_v45, %v13439_v13  ;;  %v13878_v21 = vpop.f32.mrb[53].mxu1 }
 0x3f6   :  { %v9608_v56 = vpop.f32.mrb[54].mxu1 }
 0x3f7   :  { %v18850_v37 = vadd.f32 %v9597_v12, %v9542_v19  ;;  %v9545_v5 = vadd.f32 %v13441_v44, %v9489_v51  ;;  %v13879_v57 = vpop.f32.mrb[55].mxu1  ;;  %v8890_v44 = vrot.slane %v18831_v26, 2 }
 0x3f9   :  { %v18853_v27 = vadd.f32 %v9600_v17, %v9545_v5  ;;  %v13442_v24 = vpop.f32.mrb[52].mxu0  ;;  %v3804_v28 = vpop.permute.xlu1 %3803 }
 0x3fa   :  { %v13443_v8 = vpop.f32.mrb[53].mxu0  ;;  %v3806_v2 = vadd.f32 %v3804_v28, %v3796_v61 }
 0x3fb   :  { %v13444_v33 = vadd.f32 %v13443_v8, %v13442_v24  ;;  %v9630_v50 = vrot.slane %v18853_v27, 2  ;;  %v13445_v43 = vpop.f32.mrb[54].mxu0 }
 0x3fc   :  { %v3811_v13 = vadd.f32 %v18678_v29, %v3806_v2  ;;  %v13446_v23 = vpop.f32.mrb[55].mxu0 }
 0x3fd   :  { %v9550_v45 = vadd.f32 %v13444_v33, %v9494_v34  ;;  %9631 = vrot.lane.b32.xlu0 %v9630_v50, %s14845_s21  ;;  %v9624_v34 = vrot.slane %v18850_v37, 2 }
 0x3fe   :  { %v3812_v51 = vadd.f32 %v3811_v13, %v16565_v1 }
 0x3ff   :  { %v18859_v12 = vadd.f32 %v9605_v11, %v9550_v45 }
 0x400   :  { %14708 = vtanh.f32 %v3812_v51 }
 0x401   :  { %19291 = vst [vmem:[#allocation12_spill] sm:$0xff] %v18859_v12  ;;  %v13473_v17 = vpop.f32.mrb[56].mxu1  ;;  %8157 = vrot.lane.b32.xlu0 %v8156_v25, %s14845_s21 }
 0x402   :  { %v13474_v19 = vpop.f32.mrb[57].mxu1 }
 0x403   :  { %v13475_v21 = vadd.f32 %v13474_v19, %v13473_v17  ;;  %v13476_v55 = vpop.f32.mrb[58].mxu1 }
 0x404   :  { %v13477_v29 = vpop.f32.mrb[59].mxu1 }
 0x405   :  { %v13478_v35 = vadd.f32 %v13477_v29, %v13476_v55  ;;  %8891 = vrot.lane.b32.xlu0 %v8890_v44, %s14845_s21 }
 0x409   :  { %v13507_v56 = vpop.f32.mrb[56].mxu0  ;;  %9625 = vrot.lane.b32.xlu0 %v9624_v34, %s14845_s21  ;;  %v13479_v11 = vpop.f32.mrb[60].mxu1 }
 0x40a   :  { %v14709_v5 = vpop.eup %14708  ;;  %v13508_v57 = vpop.f32.mrb[57].mxu0 }
 0x40b   :  { %v13480_v61 = vpop.f32.mrb[61].mxu1  ;;  %3815 = vst.msk [vmem:[#allocation2 + $0x8] sm:$0x3] %vm878_vm2, %v14709_v5  ;;  %v13509_v24 = vadd.f32 %v13508_v57, %v13507_v56  ;;  %v13510_v28 = vpop.f32.mrb[58].mxu0 }
 0x40c   :  { %v13481_v8 = vadd.f32 %v13480_v61, %v13479_v11  ;;  %v13482_v2 = vpop.f32.mrb[62].mxu1  ;;  %v13511_v33 = vpop.f32.mrb[59].mxu0 }
 0x40d   :  { %v13483_v50 = vpop.f32.mrb[63].mxu1  ;;  %v10212_v43 = vadd.f32 %v13509_v24, %v13475_v21  ;;  %v13512_v13 = vadd.f32 %v13511_v33, %v13510_v28 }
 0x40e   :  { %v13484_v23 = vadd.f32 %v13483_v50, %v13482_v2 }
 0x40f   :  { %v10215_v45 = vadd.f32 %v13512_v13, %v13478_v35 }
 0x411   :  { %v13513_v51 = vpop.f32.mrb[60].mxu0  ;;  %v13485_v25 = vpop.f32.mrb[64].mxu1 }
 0x412   :  { %v13514_v17 = vpop.f32.mrb[61].mxu0  ;;  %v13486_v19 = vpop.f32.mrb[65].mxu1 }
 0x413   :  { %v13515_v44 = vadd.f32 %v13514_v17, %v13513_v51  ;;  %v13516_v55 = vpop.f32.mrb[62].mxu0  ;;  %v13487_v29 = vadd.f32 %v13486_v19, %v13485_v25  ;;  %v13488_v34 = vpop.f32.mrb[66].mxu1 }
 0x414   :  { %v13517_v1 = vpop.f32.mrb[63].mxu0  ;;  %v13489_v5 = vpop.f32.mrb[67].mxu1 }
 0x415   :  { %v10220_v56 = vadd.f32 %v13515_v44, %v13481_v8  ;;  %v13518_v57 = vadd.f32 %v13517_v1, %v13516_v55 }
 0x417   :  { %v10223_v11 = vadd.f32 %v13518_v57, %v13484_v23 }
 0x419   :  { %v13519_v61 = vpop.f32.mrb[64].mxu0 }
 0x41a   :  { %v13520_v12 = vpop.f32.mrb[65].mxu0 }
 0x41b   :  { %v13521_v4 = vadd.f32 %v13520_v12, %v13519_v61  ;;  %v13522_v21 = vpop.f32.mrb[66].mxu0 }
 0x41c   :  { %v13523_v24 = vpop.f32.mrb[67].mxu0 }
 0x41d   :  { %v10228_v28 = vadd.f32 %v13521_v4, %v13487_v29 }
 0x421   :  { %v13541_v35 = vpop.f32.mrb[68].mxu1 }
 0x422   :  { %v13542_v2 = vpop.f32.mrb[69].mxu1  ;;  %v10323_v33 = vpop.f32.mrb[68].mxu0 }
 0x423   :  { %v13543_v50 = vadd.f32 %v13542_v2, %v13541_v35  ;;  %v13544_v13 = vpop.f32.mrb[70].mxu1  ;;  %v13894_v51 = vpop.f32.mrb[69].mxu0 }
 0x424   :  { %v13545_v17 = vpop.f32.mrb[71].mxu1  ;;  %v10326_v25 = vpop.f32.mrb[70].mxu0 }
 0x425   :  { %v10268_v19 = vadd.f32 %v13543_v50, %v10212_v43  ;;  %v13546_v34 = vadd.f32 %v13545_v17, %v13544_v13  ;;  %v13895_v5 = vpop.f32.mrb[71].mxu0 }
 0x427   :  { %v18868_v8 = vadd.f32 %v10323_v33, %v10268_v19  ;;  %v10271_v1 = vadd.f32 %v13546_v34, %v10215_v45  ;;  %v18876_v33 = vadd.f32 %v18816_v40, %v18123_v20  ;;  %v18886_v20 = vadd.f32 %v18846_v10, %v18724_v46  ;;  %v6690_v46 = vpop.permute.xlu0 %6689 }
 0x428   :  { %v8884_v10 = vrot.slane %v18826_v62, 2 }
 0x429   :  { %v18870_v23 = vadd.f32 %v10326_v25, %v10271_v1  ;;  %v13547_v12 = vpop.f32.mrb[72].mxu1 }
 0x42a   :  { %v13548_v44 = vpop.f32.mrb[73].mxu1  ;;  %v10331_v55 = vpop.f32.mrb[72].mxu0 }
 0x42b   :  { %v13549_v4 = vadd.f32 %v13548_v44, %v13547_v12  ;;  %v13550_v29 = vpop.f32.mrb[74].mxu1  ;;  %v13898_v57 = vpop.f32.mrb[73].mxu0  ;;  %v5990_v12 = vrot.slane %v18876_v33, 4 }
 0x42c   :  { %v13551_v61 = vpop.f32.mrb[75].mxu1  ;;  %v10334_v21 = vpop.f32.mrb[74].mxu0  ;;  %v7458_v57 = vrot.slane %v18886_v20, 4 }
 0x42d   :  { %v10276_v24 = vadd.f32 %v13549_v4, %v10220_v56  ;;  %v13552_v35 = vadd.f32 %v13551_v61, %v13550_v29  ;;  %v13899_v2 = vpop.f32.mrb[75].mxu0  ;;  %v8150_v29 = vrot.slane %v18793_v58, 2 }
 0x42e   :  { %v10352_v2 = vrot.slane %v18870_v23, 2 }
 0x42f   :  { %v18872_v51 = vadd.f32 %v10331_v55, %v10276_v24  ;;  %v10279_v43 = vadd.f32 %v13552_v35, %v10223_v11  ;;  %v8898_v55 = vpop.permute.xlu1 %8897  ;;  %v6696_v24 = vpop.permute.xlu0 %6695  ;;  %v18909_v35 = vadd.f32 %v18654_v9, %v17843_v47  ;;  %v5942_v47 = vrot.slane %v18073_v6, 2 }
 0x430   :  { %v18895_v61 = vadd.f32 %v8898_v55, %v18834_v15  ;;  %v4525_v15 = vadd.f32 %v18795_v63, %v18188_v48  ;;  %v18918_v48 = vadd.f32 %v6696_v24, %v18461_v14 }
 0x431   :  { %v10358_v45 = vrot.slane %v18872_v51, 2  ;;  %v18879_v50 = vadd.f32 %v10334_v21, %v10279_v43  ;;  %v13553_v13 = vpop.f32.mrb[76].mxu1  ;;  %v9618_v21 = vrot.slane %v18844_v39, 2 }
 0x432   :  { %v13554_v17 = vpop.f32.mrb[77].mxu1  ;;  %v10339_v25 = vpop.f32.mrb[76].mxu0  ;;  %v6724_v9 = vrot.slane %v18918_v48, 4 }
 0x433   :  { %v10364_v19 = vrot.slane %v18879_v50, 2  ;;  %v13555_v34 = vadd.f32 %v13554_v17, %v13553_v13  ;;  %10359 = vrot.lane.b32.xlu0 %v10358_v45, %s14845_s21  ;;  %v13556_v56 = vpop.f32.mrb[78].mxu1  ;;  %v13902_v5 = vpop.f32.mrb[77].mxu0  ;;  %v19292_v45 = vld [vmem:[#allocation11_spill] sm:$0xff]  ;;  %v5255_v17 = vrot.slane %v18909_v35, 4 }
 0x434   :  { %v13557_v1 = vpop.f32.mrb[79].mxu1  ;;  %v10342_v11 = vpop.f32.mrb[78].mxu0  ;;  %v4501_v13 = vadd.f32 %v18386_v59, %v19292_v45  ;;  %v7410_v59 = vrot.slane %v18673_v36, 2  ;;  %v10346_v56 = vrot.slane %v18868_v8, 2 }
 0x435   :  { %10365 = vrot.lane.b32.xlu1 %v10364_v19, %s14845_s21  ;;  %v10284_v40 = vadd.f32 %v13555_v34, %v10228_v28  ;;  %v13903_v44 = vpop.f32.mrb[79].mxu0  ;;  %v8926_v28 = vrot.slane %v18895_v61, 4  ;;  %v7424_v43 = vpop.permute.xlu0 %7423  ;;  %v8878_v19 = vrot.slane %v18822_v53, 2  ;;  %v4513_v34 = vadd.f32 %v18703_v3, %v18104_v30 }
 0x436   :  { %v18962_v24 = vadd.f32 %v7424_v43, %v18713_v31 }
 0x437   :  { %v18889_v4 = vadd.f32 %v10339_v25, %v10284_v40  ;;  %5991 = vrot.lane.b32.xlu0 %v5990_v12, %s14846_s25 }
 0x438   :  { %v7452_v45 = vrot.slane %v18962_v24, 4 }
 0x439   :  { %8151 = vrot.lane.b32.xlu1 %v8150_v29, %s14845_s21  ;;  %v8164_v63 = vpop.permute.xlu0 %8163 }
 0x43a   :  { %v18925_v25 = vadd.f32 %v8164_v63, %v18802_v0  ;;  %v18939_v0 = vadd.f32 %v18464_v38, %v17833_v49  ;;  %v19293_v38 = vld [vmem:[#allocation18_spill] sm:$0xff] }
 0x43b   :  { %7459 = vrot.lane.b32.xlu0 %v7458_v57, %s14846_s25  ;;  %v18951_v55 = vadd.f32 %v18789_v22, %v19293_v38  ;;  %v19294_v22 = vld [vmem:[#allocation21_spill] sm:$0xff] }
 0x43c   :  { %v8192_v14 = vrot.slane %v18925_v25, 4  ;;  %v5249_v5 = vrot.slane %v18939_v0, 4 }
 0x43d   :  { %8885 = vrot.lane.b32.xlu1 %v8884_v10, %s14845_s21  ;;  %v5984_v10 = vrot.slane %v18951_v55, 4 }
 0x43f   :  { %8927 = vrot.lane.b32.xlu0 %v8926_v28, %s14846_s25  ;;  %v18957_v28 = vadd.f32 %v6690_v46, %v18450_v18  ;;  %v19295_v46 = vld [vmem:[#allocation13_spill] sm:$0xff] }
 0x441   :  { %9619 = vrot.lane.b32.xlu1 %v9618_v21, %s14845_s21 }
 0x443   :  { %4532 = vrot.lane.b32.xlu0 %v4525_v15, %s14848_s19  ;;  %v4519_v15 = vadd.f32 %v18814_v41, %v19294_v22  ;;  %v19296_v41 = vld [vmem:[#allocation22_spill] sm:$0xff]  ;;  %v19303_v22 = vld [vmem:[#allocation7_spill] sm:$0xff] }
 0x444   :  { %v6676_v63 = vrot.slane %v19296_v41, 2 }
 0x445   :  { %10353 = vrot.lane.b32.xlu1 %v10352_v2, %s14845_s21 }
 0x447   :  { %4542 = vrot.lane.b32.xlu0 %v4501_v13, %s14847_s13 }
 0x449   :  { %5256 = vrot.lane.b32.xlu1 %v5255_v17, %s14846_s25  ;;  %v5207_v17 = vrot.slane %v19295_v46, 2 }
 0x44b   :  { %5943 = vrot.lane.b32.xlu0 %v5942_v47, %s14845_s21 }
 0x44d   :  { %6725 = vrot.lane.b32.xlu1 %v6724_v9, %s14846_s25  ;;  %v8144_v9 = vrot.slane %v18791_v42, 2 }
 0x44f   :  { %7411 = vrot.lane.b32.xlu0 %v7410_v59, %s14845_s21 }
 0x451   :  { %8193 = vrot.lane.b32.xlu1 %v8192_v14, %s14846_s25  ;;  %v19297_v14 = vld [vmem:[#allocation14_spill] sm:$0xff] }
 0x453   :  { %8879 = vrot.lane.b32.xlu0 %v8878_v19, %s14845_s21  ;;  %v19298_v19 = vld [vmem:[#allocation23_spill] sm:$0xff] }
 0x455   :  { %4527 = vrot.lane.b32.xlu1 %v4513_v34, %s14848_s19  ;;  %v18996_v34 = vadd.f32 %v19298_v19, %v19297_v14  ;;  %v19304_v19 = vld [vmem:[#allocation16_spill] sm:$0xff] }
 0x457   :  { %10347 = vrot.lane.b32.xlu0 %v10346_v56, %s14845_s21 }
 0x45b   :  { %5250 = vrot.lane.b32.xlu0 %v5249_v5, %s14846_s25  ;;  %v5243_v5 = vrot.slane %v18996_v34, 4 }
 0x46f   :  { %v9632_v1 = vpop.permute.xlu0 %9631 }
 0x473   :  { %v8158_v11 = vpop.permute.xlu0 %8157 }
 0x474   :  { %v18969_v13 = vadd.f32 %v8158_v11, %v18800_v16 }
 0x476   :  { %v8186_v31 = vrot.slane %v18969_v13, 4 }
 0x477   :  { %v8892_v12 = vpop.permute.xlu0 %8891 }
 0x478   :  { %v18976_v43 = vadd.f32 %v8892_v12, %v18831_v26  ;;  %v19299_v12 = vld [vmem:[#allocation17_spill] sm:$0xff] }
 0x47a   :  { %v8920_v16 = vrot.slane %v18976_v43, 4 }
 0x47b   :  { %v9626_v30 = vpop.permute.xlu0 %9625 }
 0x47c   :  { %v18983_v47 = vadd.f32 %v9626_v30, %v18850_v37  ;;  %v9612_v37 = vrot.slane %v18842_v32, 2  ;;  %v19011_v30 = vadd.f32 %v18737_v60, %v19299_v12 }
 0x47e   :  { %v9654_v26 = vrot.slane %v18983_v47, 4 }
 0x4a5   :  { %v10360_v3 = vpop.permute.xlu0 %10359 }
 0x4a6   :  { %v18990_v59 = vadd.f32 %v10360_v3, %v18872_v51  ;;  %v19004_v51 = vadd.f32 %v9632_v1, %v18853_v27  ;;  %v5978_v27 = vrot.slane %v19011_v30, 4 }
 0x4a7   :  { %v10366_v40 = vpop.permute.xlu1 %10365 }
 0x4a8   :  { %v18947_v44 = vadd.f32 %v10366_v40, %v18879_v50  ;;  %v6718_v50 = vrot.slane %v18957_v28, 4  ;;  %v10388_v56 = vrot.slane %v18990_v59, 4  ;;  %v9660_v3 = vrot.slane %v19004_v51, 4 }
 0x4a9   :  { %v5992_v49 = vpop.permute.xlu0 %5991 }
 0x4aa   :  { %v10394_v29 = vrot.slane %v18947_v44, 4  ;;  %v5994_v11 = vadd.f32 %v5992_v49, %v18876_v33  ;;  %v19020_v33 = vadd.f32 %v18820_v52, %v18418_v54  ;;  %v19300_v49 = vld [vmem:[#allocation20_spill] sm:$0xff]  ;;  %v19302_v54 = vld [vmem:[#allocation6_spill] sm:$0xff] }
 0x4ab   :  { %v8152_v38 = vpop.permute.xlu1 %8151  ;;  %v7434_v52 = vrot.slane %v19302_v54, 2 }
 0x4ac   :  { %10395 = vrot.lane.b32.xlu0 %v10394_v29, %s14846_s25  ;;  %v6712_v29 = vrot.slane %v19020_v33, 4 }
 0x4ad   :  { %v7460_v57 = vpop.permute.xlu0 %7459 }
 0x4ae   :  { %v7462_v40 = vadd.f32 %v7460_v57, %v18886_v20  ;;  %v5966_v20 = vrot.slane %v19300_v49, 2  ;;  %v19301_v57 = vld [vmem:[#allocation10_spill] sm:$0xff] }
 0x4af   :  { %v8886_v60 = vpop.permute.xlu1 %8885 }
 0x4b0   :  { %5985 = vrot.lane.b32.xlu0 %v5984_v10, %s14846_s25  ;;  %v19029_v10 = vadd.f32 %v19301_v57, %v18688_v7 }
 0x4b1   :  { %v8928_v21 = vpop.permute.xlu0 %8927 }
 0x4b2   :  { %v8930_v1 = vadd.f32 %v8928_v21, %v18895_v61  ;;  %v7446_v61 = vrot.slane %v19029_v10, 4  ;;  %v19036_v21 = vadd.f32 %v8152_v38, %v18793_v58  ;;  %v10370_v58 = vrot.slane %v18889_v4, 2 }
 0x4b4   :  { %6719 = vrot.lane.b32.xlu0 %v6718_v50, %s14846_s25  ;;  %v9620_v50 = vpop.permute.xlu1 %9619  ;;  %v8180_v7 = vrot.slane %v19036_v21, 4 }
 0x4b5   :  { %v4533_v2 = vpop.permute.xlu0 %4532 }
 0x4b6   :  { %v4535_v18 = vadd.f32 %v4533_v2, %v4519_v15  ;;  %v8902_v15 = vrot.slane %v19303_v22, 2  ;;  %v19043_v2 = vadd.f32 %v8886_v60, %v18826_v62 }
 0x4b8   :  { %7453 = vrot.lane.b32.xlu0 %v7452_v45, %s14846_s25  ;;  %4537 = vrot.lane.b32.xlu1 %v4535_v18, %s14849_s28  ;;  %v10354_v45 = vpop.permute.xlu1 %10353  ;;  %v8914_v18 = vrot.slane %v19043_v2, 4 }
 0x4b9   :  { %v19056_v62 = vadd.f32 %v10354_v45, %v18870_v23 }
 0x4bc   :  { %8187 = vrot.lane.b32.xlu0 %v8186_v31, %s14846_s25  ;;  %5208 = vrot.lane.b32.xlu1 %v5207_v17, %s14845_s21  ;;  %v19050_v17 = vadd.f32 %v9620_v50, %v18844_v39  ;;  %v19308_v50 = vld [vmem:[#allocation19_spill] sm:$0xff] }
 0x4be   :  { %v9648_v31 = vrot.slane %v19050_v17, 4 }
 0x4c0   :  { %8921 = vrot.lane.b32.xlu0 %v8920_v16, %s14846_s25  ;;  %6677 = vrot.lane.b32.xlu1 %v6676_v63, %s14845_s21  ;;  %v5257_v63 = vpop.permute.xlu1 %5256  ;;  %v10382_v16 = vrot.slane %v19056_v62, 4 }
 0x4c1   :  { %v5259_v39 = vadd.f32 %v5257_v63, %v18909_v35  ;;  %v19306_v35 = vld [vmem:[#allocation8_spill] sm:$0xff] }
 0x4c2   :  { %v8168_v12 = vrot.slane %v19306_v35, 2 }
 0x4c4   :  { %9655 = vrot.lane.b32.xlu0 %v9654_v26, %s14846_s25  ;;  %8145 = vrot.lane.b32.xlu1 %v8144_v9, %s14845_s21  ;;  %v6726_v9 = vpop.permute.xlu1 %6725 }
 0x4c5   :  { %v6728_v26 = vadd.f32 %v6726_v9, %v18918_v48  ;;  %v19307_v48 = vld [vmem:[#allocation12_spill] sm:$0xff] }
 0x4c8   :  { %10389 = vrot.lane.b32.xlu0 %v10388_v56, %s14846_s25  ;;  %9613 = vrot.lane.b32.xlu1 %v9612_v37, %s14845_s21  ;;  %v8194_v14 = vpop.permute.xlu1 %8193  ;;  %v5231_v37 = vrot.slane %v19304_v19, 2  ;;  %v4543_v56 = vpop.permute.xlu0 %4542 }
 0x4c9   :  { %v8196_v23 = vadd.f32 %v8194_v14, %v18925_v25 }
 0x4cc   :  { %6001 = vrot.lane.b32.xlu0 %v5994_v11, %s14848_s19  ;;  %5244 = vrot.lane.b32.xlu1 %v5243_v5, %s14846_s25  ;;  %v19305_v5 = vld [vmem:[#allocation24_spill] sm:$0xff] }
 0x4cd   :  { %v6700_v11 = vrot.slane %v19305_v5, 2 }
 0x4d0   :  { %7469 = vrot.lane.b32.xlu0 %v7462_v40, %s14848_s19  ;;  %9661 = vrot.lane.b32.xlu1 %v9660_v3, %s14846_s25  ;;  %v5944_v3 = vpop.permute.xlu0 %5943  ;;  %v9636_v40 = vrot.slane %v19307_v48, 2 }
 0x4d4   :  { %8937 = vrot.lane.b32.xlu0 %v8930_v1, %s14848_s19  ;;  %5979 = vrot.lane.b32.xlu1 %v5978_v27, %s14846_s25  ;;  %v7412_v38 = vpop.permute.xlu0 %7411 }
 0x4d8   :  { %5967 = vrot.lane.b32.xlu0 %v5966_v20, %s14845_s21  ;;  %6713 = vrot.lane.b32.xlu1 %v6712_v29, %s14846_s25  ;;  %v8880_v25 = vpop.permute.xlu0 %8879  ;;  %v19078_v20 = vadd.f32 %v5944_v3, %v18073_v6 }
 0x4d9   :  { %v19091_v6 = vadd.f32 %v8880_v25, %v18822_v53 }
 0x4da   :  { %v5972_v57 = vrot.slane %v19078_v20, 4 }
 0x4dc   :  { %7435 = vrot.lane.b32.xlu0 %v7434_v52, %s14845_s21  ;;  %7447 = vrot.lane.b32.xlu1 %v7446_v61, %s14846_s25  ;;  %v10348_v27 = vpop.permute.xlu0 %10347  ;;  %v19084_v52 = vadd.f32 %v7412_v38, %v18673_v36  ;;  %v4528_v61 = vpop.permute.xlu1 %4527 }
 0x4dd   :  { %v19096_v36 = vadd.f32 %v10348_v27, %v18868_v8 }
 0x4de   :  { %v7440_v45 = vrot.slane %v19084_v52, 4 }
 0x4e0   :  { %8903 = vrot.lane.b32.xlu0 %v8902_v15, %s14845_s21  ;;  %8181 = vrot.lane.b32.xlu1 %v8180_v7, %s14846_s25  ;;  %v19075_v1 = vpop.permute.xlu0 %5250  ;;  %v19309_v15 = vld [vmem:[#allocation25_spill] sm:$0xff] }
 0x4e1   :  { %v4507_v7 = vadd.f32 %v19309_v15, %v19308_v50 }
 0x4e4   :  { %10371 = vrot.lane.b32.xlu0 %v10370_v58, %s14845_s21  ;;  %8915 = vrot.lane.b32.xlu1 %v8914_v18, %s14846_s25  ;;  %v4530_v58 = vadd.f32 %v4528_v61, %v4507_v7  ;;  %v8908_v18 = vrot.slane %v19091_v6, 4 }
 0x4e8   :  { %9649 = vrot.lane.b32.xlu1 %v9648_v31, %s14846_s25 }
 0x4ec   :  { %10383 = vrot.lane.b32.xlu1 %v10382_v16, %s14846_s25 }
 0x4f0   :  { %5266 = vrot.lane.b32.xlu1 %v5259_v39, %s14848_s19  ;;  %v10376_v39 = vrot.slane %v19096_v36, 4 }
 0x4f4   :  { %6735 = vrot.lane.b32.xlu1 %v6728_v26, %s14848_s19  ;;  %v19310_v26 = vld [vmem:[#allocation5_spill] sm:$0xff] }
 0x4f8   :  { %8203 = vrot.lane.b32.xlu1 %v8196_v23, %s14848_s19 }
 0x4fc   :  { %5232 = vrot.lane.b32.xlu1 %v5231_v37, %s14845_s21 }
 0x500   :  { %6701 = vrot.lane.b32.xlu1 %v6700_v11, %s14845_s21 }
 0x504   :  { %8169 = vrot.lane.b32.xlu1 %v8168_v12, %s14845_s21 }
 0x508   :  { %9637 = vrot.lane.b32.xlu1 %v9636_v40, %s14845_s21  ;;  %s10428_s21 = sshll.u32 %s14850_s1, 4  ;;  %s10429_s21 = int_to_ptr.vmem [resolvable:$true] %s10428_s21 }
 0x509   :  { %p14823_p1 = scmp.lt.s32.totalorder %s10429_s21, %s10429_s21 }
 0x51e   :  { %v10396_v60 = vpop.permute.xlu0 %10395 }
 0x51f   :  { %v10398_v29 = vadd.f32 %v10396_v60, %v18947_v44 }
 0x521   :  { %10405 = vrot.lane.b32.xlu0 %v10398_v29, %s14848_s19 }
 0x522   :  { %v5986_v63 = vpop.permute.xlu0 %5985 }
 0x525   :  { %5973 = vrot.lane.b32.xlu0 %v5972_v57, %s14846_s25 }
 0x526   :  { %v19102_v14 = vpop.permute.xlu0 %6719 }
 0x529   :  { %7441 = vrot.lane.b32.xlu0 %v7440_v45, %s14846_s25 }
 0x52a   :  { %v4538_v44 = vpop.permute.xlu1 %4537  ;;  %v7454_v11 = vpop.permute.xlu0 %7453 }
 0x52b   :  { %v4540_v31 = vadd.f32 %v4538_v44, %v4530_v58 }
 0x52d   :  { %v4545_v16 = vadd.f32 %v4543_v56, %v4540_v31  ;;  %8909 = vrot.lane.b32.xlu0 %v8908_v18, %s14846_s25 }
 0x52e   :  { %v5209_v9 = vpop.permute.xlu1 %5208  ;;  %v19105_v56 = vpop.permute.xlu0 %8187 }
 0x52f   :  { %v4546_v53 = vadd.f32 %v4545_v16, %v19310_v26  ;;  %v19108_v38 = vadd.f32 %v5209_v9, %v19295_v46 }
 0x531   :  { %14710 = vtanh.f32 %v4546_v53  ;;  %10377 = vrot.lane.b32.xlu0 %v10376_v39, %s14846_s25  ;;  %v5237_v29 = vrot.slane %v19108_v38, 4 }
 0x532   :  { %v6678_v23 = vpop.permute.xlu1 %6677  ;;  %v8922_v27 = vpop.permute.xlu0 %8921 }
 0x533   :  { %v19114_v57 = vadd.f32 %v6678_v23, %v19296_v41 }
 0x536   :  { %v8146_v37 = vpop.permute.xlu1 %8145  ;;  %v19119_v50 = vpop.permute.xlu0 %9655 }
 0x537   :  { %v19123_v15 = vadd.f32 %v8146_v37, %v18791_v42 }
 0x539   :  { %v8174_v41 = vrot.slane %v19123_v15, 4 }
 0x53a   :  { %v9614_v8 = vpop.permute.xlu1 %9613  ;;  %v19131_v58 = vpop.permute.xlu0 %10389 }
 0x53b   :  { %v14711_v12 = vpop.eup %14710  ;;  %v19128_v45 = vadd.f32 %v9614_v8, %v18842_v32  ;;  %v5988_v8 = vadd.f32 %v5986_v63, %v18951_v55 }
 0x53c   :  { %4549 = vst.msk [vmem:[#allocation2 + $0xa] sm:$0x3] %vm878_vm2, %v14711_v12 }
 0x53d   :  { %v9642_v42 = vrot.slane %v19128_v45, 4 }
 0x53e   :  { %v5245_v3 = vpop.permute.xlu1 %5244  ;;  %v6002_v18 = vpop.permute.xlu0 %6001 }
 0x53f   :  { %v5247_v16 = vadd.f32 %v5245_v3, %v18996_v34  ;;  %v6004_v12 = vadd.f32 %v6002_v18, %v5988_v8 }
 0x542   :  { %v9662_v40 = vpop.permute.xlu1 %9661  ;;  %v7470_v39 = vpop.permute.xlu0 %7469 }
 0x543   :  { %v9664_v25 = vadd.f32 %v9662_v40, %v19004_v51  ;;  %v6706_v51 = vrot.slane %v19114_v57, 4  ;;  %v7456_v40 = vadd.f32 %v7454_v11, %v18962_v24 }
 0x545   :  { %9671 = vrot.lane.b32.xlu1 %v9664_v25, %s14848_s19  ;;  %v7472_v55 = vadd.f32 %v7470_v39, %v7456_v40  ;;  %v6722_v25 = vadd.f32 %v19102_v14, %v18957_v28 }
 0x546   :  { %v5980_v60 = vpop.permute.xlu1 %5979  ;;  %v8938_v34 = vpop.permute.xlu0 %8937 }
 0x547   :  { %v5982_v61 = vadd.f32 %v5980_v60, %v19011_v30  ;;  %v8924_v60 = vadd.f32 %v8922_v27, %v18976_v43 }
 0x549   :  { %5238 = vrot.lane.b32.xlu1 %v5237_v29, %s14846_s25  ;;  %5996 = vrot.lane.b32.xlu0 %v5982_v61, %s14848_s19 }
 0x54a   :  { %v6714_v46 = vpop.permute.xlu1 %6713  ;;  %v5968_v63 = vpop.permute.xlu0 %5967 }
 0x54b   :  { %v6716_v9 = vadd.f32 %v6714_v46, %v19020_v33  ;;  %v5253_v33 = vadd.f32 %v19075_v1, %v18939_v0  ;;  %v8190_v1 = vadd.f32 %v19105_v56, %v18969_v13  ;;  %v5970_v28 = vadd.f32 %v5968_v63, %v19300_v49 }
 0x54d   :  { %6707 = vrot.lane.b32.xlu1 %v6706_v51, %s14846_s25 }
 0x54e   :  { %v7448_v7 = vpop.permute.xlu1 %7447  ;;  %v7436_v11 = vpop.permute.xlu0 %7435 }
 0x54f   :  { %v7450_v30 = vadd.f32 %v7448_v7, %v19029_v10  ;;  %v7438_v27 = vadd.f32 %v7436_v11, %v19302_v54 }
 0x551   :  { %8175 = vrot.lane.b32.xlu1 %v8174_v41, %s14846_s25  ;;  %7464 = vrot.lane.b32.xlu0 %v7450_v30, %s14848_s19 }
 0x552   :  { %v8182_v44 = vpop.permute.xlu1 %8181  ;;  %v8904_v46 = vpop.permute.xlu0 %8903 }
 0x553   :  { %v8184_v23 = vadd.f32 %v8182_v44, %v19036_v21  ;;  %v8906_v13 = vadd.f32 %v8904_v46, %v19303_v22  ;;  %v9658_v44 = vadd.f32 %v19119_v50, %v18983_v47 }
 0x555   :  { %9643 = vrot.lane.b32.xlu1 %v9642_v42, %s14846_s25  ;;  %s14818_s25 = scalar_lea.vmem %s10429_s21, 448 }
 0x556   :  { %v8916_v31 = vpop.permute.xlu1 %8915  ;;  %v10372_v54 = vpop.permute.xlu0 %10371  ;;  %p14819_p0 = scmp.ne.s32.totalorder %s10429_s21, %s14818_s25  ;;  %p14824_p2 = scmp.lt.s32.totalorder %s14818_s25, %s14818_s25 }
 0x557   :  { %v8918_v32 = vadd.f32 %v8916_v31, %v19043_v2  ;;  %v10374_v22 = vadd.f32 %v10372_v54, %v18889_v4 }
 0x558   :  { %p14825_p3 = por %p14824_p2, %p14823_p1 }
 0x559   :  { %5261 = vrot.lane.b32.xlu1 %v5247_v16, %s14848_s19  ;;  %8932 = vrot.lane.b32.xlu0 %v8918_v32, %s14848_s19 }
 0x55a   :  { %v9650_v10 = vpop.permute.xlu1 %9649  ;;  %p14826_p4 = pnand %p14825_p3, %p14819_p0 }
 0x55b   :  { %v9652_v3 = vadd.f32 %v9650_v10, %v19050_v17  ;;  %v8940_v17 = vadd.f32 %v8938_v34, %v8924_v60 }
 0x55d   :  { %6730 = vrot.lane.b32.xlu1 %v6716_v9, %s14848_s19 }
 0x55e   :  { %v10384_v53 = vpop.permute.xlu1 %10383 }
 0x55f   :  { %v10386_v37 = vadd.f32 %v10384_v53, %v19056_v62 }
 0x561   :  { %8198 = vrot.lane.b32.xlu1 %v8184_v23, %s14848_s19  ;;  %10400 = vrot.lane.b32.xlu0 %v10386_v37, %s14848_s19 }
 0x562   :  { %v5267_v2 = vpop.permute.xlu1 %5266 }
 0x563   :  { %v5269_v62 = vadd.f32 %v5267_v2, %v5253_v33 }
 0x565   :  { %9666 = vrot.lane.b32.xlu1 %v9652_v3, %s14848_s19  ;;  %6006 = vrot.lane.b32.xlu0 %v6004_v12, %s14849_s28 }
 0x566   :  { %v6736_v21 = vpop.permute.xlu1 %6735 }
 0x567   :  { %v6738_v24 = vadd.f32 %v6736_v21, %v6722_v25 }
 0x569   :  { %5271 = vrot.lane.b32.xlu1 %v5269_v62, %s14849_s28  ;;  %7474 = vrot.lane.b32.xlu0 %v7472_v55, %s14849_s28 }
 0x56a   :  { %v8204_v0 = vpop.permute.xlu1 %8203 }
 0x56b   :  { %v8206_v14 = vadd.f32 %v8204_v0, %v8190_v1 }
 0x56d   :  { %6740 = vrot.lane.b32.xlu1 %v6738_v24, %s14849_s28  ;;  %8942 = vrot.lane.b32.xlu0 %v8940_v17, %s14849_s28 }
 0x56e   :  { %v5233_v29 = vpop.permute.xlu1 %5232 }
 0x56f   :  { %v5235_v61 = vadd.f32 %v5233_v29, %v19304_v19  ;;  %v10392_v19 = vadd.f32 %v19131_v58, %v18990_v59 }
 0x571   :  { %8208 = vrot.lane.b32.xlu1 %v8206_v14, %s14849_s28  ;;  %6011 = vrot.lane.b32.xlu0 %v5970_v28, %s14847_s13 }
 0x572   :  { %v6702_v43 = vpop.permute.xlu1 %6701 }
 0x573   :  { %v6704_v56 = vadd.f32 %v6702_v43, %v19305_v5 }
 0x575   :  { %5276 = vrot.lane.b32.xlu1 %v5235_v61, %s14847_s13  ;;  %7479 = vrot.lane.b32.xlu0 %v7438_v27, %s14847_s13 }
 0x576   :  { %v8170_v49 = vpop.permute.xlu1 %8169 }
 0x577   :  { %v8172_v51 = vadd.f32 %v8170_v49, %v19306_v35 }
 0x579   :  { %6745 = vrot.lane.b32.xlu1 %v6704_v56, %s14847_s13  ;;  %8947 = vrot.lane.b32.xlu0 %v8906_v13, %s14847_s13 }
 0x57a   :  { %v9638_v30 = vpop.permute.xlu1 %9637 }
 0x57b   :  { %v9640_v59 = vadd.f32 %v9638_v30, %v19307_v48 }
 0x57d   :  { %8213 = vrot.lane.b32.xlu1 %v8172_v51, %s14847_s13 }
 0x593   :  { %v10406_v7 = vpop.permute.xlu0 %10405 }
 0x594   :  { %v10408_v41 = vadd.f32 %v10406_v7, %v10392_v19 }
 0x596   :  { %10410 = vrot.lane.b32.xlu0 %v10408_v41, %s14849_s28 }
 0x597   :  { %v5974_v5 = vpop.permute.xlu0 %5973 }
 0x598   :  { %v5976_v33 = vadd.f32 %v5974_v5, %v19078_v20 }
 0x59a   :  { %10415 = vrot.lane.b32.xlu0 %v10374_v22, %s14847_s13 }
 0x59b   :  { %v7442_v35 = vpop.permute.xlu0 %7441 }
 0x59c   :  { %v7444_v62 = vadd.f32 %v7442_v35, %v19084_v52 }
 0x59f   :  { %v8910_v58 = vpop.permute.xlu0 %8909 }
 0x5a0   :  { %v8912_v1 = vadd.f32 %v8910_v58, %v19091_v6 }
 0x5a3   :  { %v19186_v4 = vpop.permute.xlu0 %10377 }
 0x5b7   :  { %v9672_v42 = vpop.permute.xlu1 %9671 }
 0x5b8   :  { %v9674_v18 = vadd.f32 %v9672_v42, %v9658_v44 }
 0x5ba   :  { %9676 = vrot.lane.b32.xlu1 %v9674_v18, %s14849_s28 }
 0x5bb   :  { %v5239_v31 = vpop.permute.xlu1 %5238  ;;  %v5997_v10 = vpop.permute.xlu0 %5996 }
 0x5bc   :  { %v5999_v55 = vadd.f32 %v5997_v10, %v5976_v33  ;;  %v5241_v63 = vadd.f32 %v5239_v31, %v19108_v38 }
 0x5be   :  { %9681 = vrot.lane.b32.xlu1 %v9640_v59, %s14847_s13 }
 0x5bf   :  { %v6708_v16 = vpop.permute.xlu1 %6707 }
 0x5c0   :  { %v6710_v11 = vadd.f32 %v6708_v16, %v19114_v57  ;;  %v10380_v16 = vadd.f32 %v19186_v4, %v19096_v36 }
 0x5c3   :  { %v8176_v32 = vpop.permute.xlu1 %8175  ;;  %v7465_v39 = vpop.permute.xlu0 %7464 }
 0x5c4   :  { %v7467_v17 = vadd.f32 %v7465_v39, %v7444_v62  ;;  %v8178_v46 = vadd.f32 %v8176_v32, %v19123_v15 }
 0x5c7   :  { %v9644_v9 = vpop.permute.xlu1 %9643 }
 0x5c8   :  { %v9646_v8 = vadd.f32 %v9644_v9, %v19128_v45 }
 0x5cb   :  { %v5262_v53 = vpop.permute.xlu1 %5261  ;;  %v8933_v47 = vpop.permute.xlu0 %8932 }
 0x5cc   :  { %v5264_v45 = vadd.f32 %v5262_v53, %v5241_v63  ;;  %v8935_v14 = vadd.f32 %v8933_v47, %v8912_v1 }
 0x5cf   :  { %v6731_v50 = vpop.permute.xlu1 %6730 }
 0x5d0   :  { %v6733_v52 = vadd.f32 %v6731_v50, %v6710_v11 }
 0x5d3   :  { %v8199_v23 = vpop.permute.xlu1 %8198  ;;  %v19188_v37 = vpop.permute.xlu0 %10400 }
 0x5d4   :  { %v8201_v54 = vadd.f32 %v8199_v23, %v8178_v46  ;;  %v10403_v10 = vadd.f32 %v19188_v37, %v10380_v16 }
 0x5d7   :  { %v9667_v34 = vpop.permute.xlu1 %9666  ;;  %v6007_v48 = vpop.permute.xlu0 %6006 }
 0x5d8   :  { %v19191_v2 = vadd.f32 %v9667_v34, %v9646_v8  ;;  %v6009_v25 = vadd.f32 %v6007_v48, %v5999_v55 }
 0x5db   :  { %v5272_v12 = vpop.permute.xlu1 %5271  ;;  %v7475_v3 = vpop.permute.xlu0 %7474 }
 0x5dc   :  { %v5274_v29 = vadd.f32 %v5272_v12, %v5264_v45  ;;  %v7477_v28 = vadd.f32 %v7475_v3, %v7467_v17 }
 0x5df   :  { %v6741_v40 = vpop.permute.xlu1 %6740  ;;  %v8943_v21 = vpop.permute.xlu0 %8942 }
 0x5e0   :  { %v6743_v13 = vadd.f32 %v6741_v40, %v6733_v52  ;;  %v8945_v56 = vadd.f32 %v8943_v21, %v8935_v14 }
 0x5e3   :  { %v8209_v60 = vpop.permute.xlu1 %8208  ;;  %v6012_v0 = vpop.permute.xlu0 %6011 }
 0x5e4   :  { %v6014_v24 = vadd.f32 %v6012_v0, %v6009_v25  ;;  %v8211_v41 = vadd.f32 %v8209_v60, %v8201_v54 }
 0x5e6   :  { %v6015_v20 = vadd.f32 %v6014_v24, %v19310_v26 }
 0x5e7   :  { %v5277_v43 = vpop.permute.xlu1 %5276  ;;  %v7480_v27 = vpop.permute.xlu0 %7479 }
 0x5e8   :  { %14712 = vtanh.f32 %v6015_v20  ;;  %v5279_v38 = vadd.f32 %v5277_v43, %v5274_v29  ;;  %v7482_v61 = vadd.f32 %v7480_v27, %v7477_v28 }
 0x5ea   :  { %v5280_v49 = vadd.f32 %v5279_v38, %v19310_v26  ;;  %v7483_v6 = vadd.f32 %v7482_v61, %v19310_v26 }
 0x5eb   :  { %v6746_v57 = vpop.permute.xlu1 %6745  ;;  %v8948_v51 = vpop.permute.xlu0 %8947 }
 0x5ec   :  { %14714 = vtanh.f32 %v5280_v49  ;;  %v6748_v19 = vadd.f32 %v6746_v57, %v6743_v13  ;;  %v8950_v7 = vadd.f32 %v8948_v51, %v8945_v56 }
 0x5ed   :  { %14716 = vtanh.f32 %v7483_v6 }
 0x5ee   :  { %v6749_v22 = vadd.f32 %v6748_v19, %v19310_v26  ;;  %v8951_v5 = vadd.f32 %v8950_v7, %v19310_v26 }
 0x5ef   :  { %v8214_v30 = vpop.permute.xlu1 %8213 }
 0x5f0   :  { %14718 = vtanh.f32 %v6749_v22  ;;  %v8216_v15 = vadd.f32 %v8214_v30, %v8211_v41 }
 0x5f1   :  { %14720 = vtanh.f32 %v8951_v5 }
 0x5f2   :  { %v14713_v44 = vpop.eup %14712  ;;  %v8217_v35 = vadd.f32 %v8216_v15, %v19310_v26 }
 0x5f3   :  { %6018 = vst.msk [vmem:[#allocation2 + $0xe] sm:$0x3] %vm878_vm2, %v14713_v44 }
 0x5f4   :  { %14722 = vtanh.f32 %v8217_v35 }
 0x5f6   :  { %v14715_v42 = vpop.eup %14714 }
 0x5f7   :  { %v14717_v18 = vpop.eup %14716  ;;  %5283 = vst.msk [vmem:[#allocation2 + $0xc] sm:$0x3] %vm878_vm2, %v14715_v42 }
 0x5f8   :  { %7486 = vst.msk [vmem:[#allocation2 + $0x12] sm:$0x3] %vm878_vm2, %v14717_v18 }
 0x5fa   :  { %v14719_v31 = vpop.eup %14718 }
 0x5fb   :  { %v14721_v59 = vpop.eup %14720  ;;  %6752 = vst.msk [vmem:[#allocation2 + $0x10] sm:$0x3] %vm878_vm2, %v14719_v31 }
 0x5fc   :  { %8954 = vst.msk [vmem:[#allocation2 + $0x16] sm:$0x3] %vm878_vm2, %v14721_v59 }
 0x5fe   :  { %v14723_v58 = vpop.eup %14722 }
 0x5ff   :  { %8220 = vst.msk [vmem:[#allocation2 + $0x14] sm:$0x3] %vm878_vm2, %v14723_v58 }
 0x608   :  { %v10411_v32 = vpop.permute.xlu0 %10410 }
 0x609   :  { %v10413_v9 = vadd.f32 %v10411_v32, %v10403_v10 }
 0x60c   :  { %v10416_v39 = vpop.permute.xlu0 %10415 }
 0x60d   :  { %v10418_v53 = vadd.f32 %v10416_v39, %v10413_v9 }
 0x60f   :  { %v10419_v47 = vadd.f32 %v10418_v53, %v19310_v26 }
 0x611   :  { %14724 = vtanh.f32 %v10419_v47 }
 0x61b   :  { %v14725_v50 = vpop.eup %14724 }
 0x61c   :  { %10422 = vst.msk [vmem:[#allocation2 + $0x1a] sm:$0x3] %vm878_vm2, %v14725_v50 }
 0x62c   :  { %v9677_v23 = vpop.permute.xlu1 %9676 }
 0x62d   :  { %v9679_v8 = vadd.f32 %v9677_v23, %v19191_v2 }
 0x630   :  { %v9682_v34 = vpop.permute.xlu1 %9681 }
 0x631   :  { %v9684_v48 = vadd.f32 %v9682_v34, %v9679_v8 }
 0x633   :  { %v9685_v12 = vadd.f32 %v9684_v48, %v19310_v26 }
 0x635   :  { %14726 = vtanh.f32 %v9685_v12 }
 0x63f   :  { %v14727_v36 = vpop.eup %14726 }
 0x640   :  { %9688 = vst.msk [vmem:[#allocation2 + $0x18] sm:$0x3] %vm878_vm2, %v14727_v36 }
 0x641   :  { %14829 = shalt.err (!%p14826_p4)
}
 0x642   :  { %s14830_s28 = scalar_lea.hbm %s19234_s3, 448 }
 0x643   :  { %p14831_p5 = scmp.ne.s32.totalorder %s19234_s3, %s14830_s28  ;;  %p14834_p6 = scmp.lt.u32.totalorder %s14830_s28, %s19234_s3 }
 0x645   :  { %p14836_p7 = pnand %p14834_p6, %p14831_p5 }
 0x647   :  { %14839 = shalt.err (!%p14836_p7)
}
 0x648   :  { %s14851_s24 = smov 32   ;;  %s14852_s26 = smov 2  }
 0x649   :  { %10434 = dma.vmem_to_hbm [thread:$0]  %s10429_s21, 448, %s19234_s3, [#allocation3], %s14851_s24, %s14851_s24, %s14852_s26  }
 0x64a   :  { %14840 = dma.done.wait [#allocation3], 448  }
 0x64b   :  { %14841 = vsyncadd [#allocation3], 4294966848 }
 0x64c   :  { %10438 = vsyncpa [#allocation3], 1 }

</bundles_post_ra>
